<compile_context>
chip_gen: v6e
topology: v6e:2x2x1
jax: 0.10.0
libtpu: 0.0.40
codegen_flags: <defaults>
</compile_context>

<pallas_src>
import functools

import jax
import jax.numpy as jnp
from jax import lax
from jax.experimental import pallas as pl
from jax.experimental.pallas import tpu as pltpu


OUT_W = 128  # lane-dense output width; Q-values live in lanes [0, num_actions)


def _round_up(x, m):
    return (x + m - 1) // m * m


def _dueling_kernel(o1_ref, o2_ref,
                    w1a_ref, s1a_ref, b1a_ref,
                    w1b_ref, s1b_ref, b1b_ref,
                    w2a_ref, s2a_ref, b2a_ref,
                    w2b_ref, s2b_ref, b2b_ref,
                    wh1t_ref, wh1b_ref, sh1_ref, bh1_ref,
                    wv2_ref, bv2_ref,
                    wa2_ref, sa2_ref, ba2_ref,
                    q_ref, *, num_actions):
    f32, bf16 = jnp.float32, jnp.bfloat16
    relu = lambda x: jnp.maximum(x, 0.0)

    def qdot(x, w_ref, s_ref):
        # int8 (or bf16) weights -> bf16 (exact for int8), bf16 MXU matmul with
        # f32 accumulation, then fold the per-output-column dequant scale into
        # the small (B, cols) result instead of dequantizing the weight tile.
        acc = jnp.dot(x.astype(bf16), w_ref[...].astype(bf16),
                      preferred_element_type=f32)
        return acc * s_ref[...]

    # --- path 1 (card obs): Linear -> ReLU -> Linear -> ReLU ---
    h1 = relu(qdot(o1_ref[...], w1a_ref, s1a_ref) + b1a_ref[...])
    h1 = relu(qdot(h1, w1b_ref, s1b_ref) + b1b_ref[...])

    # --- path 2 (action obs): Linear -> ReLU -> Linear -> ReLU ---
    h2 = relu(qdot(o2_ref[...], w2a_ref, s2a_ref) + b2a_ref[...])
    h2 = relu(qdot(h2, w2b_ref, s2b_ref) + b2b_ref[...])

    # --- fused value|advantage hidden layer (concat-free):
    #     [h1 | h2] @ [wv1 | wa1] == h1 @ top_rows + h2 @ bottom_rows
    acc = (jnp.dot(h1.astype(bf16), wh1t_ref[...].astype(bf16),
                   preferred_element_type=f32)
           + jnp.dot(h2.astype(bf16), wh1b_ref[...].astype(bf16),
                     preferred_element_type=f32))
    fh = relu(acc * sh1_ref[...] + bh1_ref[...])                 # (B, 1024)
    hidden = fh.shape[1] // 2

    # --- value head: V = fh_value . wv2 + bv2 (VPU mul + XLU lane-reduce) ---
    v = jnp.sum(fh[:, :hidden] * wv2_ref[...], axis=1, keepdims=True) + bv2_ref[...]

    # --- advantage head: lanes [0, num_actions) of a dense 128-lane block ---
    adv = qdot(fh[:, hidden:], wa2_ref, sa2_ref) + ba2_ref[...]  # (B, 128)

    lane = lax.broadcasted_iota(jnp.int32, adv.shape, 1)
    adv_mask = lane < num_actions
    a_max = jnp.max(jnp.where(adv_mask, adv, -jnp.inf), axis=1, keepdims=True)

    # dueling combine, exactly as in the PyTorch forward:
    #   Q = V + (A - 1/|A_i| * A_max)   (element-wise reciprocal of |A_i|)
    abs_a = jnp.where(adv_mask, jnp.abs(adv), 1.0)   # keep padded lanes finite
    q = v + (adv - pl.reciprocal(abs_a, approx=True) * a_max)
    q_ref[...] = jnp.where(adv_mask, q, 0.0)


def dueling_forward(obs1, obs2, kparams, num_actions):
    """obs1: (B, C1, H1, W1), obs2: (B, C2, H2, W2) NCHW -> (B, num_actions) f32."""
    B = obs1.shape[0]
    # bf16 activations: halves activation HBM bytes (the MXU sees bf16 anyway).
    o1 = obs1.reshape(B, -1).astype(jnp.bfloat16)   # nn.Flatten on NCHW
    o2 = obs2.reshape(B, -1).astype(jnp.bfloat16)
    d1, d2 = o1.shape[1], o2.shape[1]

    # Batch tiling: small batches run as one full-array block; large batches
    # pipeline 256-row activation tiles while the int8 weights stay resident.
    if B <= 256:
        block_b = max(8, _round_up(B, 8))
        b_pad = block_b
    else:
        block_b = 256
        b_pad = _round_up(B, block_b)
    if b_pad != B:
        # TODO(synk): for very large ragged batches an in-kernel row mask would
        # avoid this (bf16) pad copy entirely.
        o1 = jnp.pad(o1, ((0, b_pad - B), (0, 0)))
        o2 = jnp.pad(o2, ((0, b_pad - B), (0, 0)))
    num_tiles = b_pad // block_b

    args = (o1, o2,
            kparams["w1a"], kparams["s1a"], kparams["b1a"],
            kparams["w1b"], kparams["s1b"], kparams["b1b"],
            kparams["w2a"], kparams["s2a"], kparams["b2a"],
            kparams["w2b"], kparams["s2b"], kparams["b2b"],
            kparams["wh1t"], kparams["wh1b"], kparams["sh1"], kparams["bh1"],
            kparams["wv2"], kparams["bv2"],
            kparams["wa2"], kparams["sa2"], kparams["ba2"])

    # Megacore split only when there are enough batch tiles: at small B the
    # split would just duplicate the resident-weight fetch into both TCs' VMEM.
    semantics = ("parallel",) if num_tiles >= 8 else ("arbitrary",)

    act_spec = lambda cols: pl.BlockSpec((block_b, cols), lambda i: (i, 0))

    def run(single_buffer_weights):
        if single_buffer_weights:
            # Resident weights (constant index_map) are fetched exactly once:
            # single-buffer them instead of the default double buffering.
            res_spec = lambda a: pl.BlockSpec(a.shape, lambda i: (0, 0),
                                              pipeline_mode=pl.Buffered(1))
        else:
            res_spec = lambda a: pl.BlockSpec(a.shape, lambda i: (0, 0))
        in_specs = [act_spec(d1), act_spec(d2)] + [res_spec(a) for a in args[2:]]
        return pl.pallas_call(
            functools.partial(_dueling_kernel, num_actions=num_actions),
            out_shape=jax.ShapeDtypeStruct((b_pad, OUT_W), jnp.float32),
            grid=(num_tiles,),
            in_specs=in_specs,
            out_specs=pl.BlockSpec((block_b, OUT_W), lambda i: (i, 0)),
            compiler_params=pltpu.CompilerParams(
                dimension_semantics=semantics,
                vmem_limit_bytes=32 * 1024 * 1024),
        )(*args)

    try:
        out = run(single_buffer_weights=True)
    except Exception:
        # jax build without pipeline_mode support on TPU pallas_call: fall back
        # to default double-buffered resident weights (still well within VMEM).
        out = run(single_buffer_weights=False)

    return out[:B, :num_actions]


def init_params(key, input_dim1, input_dim2, num_actions, hidden=512):
    """Matches Model.initialize_weights: W ~ N(0, 0.01), bias = 0.
    Weights stored transposed vs torch, i.e. (in_features, out_features)."""
    ks = jax.random.split(key, 8)
    n = lambda k, shp: (0.01 * jax.random.normal(k, shp)).astype(jnp.float32)
    z = lambda cols: jnp.zeros((1, cols), jnp.float32)
    return {
        "w1a": n(ks[0], (input_dim1, hidden)),  "b1a": z(hidden),
        "w1b": n(ks[1], (hidden, hidden)),      "b1b": z(hidden),
        "w2a": n(ks[2], (input_dim2, hidden)),  "b2a": z(hidden),
        "w2b": n(ks[3], (hidden, hidden)),      "b2b": z(hidden),
        "wv1": n(ks[4], (2 * hidden, hidden)),  "bv1": z(hidden),
        "wv2": n(ks[5], (hidden, 1)),           "bv2": z(1),
        "wa1": n(ks[6], (2 * hidden, hidden)),  "ba1": z(hidden),
        "wa2": n(ks[7], (hidden, num_actions)), "ba2": z(num_actions),
    }


def _quantize_per_column(w, quantize):
    """Symmetric per-output-column int8 quantization: w ~= q * scale."""
    if not quantize:
        return w.astype(jnp.bfloat16), jnp.ones((1, w.shape[1]), jnp.float32)
    amax = jnp.max(jnp.abs(w), axis=0, keepdims=True)
    scale = jnp.maximum(amax, 1e-12) / 127.0
    q = jnp.clip(jnp.round(w / scale), -127, 127).astype(jnp.int8)
    return q, scale.astype(jnp.float32)


def prepare_kernel_params(params, num_actions, hidden=512, quantize=True):
    """Build the fused / int8-quantized weights the Pallas kernel consumes."""
    f32 = jnp.float32
    # Fused V/A hidden layer: columns = [value_hidden(512) | adv_hidden(512)],
    # split by rows so comb = [h1|h2] never has to be materialized.
    wh1 = jnp.concatenate([params["wv1"], params["wa1"]], axis=1)   # (1024, 1024)
    bh1 = jnp.concatenate([params["bv1"], params["ba1"]], axis=1)   # (1, 1024)
    qh1, sh1 = _quantize_per_column(wh1, quantize)
    # Advantage output block, padded to a dense 128-lane store
    # (lanes [0, num_actions) = advantages, remaining lanes = 0).
    wa2 = jnp.zeros((hidden, OUT_W), f32).at[:, :num_actions].set(params["wa2"])
    ba2 = jnp.zeros((1, OUT_W), f32).at[:, :num_actions].set(params["ba2"])
    qa2, sa2 = _quantize_per_column(wa2, quantize)

    q1a, s1a = _quantize_per_column(params["w1a"], quantize)
    q1b, s1b = _quantize_per_column(params["w1b"], quantize)
    q2a, s2a = _quantize_per_column(params["w2a"], quantize)
    q2b, s2b = _quantize_per_column(params["w2b"], quantize)

    return {
        "w1a": q1a, "s1a": s1a, "b1a": params["b1a"],
        "w1b": q1b, "s1b": s1b, "b1b": params["b1b"],
        "w2a": q2a, "s2a": s2a, "b2a": params["b2a"],
        "w2b": q2b, "s2b": s2b, "b2b": params["b2b"],
        "wh1t": qh1[:hidden], "wh1b": qh1[hidden:], "sh1": sh1, "bh1": bh1,
        # Value output row: tiny, kept in f32; V = fh_value . wv2 + bv2 is
        # computed in-kernel via multiply + lane-reduce instead of an MXU dot.
        "wv2": params["wv2"].reshape(1, hidden).astype(f32),
        "bv2": params["bv2"].reshape(1, 1).astype(f32),
        "wa2": qa2, "sa2": sa2, "ba2": ba2,
    }


def reference_forward(obs1, obs2, kparams, num_actions):
    """Pure-JAX reference mirroring the kernel's math (same int8 weights, same
    per-column scales, bf16 MXU inputs, f32 accumulation) so the comparison
    isolates the Pallas implementation; the intended deltas are reduction order
    and the approximate EUP reciprocal in the dueling combine."""
    f32, bf16 = jnp.float32, jnp.bfloat16
    B = obs1.shape[0]
    o1 = obs1.reshape(B, -1).astype(bf16)
    o2 = obs2.reshape(B, -1).astype(bf16)
    relu = lambda x: jnp.maximum(x, 0.0)
    qdot = lambda x, w, s: jnp.dot(x.astype(bf16), w.astype(bf16),
                                   preferred_element_type=f32) * s
    h1 = relu(qdot(o1, kparams["w1a"], kparams["s1a"]) + kparams["b1a"])
    h1 = relu(qdot(h1, kparams["w1b"], kparams["s1b"]) + kparams["b1b"])
    h2 = relu(qdot(o2, kparams["w2a"], kparams["s2a"]) + kparams["b2a"])
    h2 = relu(qdot(h2, kparams["w2b"], kparams["s2b"]) + kparams["b2b"])
    acc = (jnp.dot(h1.astype(bf16), kparams["wh1t"].astype(bf16),
                   preferred_element_type=f32)
           + jnp.dot(h2.astype(bf16), kparams["wh1b"].astype(bf16),
                     preferred_element_type=f32))
    fh = relu(acc * kparams["sh1"] + kparams["bh1"])
    hidden = fh.shape[1] // 2
    v = jnp.sum(fh[:, :hidden] * kparams["wv2"], axis=1, keepdims=True) + kparams["bv2"]
    adv = (qdot(fh[:, hidden:], kparams["wa2"], kparams["sa2"])
           + kparams["ba2"])[:, :num_actions]
    a_max = jnp.max(adv, axis=1, keepdims=True)
    return v + (adv - (1.0 / jnp.abs(adv)) * a_max)


if __name__ == "__main__":
    # Shapes consistent with the module's forward:
    #   card_obs_shape   = (6, 4, 4) -> input_dim1 = 96
    #   action_obs_shape = (4, 4, 4) -> input_dim2 = 64
    #   num_actions = 8, batch = 2
    card_obs_shape = (6, 4, 4)
    action_obs_shape = (4, 4, 4)
    num_actions = 8
    B = 2

    input_dim1 = card_obs_shape[0] * card_obs_shape[1] * card_obs_shape[2]
    input_dim2 = action_obs_shape[0] * action_obs_shape[1] * action_obs_shape[2]

    key = jax.random.PRNGKey(0)
    k_obs1, k_obs2, k_params = jax.random.split(key, 3)

    obs1 = jax.random.normal(k_obs1, (B,) + card_obs_shape, dtype=jnp.float32)
    obs2 = jax.random.normal(k_obs2, (B,) + action_obs_shape, dtype=jnp.float32)

    params = init_params(k_params, input_dim1, input_dim2, num_actions)
    kparams = prepare_kernel_params(params, num_actions)

    q = dueling_forward(obs1, obs2, kparams, num_actions)
    q = jax.block_until_ready(q)
    assert q.shape == (B, num_actions)

    q_ref = reference_forward(obs1, obs2, kparams, num_actions)
    # int8 weights + bf16 activations + approx 1/|A| in the dueling combine:
    # compare against a reference that uses the SAME quantized weights.
    assert jnp.allclose(q, q_ref, rtol=3e-2, atol=1e-3), (
        f"mismatch vs. JAX reference: max abs diff {jnp.max(jnp.abs(q - q_ref))}")

    # TODO(synk): the Adam optimizer / training step of the original module is
    # not part of forward() and is not implemented here.
    print("KERNEL_OK")
</pallas_src>

<mosaic_0001>
module attributes {stable_mosaic.version = 11 : i64} {
  func.func @_dueling_kernel(%arg0: i32, %arg1: memref<8x96xbf16, #tpu.memory_space<vmem>>, %arg2: memref<8x64xbf16, #tpu.memory_space<vmem>>, %arg3: memref<96x512xi8, #tpu.memory_space<vmem>>, %arg4: memref<1x512xf32, #tpu.memory_space<vmem>>, %arg5: memref<1x512xf32, #tpu.memory_space<vmem>>, %arg6: memref<512x512xi8, #tpu.memory_space<vmem>>, %arg7: memref<1x512xf32, #tpu.memory_space<vmem>>, %arg8: memref<1x512xf32, #tpu.memory_space<vmem>>, %arg9: memref<64x512xi8, #tpu.memory_space<vmem>>, %arg10: memref<1x512xf32, #tpu.memory_space<vmem>>, %arg11: memref<1x512xf32, #tpu.memory_space<vmem>>, %arg12: memref<512x512xi8, #tpu.memory_space<vmem>>, %arg13: memref<1x512xf32, #tpu.memory_space<vmem>>, %arg14: memref<1x512xf32, #tpu.memory_space<vmem>>, %arg15: memref<512x1024xi8, #tpu.memory_space<vmem>>, %arg16: memref<512x1024xi8, #tpu.memory_space<vmem>>, %arg17: memref<1x1024xf32, #tpu.memory_space<vmem>>, %arg18: memref<1x1024xf32, #tpu.memory_space<vmem>>, %arg19: memref<1x512xf32, #tpu.memory_space<vmem>>, %arg20: memref<1x1xf32, #tpu.memory_space<vmem>>, %arg21: memref<512x128xi8, #tpu.memory_space<vmem>>, %arg22: memref<1x128xf32, #tpu.memory_space<vmem>>, %arg23: memref<1x128xf32, #tpu.memory_space<vmem>>, %arg24: memref<8x128xf32, #tpu.memory_space<vmem>>) attributes {dimension_semantics = [#tpu.dimension_semantics<arbitrary>], iteration_bounds = array<i64: 1>, scalar_prefetch = 0 : i64, scratch_operands = 0 : i64, tpu.core_type = #tpu.core_type<tc>, window_params = [{transform_indices = @transform_0, window_bounds = array<i64: 8, 96>}, {transform_indices = @transform_1, window_bounds = array<i64: 8, 64>}, {pipeline_mode = #tpu.pipeline_mode<synchronous>, transform_indices = @transform_2, window_bounds = array<i64: 96, 512>}, {pipeline_mode = #tpu.pipeline_mode<synchronous>, transform_indices = @transform_3, window_bounds = array<i64: 1, 512>}, {pipeline_mode = #tpu.pipeline_mode<synchronous>, transform_indices = @transform_4, window_bounds = array<i64: 1, 512>}, {pipeline_mode = #tpu.pipeline_mode<synchronous>, transform_indices = @transform_5, window_bounds = array<i64: 512, 512>}, {pipeline_mode = #tpu.pipeline_mode<synchronous>, transform_indices = @transform_6, window_bounds = array<i64: 1, 512>}, {pipeline_mode = #tpu.pipeline_mode<synchronous>, transform_indices = @transform_7, window_bounds = array<i64: 1, 512>}, {pipeline_mode = #tpu.pipeline_mode<synchronous>, transform_indices = @transform_8, window_bounds = array<i64: 64, 512>}, {pipeline_mode = #tpu.pipeline_mode<synchronous>, transform_indices = @transform_9, window_bounds = array<i64: 1, 512>}, {pipeline_mode = #tpu.pipeline_mode<synchronous>, transform_indices = @transform_10, window_bounds = array<i64: 1, 512>}, {pipeline_mode = #tpu.pipeline_mode<synchronous>, transform_indices = @transform_11, window_bounds = array<i64: 512, 512>}, {pipeline_mode = #tpu.pipeline_mode<synchronous>, transform_indices = @transform_12, window_bounds = array<i64: 1, 512>}, {pipeline_mode = #tpu.pipeline_mode<synchronous>, transform_indices = @transform_13, window_bounds = array<i64: 1, 512>}, {pipeline_mode = #tpu.pipeline_mode<synchronous>, transform_indices = @transform_14, window_bounds = array<i64: 512, 1024>}, {pipeline_mode = #tpu.pipeline_mode<synchronous>, transform_indices = @transform_15, window_bounds = array<i64: 512, 1024>}, {pipeline_mode = #tpu.pipeline_mode<synchronous>, transform_indices = @transform_16, window_bounds = array<i64: 1, 1024>}, {pipeline_mode = #tpu.pipeline_mode<synchronous>, transform_indices = @transform_17, window_bounds = array<i64: 1, 1024>}, {pipeline_mode = #tpu.pipeline_mode<synchronous>, transform_indices = @transform_18, window_bounds = array<i64: 1, 512>}, {pipeline_mode = #tpu.pipeline_mode<synchronous>, transform_indices = @transform_19, window_bounds = array<i64: 1, 1>}, {pipeline_mode = #tpu.pipeline_mode<synchronous>, transform_indices = @transform_20, window_bounds = array<i64: 512, 128>}, {pipeline_mode = #tpu.pipeline_mode<synchronous>, transform_indices = @transform_21, window_bounds = array<i64: 1, 128>}, {pipeline_mode = #tpu.pipeline_mode<synchronous>, transform_indices = @transform_22, window_bounds = array<i64: 1, 128>}, {transform_indices = @transform_23, window_bounds = array<i64: 8, 128>}]} {
    %c0 = arith.constant 0 : index
    %c0_0 = arith.constant 0 : index
    %0 = vector.load %arg1[%c0, %c0_0] : memref<8x96xbf16, #tpu.memory_space<vmem>>, vector<8x96xbf16>
    %c0_1 = arith.constant 0 : index
    %c0_2 = arith.constant 0 : index
    %1 = vector.load %arg3[%c0_1, %c0_2] : memref<96x512xi8, #tpu.memory_space<vmem>>, vector<96x512xi8>
    %2 = arith.sitofp %1 : vector<96x512xi8> to vector<96x512xbf16>
    %cst = arith.constant dense<0.000000e+00> : vector<8x512xf32>
    %3 = tpu.matmul %0, %2, %cst {dimension_numbers = #tpu.dot_dimension_numbers<[1], [0], [0], [1], [0, 0, 1, 1], [], []>} : vector<8x96xbf16>, vector<96x512xbf16>, vector<8x512xf32> -> vector<8x512xf32>
    %c0_3 = arith.constant 0 : index
    %c0_4 = arith.constant 0 : index
    %4 = vector.load %arg4[%c0_3, %c0_4] : memref<1x512xf32, #tpu.memory_space<vmem>>, vector<1x512xf32>
    %5 = vector.broadcast %4 : vector<1x512xf32> to vector<8x512xf32>
    %6 = arith.mulf %3, %5 : vector<8x512xf32>
    %c0_5 = arith.constant 0 : index
    %c0_6 = arith.constant 0 : index
    %7 = vector.load %arg5[%c0_5, %c0_6] : memref<1x512xf32, #tpu.memory_space<vmem>>, vector<1x512xf32>
    %8 = vector.broadcast %7 : vector<1x512xf32> to vector<8x512xf32>
    %9 = arith.addf %6, %8 : vector<8x512xf32>
    %cst_7 = arith.constant 0.000000e+00 : f32
    %10 = vector.broadcast %cst_7 : f32 to vector<8x512xf32>
    %11 = arith.maximumf %9, %10 : vector<8x512xf32>
    %12 = arith.truncf %11 : vector<8x512xf32> to vector<8x512xbf16>
    %c0_8 = arith.constant 0 : index
    %c0_9 = arith.constant 0 : index
    %13 = vector.load %arg6[%c0_8, %c0_9] : memref<512x512xi8, #tpu.memory_space<vmem>>, vector<512x512xi8>
    %14 = arith.sitofp %13 : vector<512x512xi8> to vector<512x512xbf16>
    %cst_10 = arith.constant dense<0.000000e+00> : vector<8x512xf32>
    %15 = tpu.matmul %12, %14, %cst_10 {dimension_numbers = #tpu.dot_dimension_numbers<[1], [0], [0], [1], [0, 0, 1, 1], [], []>} : vector<8x512xbf16>, vector<512x512xbf16>, vector<8x512xf32> -> vector<8x512xf32>
    %c0_11 = arith.constant 0 : index
    %c0_12 = arith.constant 0 : index
    %16 = vector.load %arg7[%c0_11, %c0_12] : memref<1x512xf32, #tpu.memory_space<vmem>>, vector<1x512xf32>
    %17 = vector.broadcast %16 : vector<1x512xf32> to vector<8x512xf32>
    %18 = arith.mulf %15, %17 : vector<8x512xf32>
    %c0_13 = arith.constant 0 : index
    %c0_14 = arith.constant 0 : index
    %19 = vector.load %arg8[%c0_13, %c0_14] : memref<1x512xf32, #tpu.memory_space<vmem>>, vector<1x512xf32>
    %20 = vector.broadcast %19 : vector<1x512xf32> to vector<8x512xf32>
    %21 = arith.addf %18, %20 : vector<8x512xf32>
    %cst_15 = arith.constant 0.000000e+00 : f32
    %22 = vector.broadcast %cst_15 : f32 to vector<8x512xf32>
    %23 = arith.maximumf %21, %22 : vector<8x512xf32>
    %c0_16 = arith.constant 0 : index
    %c0_17 = arith.constant 0 : index
    %24 = vector.load %arg2[%c0_16, %c0_17] : memref<8x64xbf16, #tpu.memory_space<vmem>>, vector<8x64xbf16>
    %c0_18 = arith.constant 0 : index
    %c0_19 = arith.constant 0 : index
    %25 = vector.load %arg9[%c0_18, %c0_19] : memref<64x512xi8, #tpu.memory_space<vmem>>, vector<64x512xi8>
    %26 = arith.sitofp %25 : vector<64x512xi8> to vector<64x512xbf16>
    %cst_20 = arith.constant dense<0.000000e+00> : vector<8x512xf32>
    %27 = tpu.matmul %24, %26, %cst_20 {dimension_numbers = #tpu.dot_dimension_numbers<[1], [0], [0], [1], [0, 0, 1, 1], [], []>} : vector<8x64xbf16>, vector<64x512xbf16>, vector<8x512xf32> -> vector<8x512xf32>
    %c0_21 = arith.constant 0 : index
    %c0_22 = arith.constant 0 : index
    %28 = vector.load %arg10[%c0_21, %c0_22] : memref<1x512xf32, #tpu.memory_space<vmem>>, vector<1x512xf32>
    %29 = vector.broadcast %28 : vector<1x512xf32> to vector<8x512xf32>
    %30 = arith.mulf %27, %29 : vector<8x512xf32>
    %c0_23 = arith.constant 0 : index
    %c0_24 = arith.constant 0 : index
    %31 = vector.load %arg11[%c0_23, %c0_24] : memref<1x512xf32, #tpu.memory_space<vmem>>, vector<1x512xf32>
    %32 = vector.broadcast %31 : vector<1x512xf32> to vector<8x512xf32>
    %33 = arith.addf %30, %32 : vector<8x512xf32>
    %cst_25 = arith.constant 0.000000e+00 : f32
    %34 = vector.broadcast %cst_25 : f32 to vector<8x512xf32>
    %35 = arith.maximumf %33, %34 : vector<8x512xf32>
    %36 = arith.truncf %35 : vector<8x512xf32> to vector<8x512xbf16>
    %c0_26 = arith.constant 0 : index
    %c0_27 = arith.constant 0 : index
    %37 = vector.load %arg12[%c0_26, %c0_27] : memref<512x512xi8, #tpu.memory_space<vmem>>, vector<512x512xi8>
    %38 = arith.sitofp %37 : vector<512x512xi8> to vector<512x512xbf16>
    %cst_28 = arith.constant dense<0.000000e+00> : vector<8x512xf32>
    %39 = tpu.matmul %36, %38, %cst_28 {dimension_numbers = #tpu.dot_dimension_numbers<[1], [0], [0], [1], [0, 0, 1, 1], [], []>} : vector<8x512xbf16>, vector<512x512xbf16>, vector<8x512xf32> -> vector<8x512xf32>
    %c0_29 = arith.constant 0 : index
    %c0_30 = arith.constant 0 : index
    %40 = vector.load %arg13[%c0_29, %c0_30] : memref<1x512xf32, #tpu.memory_space<vmem>>, vector<1x512xf32>
    %41 = vector.broadcast %40 : vector<1x512xf32> to vector<8x512xf32>
    %42 = arith.mulf %39, %41 : vector<8x512xf32>
    %c0_31 = arith.constant 0 : index
    %c0_32 = arith.constant 0 : index
    %43 = vector.load %arg14[%c0_31, %c0_32] : memref<1x512xf32, #tpu.memory_space<vmem>>, vector<1x512xf32>
    %44 = vector.broadcast %43 : vector<1x512xf32> to vector<8x512xf32>
    %45 = arith.addf %42, %44 : vector<8x512xf32>
    %cst_33 = arith.constant 0.000000e+00 : f32
    %46 = vector.broadcast %cst_33 : f32 to vector<8x512xf32>
    %47 = arith.maximumf %45, %46 : vector<8x512xf32>
    %48 = arith.truncf %23 : vector<8x512xf32> to vector<8x512xbf16>
    %c0_34 = arith.constant 0 : index
    %c0_35 = arith.constant 0 : index
    %49 = vector.load %arg15[%c0_34, %c0_35] : memref<512x1024xi8, #tpu.memory_space<vmem>>, vector<512x1024xi8>
    %50 = arith.sitofp %49 : vector<512x1024xi8> to vector<512x1024xbf16>
    %cst_36 = arith.constant dense<0.000000e+00> : vector<8x1024xf32>
    %51 = tpu.matmul %48, %50, %cst_36 {dimension_numbers = #tpu.dot_dimension_numbers<[1], [0], [0], [1], [0, 0, 1, 1], [], []>} : vector<8x512xbf16>, vector<512x1024xbf16>, vector<8x1024xf32> -> vector<8x1024xf32>
    %52 = arith.truncf %47 : vector<8x512xf32> to vector<8x512xbf16>
    %c0_37 = arith.constant 0 : index
    %c0_38 = arith.constant 0 : index
    %53 = vector.load %arg16[%c0_37, %c0_38] : memref<512x1024xi8, #tpu.memory_space<vmem>>, vector<512x1024xi8>
    %54 = arith.sitofp %53 : vector<512x1024xi8> to vector<512x1024xbf16>
    %cst_39 = arith.constant dense<0.000000e+00> : vector<8x1024xf32>
    %55 = tpu.matmul %52, %54, %cst_39 {dimension_numbers = #tpu.dot_dimension_numbers<[1], [0], [0], [1], [0, 0, 1, 1], [], []>} : vector<8x512xbf16>, vector<512x1024xbf16>, vector<8x1024xf32> -> vector<8x1024xf32>
    %56 = arith.addf %51, %55 : vector<8x1024xf32>
    %c0_40 = arith.constant 0 : index
    %c0_41 = arith.constant 0 : index
    %57 = vector.load %arg17[%c0_40, %c0_41] : memref<1x1024xf32, #tpu.memory_space<vmem>>, vector<1x1024xf32>
    %58 = vector.broadcast %57 : vector<1x1024xf32> to vector<8x1024xf32>
    %59 = arith.mulf %56, %58 : vector<8x1024xf32>
    %c0_42 = arith.constant 0 : index
    %c0_43 = arith.constant 0 : index
    %60 = vector.load %arg18[%c0_42, %c0_43] : memref<1x1024xf32, #tpu.memory_space<vmem>>, vector<1x1024xf32>
    %61 = vector.broadcast %60 : vector<1x1024xf32> to vector<8x1024xf32>
    %62 = arith.addf %59, %61 : vector<8x1024xf32>
    %cst_44 = arith.constant 0.000000e+00 : f32
    %63 = vector.broadcast %cst_44 : f32 to vector<8x1024xf32>
    %64 = arith.maximumf %62, %63 : vector<8x1024xf32>
    %65 = vector.extract_strided_slice %64 {offsets = [0, 0], sizes = [8, 512], strides = [1, 1]} : vector<8x1024xf32> to vector<8x512xf32>
    %c0_45 = arith.constant 0 : index
    %c0_46 = arith.constant 0 : index
    %66 = vector.load %arg19[%c0_45, %c0_46] : memref<1x512xf32, #tpu.memory_space<vmem>>, vector<1x512xf32>
    %67 = vector.broadcast %66 : vector<1x512xf32> to vector<8x512xf32>
    %68 = arith.mulf %65, %67 : vector<8x512xf32>
    %cst_47 = arith.constant dense<0.000000e+00> : vector<8xf32>
    %69 = vector.multi_reduction <add>, %68, %cst_47 [1] : vector<8x512xf32> to vector<8xf32>
    %70 = vector.shape_cast %69 : vector<8xf32> to vector<8x1xf32>
    %c0_48 = arith.constant 0 : index
    %c0_49 = arith.constant 0 : index
    %71 = vector.load %arg20[%c0_48, %c0_49] : memref<1x1xf32, #tpu.memory_space<vmem>>, vector<1x1xf32>
    %72 = vector.broadcast %71 : vector<1x1xf32> to vector<8x1xf32>
    %73 = arith.addf %70, %72 : vector<8x1xf32>
    %74 = vector.extract_strided_slice %64 {offsets = [0, 512], sizes = [8, 512], strides = [1, 1]} : vector<8x1024xf32> to vector<8x512xf32>
    %75 = arith.truncf %74 : vector<8x512xf32> to vector<8x512xbf16>
    %c0_50 = arith.constant 0 : index
    %c0_51 = arith.constant 0 : index
    %76 = vector.load %arg21[%c0_50, %c0_51] : memref<512x128xi8, #tpu.memory_space<vmem>>, vector<512x128xi8>
    %77 = arith.sitofp %76 : vector<512x128xi8> to vector<512x128xbf16>
    %cst_52 = arith.constant dense<0.000000e+00> : vector<8x128xf32>
    %78 = tpu.matmul %75, %77, %cst_52 {dimension_numbers = #tpu.dot_dimension_numbers<[1], [0], [0], [1], [0, 0, 1, 1], [], []>} : vector<8x512xbf16>, vector<512x128xbf16>, vector<8x128xf32> -> vector<8x128xf32>
    %c0_53 = arith.constant 0 : index
    %c0_54 = arith.constant 0 : index
    %79 = vector.load %arg22[%c0_53, %c0_54] : memref<1x128xf32, #tpu.memory_space<vmem>>, vector<1x128xf32>
    %80 = vector.broadcast %79 : vector<1x128xf32> to vector<8x128xf32>
    %81 = arith.mulf %78, %80 : vector<8x128xf32>
    %c0_55 = arith.constant 0 : index
    %c0_56 = arith.constant 0 : index
    %82 = vector.load %arg23[%c0_55, %c0_56] : memref<1x128xf32, #tpu.memory_space<vmem>>, vector<1x128xf32>
    %83 = vector.broadcast %82 : vector<1x128xf32> to vector<8x128xf32>
    %84 = arith.addf %81, %83 : vector<8x128xf32>
    %85 = tpu.iota {dimensions = array<i32: 1>} : vector<8x128xi32>
    %c8_i32 = arith.constant 8 : i32
    %86 = vector.broadcast %c8_i32 : i32 to vector<8x128xi32>
    %87 = arith.cmpi slt, %85, %86 : vector<8x128xi32>
    %cst_57 = arith.constant 0xFF800000 : f32
    %88 = vector.broadcast %cst_57 : f32 to vector<8x128xf32>
    %89 = arith.select %87, %84, %88 : vector<8x128xi1>, vector<8x128xf32>
    %cst_58 = arith.constant dense<0xFF800000> : vector<8xf32>
    %90 = vector.multi_reduction <maximumf>, %89, %cst_58 [1] : vector<8x128xf32> to vector<8xf32>
    %91 = vector.shape_cast %90 : vector<8xf32> to vector<8x1xf32>
    %92 = math.absf %84 : vector<8x128xf32>
    %cst_59 = arith.constant 1.000000e+00 : f32
    %93 = vector.broadcast %cst_59 : f32 to vector<8x128xf32>
    %94 = arith.select %87, %92, %93 : vector<8x128xi1>, vector<8x128xf32>
    %95 = tpu.reciprocal %94 {approx = true} : vector<8x128xf32> -> vector<8x128xf32>
    %96 = vector.broadcast %91 : vector<8x1xf32> to vector<8x128xf32>
    %97 = arith.mulf %95, %96 : vector<8x128xf32>
    %98 = arith.subf %84, %97 : vector<8x128xf32>
    %99 = vector.broadcast %73 : vector<8x1xf32> to vector<8x128xf32>
    %100 = arith.addf %99, %98 : vector<8x128xf32>
    %cst_60 = arith.constant 0.000000e+00 : f32
    %101 = vector.broadcast %cst_60 : f32 to vector<8x128xf32>
    %102 = arith.select %87, %100, %101 : vector<8x128xi1>, vector<8x128xf32>
    %c0_61 = arith.constant 0 : index
    %c0_62 = arith.constant 0 : index
    %103 = vector.load %arg24[%c0_61, %c0_62] : memref<8x128xf32, #tpu.memory_space<vmem>>, vector<8x128xf32>
    tpu.vector_store %arg24[%c0_61, %c0_62], %102 {strides = array<i32>} : memref<8x128xf32, #tpu.memory_space<vmem>>, vector<8x128xf32>,
    return
  }
  func.func @transform_0(%arg0: i32) -> (i32, i32) {
    %c0_i32 = arith.constant 0 : i32
    %c0_i32_0 = arith.constant 0 : i32
    return %arg0, %c0_i32 : i32, i32
  }
  func.func @transform_1(%arg0: i32) -> (i32, i32) {
    %c0_i32 = arith.constant 0 : i32
    %c0_i32_0 = arith.constant 0 : i32
    return %arg0, %c0_i32 : i32, i32
  }
  func.func @transform_2(%arg0: i32) -> (i32, i32) {
    %c0_i32 = arith.constant 0 : i32
    %c0_i32_0 = arith.constant 0 : i32
    %c0_i32_1 = arith.constant 0 : i32
    return %c0_i32, %c0_i32_0 : i32, i32
  }
  func.func @transform_3(%arg0: i32) -> (i32, i32) {
    %c0_i32 = arith.constant 0 : i32
    %c0_i32_0 = arith.constant 0 : i32
    %c0_i32_1 = arith.constant 0 : i32
    return %c0_i32, %c0_i32_0 : i32, i32
  }
  func.func @transform_4(%arg0: i32) -> (i32, i32) {
    %c0_i32 = arith.constant 0 : i32
    %c0_i32_0 = arith.constant 0 : i32
    %c0_i32_1 = arith.constant 0 : i32
    return %c0_i32, %c0_i32_0 : i32, i32
  }
  func.func @transform_5(%arg0: i32) -> (i32, i32) {
    %c0_i32 = arith.constant 0 : i32
    %c0_i32_0 = arith.constant 0 : i32
    %c0_i32_1 = arith.constant 0 : i32
    return %c0_i32, %c0_i32_0 : i32, i32
  }
  func.func @transform_6(%arg0: i32) -> (i32, i32) {
    %c0_i32 = arith.constant 0 : i32
    %c0_i32_0 = arith.constant 0 : i32
    %c0_i32_1 = arith.constant 0 : i32
    return %c0_i32, %c0_i32_0 : i32, i32
  }
  func.func @transform_7(%arg0: i32) -> (i32, i32) {
    %c0_i32 = arith.constant 0 : i32
    %c0_i32_0 = arith.constant 0 : i32
    %c0_i32_1 = arith.constant 0 : i32
    return %c0_i32, %c0_i32_0 : i32, i32
  }
  func.func @transform_8(%arg0: i32) -> (i32, i32) {
    %c0_i32 = arith.constant 0 : i32
    %c0_i32_0 = arith.constant 0 : i32
    %c0_i32_1 = arith.constant 0 : i32
    return %c0_i32, %c0_i32_0 : i32, i32
  }
  func.func @transform_9(%arg0: i32) -> (i32, i32) {
    %c0_i32 = arith.constant 0 : i32
    %c0_i32_0 = arith.constant 0 : i32
    %c0_i32_1 = arith.constant 0 : i32
    return %c0_i32, %c0_i32_0 : i32, i32
  }
  func.func @transform_10(%arg0: i32) -> (i32, i32) {
    %c0_i32 = arith.constant 0 : i32
    %c0_i32_0 = arith.constant 0 : i32
    %c0_i32_1 = arith.constant 0 : i32
    return %c0_i32, %c0_i32_0 : i32, i32
  }
  func.func @transform_11(%arg0: i32) -> (i32, i32) {
    %c0_i32 = arith.constant 0 : i32
    %c0_i32_0 = arith.constant 0 : i32
    %c0_i32_1 = arith.constant 0 : i32
    return %c0_i32, %c0_i32_0 : i32, i32
  }
  func.func @transform_12(%arg0: i32) -> (i32, i32) {
    %c0_i32 = arith.constant 0 : i32
    %c0_i32_0 = arith.constant 0 : i32
    %c0_i32_1 = arith.constant 0 : i32
    return %c0_i32, %c0_i32_0 : i32, i32
  }
  func.func @transform_13(%arg0: i32) -> (i32, i32) {
    %c0_i32 = arith.constant 0 : i32
    %c0_i32_0 = arith.constant 0 : i32
    %c0_i32_1 = arith.constant 0 : i32
    return %c0_i32, %c0_i32_0 : i32, i32
  }
  func.func @transform_14(%arg0: i32) -> (i32, i32) {
    %c0_i32 = arith.constant 0 : i32
    %c0_i32_0 = arith.constant 0 : i32
    %c0_i32_1 = arith.constant 0 : i32
    return %c0_i32, %c0_i32_0 : i32, i32
  }
  func.func @transform_15(%arg0: i32) -> (i32, i32) {
    %c0_i32 = arith.constant 0 : i32
    %c0_i32_0 = arith.constant 0 : i32
    %c0_i32_1 = arith.constant 0 : i32
    return %c0_i32, %c0_i32_0 : i32, i32
  }
  func.func @transform_16(%arg0: i32) -> (i32, i32) {
    %c0_i32 = arith.constant 0 : i32
    %c0_i32_0 = arith.constant 0 : i32
    %c0_i32_1 = arith.constant 0 : i32
    return %c0_i32, %c0_i32_0 : i32, i32
  }
  func.func @transform_17(%arg0: i32) -> (i32, i32) {
    %c0_i32 = arith.constant 0 : i32
    %c0_i32_0 = arith.constant 0 : i32
    %c0_i32_1 = arith.constant 0 : i32
    return %c0_i32, %c0_i32_0 : i32, i32
  }
  func.func @transform_18(%arg0: i32) -> (i32, i32) {
    %c0_i32 = arith.constant 0 : i32
    %c0_i32_0 = arith.constant 0 : i32
    %c0_i32_1 = arith.constant 0 : i32
    return %c0_i32, %c0_i32_0 : i32, i32
  }
  func.func @transform_19(%arg0: i32) -> (i32, i32) {
    %c0_i32 = arith.constant 0 : i32
    %c0_i32_0 = arith.constant 0 : i32
    %c0_i32_1 = arith.constant 0 : i32
    return %c0_i32, %c0_i32_0 : i32, i32
  }
  func.func @transform_20(%arg0: i32) -> (i32, i32) {
    %c0_i32 = arith.constant 0 : i32
    %c0_i32_0 = arith.constant 0 : i32
    %c0_i32_1 = arith.constant 0 : i32
    return %c0_i32, %c0_i32_0 : i32, i32
  }
  func.func @transform_21(%arg0: i32) -> (i32, i32) {
    %c0_i32 = arith.constant 0 : i32
    %c0_i32_0 = arith.constant 0 : i32
    %c0_i32_1 = arith.constant 0 : i32
    return %c0_i32, %c0_i32_0 : i32, i32
  }
  func.func @transform_22(%arg0: i32) -> (i32, i32) {
    %c0_i32 = arith.constant 0 : i32
    %c0_i32_0 = arith.constant 0 : i32
    %c0_i32_1 = arith.constant 0 : i32
    return %c0_i32, %c0_i32_0 : i32, i32
  }
  func.func @transform_23(%arg0: i32) -> (i32, i32) {
    %c0_i32 = arith.constant 0 : i32
    %c0_i32_0 = arith.constant 0 : i32
    return %arg0, %c0_i32 : i32, i32
  }
}

module attributes {stable_mosaic.version = 11 : i64} {
  func.func @_dueling_kernel(%arg0: i32, %arg1: memref<8x96xbf16, #tpu.memory_space<vmem>>, %arg2: memref<8x64xbf16, #tpu.memory_space<vmem>>, %arg3: memref<96x512xi8, #tpu.memory_space<vmem>>, %arg4: memref<1x512xf32, #tpu.memory_space<vmem>>, %arg5: memref<1x512xf32, #tpu.memory_space<vmem>>, %arg6: memref<512x512xi8, #tpu.memory_space<vmem>>, %arg7: memref<1x512xf32, #tpu.memory_space<vmem>>, %arg8: memref<1x512xf32, #tpu.memory_space<vmem>>, %arg9: memref<64x512xi8, #tpu.memory_space<vmem>>, %arg10: memref<1x512xf32, #tpu.memory_space<vmem>>, %arg11: memref<1x512xf32, #tpu.memory_space<vmem>>, %arg12: memref<512x512xi8, #tpu.memory_space<vmem>>, %arg13: memref<1x512xf32, #tpu.memory_space<vmem>>, %arg14: memref<1x512xf32, #tpu.memory_space<vmem>>, %arg15: memref<512x1024xi8, #tpu.memory_space<vmem>>, %arg16: memref<512x1024xi8, #tpu.memory_space<vmem>>, %arg17: memref<1x1024xf32, #tpu.memory_space<vmem>>, %arg18: memref<1x1024xf32, #tpu.memory_space<vmem>>, %arg19: memref<1x512xf32, #tpu.memory_space<vmem>>, %arg20: memref<1x1xf32, #tpu.memory_space<vmem>>, %arg21: memref<512x128xi8, #tpu.memory_space<vmem>>, %arg22: memref<1x128xf32, #tpu.memory_space<vmem>>, %arg23: memref<1x128xf32, #tpu.memory_space<vmem>>, %arg24: memref<8x128xf32, #tpu.memory_space<vmem>>) attributes {dimension_semantics = [#tpu.dimension_semantics<arbitrary>], iteration_bounds = array<i64: 1>, scalar_prefetch = 0 : i64, scratch_operands = 0 : i64, tpu.core_type = #tpu.core_type<tc>, window_params = [{transform_indices = @transform_0, window_bounds = array<i64: 8, 96>}, {transform_indices = @transform_1, window_bounds = array<i64: 8, 64>}, {pipeline_mode = #tpu.pipeline_mode<synchronous>, transform_indices = @transform_2, window_bounds = array<i64: 96, 512>}, {pipeline_mode = #tpu.pipeline_mode<synchronous>, transform_indices = @transform_3, window_bounds = array<i64: 1, 512>}, {pipeline_mode = #tpu.pipeline_mode<synchronous>, transform_indices = @transform_4, window_bounds = array<i64: 1, 512>}, {pipeline_mode = #tpu.pipeline_mode<synchronous>, transform_indices = @transform_5, window_bounds = array<i64: 512, 512>}, {pipeline_mode = #tpu.pipeline_mode<synchronous>, transform_indices = @transform_6, window_bounds = array<i64: 1, 512>}, {pipeline_mode = #tpu.pipeline_mode<synchronous>, transform_indices = @transform_7, window_bounds = array<i64: 1, 512>}, {pipeline_mode = #tpu.pipeline_mode<synchronous>, transform_indices = @transform_8, window_bounds = array<i64: 64, 512>}, {pipeline_mode = #tpu.pipeline_mode<synchronous>, transform_indices = @transform_9, window_bounds = array<i64: 1, 512>}, {pipeline_mode = #tpu.pipeline_mode<synchronous>, transform_indices = @transform_10, window_bounds = array<i64: 1, 512>}, {pipeline_mode = #tpu.pipeline_mode<synchronous>, transform_indices = @transform_11, window_bounds = array<i64: 512, 512>}, {pipeline_mode = #tpu.pipeline_mode<synchronous>, transform_indices = @transform_12, window_bounds = array<i64: 1, 512>}, {pipeline_mode = #tpu.pipeline_mode<synchronous>, transform_indices = @transform_13, window_bounds = array<i64: 1, 512>}, {pipeline_mode = #tpu.pipeline_mode<synchronous>, transform_indices = @transform_14, window_bounds = array<i64: 512, 1024>}, {pipeline_mode = #tpu.pipeline_mode<synchronous>, transform_indices = @transform_15, window_bounds = array<i64: 512, 1024>}, {pipeline_mode = #tpu.pipeline_mode<synchronous>, transform_indices = @transform_16, window_bounds = array<i64: 1, 1024>}, {pipeline_mode = #tpu.pipeline_mode<synchronous>, transform_indices = @transform_17, window_bounds = array<i64: 1, 1024>}, {pipeline_mode = #tpu.pipeline_mode<synchronous>, transform_indices = @transform_18, window_bounds = array<i64: 1, 512>}, {pipeline_mode = #tpu.pipeline_mode<synchronous>, transform_indices = @transform_19, window_bounds = array<i64: 1, 1>}, {pipeline_mode = #tpu.pipeline_mode<synchronous>, transform_indices = @transform_20, window_bounds = array<i64: 512, 128>}, {pipeline_mode = #tpu.pipeline_mode<synchronous>, transform_indices = @transform_21, window_bounds = array<i64: 1, 128>}, {pipeline_mode = #tpu.pipeline_mode<synchronous>, transform_indices = @transform_22, window_bounds = array<i64: 1, 128>}, {transform_indices = @transform_23, window_bounds = array<i64: 8, 128>}]} {
    %c0 = arith.constant 0 : index
    %c0_0 = arith.constant 0 : index
    %0 = vector.load %arg1[%c0, %c0_0] : memref<8x96xbf16, #tpu.memory_space<vmem>>, vector<8x96xbf16>
    %c0_1 = arith.constant 0 : index
    %c0_2 = arith.constant 0 : index
    %1 = vector.load %arg3[%c0_1, %c0_2] : memref<96x512xi8, #tpu.memory_space<vmem>>, vector<96x512xi8>
    %2 = arith.sitofp %1 : vector<96x512xi8> to vector<96x512xbf16>
    %cst = arith.constant dense<0.000000e+00> : vector<8x512xf32>
    %3 = tpu.matmul %0, %2, %cst {dimension_numbers = #tpu.dot_dimension_numbers<[1], [0], [0], [1], [0, 0, 1, 1], [], []>} : vector<8x96xbf16>, vector<96x512xbf16>, vector<8x512xf32> -> vector<8x512xf32>
    %c0_3 = arith.constant 0 : index
    %c0_4 = arith.constant 0 : index
    %4 = vector.load %arg4[%c0_3, %c0_4] : memref<1x512xf32, #tpu.memory_space<vmem>>, vector<1x512xf32>
    %5 = vector.broadcast %4 : vector<1x512xf32> to vector<8x512xf32>
    %6 = arith.mulf %3, %5 : vector<8x512xf32>
    %c0_5 = arith.constant 0 : index
    %c0_6 = arith.constant 0 : index
    %7 = vector.load %arg5[%c0_5, %c0_6] : memref<1x512xf32, #tpu.memory_space<vmem>>, vector<1x512xf32>
    %8 = vector.broadcast %7 : vector<1x512xf32> to vector<8x512xf32>
    %9 = arith.addf %6, %8 : vector<8x512xf32>
    %cst_7 = arith.constant 0.000000e+00 : f32
    %10 = vector.broadcast %cst_7 : f32 to vector<8x512xf32>
    %11 = arith.maximumf %9, %10 : vector<8x512xf32>
    %12 = arith.truncf %11 : vector<8x512xf32> to vector<8x512xbf16>
    %c0_8 = arith.constant 0 : index
    %c0_9 = arith.constant 0 : index
    %13 = vector.load %arg6[%c0_8, %c0_9] : memref<512x512xi8, #tpu.memory_space<vmem>>, vector<512x512xi8>
    %14 = arith.sitofp %13 : vector<512x512xi8> to vector<512x512xbf16>
    %cst_10 = arith.constant dense<0.000000e+00> : vector<8x512xf32>
    %15 = tpu.matmul %12, %14, %cst_10 {dimension_numbers = #tpu.dot_dimension_numbers<[1], [0], [0], [1], [0, 0, 1, 1], [], []>} : vector<8x512xbf16>, vector<512x512xbf16>, vector<8x512xf32> -> vector<8x512xf32>
    %c0_11 = arith.constant 0 : index
    %c0_12 = arith.constant 0 : index
    %16 = vector.load %arg7[%c0_11, %c0_12] : memref<1x512xf32, #tpu.memory_space<vmem>>, vector<1x512xf32>
    %17 = vector.broadcast %16 : vector<1x512xf32> to vector<8x512xf32>
    %18 = arith.mulf %15, %17 : vector<8x512xf32>
    %c0_13 = arith.constant 0 : index
    %c0_14 = arith.constant 0 : index
    %19 = vector.load %arg8[%c0_13, %c0_14] : memref<1x512xf32, #tpu.memory_space<vmem>>, vector<1x512xf32>
    %20 = vector.broadcast %19 : vector<1x512xf32> to vector<8x512xf32>
    %21 = arith.addf %18, %20 : vector<8x512xf32>
    %cst_15 = arith.constant 0.000000e+00 : f32
    %22 = vector.broadcast %cst_15 : f32 to vector<8x512xf32>
    %23 = arith.maximumf %21, %22 : vector<8x512xf32>
    %c0_16 = arith.constant 0 : index
    %c0_17 = arith.constant 0 : index
    %24 = vector.load %arg2[%c0_16, %c0_17] : memref<8x64xbf16, #tpu.memory_space<vmem>>, vector<8x64xbf16>
    %c0_18 = arith.constant 0 : index
    %c0_19 = arith.constant 0 : index
    %25 = vector.load %arg9[%c0_18, %c0_19] : memref<64x512xi8, #tpu.memory_space<vmem>>, vector<64x512xi8>
    %26 = arith.sitofp %25 : vector<64x512xi8> to vector<64x512xbf16>
    %cst_20 = arith.constant dense<0.000000e+00> : vector<8x512xf32>
    %27 = tpu.matmul %24, %26, %cst_20 {dimension_numbers = #tpu.dot_dimension_numbers<[1], [0], [0], [1], [0, 0, 1, 1], [], []>} : vector<8x64xbf16>, vector<64x512xbf16>, vector<8x512xf32> -> vector<8x512xf32>
    %c0_21 = arith.constant 0 : index
    %c0_22 = arith.constant 0 : index
    %28 = vector.load %arg10[%c0_21, %c0_22] : memref<1x512xf32, #tpu.memory_space<vmem>>, vector<1x512xf32>
    %29 = vector.broadcast %28 : vector<1x512xf32> to vector<8x512xf32>
    %30 = arith.mulf %27, %29 : vector<8x512xf32>
    %c0_23 = arith.constant 0 : index
    %c0_24 = arith.constant 0 : index
    %31 = vector.load %arg11[%c0_23, %c0_24] : memref<1x512xf32, #tpu.memory_space<vmem>>, vector<1x512xf32>
    %32 = vector.broadcast %31 : vector<1x512xf32> to vector<8x512xf32>
    %33 = arith.addf %30, %32 : vector<8x512xf32>
    %cst_25 = arith.constant 0.000000e+00 : f32
    %34 = vector.broadcast %cst_25 : f32 to vector<8x512xf32>
    %35 = arith.maximumf %33, %34 : vector<8x512xf32>
    %36 = arith.truncf %35 : vector<8x512xf32> to vector<8x512xbf16>
    %c0_26 = arith.constant 0 : index
    %c0_27 = arith.constant 0 : index
    %37 = vector.load %arg12[%c0_26, %c0_27] : memref<512x512xi8, #tpu.memory_space<vmem>>, vector<512x512xi8>
    %38 = arith.sitofp %37 : vector<512x512xi8> to vector<512x512xbf16>
    %cst_28 = arith.constant dense<0.000000e+00> : vector<8x512xf32>
    %39 = tpu.matmul %36, %38, %cst_28 {dimension_numbers = #tpu.dot_dimension_numbers<[1], [0], [0], [1], [0, 0, 1, 1], [], []>} : vector<8x512xbf16>, vector<512x512xbf16>, vector<8x512xf32> -> vector<8x512xf32>
    %c0_29 = arith.constant 0 : index
    %c0_30 = arith.constant 0 : index
    %40 = vector.load %arg13[%c0_29, %c0_30] : memref<1x512xf32, #tpu.memory_space<vmem>>, vector<1x512xf32>
    %41 = vector.broadcast %40 : vector<1x512xf32> to vector<8x512xf32>
    %42 = arith.mulf %39, %41 : vector<8x512xf32>
    %c0_31 = arith.constant 0 : index
    %c0_32 = arith.constant 0 : index
    %43 = vector.load %arg14[%c0_31, %c0_32] : memref<1x512xf32, #tpu.memory_space<vmem>>, vector<1x512xf32>
    %44 = vector.broadcast %43 : vector<1x512xf32> to vector<8x512xf32>
    %45 = arith.addf %42, %44 : vector<8x512xf32>
    %cst_33 = arith.constant 0.000000e+00 : f32
    %46 = vector.broadcast %cst_33 : f32 to vector<8x512xf32>
    %47 = arith.maximumf %45, %46 : vector<8x512xf32>
    %48 = arith.truncf %23 : vector<8x512xf32> to vector<8x512xbf16>
    %c0_34 = arith.constant 0 : index
    %c0_35 = arith.constant 0 : index
    %49 = vector.load %arg15[%c0_34, %c0_35] : memref<512x1024xi8, #tpu.memory_space<vmem>>, vector<512x1024xi8>
    %50 = arith.sitofp %49 : vector<512x1024xi8> to vector<512x1024xbf16>
    %cst_36 = arith.constant dense<0.000000e+00> : vector<8x1024xf32>
    %51 = tpu.matmul %48, %50, %cst_36 {dimension_numbers = #tpu.dot_dimension_numbers<[1], [0], [0], [1], [0, 0, 1, 1], [], []>} : vector<8x512xbf16>, vector<512x1024xbf16>, vector<8x1024xf32> -> vector<8x1024xf32>
    %52 = arith.truncf %47 : vector<8x512xf32> to vector<8x512xbf16>
    %c0_37 = arith.constant 0 : index
    %c0_38 = arith.constant 0 : index
    %53 = vector.load %arg16[%c0_37, %c0_38] : memref<512x1024xi8, #tpu.memory_space<vmem>>, vector<512x1024xi8>
    %54 = arith.sitofp %53 : vector<512x1024xi8> to vector<512x1024xbf16>
    %cst_39 = arith.constant dense<0.000000e+00> : vector<8x1024xf32>
    %55 = tpu.matmul %52, %54, %cst_39 {dimension_numbers = #tpu.dot_dimension_numbers<[1], [0], [0], [1], [0, 0, 1, 1], [], []>} : vector<8x512xbf16>, vector<512x1024xbf16>, vector<8x1024xf32> -> vector<8x1024xf32>
    %56 = arith.addf %51, %55 : vector<8x1024xf32>
    %c0_40 = arith.constant 0 : index
    %c0_41 = arith.constant 0 : index
    %57 = vector.load %arg17[%c0_40, %c0_41] : memref<1x1024xf32, #tpu.memory_space<vmem>>, vector<1x1024xf32>
    %58 = vector.broadcast %57 : vector<1x1024xf32> to vector<8x1024xf32>
    %59 = arith.mulf %56, %58 : vector<8x1024xf32>
    %c0_42 = arith.constant 0 : index
    %c0_43 = arith.constant 0 : index
    %60 = vector.load %arg18[%c0_42, %c0_43] : memref<1x1024xf32, #tpu.memory_space<vmem>>, vector<1x1024xf32>
    %61 = vector.broadcast %60 : vector<1x1024xf32> to vector<8x1024xf32>
    %62 = arith.addf %59, %61 : vector<8x1024xf32>
    %cst_44 = arith.constant 0.000000e+00 : f32
    %63 = vector.broadcast %cst_44 : f32 to vector<8x1024xf32>
    %64 = arith.maximumf %62, %63 : vector<8x1024xf32>
    %65 = vector.extract_strided_slice %64 {offsets = [0, 0], sizes = [8, 512], strides = [1, 1]} : vector<8x1024xf32> to vector<8x512xf32>
    %c0_45 = arith.constant 0 : index
    %c0_46 = arith.constant 0 : index
    %66 = vector.load %arg19[%c0_45, %c0_46] : memref<1x512xf32, #tpu.memory_space<vmem>>, vector<1x512xf32>
    %67 = vector.broadcast %66 : vector<1x512xf32> to vector<8x512xf32>
    %68 = arith.mulf %65, %67 : vector<8x512xf32>
    %cst_47 = arith.constant dense<0.000000e+00> : vector<8xf32>
    %69 = vector.multi_reduction <add>, %68, %cst_47 [1] : vector<8x512xf32> to vector<8xf32>
    %70 = vector.shape_cast %69 : vector<8xf32> to vector<8x1xf32>
    %c0_48 = arith.constant 0 : index
    %c0_49 = arith.constant 0 : index
    %71 = vector.load %arg20[%c0_48, %c0_49] : memref<1x1xf32, #tpu.memory_space<vmem>>, vector<1x1xf32>
    %72 = vector.broadcast %71 : vector<1x1xf32> to vector<8x1xf32>
    %73 = arith.addf %70, %72 : vector<8x1xf32>
    %74 = vector.extract_strided_slice %64 {offsets = [0, 512], sizes = [8, 512], strides = [1, 1]} : vector<8x1024xf32> to vector<8x512xf32>
    %75 = arith.truncf %74 : vector<8x512xf32> to vector<8x512xbf16>
    %c0_50 = arith.constant 0 : index
    %c0_51 = arith.constant 0 : index
    %76 = vector.load %arg21[%c0_50, %c0_51] : memref<512x128xi8, #tpu.memory_space<vmem>>, vector<512x128xi8>
    %77 = arith.sitofp %76 : vector<512x128xi8> to vector<512x128xbf16>
    %cst_52 = arith.constant dense<0.000000e+00> : vector<8x128xf32>
    %78 = tpu.matmul %75, %77, %cst_52 {dimension_numbers = #tpu.dot_dimension_numbers<[1], [0], [0], [1], [0, 0, 1, 1], [], []>} : vector<8x512xbf16>, vector<512x128xbf16>, vector<8x128xf32> -> vector<8x128xf32>
    %c0_53 = arith.constant 0 : index
    %c0_54 = arith.constant 0 : index
    %79 = vector.load %arg22[%c0_53, %c0_54] : memref<1x128xf32, #tpu.memory_space<vmem>>, vector<1x128xf32>
    %80 = vector.broadcast %79 : vector<1x128xf32> to vector<8x128xf32>
    %81 = arith.mulf %78, %80 : vector<8x128xf32>
    %c0_55 = arith.constant 0 : index
    %c0_56 = arith.constant 0 : index
    %82 = vector.load %arg23[%c0_55, %c0_56] : memref<1x128xf32, #tpu.memory_space<vmem>>, vector<1x128xf32>
    %83 = vector.broadcast %82 : vector<1x128xf32> to vector<8x128xf32>
    %84 = arith.addf %81, %83 : vector<8x128xf32>
    %85 = tpu.iota {dimensions = array<i32: 1>} : vector<8x128xi32>
    %c8_i32 = arith.constant 8 : i32
    %86 = vector.broadcast %c8_i32 : i32 to vector<8x128xi32>
    %87 = arith.cmpi slt, %85, %86 : vector<8x128xi32>
    %cst_57 = arith.constant 0xFF800000 : f32
    %88 = vector.broadcast %cst_57 : f32 to vector<8x128xf32>
    %89 = arith.select %87, %84, %88 : vector<8x128xi1>, vector<8x128xf32>
    %cst_58 = arith.constant dense<0xFF800000> : vector<8xf32>
    %90 = vector.multi_reduction <maximumf>, %89, %cst_58 [1] : vector<8x128xf32> to vector<8xf32>
    %91 = vector.shape_cast %90 : vector<8xf32> to vector<8x1xf32>
    %92 = math.absf %84 : vector<8x128xf32>
    %cst_59 = arith.constant 1.000000e+00 : f32
    %93 = vector.broadcast %cst_59 : f32 to vector<8x128xf32>
    %94 = arith.select %87, %92, %93 : vector<8x128xi1>, vector<8x128xf32>
    %95 = tpu.reciprocal %94 {approx = true} : vector<8x128xf32> -> vector<8x128xf32>
    %96 = vector.broadcast %91 : vector<8x1xf32> to vector<8x128xf32>
    %97 = arith.mulf %95, %96 : vector<8x128xf32>
    %98 = arith.subf %84, %97 : vector<8x128xf32>
    %99 = vector.broadcast %73 : vector<8x1xf32> to vector<8x128xf32>
    %100 = arith.addf %99, %98 : vector<8x128xf32>
    %cst_60 = arith.constant 0.000000e+00 : f32
    %101 = vector.broadcast %cst_60 : f32 to vector<8x128xf32>
    %102 = arith.select %87, %100, %101 : vector<8x128xi1>, vector<8x128xf32>
    %c0_61 = arith.constant 0 : index
    %c0_62 = arith.constant 0 : index
    %103 = vector.load %arg24[%c0_61, %c0_62] : memref<8x128xf32, #tpu.memory_space<vmem>>, vector<8x128xf32>
    tpu.vector_store %arg24[%c0_61, %c0_62], %102 {strides = array<i32>} : memref<8x128xf32, #tpu.memory_space<vmem>>, vector<8x128xf32>,
    return
  }
  func.func @transform_0(%arg0: i32) -> (i32, i32) {
    %c0_i32 = arith.constant 0 : i32
    %c0_i32_0 = arith.constant 0 : i32
    return %arg0, %c0_i32 : i32, i32
  }
  func.func @transform_1(%arg0: i32) -> (i32, i32) {
    %c0_i32 = arith.constant 0 : i32
    %c0_i32_0 = arith.constant 0 : i32
    return %arg0, %c0_i32 : i32, i32
  }
  func.func @transform_2(%arg0: i32) -> (i32, i32) {
    %c0_i32 = arith.constant 0 : i32
    %c0_i32_0 = arith.constant 0 : i32
    %c0_i32_1 = arith.constant 0 : i32
    return %c0_i32, %c0_i32_0 : i32, i32
  }
  func.func @transform_3(%arg0: i32) -> (i32, i32) {
    %c0_i32 = arith.constant 0 : i32
    %c0_i32_0 = arith.constant 0 : i32
    %c0_i32_1 = arith.constant 0 : i32
    return %c0_i32, %c0_i32_0 : i32, i32
  }
  func.func @transform_4(%arg0: i32) -> (i32, i32) {
    %c0_i32 = arith.constant 0 : i32
    %c0_i32_0 = arith.constant 0 : i32
    %c0_i32_1 = arith.constant 0 : i32
    return %c0_i32, %c0_i32_0 : i32, i32
  }
  func.func @transform_5(%arg0: i32) -> (i32, i32) {
    %c0_i32 = arith.constant 0 : i32
    %c0_i32_0 = arith.constant 0 : i32
    %c0_i32_1 = arith.constant 0 : i32
    return %c0_i32, %c0_i32_0 : i32, i32
  }
  func.func @transform_6(%arg0: i32) -> (i32, i32) {
    %c0_i32 = arith.constant 0 : i32
    %c0_i32_0 = arith.constant 0 : i32
    %c0_i32_1 = arith.constant 0 : i32
    return %c0_i32, %c0_i32_0 : i32, i32
  }
  func.func @transform_7(%arg0: i32) -> (i32, i32) {
    %c0_i32 = arith.constant 0 : i32
    %c0_i32_0 = arith.constant 0 : i32
    %c0_i32_1 = arith.constant 0 : i32
    return %c0_i32, %c0_i32_0 : i32, i32
  }
  func.func @transform_8(%arg0: i32) -> (i32, i32) {
    %c0_i32 = arith.constant 0 : i32
    %c0_i32_0 = arith.constant 0 : i32
    %c0_i32_1 = arith.constant 0 : i32
    return %c0_i32, %c0_i32_0 : i32, i32
  }
  func.func @transform_9(%arg0: i32) -> (i32, i32) {
    %c0_i32 = arith.constant 0 : i32
    %c0_i32_0 = arith.constant 0 : i32
    %c0_i32_1 = arith.constant 0 : i32
    return %c0_i32, %c0_i32_0 : i32, i32
  }
  func.func @transform_10(%arg0: i32) -> (i32, i32) {
    %c0_i32 = arith.constant 0 : i32
    %c0_i32_0 = arith.constant 0 : i32
    %c0_i32_1 = arith.constant 0 : i32
    return %c0_i32, %c0_i32_0 : i32, i32
  }
  func.func @transform_11(%arg0: i32) -> (i32, i32) {
    %c0_i32 = arith.constant 0 : i32
    %c0_i32_0 = arith.constant 0 : i32
    %c0_i32_1 = arith.constant 0 : i32
    return %c0_i32, %c0_i32_0 : i32, i32
  }
  func.func @transform_12(%arg0: i32) -> (i32, i32) {
    %c0_i32 = arith.constant 0 : i32
    %c0_i32_0 = arith.constant 0 : i32
    %c0_i32_1 = arith.constant 0 : i32
    return %c0_i32, %c0_i32_0 : i32, i32
  }
  func.func @transform_13(%arg0: i32) -> (i32, i32) {
    %c0_i32 = arith.constant 0 : i32
    %c0_i32_0 = arith.constant 0 : i32
    %c0_i32_1 = arith.constant 0 : i32
    return %c0_i32, %c0_i32_0 : i32, i32
  }
  func.func @transform_14(%arg0: i32) -> (i32, i32) {
    %c0_i32 = arith.constant 0 : i32
    %c0_i32_0 = arith.constant 0 : i32
    %c0_i32_1 = arith.constant 0 : i32
    return %c0_i32, %c0_i32_0 : i32, i32
  }
  func.func @transform_15(%arg0: i32) -> (i32, i32) {
    %c0_i32 = arith.constant 0 : i32
    %c0_i32_0 = arith.constant 0 : i32
    %c0_i32_1 = arith.constant 0 : i32
    return %c0_i32, %c0_i32_0 : i32, i32
  }
  func.func @transform_16(%arg0: i32) -> (i32, i32) {
    %c0_i32 = arith.constant 0 : i32
    %c0_i32_0 = arith.constant 0 : i32
    %c0_i32_1 = arith.constant 0 : i32
    return %c0_i32, %c0_i32_0 : i32, i32
  }
  func.func @transform_17(%arg0: i32) -> (i32, i32) {
    %c0_i32 = arith.constant 0 : i32
    %c0_i32_0 = arith.constant 0 : i32
    %c0_i32_1 = arith.constant 0 : i32
    return %c0_i32, %c0_i32_0 : i32, i32
  }
  func.func @transform_18(%arg0: i32) -> (i32, i32) {
    %c0_i32 = arith.constant 0 : i32
    %c0_i32_0 = arith.constant 0 : i32
    %c0_i32_1 = arith.constant 0 : i32
    return %c0_i32, %c0_i32_0 : i32, i32
  }
  func.func @transform_19(%arg0: i32) -> (i32, i32) {
    %c0_i32 = arith.constant 0 : i32
    %c0_i32_0 = arith.constant 0 : i32
    %c0_i32_1 = arith.constant 0 : i32
    return %c0_i32, %c0_i32_0 : i32, i32
  }
  func.func @transform_20(%arg0: i32) -> (i32, i32) {
    %c0_i32 = arith.constant 0 : i32
    %c0_i32_0 = arith.constant 0 : i32
    %c0_i32_1 = arith.constant 0 : i32
    return %c0_i32, %c0_i32_0 : i32, i32
  }
  func.func @transform_21(%arg0: i32) -> (i32, i32) {
    %c0_i32 = arith.constant 0 : i32
    %c0_i32_0 = arith.constant 0 : i32
    %c0_i32_1 = arith.constant 0 : i32
    return %c0_i32, %c0_i32_0 : i32, i32
  }
  func.func @transform_22(%arg0: i32) -> (i32, i32) {
    %c0_i32 = arith.constant 0 : i32
    %c0_i32_0 = arith.constant 0 : i32
    %c0_i32_1 = arith.constant 0 : i32
    return %c0_i32, %c0_i32_0 : i32, i32
  }
  func.func @transform_23(%arg0: i32) -> (i32, i32) {
    %c0_i32 = arith.constant 0 : i32
    %c0_i32_0 = arith.constant 0 : i32
    return %arg0, %c0_i32 : i32, i32
  }
}

</mosaic_0001>

<bundles_post_ra>
// kernel: tpu_custom_call.1
= control target key start
LH: loop header
LB: loop body
LE: loop exit
PB: predicated region body
PF: predicated region fallthrough
CT: control target
= control target key end

     0   :  { %s4144_s0 = inlined_call_operand.hbm [shape: bf16[8,96], index: 0, kind: input, shape index: {}]   ;;  %s4145_s1 = inlined_call_operand.hbm [shape: bf16[8,64], index: 1, kind: input, shape index: {}]   ;;  %s4146_s2 = inlined_call_operand.hbm [shape: s8[96,512], index: 2, kind: input, shape index: {}]   ;;  %s4147_s3 = inlined_call_operand.hbm [shape: f32[1,512], index: 3, kind: input, shape index: {}]   ;;  %s4148_s4 = inlined_call_operand.hbm [shape: f32[1,512], index: 4, kind: input, shape index: {}]   ;;  %s4149_s5 = inlined_call_operand.hbm [shape: s8[512,512], index: 5, kind: input, shape index: {}]   ;;  %s4150_s6 = inlined_call_operand.hbm [shape: f32[1,512], index: 6, kind: input, shape index: {}]   ;;  %s4151_s7 = inlined_call_operand.hbm [shape: f32[1,512], index: 7, kind: input, shape index: {}]   ;;  %s4152_s8 = inlined_call_operand.hbm [shape: s8[64,512], index: 8, kind: input, shape index: {}]   ;;  %s4153_s9 = inlined_call_operand.hbm [shape: f32[1,512], index: 9, kind: input, shape index: {}]   ;;  %s4154_s10 = inlined_call_operand.vmem [shape: f32[1,512], index: 10, kind: input, shape index: {}]   ;;  %s4155_s11 = inlined_call_operand.hbm [shape: s8[512,512], index: 11, kind: input, shape index: {}]   ;;  %s4156_s12 = inlined_call_operand.hbm [shape: f32[1,512], index: 12, kind: input, shape index: {}]   ;;  %s4157_s13 = inlined_call_operand.vmem [shape: f32[1,512], index: 13, kind: input, shape index: {}]   ;;  %s4158_s14 = inlined_call_operand.hbm [shape: s8[512,1024], index: 14, kind: input, shape index: {}]   ;;  %s4159_s15 = inlined_call_operand.hbm [shape: s8[512,1024], index: 15, kind: input, shape index: {}]   ;;  %s4160_s16 = inlined_call_operand.vmem [shape: f32[1,1024], index: 16, kind: input, shape index: {}]   ;;  %s4161_s17 = inlined_call_operand.vmem [shape: f32[1,1024], index: 17, kind: input, shape index: {}]   ;;  %s4162_s18 = inlined_call_operand.vmem [shape: f32[1,512], index: 18, kind: input, shape index: {}]   ;;  %s4163_s19 = inlined_call_operand.<no memory space> [shape: f32[1,1], index: 19, kind: input, shape index: {}]   ;;  %s4164_s20 = inlined_call_operand.hbm [shape: s8[512,128], index: 20, kind: input, shape index: {}]   ;;  %s4165_s21 = inlined_call_operand.vmem [shape: f32[1,128], index: 21, kind: input, shape index: {}]   ;;  %s4166_s22 = inlined_call_operand.vmem [shape: f32[1,128], index: 22, kind: input, shape index: {}]   ;;  %s4167_s23 = inlined_call_operand.hbm [shape: f32[8,128], index: 23, kind: output, shape index: {}]  }
   0x1   :  { %4168 = sst [smem:[#allocation37_spill]] %s4144_s0  ;;  %v28_v0 = vstv %s4163_s19 }
   0x2   :  { %4169 = sst [smem:[#allocation38_spill]] %s4145_s1  ;;  %29 = vst [vmem:[#allocation2] sm:$0x1] %v28_v0 }
   0x3   :  { %4170 = sst [smem:[#allocation39_spill]] %s4146_s2 }
   0x4   :  { %4171 = sst [smem:[#allocation40_spill]] %s4147_s3 }
   0x5   :  { %4172 = sst [smem:[#allocation41_spill]] %s4148_s4 }
   0x6   :  { %4173 = sst [smem:[#allocation42_spill]] %s4149_s5 }
   0x7   :  { %4174 = sst [smem:[#allocation43_spill]] %s4150_s6 }
   0x8   :  { %4175 = sst [smem:[#allocation44_spill]] %s4151_s7 }
   0x9   :  { %30 = vsyncpa [#allocation4], 0 }
   0xa   :  { %31 = vsyncpa [#allocation7], 0 }
   0xb   :  { %32 = vsyncpa [#allocation10], 0 }
   0xc   :  { %33 = vsyncpa [#allocation13], 0 }
   0xd   :  { %34 = vsyncpa [#allocation16], 0 }
   0xe   :  { %35 = vsyncpa [#allocation19], 0 }
   0xf   :  { %36 = vsyncpa [#allocation22], 0 }
  0x10   :  { %37 = vsyncpa [#allocation25], 0 }
  0x11   :  { %38 = vsyncpa [#allocation5], 0  ;;  %s3627_s24 = smov [#allocation6]   ;;  %s3628_s5 = smov [#allocation9]  }
  0x12   :  { %s55_s25 = sshll.u32 %s3627_s24, 4  ;;  %s77_s1 = sshll.u32 %s3628_s5, 4  ;;  %s56_s25 = int_to_ptr.vmem [resolvable:$true] %s55_s25  ;;  %s78_s1 = int_to_ptr.vmem [resolvable:$true] %s77_s1 }
  0x13   :  { %s3297_s26 = scalar_lea.vmem %s56_s25, 64  ;;  %p3302_p1 = scmp.lt.s32.totalorder %s56_s25, %s56_s25 }
  0x14   :  { %p3298_p0 = scmp.ne.s32.totalorder %s56_s25, %s3297_s26  ;;  %p3303_p2 = scmp.lt.s32.totalorder %s3297_s26, %s3297_s26 }
  0x16   :  { %p3304_p3 = por %p3303_p2, %p3302_p1 }
  0x18   :  { %p3305_p4 = pnand %p3304_p3, %p3298_p0 }
  0x1a   :  { %3308 = shalt.err (!%p3305_p4)
}
  0x1b   :  { %s4176_s6 = sld [smem:[#allocation38_spill]]  ;;  %s3317_s27 = scalar_lea.vmem %s78_s1, 64 }
  0x1c   :  { %p3318_p5 = scmp.ne.s32.totalorder %s78_s1, %s3317_s27  ;;  %p3322_p6 = scmp.lt.s32.totalorder %s78_s1, %s78_s1 }
  0x1d   :  { %p3323_p7 = scmp.lt.s32.totalorder %s3317_s27, %s3317_s27 }
  0x1f   :  { %p3324_p8 = por %p3323_p7, %p3322_p6 }
  0x21   :  { %58 = dma.hbm_to_vmem [thread:$0]  %s4176_s6, 64, %s56_s25, [#allocation7]  }
  0x22   :  { %p3325_p9 = pnand %p3324_p8, %p3318_p5 }
  0x24   :  { %3328 = shalt.err (!%p3325_p9)
}
  0x25   :  { %s4177_s29 = sld [smem:[#allocation40_spill]]  ;;  %s3629_s3 = smov [#allocation12]  }
  0x26   :  { %s96_s0 = sshll.u32 %s3629_s3, 4  ;;  %s3630_s4 = smov [#allocation15]   ;;  %s97_s0 = int_to_ptr.vmem [resolvable:$true] %s96_s0 }
  0x27   :  { %s119_s30 = sshll.u32 %s3630_s4, 4  ;;  %s3337_s24 = scalar_lea.vmem %s97_s0, 8192  ;;  %s120_s30 = int_to_ptr.vmem [resolvable:$true] %s119_s30 }
  0x28   :  { %p3338_p10 = scmp.ne.s32.totalorder %s97_s0, %s3337_s24  ;;  %p3342_p11 = scmp.lt.s32.totalorder %s97_s0, %s97_s0 }
  0x29   :  { %p3343_p12 = scmp.lt.s32.totalorder %s3337_s24, %s3337_s24 }
  0x2b   :  { %80 = dma.hbm_to_vmem [thread:$0]  %s4177_s29, 64, %s78_s1, [#allocation10]  }
  0x2c   :  { %p3344_p13 = por %p3343_p12, %p3342_p11 }
  0x2e   :  { %p3345_p0 = pnand %p3344_p13, %p3338_p10 }
  0x30   :  { %3348 = shalt.err (!%p3345_p0)
}
  0x31   :  { %s3631_s25 = smov 512   ;;  %s3632_s5 = smov 32  }
  0x32   :  { %s4178_s19 = sld [smem:[#allocation42_spill]]  ;;  %s3357_s2 = scalar_lea.vmem %s120_s30, 64 }
  0x33   :  { %p3358_p1 = scmp.ne.s32.totalorder %s120_s30, %s3357_s2  ;;  %p3362_p2 = scmp.lt.s32.totalorder %s120_s30, %s120_s30 }
  0x34   :  { %p3363_p3 = scmp.lt.s32.totalorder %s3357_s2, %s3357_s2 }
  0x36   :  { %p3364_p4 = por %p3363_p3, %p3362_p2 }
  0x38   :  { %102 = dma.hbm_to_vmem [thread:$0]  %s4178_s19, 8192, %s97_s0, [#allocation13], %s3631_s25, %s3631_s25, %s3632_s5  }
  0x39   :  { %p3365_p5 = pnand %p3364_p4, %p3358_p1 }
  0x3b   :  { %3368 = shalt.err (!%p3365_p5)
}
  0x3c   :  { %s4179_s7 = sld [smem:[#allocation44_spill]]  ;;  %s3633_s28 = smov [#allocation18]  }
  0x3d   :  { %s141_s29 = sshll.u32 %s3633_s28, 4  ;;  %s3634_s3 = smov [#allocation21]   ;;  %s142_s29 = int_to_ptr.vmem [resolvable:$true] %s141_s29 }
  0x3e   :  { %s165_s4 = sshll.u32 %s3634_s3, 4  ;;  %s3377_s24 = scalar_lea.vmem %s142_s29, 64  ;;  %s166_s4 = int_to_ptr.vmem [resolvable:$true] %s165_s4 }
  0x3f   :  { %p3378_p6 = scmp.ne.s32.totalorder %s142_s29, %s3377_s24  ;;  %p3382_p7 = scmp.lt.s32.totalorder %s142_s29, %s142_s29 }
  0x40   :  { %p3383_p8 = scmp.lt.s32.totalorder %s3377_s24, %s3377_s24 }
  0x42   :  { %122 = dma.hbm_to_vmem [thread:$0]  %s4179_s7, 64, %s120_s30, [#allocation16]  }
  0x43   :  { %p3384_p9 = por %p3383_p8, %p3382_p7 }
  0x45   :  { %p3385_p10 = pnand %p3384_p9, %p3378_p6 }
  0x47   :  { %3388 = shalt.err (!%p3385_p10)
}
  0x48   :  { %144 = dma.hbm_to_vmem [thread:$0]  %s4153_s9, 64, %s142_s29, [#allocation19]  }
  0x49   :  { %s3397_s1 = scalar_lea.vmem %s166_s4, 64  ;;  %p3402_p12 = scmp.lt.s32.totalorder %s166_s4, %s166_s4 }
  0x4a   :  { %p3398_p11 = scmp.ne.s32.totalorder %s166_s4, %s3397_s1  ;;  %p3403_p13 = scmp.lt.s32.totalorder %s3397_s1, %s3397_s1 }
  0x4c   :  { %p3404_p0 = por %p3403_p13, %p3402_p12 }
  0x4e   :  { %p3405_p1 = pnand %p3404_p0, %p3398_p11 }
  0x50   :  { %3408 = shalt.err (!%p3405_p1)
}
  0x51   :  { %168 = dma.hbm_to_vmem [thread:$0]  %s4156_s12, 64, %s166_s4, [#allocation22]  }
  0x52   :  { %s3635_s2 = smov [#allocation24]   ;;  %s3636_s27 = smov [#allocation3]  }
  0x53   :  { %s188_s6 = sshll.u32 %s3635_s2, 4  ;;  %s45_s7 = sshll.u32 %s3636_s27, 4  ;;  %s189_s6 = int_to_ptr.vmem [resolvable:$true] %s188_s6  ;;  %s46_s7 = int_to_ptr.vmem [resolvable:$true] %s45_s7 }
  0x54   :  { %s3417_s28 = scalar_lea.vmem %s189_s6, 16384  ;;  %p3422_p3 = scmp.lt.s32.totalorder %s189_s6, %s189_s6 }
  0x55   :  { %p3418_p2 = scmp.ne.s32.totalorder %s189_s6, %s3417_s28  ;;  %p3423_p4 = scmp.lt.s32.totalorder %s3417_s28, %s3417_s28 }
  0x57   :  { %p3424_p5 = por %p3423_p4, %p3422_p3 }
  0x59   :  { %p3425_p6 = pnand %p3424_p5, %p3418_p2 }
  0x5b   :  { %3428 = shalt.err (!%p3425_p6)
}
  0x5c   :  { %s3637_s9 = smov 1024   ;;  %s3638_s29 = smov 64  }
  0x5d   :  { %194 = dma.hbm_to_vmem [thread:$0]  %s4159_s15, 16384, %s189_s6, [#allocation25], %s3637_s9, %s3637_s9, %s3638_s29  }
  0x5e   :  { %s3437_s4 = scalar_lea.vmem %s46_s7, 64  ;;  %p3442_p8 = scmp.lt.s32.totalorder %s46_s7, %s46_s7 }
  0x5f   :  { %p3438_p7 = scmp.ne.s32.totalorder %s46_s7, %s3437_s4  ;;  %p3443_p9 = scmp.lt.s32.totalorder %s3437_s4, %s3437_s4 }
  0x61   :  { %p3444_p10 = por %p3443_p9, %p3442_p8 }
  0x63   :  { %p3445_p11 = pnand %p3444_p10, %p3438_p7 }
  0x65   :  { %3448 = shalt.err (!%p3445_p11)
}
  0x66   :  { %s4180_s26 = sld [smem:[#allocation37_spill]]  ;;  %s3639_s1 = smov [#allocation8]  }
  0x67   :  { %s64_s30 = sshll.u32 %s3639_s1, 4  ;;  %s3640_s19 = smov [#allocation11]   ;;  %s65_s30 = int_to_ptr.vmem [resolvable:$true] %s64_s30 }
  0x68   :  { %s87_s2 = sshll.u32 %s3640_s19, 4  ;;  %s3457_s27 = scalar_lea.vmem %s65_s30, 1536  ;;  %s88_s2 = int_to_ptr.vmem [resolvable:$true] %s87_s2 }
  0x69   :  { %p3458_p12 = scmp.ne.s32.totalorder %s65_s30, %s3457_s27  ;;  %p3462_p13 = scmp.lt.s32.totalorder %s65_s30, %s65_s30 }
  0x6a   :  { %p3463_p0 = scmp.lt.s32.totalorder %s3457_s27, %s3457_s27 }
  0x6c   :  { %48 = dma.hbm_to_vmem [thread:$0]  %s4180_s26, 64, %s46_s7, [#allocation4]  }
  0x6d   :  { %p3464_p1 = por %p3463_p0, %p3462_p13 }
  0x6f   :  { %p3465_p2 = pnand %p3464_p1, %p3458_p12 }
  0x71   :  { %3468 = shalt.err (!%p3465_p2)
}
  0x72   :  { %s4181_s28 = sld [smem:[#allocation39_spill]]  ;;  %s3477_s7 = scalar_lea.vmem %s88_s2, 64 }
  0x73   :  { %p3478_p3 = scmp.ne.s32.totalorder %s88_s2, %s3477_s7  ;;  %p3482_p4 = scmp.lt.s32.totalorder %s88_s2, %s88_s2 }
  0x74   :  { %p3483_p5 = scmp.lt.s32.totalorder %s3477_s7, %s3477_s7 }
  0x76   :  { %p3484_p6 = por %p3483_p5, %p3482_p4 }
  0x78   :  { %70 = dma.hbm_to_vmem [thread:$0]  %s4181_s28, 1536, %s65_s30, [#allocation7], %s3631_s25, %s3631_s25, %s3632_s5  }
  0x79   :  { %p3485_p7 = pnand %p3484_p6, %p3478_p3 }
  0x7b   :  { %3488 = shalt.err (!%p3485_p7)
}
  0x7c   :  { %s4182_s4 = sld [smem:[#allocation41_spill]]  ;;  %s3641_s24 = smov [#allocation14]  }
  0x7d   :  { %s109_s0 = sshll.u32 %s3641_s24, 4  ;;  %s3642_s26 = smov [#allocation17]   ;;  %s110_s0 = int_to_ptr.vmem [resolvable:$true] %s109_s0 }
  0x7e   :  { %s128_s1 = sshll.u32 %s3642_s26, 4  ;;  %s3497_s19 = scalar_lea.vmem %s110_s0, 64  ;;  %s129_s1 = int_to_ptr.vmem [resolvable:$true] %s128_s1 }
  0x7f   :  { %p3498_p8 = scmp.ne.s32.totalorder %s110_s0, %s3497_s19  ;;  %p3502_p9 = scmp.lt.s32.totalorder %s110_s0, %s110_s0 }
  0x80   :  { %p3503_p10 = scmp.lt.s32.totalorder %s3497_s19, %s3497_s19 }
  0x82   :  { %90 = dma.hbm_to_vmem [thread:$0]  %s4182_s4, 64, %s88_s2, [#allocation10]  }
  0x83   :  { %p3504_p11 = por %p3503_p10, %p3502_p9 }
  0x85   :  { %p3505_p12 = pnand %p3504_p11, %p3498_p8 }
  0x87   :  { %3508 = shalt.err (!%p3505_p12)
}
  0x88   :  { %s4183_s15 = sld [smem:[#allocation43_spill]]  ;;  %s3517_s6 = scalar_lea.vmem %s129_s1, 1024 }
  0x89   :  { %p3518_p13 = scmp.ne.s32.totalorder %s129_s1, %s3517_s6  ;;  %p3522_p0 = scmp.lt.s32.totalorder %s129_s1, %s129_s1 }
  0x8a   :  { %p3523_p1 = scmp.lt.s32.totalorder %s3517_s6, %s3517_s6 }
  0x8c   :  { %p3524_p2 = por %p3523_p1, %p3522_p0 }
  0x8e   :  { %112 = dma.hbm_to_vmem [thread:$0]  %s4183_s15, 64, %s110_s0, [#allocation13]  }
  0x8f   :  { %p3525_p3 = pnand %p3524_p2, %p3518_p13 }
  0x91   :  { %3528 = shalt.err (!%p3525_p3)
}
  0x92   :  { %134 = dma.hbm_to_vmem [thread:$0]  %s4152_s8, 1024, %s129_s1, [#allocation16], %s3631_s25, %s3631_s25, %s3632_s5  }
  0x93   :  { %s3643_s7 = smov [#allocation20]   ;;  %s3644_s12 = smov [#allocation23]  }
  0x94   :  { %s152_s3 = sshll.u32 %s3643_s7, 4  ;;  %s176_s4 = sshll.u32 %s3644_s12, 4  ;;  %s153_s3 = int_to_ptr.vmem [resolvable:$true] %s152_s3  ;;  %s177_s4 = int_to_ptr.vmem [resolvable:$true] %s176_s4 }
  0x95   :  { %s3537_s24 = scalar_lea.vmem %s153_s3, 8192  ;;  %p3542_p5 = scmp.lt.s32.totalorder %s153_s3, %s153_s3 }
  0x96   :  { %p3538_p4 = scmp.ne.s32.totalorder %s153_s3, %s3537_s24  ;;  %p3543_p6 = scmp.lt.s32.totalorder %s3537_s24, %s3537_s24 }
  0x98   :  { %p3544_p7 = por %p3543_p6, %p3542_p5 }
  0x9a   :  { %p3545_p8 = pnand %p3544_p7, %p3538_p4 }
  0x9c   :  { %3548 = shalt.err (!%p3545_p8)
}
  0x9d   :  { %158 = dma.hbm_to_vmem [thread:$0]  %s4155_s11, 8192, %s153_s3, [#allocation19], %s3631_s25, %s3631_s25, %s3632_s5  }
  0x9e   :  { %s3557_s8 = scalar_lea.vmem %s177_s4, 16384  ;;  %p3562_p10 = scmp.lt.s32.totalorder %s177_s4, %s177_s4 }
  0x9f   :  { %p3558_p9 = scmp.ne.s32.totalorder %s177_s4, %s3557_s8  ;;  %p3563_p11 = scmp.lt.s32.totalorder %s3557_s8, %s3557_s8 }
  0xa1   :  { %p3564_p12 = por %p3563_p11, %p3562_p10 }
  0xa3   :  { %p3565_p13 = pnand %p3564_p12, %p3558_p9 }
  0xa5   :  { %3568 = shalt.err (!%p3565_p13)
}
  0xa6   :  { %182 = dma.hbm_to_vmem [thread:$0]  %s4158_s14, 16384, %s177_s4, [#allocation22], %s3637_s9, %s3637_s9, %s3638_s29  }
  0xa7   :  { %s3645_s30 = smov [#allocation26]  }
  0xa8   :  { %s208_s27 = sshll.u32 %s3645_s30, 4  ;;  %s209_s27 = int_to_ptr.vmem [resolvable:$true] %s208_s27 }
  0xa9   :  { %s3577_s15 = scalar_lea.vmem %s209_s27, 2048  ;;  %p3582_p1 = scmp.lt.s32.totalorder %s209_s27, %s209_s27 }
  0xaa   :  { %p3578_p0 = scmp.ne.s32.totalorder %s209_s27, %s3577_s15  ;;  %p3583_p2 = scmp.lt.s32.totalorder %s3577_s15, %s3577_s15 }
  0xac   :  { %p3584_p3 = por %p3583_p2, %p3582_p1 }
  0xae   :  { %p3585_p4 = pnand %p3584_p3, %p3578_p0 }
  0xb0   :  { %3588 = shalt.err (!%p3585_p4)
}
  0xb1   :  { %s3646_s11 = smov 128   ;;  %s3647_s25 = smov 8  }
  0xb2   :  { %214 = dma.hbm_to_vmem [thread:$0]  %s4164_s20, 2048, %s209_s27, [#allocation25], %s3646_s11, %s3646_s11, %s3647_s25  }
  0xb3   :  { %3609 = dma.done.wait [#allocation4], 64  }
  0xb4   :  { %3610 = vsyncadd [#allocation4], 4294967232 }
  0xb5   :  { %3611 = dma.done.wait [#allocation7], 1600  }
  0xb6   :  { %3612 = vsyncadd [#allocation7], 4294965696 }
  0xb7   :  { %3613 = dma.done.wait [#allocation10], 128  }
  0xb8   :  { %3614 = vsyncadd [#allocation10], 4294967168 }
  0xb9   :  { %3615 = dma.done.wait [#allocation13], 8256  }
  0xba   :  { %3616 = vsyncadd [#allocation13], 4294959040 }
  0xbb   :  { %3617 = dma.done.wait [#allocation16], 1088  }
  0xbc   :  { %3618 = vsyncadd [#allocation16], 4294966208 }
  0xbd   :  { %3619 = dma.done.wait [#allocation19], 8256  }
  0xbe   :  { %3620 = vsyncadd [#allocation19], 4294959040 }
  0xbf   :  { %3621 = dma.done.wait [#allocation22], 16448  }
  0xc0   :  { %3622 = vsyncadd [#allocation22], 4294950848 }
  0xc1   :  { %3623 = dma.done.wait [#allocation25], 18432  }
  0xc2   :  { %3624 = vsyncadd [#allocation25], 4294948864  ;;  %v3648_v1 = vmov 0   ;;  %v275_v2 = vld [vmem:[#allocation8 + $0x48] sm:$0xff]  ;;  %v277_v3 = vld [vmem:[#allocation8 + $0x58] sm:$0xff]  ;;  %vm302_vm0 = vcmask 785408  }
  0xc3   :  { %338 = vmatprep.mubr.bf16.mxu0 %v3648_v1  ;;  %379 = vmatprep.mubr.bf16.mxu1 %v3648_v1  ;;  %v274_v4 = vld [vmem:[#allocation8 + $0x40] sm:$0xff]  ;;  %v295_v5 = vunpack.c.l.s8.bf16 %v275_v2  ;;  %v299_v6 = vunpack.c.h.s8.bf16 %v275_v2  ;;  %v297_v7 = vunpack.c.l.s8.bf16 %v277_v3  ;;  %v301_v8 = vunpack.c.h.s8.bf16 %v277_v3  ;;  %v276_v9 = vld [vmem:[#allocation8 + $0x50] sm:$0xff]  ;;  %v271_v12 = vld [vmem:[#allocation8 + $0x28] sm:$0xff] }
  0xc4   :  { %3285 = vset.pattern.permute.xlu1 %v3648_v1  ;;  %3286 = vset.pattern.permute.xlu0 %v3648_v1  ;;  %v298_v10 = vunpack.c.h.s8.bf16 %v274_v4  ;;  %v300_v11 = vunpack.c.h.s8.bf16 %v276_v9  ;;  %v273_v13 = vld [vmem:[#allocation8 + $0x38] sm:$0xff]  ;;  %v294_v14 = vunpack.c.l.s8.bf16 %v274_v4  ;;  %v296_v15 = vunpack.c.l.s8.bf16 %v276_v9  ;;  %v270_v18 = vld [vmem:[#allocation8 + $0x20] sm:$0xff]  ;;  %v272_v19 = vld [vmem:[#allocation8 + $0x30] sm:$0xff] }
  0xc5   :  { %310 = vmatprep.subr.bf16.mxu0 %v299_v6  ;;  %351 = vmatprep.subr.bf16.mxu1 %v301_v8  ;;  %v291_v16 = vunpack.c.h.s8.bf16 %v271_v12  ;;  %v293_v17 = vunpack.c.h.s8.bf16 %v273_v13  ;;  %v290_v20 = vunpack.c.h.s8.bf16 %v270_v18  ;;  %v292_v21 = vunpack.c.h.s8.bf16 %v272_v19  ;;  %v267_v24 = vld [vmem:[#allocation8 + $0x8] sm:$0xff]  ;;  %v269_v25 = vld [vmem:[#allocation8 + $0x18] sm:$0xff]  ;;  %v266_v30 = vld [vmem:[#allocation8] sm:$0xff] }
  0xc6   :  { %311 = vmatpush1.bf16.msra.mxu0 %v298_v10  ;;  %352 = vmatpush1.bf16.msra.mxu1 %v300_v11  ;;  %v287_v22 = vunpack.c.l.s8.bf16 %v271_v12  ;;  %v289_v23 = vunpack.c.l.s8.bf16 %v273_v13  ;;  %v286_v26 = vunpack.c.l.s8.bf16 %v270_v18  ;;  %v288_v27 = vunpack.c.l.s8.bf16 %v272_v19  ;;  %v268_v31 = vld [vmem:[#allocation8 + $0x10] sm:$0xff]  ;;  %v460_v42 = vld [vmem:[#allocation12 + $0x60] sm:$0xff]  ;;  %v265_v44 = vld [vmem:[#allocation3] sm:$0xf] }
  0xc7   :  { %312 = vmatprep.subr.bf16.mxu0 %v295_v5  ;;  %353 = vmatprep.subr.bf16.mxu1 %v297_v7  ;;  %v283_v28 = vunpack.c.h.s8.bf16 %v267_v24  ;;  %v285_v29 = vunpack.c.h.s8.bf16 %v269_v25  ;;  %v282_v32 = vunpack.c.h.s8.bf16 %v266_v30  ;;  %v284_v33 = vunpack.c.h.s8.bf16 %v268_v31  ;;  %v461_v36 = vld [vmem:[#allocation12 + $0x68] sm:$0xff]  ;;  %v492_v43 = vld [vmem:[#allocation12 + $0x160] sm:$0xff] }
  0xc8   :  { %v279_v34 = vunpack.c.l.s8.bf16 %v267_v24  ;;  %v281_v35 = vunpack.c.l.s8.bf16 %v269_v25  ;;  %v493_v37 = vld [vmem:[#allocation12 + $0x168] sm:$0xff]  ;;  %v278_v38 = vunpack.c.l.s8.bf16 %v266_v30  ;;  %v280_v39 = vunpack.c.l.s8.bf16 %v268_v31  ;;  %v456_v55 = vld [vmem:[#allocation12 + $0x40] sm:$0xff] }
  0xc9   :  { %v541_v40 = vunpack.c.h.s8.bf16 %v461_v36  ;;  %v605_v41 = vunpack.c.h.s8.bf16 %v493_v37  ;;  %v540_v45 = vunpack.c.h.s8.bf16 %v460_v42  ;;  %v604_v46 = vunpack.c.h.s8.bf16 %v492_v43  ;;  %v457_v49 = vld [vmem:[#allocation12 + $0x48] sm:$0xff]  ;;  %v488_v56 = vld [vmem:[#allocation12 + $0x140] sm:$0xff] }
  0xca   :  { %313 = vmatpush1.bf16.msra.mxu0 %v294_v14  ;;  %354 = vmatpush1.bf16.msra.mxu1 %v296_v15  ;;  %v537_v47 = vunpack.c.l.s8.bf16 %v461_v36  ;;  %v601_v48 = vunpack.c.l.s8.bf16 %v493_v37  ;;  %v489_v50 = vld [vmem:[#allocation12 + $0x148] sm:$0xff]  ;;  %v536_v51 = vunpack.c.l.s8.bf16 %v460_v42  ;;  %v600_v52 = vunpack.c.l.s8.bf16 %v492_v43  ;;  %v452_v4 = vld [vmem:[#allocation12 + $0x20] sm:$0xff] }
  0xcb   :  { %314 = vmatprep.subr.bf16.mxu0 %v291_v16  ;;  %355 = vmatprep.subr.bf16.mxu1 %v293_v17  ;;  %v533_v53 = vunpack.c.h.s8.bf16 %v457_v49  ;;  %v597_v54 = vunpack.c.h.s8.bf16 %v489_v50  ;;  %v532_v57 = vunpack.c.h.s8.bf16 %v456_v55  ;;  %v596_v58 = vunpack.c.h.s8.bf16 %v488_v56  ;;  %v453_v61 = vld [vmem:[#allocation12 + $0x28] sm:$0xff]  ;;  %v484_v5 = vld [vmem:[#allocation12 + $0x120] sm:$0xff] }
  0xcc   :  { %v529_v59 = vunpack.c.l.s8.bf16 %v457_v49  ;;  %v593_v60 = vunpack.c.l.s8.bf16 %v489_v50  ;;  %v485_v62 = vld [vmem:[#allocation12 + $0x128] sm:$0xff]  ;;  %v528_v63 = vunpack.c.l.s8.bf16 %v456_v55  ;;  %v592_v0 = vunpack.c.l.s8.bf16 %v488_v56  ;;  %v448_v16 = vld [vmem:[#allocation12] sm:$0xff] }
  0xcd   :  { %v525_v2 = vunpack.c.h.s8.bf16 %v453_v61  ;;  %v589_v3 = vunpack.c.h.s8.bf16 %v485_v62  ;;  %v524_v6 = vunpack.c.h.s8.bf16 %v452_v4  ;;  %v588_v7 = vunpack.c.h.s8.bf16 %v484_v5  ;;  %v449_v10 = vld [vmem:[#allocation12 + $0x8] sm:$0xff]  ;;  %v480_v17 = vld [vmem:[#allocation12 + $0x100] sm:$0xff] }
  0xce   :  { %315 = vmatpush1.bf16.msra.mxu0 %v290_v20  ;;  %356 = vmatpush1.bf16.msra.mxu1 %v292_v21  ;;  %v521_v8 = vunpack.c.l.s8.bf16 %v453_v61  ;;  %v585_v9 = vunpack.c.l.s8.bf16 %v485_v62  ;;  %v481_v11 = vld [vmem:[#allocation12 + $0x108] sm:$0xff]  ;;  %v520_v12 = vunpack.c.l.s8.bf16 %v452_v4  ;;  %v584_v13 = vunpack.c.l.s8.bf16 %v484_v5  ;;  %v464_v62 = vld [vmem:[#allocation12 + $0x80] sm:$0xff] }
  0xcf   :  { %316 = vmatprep.subr.bf16.mxu0 %v287_v22  ;;  %357 = vmatprep.subr.bf16.mxu1 %v289_v23  ;;  %v517_v14 = vunpack.c.h.s8.bf16 %v449_v10  ;;  %v581_v15 = vunpack.c.h.s8.bf16 %v481_v11  ;;  %v516_v18 = vunpack.c.h.s8.bf16 %v448_v16  ;;  %v580_v19 = vunpack.c.h.s8.bf16 %v480_v17  ;;  %v477_v22 = vld [vmem:[#allocation12 + $0xe8] sm:$0xff] }
  0xd0   :  { %v513_v20 = vunpack.c.l.s8.bf16 %v449_v10  ;;  %v577_v21 = vunpack.c.l.s8.bf16 %v481_v11  ;;  %v509_v23 = vld [vmem:[#allocation12 + $0x1e8] sm:$0xff]  ;;  %v512_v24 = vunpack.c.l.s8.bf16 %v448_v16  ;;  %v576_v25 = vunpack.c.l.s8.bf16 %v480_v17  ;;  %v3842_v10 = vld [vmem:[#allocation12 + $0x178] sm:$0xff] }
  0xd1   :  { %v497_v61 = vld [vmem:[#allocation12 + $0x188] sm:$0xff]  ;;  %v388_v17 = vld [vmem:[#allocation9] sm:$0xf]  ;;  %vm885_vm1 = vcmask 523264  }
  0xd2   :  { %317 = vmatpush1.bf16.msra.mxu0 %v286_v26  ;;  %358 = vmatpush1.bf16.msra.mxu1 %v288_v27  ;;  %v573_v26 = vunpack.c.h.s8.bf16 %v477_v22  ;;  %v637_v27 = vunpack.c.h.s8.bf16 %v509_v23 }
  0xd3   :  { %318 = vmatprep.subr.bf16.mxu0 %v283_v28  ;;  %359 = vmatprep.subr.bf16.mxu1 %v285_v29  ;;  %v476_v28 = vld [vmem:[#allocation12 + $0xe0] sm:$0xff] }
  0xd4   :  { %v508_v29 = vld [vmem:[#allocation12 + $0x1e0] sm:$0xff]  ;;  %v572_v30 = vunpack.c.h.s8.bf16 %v476_v28  ;;  %v568_v36 = vunpack.c.l.s8.bf16 %v476_v28 }
  0xd5   :  { %v636_v31 = vunpack.c.h.s8.bf16 %v508_v29  ;;  %v632_v37 = vunpack.c.l.s8.bf16 %v508_v29 }
  0xd6   :  { %319 = vmatpush1.bf16.msra.mxu0 %v282_v32  ;;  %360 = vmatpush1.bf16.msra.mxu1 %v284_v33  ;;  %v569_v32 = vunpack.c.l.s8.bf16 %v477_v22  ;;  %v633_v33 = vunpack.c.l.s8.bf16 %v509_v23 }
  0xd7   :  { %320 = vmatprep.subr.bf16.mxu0 %v279_v34  ;;  %361 = vmatprep.subr.bf16.mxu1 %v281_v35  ;;  %v473_v34 = vld [vmem:[#allocation12 + $0xc8] sm:$0xff] }
  0xd8   :  { %v505_v35 = vld [vmem:[#allocation12 + $0x1c8] sm:$0xff] }
  0xda   :  { %321 = vmatpush1.bf16.msra.mxu0 %v278_v38  ;;  %362 = vmatpush1.bf16.msra.mxu1 %v280_v39  ;;  %v565_v38 = vunpack.c.h.s8.bf16 %v473_v34  ;;  %v629_v39 = vunpack.c.h.s8.bf16 %v505_v35 }
  0xdb   :  { %640 = vmatprep.subr.bf16.mxu0 %v541_v40  ;;  %681 = vmatprep.subr.bf16.mxu1 %v605_v41  ;;  %v472_v40 = vld [vmem:[#allocation12 + $0xc0] sm:$0xff] }
  0xdc   :  { %v504_v41 = vld [vmem:[#allocation12 + $0x1c0] sm:$0xff]  ;;  %v564_v42 = vunpack.c.h.s8.bf16 %v472_v40 }
  0xdd   :  { %3211 = vmatmul.mubr.msk.bf16.vlgmr.msra.gmra.mxu0 %vm302_vm0, %v265_v44  ;;  %3212 = vmatmul.mubr.msk.bf16.vlgmr.msra.gmra.mxu1 %vm302_vm0, %v265_v44  ;;  %v628_v43 = vunpack.c.h.s8.bf16 %v504_v41  ;;  %v561_v44 = vunpack.c.l.s8.bf16 %v473_v34  ;;  %v624_v49 = vunpack.c.l.s8.bf16 %v504_v41 }
  0xde   :  { %641 = vmatpush1.bf16.msra.mxu0 %v540_v45  ;;  %682 = vmatpush1.bf16.msra.mxu1 %v604_v46  ;;  %v625_v45 = vunpack.c.l.s8.bf16 %v505_v35  ;;  %v469_v46 = vld [vmem:[#allocation12 + $0xa8] sm:$0xff] }
  0xdf   :  { %642 = vmatprep.subr.bf16.mxu0 %v537_v47  ;;  %683 = vmatprep.subr.bf16.mxu1 %v601_v48  ;;  %v501_v47 = vld [vmem:[#allocation12 + $0x1a8] sm:$0xff]  ;;  %v560_v48 = vunpack.c.l.s8.bf16 %v472_v40  ;;  %v557_v50 = vunpack.c.h.s8.bf16 %v469_v46  ;;  %v553_v56 = vunpack.c.l.s8.bf16 %v469_v46 }
  0xe2   :  { %643 = vmatpush1.bf16.msra.mxu0 %v536_v51  ;;  %684 = vmatpush1.bf16.msra.mxu1 %v600_v52  ;;  %v621_v51 = vunpack.c.h.s8.bf16 %v501_v47  ;;  %v468_v52 = vld [vmem:[#allocation12 + $0xa0] sm:$0xff] }
  0xe3   :  { %644 = vmatprep.subr.bf16.mxu0 %v533_v53  ;;  %685 = vmatprep.subr.bf16.mxu1 %v597_v54  ;;  %v500_v53 = vld [vmem:[#allocation12 + $0x1a0] sm:$0xff]  ;;  %v556_v54 = vunpack.c.h.s8.bf16 %v468_v52 }
  0xe4   :  { %v620_v55 = vunpack.c.h.s8.bf16 %v500_v53 }
  0xe6   :  { %645 = vmatpush1.bf16.msra.mxu0 %v532_v57  ;;  %686 = vmatpush1.bf16.msra.mxu1 %v596_v58  ;;  %v617_v57 = vunpack.c.l.s8.bf16 %v501_v47  ;;  %v552_v58 = vunpack.c.l.s8.bf16 %v468_v52  ;;  %v462_v47 = vld [vmem:[#allocation12 + $0x70] sm:$0xff] }
  0xe7   :  { %646 = vmatprep.subr.bf16.mxu0 %v529_v59  ;;  %687 = vmatprep.subr.bf16.mxu1 %v593_v60  ;;  %v616_v59 = vunpack.c.l.s8.bf16 %v500_v53  ;;  %v465_v60 = vld [vmem:[#allocation12 + $0x88] sm:$0xff]  ;;  %v542_v53 = vunpack.c.h.s8.bf16 %v462_v47 }
  0xe8   :  { %v545_v5 = vunpack.c.l.s8.bf16 %v465_v60 }
  0xea   :  { %647 = vmatpush1.bf16.msra.mxu0 %v528_v63  ;;  %688 = vmatpush1.bf16.msra.mxu1 %v592_v0  ;;  %v496_v63 = vld [vmem:[#allocation12 + $0x180] sm:$0xff]  ;;  %v549_v0 = vunpack.c.h.s8.bf16 %v465_v60  ;;  %v491_v60 = vld [vmem:[#allocation12 + $0x158] sm:$0xff] }
  0xeb   :  { %648 = vmatprep.subr.bf16.mxu0 %v525_v2  ;;  %689 = vmatprep.subr.bf16.mxu1 %v589_v3  ;;  %v613_v2 = vunpack.c.h.s8.bf16 %v497_v61  ;;  %v548_v3 = vunpack.c.h.s8.bf16 %v464_v62  ;;  %v612_v4 = vunpack.c.h.s8.bf16 %v496_v63 }
  0xee   :  { %649 = vmatpush1.bf16.msra.mxu0 %v524_v6  ;;  %690 = vmatpush1.bf16.msra.mxu1 %v588_v7  ;;  %v609_v6 = vunpack.c.l.s8.bf16 %v497_v61  ;;  %v544_v7 = vunpack.c.l.s8.bf16 %v464_v62  ;;  %v538_v61 = vunpack.c.l.s8.bf16 %v462_v47 }
  0xef   :  { %650 = vmatprep.subr.bf16.mxu0 %v521_v8  ;;  %691 = vmatprep.subr.bf16.mxu1 %v585_v9  ;;  %v608_v8 = vunpack.c.l.s8.bf16 %v496_v63  ;;  %v3840_v9 = vld [vmem:[#allocation12 + $0x78] sm:$0xff] }
  0xf0   :  { %v543_v11 = vunpack.c.h.s8.bf16 %v3840_v9 }
  0xf2   :  { %651 = vmatpush1.bf16.msra.mxu0 %v520_v12  ;;  %692 = vmatpush1.bf16.msra.mxu1 %v584_v13  ;;  %v607_v12 = vunpack.c.h.s8.bf16 %v3842_v10  ;;  %v390_v13 = vlaneseq }
  0xf3   :  { %652 = vmatprep.subr.bf16.mxu0 %v517_v14  ;;  %693 = vmatprep.subr.bf16.mxu1 %v581_v15 }
  0xf4   :  { %v3847_v14 = vshrl.u32 %v390_v13, 7 }
  0xf6   :  { %653 = vmatpush1.bf16.msra.mxu0 %v516_v18  ;;  %694 = vmatpush1.bf16.msra.mxu1 %v580_v19  ;;  %v3850_v15 = vsub.s32 0, %v3847_v14  ;;  %v3853_v16 = vsub.s32 2, %v3847_v14  ;;  %v3856_v18 = vsub.s32 1, %v3847_v14  ;;  %v3859_v19 = vsub.s32 3, %v3847_v14 }
  0xf7   :  { %654 = vmatprep.subr.bf16.mxu0 %v513_v20  ;;  %695 = vmatprep.subr.bf16.mxu1 %v577_v21  ;;  %v414_v20 = vld [vmem:[#allocation11] sm:$0xf] }
  0xf8   :  { %v393_v21 = vrot.slane %v388_v17, %v3850_v15  ;;  %v401_v22 = vrot.slane %v388_v17, %v3853_v16  ;;  %v419_v23 = vrot.slane %v414_v20, %v3850_v15 }
  0xfa   :  { %655 = vmatpush1.bf16.msra.mxu0 %v512_v24  ;;  %696 = vmatpush1.bf16.msra.mxu1 %v576_v25  ;;  %v427_v24 = vrot.slane %v414_v20, %v3853_v16  ;;  %v397_v25 = vrot.slane %v388_v17, %v3856_v18 }
  0xfb   :  { %656 = vmatprep.subr.bf16.mxu0 %v573_v26  ;;  %697 = vmatprep.subr.bf16.mxu1 %v637_v27  ;;  %v405_v26 = vrot.slane %v388_v17, %v3859_v19 }
  0xfe   :  { %657 = vmatpush2.bf16.msra.mxu0 %v572_v30  ;;  %698 = vmatpush2.bf16.msra.mxu1 %v636_v31  ;;  %v423_v31 = vrot.slane %v414_v20, %v3856_v18 }
  0xff   :  { %658 = vmatprep.subr.bf16.mxu0 %v569_v32  ;;  %699 = vmatprep.subr.bf16.mxu1 %v633_v33  ;;  %v431_v32 = vrot.slane %v414_v20, %v3859_v19  ;;  %v454_v20 = vld [vmem:[#allocation12 + $0x30] sm:$0xff] }
 0x102   :  { %659 = vmatpush2.bf16.msra.mxu0 %v568_v36  ;;  %700 = vmatpush2.bf16.msra.mxu1 %v632_v37 }
 0x103   :  { %660 = vmatprep.subr.bf16.mxu0 %v565_v38  ;;  %701 = vmatprep.subr.bf16.mxu1 %v629_v39 }
 0x106   :  { %661 = vmatpush2.bf16.msra.mxu0 %v564_v42  ;;  %702 = vmatpush2.bf16.msra.mxu1 %v628_v43 }
 0x107   :  { %662 = vmatprep.subr.bf16.mxu0 %v561_v44  ;;  %703 = vmatprep.subr.bf16.mxu1 %v625_v45 }
 0x10a   :  { %663 = vmatpush2.bf16.msra.mxu0 %v560_v48  ;;  %704 = vmatpush2.bf16.msra.mxu1 %v624_v49  ;;  %v494_v48 = vld [vmem:[#allocation12 + $0x170] sm:$0xff] }
 0x10b   :  { %664 = vmatprep.subr.bf16.mxu0 %v557_v50  ;;  %705 = vmatprep.subr.bf16.mxu1 %v621_v51  ;;  %v602_v62 = vunpack.c.l.s8.bf16 %v494_v48 }
 0x10e   :  { %665 = vmatpush2.bf16.msra.mxu0 %v556_v54  ;;  %706 = vmatpush2.bf16.msra.mxu1 %v620_v55  ;;  %v606_v54 = vunpack.c.h.s8.bf16 %v494_v48 }
 0x10f   :  { %666 = vmatprep.subr.bf16.mxu0 %v553_v56  ;;  %707 = vmatprep.subr.bf16.mxu1 %v617_v57  ;;  %v539_v57 = vunpack.c.l.s8.bf16 %v3840_v9  ;;  %v487_v9 = vld [vmem:[#allocation12 + $0x138] sm:$0xff] }
 0x110   :  { %v591_v17 = vunpack.c.h.s8.bf16 %v487_v9 }
 0x112   :  { %667 = vmatpush2.bf16.msra.mxu0 %v552_v58  ;;  %708 = vmatpush2.bf16.msra.mxu1 %v616_v59  ;;  %v603_v58 = vunpack.c.l.s8.bf16 %v3842_v10  ;;  %v459_v59 = vld [vmem:[#allocation12 + $0x58] sm:$0xff] }
 0x113   :  { %668 = vmatprep.subr.bf16.mxu0 %v549_v0  ;;  %709 = vmatprep.subr.bf16.mxu1 %v613_v2  ;;  %v535_v63 = vunpack.c.h.s8.bf16 %v459_v59  ;;  %v599_v0 = vunpack.c.h.s8.bf16 %v491_v60  ;;  %v458_v2 = vld [vmem:[#allocation12 + $0x50] sm:$0xff] }
 0x114   :  { %v530_v10 = vunpack.c.l.s8.bf16 %v458_v2 }
 0x116   :  { %669 = vmatpush2.bf16.msra.mxu0 %v548_v3  ;;  %710 = vmatpush2.bf16.msra.mxu1 %v612_v4  ;;  %v490_v3 = vld [vmem:[#allocation12 + $0x150] sm:$0xff]  ;;  %v534_v4 = vunpack.c.h.s8.bf16 %v458_v2  ;;  %v503_v2 = vld [vmem:[#allocation12 + $0x1b8] sm:$0xff] }
 0x117   :  { %670 = vmatprep.subr.bf16.mxu0 %v545_v5  ;;  %711 = vmatprep.subr.bf16.mxu1 %v609_v6  ;;  %v598_v5 = vunpack.c.h.s8.bf16 %v490_v3  ;;  %v531_v6 = vunpack.c.l.s8.bf16 %v459_v59  ;;  %v506_v59 = vld [vmem:[#allocation12 + $0x1d0] sm:$0xff] }
 0x11a   :  { %671 = vmatpush2.bf16.msra.mxu0 %v544_v7  ;;  %712 = vmatpush2.bf16.msra.mxu1 %v608_v8  ;;  %v595_v7 = vunpack.c.l.s8.bf16 %v491_v60  ;;  %v455_v8 = vld [vmem:[#allocation12 + $0x38] sm:$0xff] }
 0x11b   :  { %722 = vmatprep.subr.bf16.mxu0 %v543_v11  ;;  %763 = vmatprep.subr.bf16.mxu1 %v607_v12  ;;  %v594_v11 = vunpack.c.l.s8.bf16 %v490_v3  ;;  %v527_v12 = vunpack.c.h.s8.bf16 %v455_v8 }
 0x19d   :  { %v340_v27 = vpop.f32.mrf.mxu0  ;;  %v381_v28 = vpop.f32.mrf.mxu1 }
 0x19e   :  { %v410_v29 = vmul.f32 %v393_v21, %v340_v27  ;;  %v412_v30 = vmul.f32 %v401_v22, %v381_v28  ;;  %v486_v21 = vld [vmem:[#allocation12 + $0x130] sm:$0xff]  ;;  %v526_v22 = vunpack.c.h.s8.bf16 %v454_v20  ;;  %v483_v27 = vld [vmem:[#allocation12 + $0x118] sm:$0xff]  ;;  %v522_v28 = vunpack.c.l.s8.bf16 %v454_v20 }
 0x19f   :  { %v342_v33 = vpop.f32.mrf.mxu0  ;;  %v383_v34 = vpop.f32.mrf.mxu1  ;;  %v499_v20 = vld [vmem:[#allocation12 + $0x198] sm:$0xff] }
 0x1a0   :  { %v436_v35 = vadd.f32 %v419_v23, %v410_v29  ;;  %v438_v36 = vadd.f32 %v427_v24, %v412_v30  ;;  %v411_v37 = vmul.f32 %v397_v25, %v342_v33  ;;  %v413_v38 = vmul.f32 %v405_v26, %v383_v34  ;;  %v451_v26 = vld [vmem:[#allocation12 + $0x18] sm:$0xff]  ;;  %v482_v33 = vld [vmem:[#allocation12 + $0x110] sm:$0xff] }
 0x1a1   :  { %v344_v39 = vpop.f32.mrf.mxu0  ;;  %v385_v40 = vpop.f32.mrf.mxu1  ;;  %v590_v23 = vunpack.c.h.s8.bf16 %v486_v21  ;;  %v523_v24 = vunpack.c.l.s8.bf16 %v455_v8  ;;  %v587_v25 = vunpack.c.l.s8.bf16 %v487_v9  ;;  %v586_v29 = vunpack.c.l.s8.bf16 %v486_v21  ;;  %v502_v8 = vld [vmem:[#allocation12 + $0x1b0] sm:$0xff] }
 0x1a2   :  { %v437_v41 = vadd.f32 %v423_v31, %v411_v37  ;;  %v439_v42 = vadd.f32 %v431_v32, %v413_v38  ;;  %v440_v43 = vmax.f32 %v436_v35, 0.0  ;;  %v442_v44 = vmax.f32 %v438_v36, 0.0  ;;  %v450_v32 = vld [vmem:[#allocation12 + $0x10] sm:$0xff]  ;;  %v479_v38 = vld [vmem:[#allocation12 + $0xf8] sm:$0xff] }
 0x1a3   :  { %v345_v45 = vpop.f32.mrf.mxu0  ;;  %v386_v46 = vpop.f32.mrf.mxu1  ;;  %v519_v30 = vunpack.c.h.s8.bf16 %v451_v26  ;;  %v583_v31 = vunpack.c.h.s8.bf16 %v483_v27  ;;  %v518_v34 = vunpack.c.h.s8.bf16 %v450_v32  ;;  %v582_v35 = vunpack.c.h.s8.bf16 %v482_v33  ;;  %v511_v39 = vld [vmem:[#allocation12 + $0x1f8] sm:$0xff] }
 0x1a4   :  { %v441_v49 = vmax.f32 %v437_v41, 0.0  ;;  %v443_v50 = vmax.f32 %v439_v42, 0.0  ;;  %v3869_v55 = vpack.c.bf16 %v440_v43, %v440_v43  ;;  %v3871_v56 = vpack.c.bf16 %v442_v44, %v442_v44  ;;  %v478_v44 = vld [vmem:[#allocation12 + $0xf0] sm:$0xff] }
 0x1a5   :  { %v515_v36 = vunpack.c.l.s8.bf16 %v451_v26  ;;  %v579_v37 = vunpack.c.l.s8.bf16 %v483_v27  ;;  %v514_v40 = vunpack.c.l.s8.bf16 %v450_v32  ;;  %v578_v41 = vunpack.c.l.s8.bf16 %v482_v33  ;;  %v510_v45 = vld [vmem:[#allocation12 + $0x1f0] sm:$0xff]  ;;  %v868_v32 = vld [vmem:[#allocation17 + $0x38] sm:$0xff] }
 0x1a6   :  { %v445_v51 = vpack.c.bf16 %v441_v49, %v441_v49  ;;  %v447_v52 = vpack.c.bf16 %v443_v50, %v443_v50  ;;  %v575_v42 = vunpack.c.h.s8.bf16 %v479_v38  ;;  %v639_v43 = vunpack.c.h.s8.bf16 %v511_v39  ;;  %v475_v50 = vld [vmem:[#allocation12 + $0xd8] sm:$0xff]  ;;  %v498_v26 = vld [vmem:[#allocation12 + $0x190] sm:$0xff] }
 0x1a7   :  { %v574_v46 = vunpack.c.h.s8.bf16 %v478_v44  ;;  %v638_v47 = vunpack.c.h.s8.bf16 %v510_v45  ;;  %v571_v48 = vunpack.c.l.s8.bf16 %v479_v38  ;;  %v635_v49 = vunpack.c.l.s8.bf16 %v511_v39  ;;  %v867_v38 = vld [vmem:[#allocation17 + $0x30] sm:$0xff] }
 0x1a8   :  { %672 = vmatprep.mubr.bf16.mxu0 %v445_v51  ;;  %713 = vmatprep.mubr.bf16.mxu1 %v447_v52 }
 0x1a9   :  { %673 = vmatmul.mubr.bf16.vlgmr.msra.gmra.mxu0 %v3869_v55  ;;  %714 = vmatmul.mubr.bf16.vlgmr.msra.gmra.mxu1 %v3871_v56 }
 0x1aa   :  { %723 = vmatpush1.bf16.msra.mxu0 %v542_v53  ;;  %764 = vmatpush1.bf16.msra.mxu1 %v606_v54  ;;  %v634_v53 = vunpack.c.l.s8.bf16 %v510_v45  ;;  %v567_v54 = vunpack.c.h.s8.bf16 %v475_v50 }
 0x1ab   :  { %754 = vmatprep.mubr.bf16.mxu0 %v445_v51  ;;  %795 = vmatprep.mubr.bf16.mxu1 %v447_v52  ;;  %v507_v51 = vld [vmem:[#allocation12 + $0x1d8] sm:$0xff]  ;;  %v570_v52 = vunpack.c.l.s8.bf16 %v478_v44  ;;  %v864_v44 = vld [vmem:[#allocation17 + $0x18] sm:$0xff] }
 0x1ac   :  { %724 = vmatprep.subr.bf16.mxu0 %v539_v57  ;;  %765 = vmatprep.subr.bf16.mxu1 %v603_v58  ;;  %v631_v57 = vunpack.c.h.s8.bf16 %v507_v51  ;;  %v474_v58 = vld [vmem:[#allocation12 + $0xd0] sm:$0xff] }
 0x1ad   :  { %v566_v60 = vunpack.c.h.s8.bf16 %v474_v58  ;;  %v562_v3 = vunpack.c.l.s8.bf16 %v474_v58  ;;  %v1076_v58 = vld [vmem:[#allocation20 + $0x168] sm:$0xff] }
 0x1ae   :  { %725 = vmatpush1.bf16.msra.mxu0 %v538_v61  ;;  %766 = vmatpush1.bf16.msra.mxu1 %v602_v62  ;;  %v630_v61 = vunpack.c.h.s8.bf16 %v506_v59  ;;  %v563_v62 = vunpack.c.l.s8.bf16 %v475_v50  ;;  %v863_v50 = vld [vmem:[#allocation17 + $0x10] sm:$0xff] }
 0x1af   :  { %726 = vmatprep.subr.bf16.mxu0 %v535_v63  ;;  %767 = vmatprep.subr.bf16.mxu1 %v599_v0  ;;  %v627_v63 = vunpack.c.l.s8.bf16 %v507_v51  ;;  %v471_v0 = vld [vmem:[#allocation12 + $0xb8] sm:$0xff] }
 0x1b2   :  { %727 = vmatpush1.bf16.msra.mxu0 %v534_v4  ;;  %768 = vmatpush1.bf16.msra.mxu1 %v598_v5  ;;  %v626_v4 = vunpack.c.l.s8.bf16 %v506_v59  ;;  %v559_v5 = vunpack.c.h.s8.bf16 %v471_v0  ;;  %v1043_v59 = vld [vmem:[#allocation20 + $0x60] sm:$0xff] }
 0x1b3   :  { %728 = vmatprep.subr.bf16.mxu0 %v531_v6  ;;  %769 = vmatprep.subr.bf16.mxu1 %v595_v7  ;;  %v623_v6 = vunpack.c.h.s8.bf16 %v503_v2  ;;  %v470_v7 = vld [vmem:[#allocation12 + $0xb0] sm:$0xff] }
 0x1b4   :  { %v558_v9 = vunpack.c.h.s8.bf16 %v470_v7  ;;  %v554_v21 = vunpack.c.l.s8.bf16 %v470_v7 }
 0x1b6   :  { %729 = vmatpush1.bf16.msra.mxu0 %v530_v10  ;;  %770 = vmatpush1.bf16.msra.mxu1 %v594_v11  ;;  %v622_v10 = vunpack.c.h.s8.bf16 %v502_v8  ;;  %v555_v11 = vunpack.c.l.s8.bf16 %v471_v0 }
 0x1b7   :  { %730 = vmatprep.subr.bf16.mxu0 %v527_v12  ;;  %771 = vmatprep.subr.bf16.mxu1 %v591_v17  ;;  %v619_v12 = vunpack.c.l.s8.bf16 %v503_v2  ;;  %v467_v17 = vld [vmem:[#allocation12 + $0x98] sm:$0xff] }
 0x1ba   :  { %731 = vmatpush1.bf16.msra.mxu0 %v526_v22  ;;  %772 = vmatpush1.bf16.msra.mxu1 %v590_v23  ;;  %v618_v22 = vunpack.c.l.s8.bf16 %v502_v8  ;;  %v551_v23 = vunpack.c.h.s8.bf16 %v467_v17 }
 0x1bb   :  { %732 = vmatprep.subr.bf16.mxu0 %v523_v24  ;;  %773 = vmatprep.subr.bf16.mxu1 %v587_v25  ;;  %v615_v24 = vunpack.c.h.s8.bf16 %v499_v20  ;;  %v466_v25 = vld [vmem:[#allocation12 + $0x90] sm:$0xff] }
 0x1bc   :  { %v550_v27 = vunpack.c.h.s8.bf16 %v466_v25  ;;  %v546_v33 = vunpack.c.l.s8.bf16 %v466_v25 }
 0x1be   :  { %733 = vmatpush1.bf16.msra.mxu0 %v522_v28  ;;  %774 = vmatpush1.bf16.msra.mxu1 %v586_v29  ;;  %v614_v28 = vunpack.c.h.s8.bf16 %v498_v26  ;;  %v547_v29 = vunpack.c.l.s8.bf16 %v467_v17 }
 0x1bf   :  { %734 = vmatprep.subr.bf16.mxu0 %v519_v30  ;;  %775 = vmatprep.subr.bf16.mxu1 %v583_v31  ;;  %v611_v30 = vunpack.c.l.s8.bf16 %v499_v20  ;;  %v866_v31 = vld [vmem:[#allocation17 + $0x28] sm:$0xff] }
 0x1c2   :  { %735 = vmatpush1.bf16.msra.mxu0 %v518_v34  ;;  %776 = vmatpush1.bf16.msra.mxu1 %v582_v35  ;;  %v610_v34 = vunpack.c.l.s8.bf16 %v498_v26  ;;  %v882_v35 = vunpack.c.h.s8.bf16 %v866_v31 }
 0x1c3   :  { %736 = vmatprep.subr.bf16.mxu0 %v515_v36  ;;  %777 = vmatprep.subr.bf16.mxu1 %v579_v37  ;;  %v884_v36 = vunpack.c.h.s8.bf16 %v868_v32  ;;  %v865_v37 = vld [vmem:[#allocation17 + $0x20] sm:$0xff] }
 0x1c4   :  { %v881_v39 = vunpack.c.h.s8.bf16 %v865_v37  ;;  %v877_v45 = vunpack.c.l.s8.bf16 %v865_v37 }
 0x1c6   :  { %737 = vmatpush1.bf16.msra.mxu0 %v514_v40  ;;  %778 = vmatpush1.bf16.msra.mxu1 %v578_v41  ;;  %v883_v40 = vunpack.c.h.s8.bf16 %v867_v38  ;;  %v878_v41 = vunpack.c.l.s8.bf16 %v866_v31 }
 0x1c7   :  { %738 = vmatprep.subr.bf16.mxu0 %v575_v42  ;;  %779 = vmatprep.subr.bf16.mxu1 %v639_v43  ;;  %v880_v42 = vunpack.c.l.s8.bf16 %v868_v32  ;;  %v862_v43 = vld [vmem:[#allocation17 + $0x8] sm:$0xff] }
 0x1ca   :  { %739 = vmatpush2.bf16.msra.mxu0 %v574_v46  ;;  %780 = vmatpush2.bf16.msra.mxu1 %v638_v47  ;;  %v879_v46 = vunpack.c.l.s8.bf16 %v867_v38  ;;  %v874_v47 = vunpack.c.h.s8.bf16 %v862_v43 }
 0x1cb   :  { %740 = vmatprep.subr.bf16.mxu0 %v571_v48  ;;  %781 = vmatprep.subr.bf16.mxu1 %v635_v49  ;;  %v876_v48 = vunpack.c.h.s8.bf16 %v864_v44  ;;  %v861_v49 = vld [vmem:[#allocation17] sm:$0xff] }
 0x1cc   :  { %v873_v51 = vunpack.c.h.s8.bf16 %v861_v49 }
 0x1ce   :  { %741 = vmatpush2.bf16.msra.mxu0 %v570_v52  ;;  %782 = vmatpush2.bf16.msra.mxu1 %v634_v53  ;;  %v872_v52 = vunpack.c.l.s8.bf16 %v864_v44  ;;  %v869_v53 = vunpack.c.l.s8.bf16 %v861_v49 }
 0x1cf   :  { %742 = vmatprep.subr.bf16.mxu0 %v567_v54  ;;  %783 = vmatprep.subr.bf16.mxu1 %v631_v57  ;;  %v871_v54 = vunpack.c.l.s8.bf16 %v863_v50  ;;  %v1044_v57 = vld [vmem:[#allocation20 + $0x68] sm:$0xff] }
 0x1d0   :  { %v1120_v2 = vunpack.c.l.s8.bf16 %v1044_v57 }
 0x1d2   :  { %743 = vmatpush2.bf16.msra.mxu0 %v566_v60  ;;  %784 = vmatpush2.bf16.msra.mxu1 %v630_v61  ;;  %v1124_v60 = vunpack.c.h.s8.bf16 %v1044_v57  ;;  %v1188_v61 = vunpack.c.h.s8.bf16 %v1076_v58 }
 0x1d3   :  { %744 = vmatprep.subr.bf16.mxu0 %v563_v62  ;;  %785 = vmatprep.subr.bf16.mxu1 %v627_v63  ;;  %v860_v62 = vld [vmem:[#allocation6] sm:$0xf]  ;;  %v1123_v63 = vunpack.c.h.s8.bf16 %v1043_v59 }
 0x1d6   :  { %745 = vmatpush2.bf16.msra.mxu0 %v562_v3  ;;  %786 = vmatpush2.bf16.msra.mxu1 %v626_v4  ;;  %v1184_v3 = vunpack.c.l.s8.bf16 %v1076_v58  ;;  %v1040_v4 = vld [vmem:[#allocation20 + $0x48] sm:$0xff] }
 0x1d7   :  { %746 = vmatprep.subr.bf16.mxu0 %v559_v5  ;;  %787 = vmatprep.subr.bf16.mxu1 %v623_v6  ;;  %v1072_v5 = vld [vmem:[#allocation20 + $0x148] sm:$0xff]  ;;  %v1119_v6 = vunpack.c.l.s8.bf16 %v1043_v59  ;;  %v1116_v8 = vunpack.c.h.s8.bf16 %v1040_v4  ;;  %v1112_v20 = vunpack.c.l.s8.bf16 %v1040_v4 }
 0x1da   :  { %747 = vmatpush2.bf16.msra.mxu0 %v558_v9  ;;  %788 = vmatpush2.bf16.msra.mxu1 %v622_v10  ;;  %v1180_v9 = vunpack.c.h.s8.bf16 %v1072_v5  ;;  %v1039_v10 = vld [vmem:[#allocation20 + $0x40] sm:$0xff] }
 0x1db   :  { %748 = vmatprep.subr.bf16.mxu0 %v555_v11  ;;  %789 = vmatprep.subr.bf16.mxu1 %v619_v12  ;;  %v1071_v11 = vld [vmem:[#allocation20 + $0x140] sm:$0xff]  ;;  %v1115_v12 = vunpack.c.h.s8.bf16 %v1039_v10 }
 0x1dc   :  { %v1179_v17 = vunpack.c.h.s8.bf16 %v1071_v11  ;;  %v1175_v25 = vunpack.c.l.s8.bf16 %v1071_v11 }
 0x1de   :  { %749 = vmatpush2.bf16.msra.mxu0 %v554_v21  ;;  %790 = vmatpush2.bf16.msra.mxu1 %v618_v22  ;;  %v1176_v21 = vunpack.c.l.s8.bf16 %v1072_v5  ;;  %v1036_v22 = vld [vmem:[#allocation20 + $0x28] sm:$0xff] }
 0x1df   :  { %750 = vmatprep.subr.bf16.mxu0 %v551_v23  ;;  %791 = vmatprep.subr.bf16.mxu1 %v615_v24  ;;  %v1068_v23 = vld [vmem:[#allocation20 + $0x128] sm:$0xff]  ;;  %v1111_v24 = vunpack.c.l.s8.bf16 %v1039_v10  ;;  %v1108_v26 = vunpack.c.h.s8.bf16 %v1036_v22  ;;  %v1104_v32 = vunpack.c.l.s8.bf16 %v1036_v22 }
 0x1e2   :  { %751 = vmatpush2.bf16.msra.mxu0 %v550_v27  ;;  %792 = vmatpush2.bf16.msra.mxu1 %v614_v28  ;;  %v1172_v27 = vunpack.c.h.s8.bf16 %v1068_v23  ;;  %v1035_v28 = vld [vmem:[#allocation20 + $0x20] sm:$0xff] }
 0x1e3   :  { %752 = vmatprep.subr.bf16.mxu0 %v547_v29  ;;  %793 = vmatprep.subr.bf16.mxu1 %v611_v30  ;;  %v1067_v29 = vld [vmem:[#allocation20 + $0x120] sm:$0xff]  ;;  %v1107_v30 = vunpack.c.h.s8.bf16 %v1035_v28 }
 0x1e4   :  { %v1171_v31 = vunpack.c.h.s8.bf16 %v1067_v29  ;;  %v1167_v37 = vunpack.c.l.s8.bf16 %v1067_v29  ;;  %v1079_v29 = vld [vmem:[#allocation20 + $0x180] sm:$0xff] }
 0x1e6   :  { %753 = vmatpush2.bf16.msra.mxu0 %v546_v33  ;;  %794 = vmatpush2.bf16.msra.mxu1 %v610_v34  ;;  %v1168_v33 = vunpack.c.l.s8.bf16 %v1068_v23  ;;  %v1032_v34 = vld [vmem:[#allocation20 + $0x8] sm:$0xff] }
 0x1e7   :  { %897 = vmatprep.subr.bf16.mxu0 %v882_v35  ;;  %938 = vmatprep.subr.bf16.mxu1 %v884_v36  ;;  %v1064_v35 = vld [vmem:[#allocation20 + $0x108] sm:$0xff]  ;;  %v1103_v36 = vunpack.c.l.s8.bf16 %v1035_v28  ;;  %v1100_v38 = vunpack.c.h.s8.bf16 %v1032_v34  ;;  %v1096_v44 = vunpack.c.l.s8.bf16 %v1032_v34  ;;  %v1047_v28 = vld [vmem:[#allocation20 + $0x80] sm:$0xff] }
 0x1e9   :  { %755 = vmatmul.mubr.bf16.vlgmr.msra.gmra.mxu0 %v3869_v55  ;;  %796 = vmatmul.mubr.bf16.vlgmr.msra.gmra.mxu1 %v3871_v56  ;;  %v875_v55 = vunpack.c.h.s8.bf16 %v863_v50  ;;  %v870_v56 = vunpack.c.l.s8.bf16 %v862_v43 }
 0x1ea   :  { %898 = vmatpush1.bf16.msra.mxu0 %v881_v39  ;;  %939 = vmatpush1.bf16.msra.mxu1 %v883_v40  ;;  %v1164_v39 = vunpack.c.h.s8.bf16 %v1064_v35  ;;  %v1031_v40 = vld [vmem:[#allocation20] sm:$0xff] }
 0x1eb   :  { %899 = vmatprep.subr.bf16.mxu0 %v878_v41  ;;  %940 = vmatprep.subr.bf16.mxu1 %v880_v42  ;;  %v1063_v41 = vld [vmem:[#allocation20 + $0x100] sm:$0xff]  ;;  %v1099_v42 = vunpack.c.h.s8.bf16 %v1031_v40 }
 0x1ec   :  { %921 = vmatprep.mubr.bf16.mxu0 %v3648_v1  ;;  %962 = vmatprep.mubr.bf16.mxu1 %v3648_v1  ;;  %v1075_v1 = vld [vmem:[#allocation20 + $0x160] sm:$0xff]  ;;  %v1163_v43 = vunpack.c.h.s8.bf16 %v1063_v41  ;;  %v1159_v49 = vunpack.c.l.s8.bf16 %v1063_v41 }
 0x1ed   :  { %v1187_v0 = vunpack.c.h.s8.bf16 %v1075_v1  ;;  %v1183_v7 = vunpack.c.l.s8.bf16 %v1075_v1 }
 0x1ee   :  { %900 = vmatpush1.bf16.msra.mxu0 %v877_v45  ;;  %941 = vmatpush1.bf16.msra.mxu1 %v879_v46  ;;  %v1160_v45 = vunpack.c.l.s8.bf16 %v1064_v35  ;;  %v1060_v46 = vld [vmem:[#allocation20 + $0xe8] sm:$0xff] }
 0x1ef   :  { %901 = vmatprep.subr.bf16.mxu0 %v874_v47  ;;  %942 = vmatprep.subr.bf16.mxu1 %v876_v48  ;;  %v1092_v47 = vld [vmem:[#allocation20 + $0x1e8] sm:$0xff]  ;;  %v1095_v48 = vunpack.c.l.s8.bf16 %v1031_v40  ;;  %v1156_v50 = vunpack.c.h.s8.bf16 %v1060_v46 }
 0x1f0   :  { %v1216_v57 = vunpack.c.l.s8.bf16 %v1092_v47 }
 0x1f2   :  { %902 = vmatpush1.bf16.msra.mxu0 %v873_v51  ;;  %943 = vmatpush1.bf16.msra.mxu1 %v875_v55  ;;  %v1220_v51 = vunpack.c.h.s8.bf16 %v1092_v47  ;;  %v1059_v55 = vld [vmem:[#allocation20 + $0xe0] sm:$0xff] }
 0x1f3   :  { %903 = vmatprep.subr.bf16.mxu0 %v870_v56  ;;  %944 = vmatprep.subr.bf16.mxu1 %v872_v52  ;;  %v1091_v56 = vld [vmem:[#allocation20 + $0x1e0] sm:$0xff]  ;;  %v1155_v52 = vunpack.c.h.s8.bf16 %v1059_v55  ;;  %v1151_v58 = vunpack.c.l.s8.bf16 %v1059_v55 }
 0x1f4   :  { %v1215_v59 = vunpack.c.l.s8.bf16 %v1091_v56 }
 0x1f6   :  { %904 = vmatpush1.bf16.msra.mxu0 %v869_v53  ;;  %945 = vmatpush1.bf16.msra.mxu1 %v871_v54  ;;  %v1219_v53 = vunpack.c.h.s8.bf16 %v1091_v56  ;;  %v1152_v54 = vunpack.c.l.s8.bf16 %v1060_v46 }
 0x1f7   :  { %1223 = vmatprep.subr.bf16.mxu0 %v1124_v60  ;;  %1264 = vmatprep.subr.bf16.mxu1 %v1188_v61  ;;  %v1056_v60 = vld [vmem:[#allocation20 + $0xc8] sm:$0xff] }
 0x1f8   :  { %v1088_v61 = vld [vmem:[#allocation20 + $0x1c8] sm:$0xff]  ;;  %v1148_v1 = vunpack.c.h.s8.bf16 %v1056_v60  ;;  %v1144_v4 = vunpack.c.l.s8.bf16 %v1056_v60 }
 0x1f9   :  { %3213 = vmatmul.mubr.msk.bf16.vlgmr.msra.gmra.mxu0 %vm885_vm1, %v860_v62  ;;  %3214 = vmatmul.mubr.msk.bf16.vlgmr.msra.gmra.mxu1 %vm885_vm1, %v860_v62  ;;  %v1212_v62 = vunpack.c.h.s8.bf16 %v1088_v61  ;;  %v1208_v5 = vunpack.c.l.s8.bf16 %v1088_v61 }
 0x1fa   :  { %1224 = vmatpush1.bf16.msra.mxu0 %v1123_v63  ;;  %1265 = vmatpush1.bf16.msra.mxu1 %v1187_v0  ;;  %v1055_v63 = vld [vmem:[#allocation20 + $0xc0] sm:$0xff] }
 0x1fb   :  { %1225 = vmatprep.subr.bf16.mxu0 %v1120_v2  ;;  %1266 = vmatprep.subr.bf16.mxu1 %v1184_v3  ;;  %v1087_v0 = vld [vmem:[#allocation20 + $0x1c0] sm:$0xff]  ;;  %v1147_v2 = vunpack.c.h.s8.bf16 %v1055_v63 }
 0x1fc   :  { %v1211_v3 = vunpack.c.h.s8.bf16 %v1087_v0 }
 0x1fe   :  { %1226 = vmatpush1.bf16.msra.mxu0 %v1119_v6  ;;  %1267 = vmatpush1.bf16.msra.mxu1 %v1183_v7  ;;  %v1143_v6 = vunpack.c.l.s8.bf16 %v1055_v63  ;;  %v1207_v7 = vunpack.c.l.s8.bf16 %v1087_v0 }
 0x1ff   :  { %1227 = vmatprep.subr.bf16.mxu0 %v1116_v8  ;;  %1268 = vmatprep.subr.bf16.mxu1 %v1180_v9  ;;  %v1052_v8 = vld [vmem:[#allocation20 + $0xa8] sm:$0xff] }
 0x200   :  { %v1084_v9 = vld [vmem:[#allocation20 + $0x1a8] sm:$0xff]  ;;  %v1140_v10 = vunpack.c.h.s8.bf16 %v1052_v8  ;;  %v1136_v22 = vunpack.c.l.s8.bf16 %v1052_v8 }
 0x201   :  { %v1204_v11 = vunpack.c.h.s8.bf16 %v1084_v9  ;;  %v1200_v23 = vunpack.c.l.s8.bf16 %v1084_v9 }
 0x202   :  { %1228 = vmatpush1.bf16.msra.mxu0 %v1115_v12  ;;  %1269 = vmatpush1.bf16.msra.mxu1 %v1179_v17  ;;  %v1051_v12 = vld [vmem:[#allocation20 + $0xa0] sm:$0xff] }
 0x203   :  { %1229 = vmatprep.subr.bf16.mxu0 %v1112_v20  ;;  %1270 = vmatprep.subr.bf16.mxu1 %v1176_v21  ;;  %v1083_v17 = vld [vmem:[#allocation20 + $0x1a0] sm:$0xff]  ;;  %v1139_v20 = vunpack.c.h.s8.bf16 %v1051_v12 }
 0x204   :  { %v1203_v21 = vunpack.c.h.s8.bf16 %v1083_v17 }
 0x206   :  { %1230 = vmatpush1.bf16.msra.mxu0 %v1111_v24  ;;  %1271 = vmatpush1.bf16.msra.mxu1 %v1175_v25  ;;  %v1135_v24 = vunpack.c.l.s8.bf16 %v1051_v12  ;;  %v1199_v25 = vunpack.c.l.s8.bf16 %v1083_v17 }
 0x207   :  { %1231 = vmatprep.subr.bf16.mxu0 %v1108_v26  ;;  %1272 = vmatprep.subr.bf16.mxu1 %v1172_v27  ;;  %v1048_v26 = vld [vmem:[#allocation20 + $0x88] sm:$0xff] }
 0x208   :  { %v1080_v27 = vld [vmem:[#allocation20 + $0x188] sm:$0xff]  ;;  %v1128_v34 = vunpack.c.l.s8.bf16 %v1048_v26 }
 0x209   :  { %v1192_v35 = vunpack.c.l.s8.bf16 %v1080_v27 }
 0x20a   :  { %1232 = vmatpush1.bf16.msra.mxu0 %v1107_v30  ;;  %1273 = vmatpush1.bf16.msra.mxu1 %v1171_v31  ;;  %v1132_v30 = vunpack.c.h.s8.bf16 %v1048_v26  ;;  %v1196_v31 = vunpack.c.h.s8.bf16 %v1080_v27 }
 0x20b   :  { %1233 = vmatprep.subr.bf16.mxu0 %v1104_v32  ;;  %1274 = vmatprep.subr.bf16.mxu1 %v1168_v33  ;;  %v1131_v32 = vunpack.c.h.s8.bf16 %v1047_v28  ;;  %v1195_v33 = vunpack.c.h.s8.bf16 %v1079_v29 }
 0x20e   :  { %1234 = vmatpush1.bf16.msra.mxu0 %v1103_v36  ;;  %1275 = vmatpush1.bf16.msra.mxu1 %v1167_v37  ;;  %v1127_v36 = vunpack.c.l.s8.bf16 %v1047_v28  ;;  %v1191_v37 = vunpack.c.l.s8.bf16 %v1079_v29 }
 0x20f   :  { %1235 = vmatprep.subr.bf16.mxu0 %v1100_v38  ;;  %1276 = vmatprep.subr.bf16.mxu1 %v1164_v39  ;;  %v3881_v38 = vld [vmem:[#allocation20 + $0x78] sm:$0xff] }
 0x210   :  { %v3883_v39 = vld [vmem:[#allocation20 + $0x178] sm:$0xff]  ;;  %v1126_v40 = vunpack.c.h.s8.bf16 %v3881_v38 }
 0x211   :  { %v1190_v41 = vunpack.c.h.s8.bf16 %v3883_v39 }
 0x212   :  { %1236 = vmatpush1.bf16.msra.mxu0 %v1099_v42  ;;  %1277 = vmatpush1.bf16.msra.mxu1 %v1163_v43 }
 0x213   :  { %1237 = vmatprep.subr.bf16.mxu0 %v1096_v44  ;;  %1278 = vmatprep.subr.bf16.mxu1 %v1160_v45 }
 0x216   :  { %1238 = vmatpush1.bf16.msra.mxu0 %v1095_v48  ;;  %1279 = vmatpush1.bf16.msra.mxu1 %v1159_v49 }
 0x217   :  { %1239 = vmatprep.subr.bf16.mxu0 %v1156_v50  ;;  %1280 = vmatprep.subr.bf16.mxu1 %v1220_v51 }
 0x21a   :  { %1240 = vmatpush2.bf16.msra.mxu0 %v1155_v52  ;;  %1281 = vmatpush2.bf16.msra.mxu1 %v1219_v53 }
 0x21b   :  { %1241 = vmatprep.subr.bf16.mxu0 %v1152_v54  ;;  %1282 = vmatprep.subr.bf16.mxu1 %v1216_v57 }
 0x21e   :  { %1242 = vmatpush2.bf16.msra.mxu0 %v1151_v58  ;;  %1283 = vmatpush2.bf16.msra.mxu1 %v1215_v59 }
 0x21f   :  { %1243 = vmatprep.subr.bf16.mxu0 %v1148_v1  ;;  %1284 = vmatprep.subr.bf16.mxu1 %v1212_v62  ;;  %v971_v1 = vld [vmem:[#allocation18] sm:$0xf]  ;;  %v997_v62 = vld [vmem:[%s4154_s10] sm:$0xf] }
 0x220   :  { %v976_v63 = vrot.slane %v971_v1, %v3850_v15  ;;  %v984_v0 = vrot.slane %v971_v1, %v3853_v16 }
 0x222   :  { %1244 = vmatpush2.bf16.msra.mxu0 %v1147_v2  ;;  %1285 = vmatpush2.bf16.msra.mxu1 %v1211_v3  ;;  %v1002_v2 = vrot.slane %v997_v62, %v3850_v15  ;;  %v1010_v3 = vrot.slane %v997_v62, %v3853_v16 }
 0x223   :  { %1245 = vmatprep.subr.bf16.mxu0 %v1144_v4  ;;  %1286 = vmatprep.subr.bf16.mxu1 %v1208_v5  ;;  %v980_v4 = vrot.slane %v971_v1, %v3856_v18  ;;  %v988_v5 = vrot.slane %v971_v1, %v3859_v19 }
 0x226   :  { %1246 = vmatpush2.bf16.msra.mxu0 %v1143_v6  ;;  %1287 = vmatpush2.bf16.msra.mxu1 %v1207_v7 }
 0x227   :  { %1247 = vmatprep.subr.bf16.mxu0 %v1140_v10  ;;  %1288 = vmatprep.subr.bf16.mxu1 %v1204_v11  ;;  %v1006_v10 = vrot.slane %v997_v62, %v3856_v18  ;;  %v1014_v11 = vrot.slane %v997_v62, %v3859_v19 }
 0x22a   :  { %1248 = vmatpush2.bf16.msra.mxu0 %v1139_v20  ;;  %1289 = vmatpush2.bf16.msra.mxu1 %v1203_v21 }
 0x22b   :  { %1249 = vmatprep.subr.bf16.mxu0 %v1136_v22  ;;  %1290 = vmatprep.subr.bf16.mxu1 %v1200_v23 }
 0x22e   :  { %1250 = vmatpush2.bf16.msra.mxu0 %v1135_v24  ;;  %1291 = vmatpush2.bf16.msra.mxu1 %v1199_v25 }
 0x22f   :  { %1251 = vmatprep.subr.bf16.mxu0 %v1132_v30  ;;  %1292 = vmatprep.subr.bf16.mxu1 %v1196_v31 }
 0x232   :  { %1252 = vmatpush2.bf16.msra.mxu0 %v1131_v32  ;;  %1293 = vmatpush2.bf16.msra.mxu1 %v1195_v33  ;;  %v1045_v32 = vld [vmem:[#allocation20 + $0x70] sm:$0xff] }
 0x233   :  { %1253 = vmatprep.subr.bf16.mxu0 %v1128_v34  ;;  %1294 = vmatprep.subr.bf16.mxu1 %v1192_v35  ;;  %v1077_v33 = vld [vmem:[#allocation20 + $0x170] sm:$0xff] }
 0x236   :  { %1254 = vmatpush2.bf16.msra.mxu0 %v1127_v36  ;;  %1295 = vmatpush2.bf16.msra.mxu1 %v1191_v37 }
 0x237   :  { %1305 = vmatprep.subr.bf16.mxu0 %v1126_v40  ;;  %1346 = vmatprep.subr.bf16.mxu1 %v1190_v41  ;;  %v1125_v40 = vunpack.c.h.s8.bf16 %v1045_v32  ;;  %v1189_v41 = vunpack.c.h.s8.bf16 %v1077_v33 }
 0x269   :  { %v674_v42 = vpop.f32.mrf.mxu0  ;;  %v715_v43 = vpop.f32.mrf.mxu1 }
 0x26a   :  { %v3887_v44 = vadd.f32 %v715_v43, %v674_v42 }
 0x26b   :  { %v676_v45 = vpop.f32.mrf.mxu0  ;;  %v717_v46 = vpop.f32.mrf.mxu1 }
 0x26c   :  { %v3889_v47 = vadd.f32 %v717_v46, %v676_v45  ;;  %v1122_v45 = vunpack.c.l.s8.bf16 %v3881_v38  ;;  %v1186_v46 = vunpack.c.l.s8.bf16 %v3883_v39 }
 0x26d   :  { %v678_v48 = vpop.f32.mrf.mxu0  ;;  %v719_v49 = vpop.f32.mrf.mxu1 }
 0x26e   :  { %v1042_v48 = vld [vmem:[#allocation20 + $0x58] sm:$0xff] }
 0x26f   :  { %v679_v50 = vpop.f32.mrf.mxu0  ;;  %v720_v51 = vpop.f32.mrf.mxu1  ;;  %v1074_v49 = vld [vmem:[#allocation20 + $0x158] sm:$0xff] }
 0x270   :  { %v1121_v50 = vunpack.c.l.s8.bf16 %v1045_v32  ;;  %v1185_v51 = vunpack.c.l.s8.bf16 %v1077_v33  ;;  %v1061_v32 = vld [vmem:[#allocation20 + $0xf0] sm:$0xff] }
 0x271   :  { %v1093_v33 = vld [vmem:[#allocation20 + $0x1f0] sm:$0xff] }
 0x2a9   :  { %v756_v55 = vpop.f32.mrf.mxu0  ;;  %v797_v56 = vpop.f32.mrf.mxu1 }
 0x2aa   :  { %v3891_v52 = vadd.f32 %v797_v56, %v756_v55  ;;  %v1118_v55 = vunpack.c.h.s8.bf16 %v1042_v48  ;;  %v1182_v56 = vunpack.c.h.s8.bf16 %v1074_v49 }
 0x2ab   :  { %v758_v53 = vpop.f32.mrf.mxu0  ;;  %v799_v54 = vpop.f32.mrf.mxu1 }
 0x2ac   :  { %v3893_v57 = vadd.f32 %v799_v54, %v758_v53  ;;  %v1041_v53 = vld [vmem:[#allocation20 + $0x50] sm:$0xff] }
 0x2ad   :  { %v760_v58 = vpop.f32.mrf.mxu0  ;;  %v801_v59 = vpop.f32.mrf.mxu1  ;;  %v1073_v54 = vld [vmem:[#allocation20 + $0x150] sm:$0xff]  ;;  %v1117_v38 = vunpack.c.h.s8.bf16 %v1041_v53  ;;  %v1113_v1 = vunpack.c.l.s8.bf16 %v1041_v53 }
 0x2ae   :  { %v1181_v39 = vunpack.c.h.s8.bf16 %v1073_v54  ;;  %v1114_v58 = vunpack.c.l.s8.bf16 %v1042_v48  ;;  %v1178_v59 = vunpack.c.l.s8.bf16 %v1074_v49  ;;  %v1177_v62 = vunpack.c.l.s8.bf16 %v1073_v54 }
 0x2af   :  { %v761_v60 = vpop.f32.mrf.mxu0  ;;  %v802_v61 = vpop.f32.mrf.mxu1 }
 0x2b0   :  { %v1038_v60 = vld [vmem:[#allocation20 + $0x38] sm:$0xff] }
 0x2b1   :  { %v1070_v61 = vld [vmem:[#allocation20 + $0x138] sm:$0xff] }
 0x2b9   :  { %v923_v6 = vpop.f32.mrf.mxu0  ;;  %v964_v7 = vpop.f32.mrf.mxu1 }
 0x2ba   :  { %v993_v8 = vmul.f32 %v976_v63, %v923_v6  ;;  %v995_v9 = vmul.f32 %v984_v0, %v964_v7  ;;  %v1110_v63 = vunpack.c.h.s8.bf16 %v1038_v60  ;;  %v1174_v0 = vunpack.c.h.s8.bf16 %v1070_v61 }
 0x2bb   :  { %v925_v12 = vpop.f32.mrf.mxu0  ;;  %v966_v17 = vpop.f32.mrf.mxu1  ;;  %v1106_v6 = vunpack.c.l.s8.bf16 %v1038_v60  ;;  %v1170_v7 = vunpack.c.l.s8.bf16 %v1070_v61 }
 0x2bc   :  { %v1019_v20 = vadd.f32 %v1002_v2, %v993_v8  ;;  %v1021_v21 = vadd.f32 %v1010_v3, %v995_v9  ;;  %v994_v22 = vmul.f32 %v980_v4, %v925_v12  ;;  %v996_v23 = vmul.f32 %v988_v5, %v966_v17  ;;  %v1037_v2 = vld [vmem:[#allocation20 + $0x30] sm:$0xff]  ;;  %v1034_v8 = vld [vmem:[#allocation20 + $0x18] sm:$0xff] }
 0x2bd   :  { %v927_v24 = vpop.f32.mrf.mxu0  ;;  %v968_v25 = vpop.f32.mrf.mxu1  ;;  %v1069_v3 = vld [vmem:[#allocation20 + $0x130] sm:$0xff]  ;;  %v1109_v4 = vunpack.c.h.s8.bf16 %v1037_v2  ;;  %v1066_v9 = vld [vmem:[#allocation20 + $0x118] sm:$0xff]  ;;  %v1102_v12 = vunpack.c.h.s8.bf16 %v1034_v8 }
 0x2be   :  { %v1020_v26 = vadd.f32 %v1006_v10, %v994_v22  ;;  %v1022_v27 = vadd.f32 %v1014_v11, %v996_v23  ;;  %v1023_v28 = vmax.f32 %v1019_v20, 0.0  ;;  %v1025_v29 = vmax.f32 %v1021_v21, 0.0  ;;  %v1033_v20 = vld [vmem:[#allocation20 + $0x10] sm:$0xff] }
 0x2bf   :  { %v928_v30 = vpop.f32.mrf.mxu0  ;;  %v969_v31 = vpop.f32.mrf.mxu1  ;;  %v1173_v5 = vunpack.c.h.s8.bf16 %v1069_v3  ;;  %v1105_v10 = vunpack.c.l.s8.bf16 %v1037_v2  ;;  %v1169_v11 = vunpack.c.l.s8.bf16 %v1069_v3  ;;  %v1166_v17 = vunpack.c.h.s8.bf16 %v1066_v9  ;;  %v1065_v21 = vld [vmem:[#allocation20 + $0x110] sm:$0xff] }
 0x2c0   :  { %v1024_v34 = vmax.f32 %v1020_v26, 0.0  ;;  %v1026_v35 = vmax.f32 %v1022_v27, 0.0  ;;  %v3906_v42 = vpack.c.bf16 %v1023_v28, %v1023_v28  ;;  %v3908_v43 = vpack.c.bf16 %v1025_v29, %v1025_v29  ;;  %v1062_v26 = vld [vmem:[#allocation20 + $0xf8] sm:$0xff] }
 0x2c1   :  { %v1101_v22 = vunpack.c.h.s8.bf16 %v1033_v20  ;;  %v1165_v23 = vunpack.c.h.s8.bf16 %v1065_v21  ;;  %v1098_v24 = vunpack.c.l.s8.bf16 %v1034_v8  ;;  %v1162_v25 = vunpack.c.l.s8.bf16 %v1066_v9  ;;  %v1094_v27 = vld [vmem:[#allocation20 + $0x1f8] sm:$0xff] }
 0x2c2   :  { %v1028_v36 = vpack.c.bf16 %v1024_v34, %v1024_v34  ;;  %v1030_v37 = vpack.c.bf16 %v1026_v35, %v1026_v35  ;;  %v1097_v28 = vunpack.c.l.s8.bf16 %v1033_v20  ;;  %v1161_v29 = vunpack.c.l.s8.bf16 %v1065_v21 }
 0x2c3   :  { %v1158_v30 = vunpack.c.h.s8.bf16 %v1062_v26  ;;  %v1222_v31 = vunpack.c.h.s8.bf16 %v1094_v27  ;;  %v1157_v34 = vunpack.c.h.s8.bf16 %v1061_v32  ;;  %v1221_v35 = vunpack.c.h.s8.bf16 %v1093_v33 }
 0x2c4   :  { %1255 = vmatprep.mubr.bf16.mxu0 %v1028_v36  ;;  %1296 = vmatprep.mubr.bf16.mxu1 %v1030_v37 }
 0x2c5   :  { %1256 = vmatmul.mubr.bf16.vlgmr.msra.gmra.mxu0 %v3906_v42  ;;  %1297 = vmatmul.mubr.bf16.vlgmr.msra.gmra.mxu1 %v3908_v43 }
 0x2c6   :  { %1306 = vmatpush1.bf16.msra.mxu0 %v1125_v40  ;;  %1347 = vmatpush1.bf16.msra.mxu1 %v1189_v41  ;;  %v1058_v40 = vld [vmem:[#allocation20 + $0xd8] sm:$0xff] }
 0x2c7   :  { %1337 = vmatprep.mubr.bf16.mxu0 %v1028_v36  ;;  %1378 = vmatprep.mubr.bf16.mxu1 %v1030_v37  ;;  %v1154_v36 = vunpack.c.l.s8.bf16 %v1062_v26  ;;  %v1218_v37 = vunpack.c.l.s8.bf16 %v1094_v27  ;;  %v1090_v41 = vld [vmem:[#allocation20 + $0x1d8] sm:$0xff]  ;;  %v1150_v48 = vunpack.c.h.s8.bf16 %v1058_v40  ;;  %v1146_v53 = vunpack.c.l.s8.bf16 %v1058_v40  ;;  %v1859_v26 = vld [vmem:[#allocation24 + $0xc0] sm:$0xff] }
 0x2c8   :  { %1307 = vmatprep.subr.bf16.mxu0 %v1122_v45  ;;  %1348 = vmatprep.subr.bf16.mxu1 %v1186_v46  ;;  %v1153_v45 = vunpack.c.l.s8.bf16 %v1061_v32  ;;  %v1217_v46 = vunpack.c.l.s8.bf16 %v1093_v33  ;;  %v1214_v49 = vunpack.c.h.s8.bf16 %v1090_v41  ;;  %v1210_v54 = vunpack.c.l.s8.bf16 %v1090_v41  ;;  %v1851_v32 = vld [vmem:[#allocation24 + $0x80] sm:$0xff]  ;;  %v1924_v41 = vld [vmem:[#allocation24 + $0x2c8] sm:$0xff] }
 0x2c9   :  { %v2019_v27 = vunpack.c.h.s8.bf16 %v1859_v26  ;;  %v2003_v33 = vunpack.c.h.s8.bf16 %v1851_v32  ;;  %v1843_v40 = vld [vmem:[#allocation24 + $0x40] sm:$0xff] }
 0x2ca   :  { %1308 = vmatpush1.bf16.msra.mxu0 %v1121_v50  ;;  %1349 = vmatpush1.bf16.msra.mxu1 %v1185_v51  ;;  %v1057_v50 = vld [vmem:[#allocation20 + $0xd0] sm:$0xff] }
 0x2cb   :  { %1309 = vmatprep.subr.bf16.mxu0 %v1118_v55  ;;  %1350 = vmatprep.subr.bf16.mxu1 %v1182_v56  ;;  %v1089_v51 = vld [vmem:[#allocation20 + $0x1d0] sm:$0xff]  ;;  %v1149_v55 = vunpack.c.h.s8.bf16 %v1057_v50 }
 0x2cc   :  { %v1213_v56 = vunpack.c.h.s8.bf16 %v1089_v51 }
 0x2ce   :  { %1310 = vmatpush1.bf16.msra.mxu0 %v1117_v38  ;;  %1351 = vmatpush1.bf16.msra.mxu1 %v1181_v39  ;;  %v1054_v38 = vld [vmem:[#allocation20 + $0xb8] sm:$0xff] }
 0x2cf   :  { %1311 = vmatprep.subr.bf16.mxu0 %v1114_v58  ;;  %1352 = vmatprep.subr.bf16.mxu1 %v1178_v59  ;;  %v1086_v39 = vld [vmem:[#allocation20 + $0x1b8] sm:$0xff]  ;;  %v1145_v58 = vunpack.c.l.s8.bf16 %v1057_v50  ;;  %v1209_v59 = vunpack.c.l.s8.bf16 %v1089_v51  ;;  %v1142_v60 = vunpack.c.h.s8.bf16 %v1054_v38  ;;  %v1138_v2 = vunpack.c.l.s8.bf16 %v1054_v38 }
 0x2d0   :  { %v1206_v61 = vunpack.c.h.s8.bf16 %v1086_v39  ;;  %v1202_v3 = vunpack.c.l.s8.bf16 %v1086_v39  ;;  %v2140_v50 = vunpack.c.l.s8.bf16 %v1924_v41  ;;  %v1915_v39 = vld [vmem:[#allocation24 + $0x280] sm:$0xff] }
 0x2d2   :  { %1312 = vmatpush1.bf16.msra.mxu0 %v1113_v1  ;;  %1353 = vmatpush1.bf16.msra.mxu1 %v1177_v62  ;;  %v1053_v1 = vld [vmem:[#allocation20 + $0xb0] sm:$0xff] }
 0x2d3   :  { %1313 = vmatprep.subr.bf16.mxu0 %v1110_v63  ;;  %1354 = vmatprep.subr.bf16.mxu1 %v1174_v0  ;;  %v1085_v62 = vld [vmem:[#allocation20 + $0x1b0] sm:$0xff]  ;;  %v1141_v63 = vunpack.c.h.s8.bf16 %v1053_v1 }
 0x2d4   :  { %v1205_v0 = vunpack.c.h.s8.bf16 %v1085_v62 }
 0x2d6   :  { %1314 = vmatpush1.bf16.msra.mxu0 %v1109_v4  ;;  %1355 = vmatpush1.bf16.msra.mxu1 %v1173_v5  ;;  %v1050_v4 = vld [vmem:[#allocation20 + $0x98] sm:$0xff] }
 0x2d7   :  { %1315 = vmatprep.subr.bf16.mxu0 %v1106_v6  ;;  %1356 = vmatprep.subr.bf16.mxu1 %v1170_v7  ;;  %v1082_v5 = vld [vmem:[#allocation20 + $0x198] sm:$0xff]  ;;  %v1137_v6 = vunpack.c.l.s8.bf16 %v1053_v1  ;;  %v1201_v7 = vunpack.c.l.s8.bf16 %v1085_v62  ;;  %v1134_v8 = vunpack.c.h.s8.bf16 %v1050_v4  ;;  %v1130_v20 = vunpack.c.l.s8.bf16 %v1050_v4 }
 0x2d8   :  { %v1198_v9 = vunpack.c.h.s8.bf16 %v1082_v5  ;;  %v1194_v21 = vunpack.c.l.s8.bf16 %v1082_v5  ;;  %v2123_v62 = vunpack.c.l.s8.bf16 %v1915_v39  ;;  %v1907_v5 = vld [vmem:[#allocation24 + $0x240] sm:$0xff] }
 0x2da   :  { %1316 = vmatpush1.bf16.msra.mxu0 %v1105_v10  ;;  %1357 = vmatpush1.bf16.msra.mxu1 %v1169_v11  ;;  %v1049_v10 = vld [vmem:[#allocation20 + $0x90] sm:$0xff] }
 0x2db   :  { %1317 = vmatprep.subr.bf16.mxu0 %v1102_v12  ;;  %1358 = vmatprep.subr.bf16.mxu1 %v1166_v17  ;;  %v1081_v11 = vld [vmem:[#allocation20 + $0x190] sm:$0xff]  ;;  %v1133_v12 = vunpack.c.h.s8.bf16 %v1049_v10 }
 0x2dc   :  { %v1197_v17 = vunpack.c.h.s8.bf16 %v1081_v11 }
 0x2de   :  { %1318 = vmatpush1.bf16.msra.mxu0 %v1101_v22  ;;  %1359 = vmatpush1.bf16.msra.mxu1 %v1165_v23  ;;  %v1860_v22 = vld [vmem:[#allocation24 + $0xc8] sm:$0xff]  ;;  %v1129_v23 = vunpack.c.l.s8.bf16 %v1049_v10 }
 0x2df   :  { %1319 = vmatprep.subr.bf16.mxu0 %v1098_v24  ;;  %1360 = vmatprep.subr.bf16.mxu1 %v1162_v25  ;;  %v1193_v24 = vunpack.c.l.s8.bf16 %v1081_v11  ;;  %v2020_v25 = vunpack.c.h.s8.bf16 %v1860_v22  ;;  %v2107_v11 = vunpack.c.l.s8.bf16 %v1907_v5 }
 0x2e2   :  { %1320 = vmatpush1.bf16.msra.mxu0 %v1097_v28  ;;  %1361 = vmatpush1.bf16.msra.mxu1 %v1161_v29  ;;  %v2012_v28 = vunpack.c.l.s8.bf16 %v1860_v22  ;;  %v1852_v29 = vld [vmem:[#allocation24 + $0x88] sm:$0xff] }
 0x2e3   :  { %1321 = vmatprep.subr.bf16.mxu0 %v1158_v30  ;;  %1362 = vmatprep.subr.bf16.mxu1 %v1222_v31  ;;  %v2011_v30 = vunpack.c.l.s8.bf16 %v1859_v26  ;;  %v2004_v31 = vunpack.c.h.s8.bf16 %v1852_v29 }
 0x2e6   :  { %1322 = vmatpush2.bf16.msra.mxu0 %v1157_v34  ;;  %1363 = vmatpush2.bf16.msra.mxu1 %v1221_v35  ;;  %v1996_v34 = vunpack.c.l.s8.bf16 %v1852_v29  ;;  %v1844_v35 = vld [vmem:[#allocation24 + $0x48] sm:$0xff] }
 0x2e7   :  { %1323 = vmatprep.subr.bf16.mxu0 %v1154_v36  ;;  %1364 = vmatprep.subr.bf16.mxu1 %v1218_v37  ;;  %v1995_v36 = vunpack.c.l.s8.bf16 %v1851_v32  ;;  %v1988_v37 = vunpack.c.h.s8.bf16 %v1844_v35  ;;  %v1875_v32 = vld [vmem:[#allocation24 + $0x140] sm:$0xff] }
 0x2ea   :  { %1324 = vmatpush2.bf16.msra.mxu0 %v1153_v45  ;;  %1365 = vmatpush2.bf16.msra.mxu1 %v1217_v46  ;;  %v2148_v45 = vunpack.c.h.s8.bf16 %v1924_v41  ;;  %v1868_v41 = vld [vmem:[#allocation24 + $0x108] sm:$0xff] }
 0x2eb   :  { %1325 = vmatprep.subr.bf16.mxu0 %v1150_v48  ;;  %1366 = vmatprep.subr.bf16.mxu1 %v1214_v49  ;;  %v1980_v48 = vunpack.c.l.s8.bf16 %v1844_v35  ;;  %v1836_v49 = vld [vmem:[#allocation24 + $0x8] sm:$0xff]  ;;  %v1955_v35 = vld [vmem:[#allocation24 + $0x3c0] sm:$0xff] }
 0x2ee   :  { %1326 = vmatpush2.bf16.msra.mxu0 %v1149_v55  ;;  %1367 = vmatpush2.bf16.msra.mxu1 %v1213_v56  ;;  %v1979_v55 = vunpack.c.l.s8.bf16 %v1843_v40  ;;  %v1972_v56 = vunpack.c.h.s8.bf16 %v1836_v49 }
 0x2ef   :  { %1327 = vmatprep.subr.bf16.mxu0 %v1146_v53  ;;  %1368 = vmatprep.subr.bf16.mxu1 %v1210_v54  ;;  %v1835_v53 = vld [vmem:[#allocation24] sm:$0xff]  ;;  %v1916_v54 = vld [vmem:[#allocation24 + $0x288] sm:$0xff] }
 0x2f0   :  { %v2132_v38 = vunpack.c.h.s8.bf16 %v1916_v54  ;;  %v2124_v1 = vunpack.c.l.s8.bf16 %v1916_v54  ;;  %v3916_v54 = vld [vmem:[#allocation24 + $0xd8] sm:$0xff] }
 0x2f2   :  { %1328 = vmatpush2.bf16.msra.mxu0 %v1145_v58  ;;  %1369 = vmatpush2.bf16.msra.mxu1 %v1209_v59  ;;  %v2131_v58 = vunpack.c.h.s8.bf16 %v1915_v39  ;;  %v1971_v59 = vunpack.c.h.s8.bf16 %v1835_v53 }
 0x2f3   :  { %1329 = vmatprep.subr.bf16.mxu0 %v1142_v60  ;;  %1370 = vmatprep.subr.bf16.mxu1 %v1206_v61  ;;  %v1964_v60 = vunpack.c.l.s8.bf16 %v1836_v49  ;;  %v1892_v61 = vld [vmem:[#allocation24 + $0x1c8] sm:$0xff] }
 0x2f4   :  { %v1948_v49 = vld [vmem:[#allocation24 + $0x388] sm:$0xff] }
 0x2f6   :  { %1330 = vmatpush2.bf16.msra.mxu0 %v1141_v63  ;;  %1371 = vmatpush2.bf16.msra.mxu1 %v1205_v0  ;;  %v1963_v63 = vunpack.c.l.s8.bf16 %v1835_v53  ;;  %v2084_v0 = vunpack.c.h.s8.bf16 %v1892_v61  ;;  %v2028_v53 = vunpack.c.l.s8.bf16 %v1868_v41 }
 0x2f7   :  { %1331 = vmatprep.subr.bf16.mxu0 %v1138_v2  ;;  %1372 = vmatprep.subr.bf16.mxu1 %v1202_v3  ;;  %v1891_v2 = vld [vmem:[#allocation24 + $0x1c0] sm:$0xff]  ;;  %v1908_v3 = vld [vmem:[#allocation24 + $0x248] sm:$0xff] }
 0x2f8   :  { %v2116_v4 = vunpack.c.h.s8.bf16 %v1908_v3  ;;  %v2108_v10 = vunpack.c.l.s8.bf16 %v1908_v3 }
 0x2fa   :  { %1332 = vmatpush2.bf16.msra.mxu0 %v1137_v6  ;;  %1373 = vmatpush2.bf16.msra.mxu1 %v1201_v7  ;;  %v2115_v6 = vunpack.c.h.s8.bf16 %v1907_v5  ;;  %v2083_v7 = vunpack.c.h.s8.bf16 %v1891_v2 }
 0x2fb   :  { %1333 = vmatprep.subr.bf16.mxu0 %v1134_v8  ;;  %1374 = vmatprep.subr.bf16.mxu1 %v1198_v9  ;;  %v2076_v8 = vunpack.c.l.s8.bf16 %v1892_v61  ;;  %v1884_v9 = vld [vmem:[#allocation24 + $0x188] sm:$0xff] }
 0x2fc   :  { %v2060_v26 = vunpack.c.l.s8.bf16 %v1884_v9 }
 0x2fe   :  { %1334 = vmatpush2.bf16.msra.mxu0 %v1133_v12  ;;  %1375 = vmatpush2.bf16.msra.mxu1 %v1197_v17  ;;  %v2075_v12 = vunpack.c.l.s8.bf16 %v1891_v2  ;;  %v2068_v17 = vunpack.c.h.s8.bf16 %v1884_v9  ;;  %v1932_v2 = vld [vmem:[#allocation24 + $0x308] sm:$0xff] }
 0x2ff   :  { %1335 = vmatprep.subr.bf16.mxu0 %v1130_v20  ;;  %1376 = vmatprep.subr.bf16.mxu1 %v1194_v21  ;;  %v1883_v20 = vld [vmem:[#allocation24 + $0x180] sm:$0xff]  ;;  %v1900_v21 = vld [vmem:[#allocation24 + $0x208] sm:$0xff]  ;;  %v2164_v3 = vunpack.c.h.s8.bf16 %v1932_v2 }
 0x300   :  { %v2100_v22 = vunpack.c.h.s8.bf16 %v1900_v21 }
 0x302   :  { %1336 = vmatpush2.bf16.msra.mxu0 %v1129_v23  ;;  %1377 = vmatpush2.bf16.msra.mxu1 %v1193_v24  ;;  %v1899_v23 = vld [vmem:[#allocation24 + $0x200] sm:$0xff] }
 0x303   :  { %2219 = vmatprep.subr.bf16.mxu0 %v2020_v25  ;;  %2260 = vmatprep.subr.bf16.mxu1 %v2148_v45  ;;  %v2099_v24 = vunpack.c.h.s8.bf16 %v1899_v23  ;;  %v2067_v25 = vunpack.c.h.s8.bf16 %v1883_v20  ;;  %v2091_v29 = vunpack.c.l.s8.bf16 %v1899_v23 }
 0x305   :  { %1338 = vmatmul.mubr.bf16.vlgmr.msra.gmra.mxu0 %v3906_v42  ;;  %1379 = vmatmul.mubr.bf16.vlgmr.msra.gmra.mxu1 %v3908_v43  ;;  %v1923_v42 = vld [vmem:[#allocation24 + $0x2c0] sm:$0xff]  ;;  %v1987_v43 = vunpack.c.h.s8.bf16 %v1843_v40 }
 0x306   :  { %2220 = vmatpush1.bf16.msra.mxu0 %v2019_v27  ;;  %v2147_v46 = vunpack.c.h.s8.bf16 %v1923_v42  ;;  %v2139_v51 = vunpack.c.l.s8.bf16 %v1923_v42  ;;  %v1876_v27 = vld [vmem:[#allocation24 + $0x148] sm:$0xff]  ;;  %v2203_v42 = vunpack.c.l.s8.bf16 %v1955_v35 }
 0x307   :  { %2221 = vmatprep.subr.bf16.mxu0 %v2012_v28  ;;  %v2092_v28 = vunpack.c.l.s8.bf16 %v1900_v21  ;;  %v2044_v40 = vunpack.c.l.s8.bf16 %v1876_v27 }
 0x308   :  { %2261 = vmatpush1.bf16.msra.mxu1 %v2147_v46  ;;  %v2043_v46 = vunpack.c.l.s8.bf16 %v1875_v32 }
 0x309   :  { %2262 = vmatprep.subr.bf16.mxu1 %v2140_v50  ;;  %v2196_v50 = vunpack.c.h.s8.bf16 %v1948_v49 }
 0x30a   :  { %2222 = vmatpush1.bf16.msra.mxu0 %v2011_v30  ;;  %v2059_v30 = vunpack.c.l.s8.bf16 %v1883_v20 }
 0x30b   :  { %2223 = vmatprep.subr.bf16.mxu0 %v2004_v31  ;;  %v2052_v31 = vunpack.c.h.s8.bf16 %v1876_v27 }
 0x30c   :  { %2263 = vmatpush1.bf16.msra.mxu1 %v2139_v51  ;;  %v1947_v51 = vld [vmem:[#allocation24 + $0x380] sm:$0xff] }
 0x30d   :  { %2264 = vmatprep.subr.bf16.mxu1 %v2132_v38  ;;  %v2188_v38 = vunpack.c.l.s8.bf16 %v1948_v49  ;;  %v2187_v39 = vunpack.c.l.s8.bf16 %v1947_v51 }
 0x30e   :  { %2224 = vmatpush1.bf16.msra.mxu0 %v2003_v33  ;;  %v1956_v33 = vld [vmem:[#allocation24 + $0x3c8] sm:$0xff] }
 0x30f   :  { %2225 = vmatprep.subr.bf16.mxu0 %v1996_v34  ;;  %v2212_v34 = vunpack.c.h.s8.bf16 %v1956_v33  ;;  %v2204_v45 = vunpack.c.l.s8.bf16 %v1956_v33 }
 0x310   :  { %2265 = vmatpush1.bf16.msra.mxu1 %v2131_v58 }
 0x311   :  { %2266 = vmatprep.subr.bf16.mxu1 %v2124_v1  ;;  %v1939_v1 = vld [vmem:[#allocation24 + $0x340] sm:$0xff] }
 0x312   :  { %2226 = vmatpush1.bf16.msra.mxu0 %v1995_v36  ;;  %v2211_v36 = vunpack.c.h.s8.bf16 %v1955_v35 }
 0x313   :  { %2227 = vmatprep.subr.bf16.mxu0 %v1988_v37  ;;  %v2051_v37 = vunpack.c.h.s8.bf16 %v1875_v32 }
 0x314   :  { %2267 = vmatpush1.bf16.msra.mxu1 %v2123_v62  ;;  %v2179_v62 = vunpack.c.h.s8.bf16 %v1939_v1 }
 0x315   :  { %2268 = vmatprep.subr.bf16.mxu1 %v2116_v4  ;;  %v1931_v4 = vld [vmem:[#allocation24 + $0x300] sm:$0xff] }
 0x316   :  { %2228 = vmatpush1.bf16.msra.mxu0 %v1987_v43  ;;  %v2036_v43 = vunpack.c.h.s8.bf16 %v1868_v41  ;;  %v2163_v5 = vunpack.c.h.s8.bf16 %v1931_v4 }
 0x317   :  { %2229 = vmatprep.subr.bf16.mxu0 %v1980_v48  ;;  %v1867_v48 = vld [vmem:[#allocation24 + $0x100] sm:$0xff] }
 0x318   :  { %2269 = vmatpush1.bf16.msra.mxu1 %v2115_v6  ;;  %v2027_v58 = vunpack.c.l.s8.bf16 %v1867_v48  ;;  %v2156_v6 = vunpack.c.l.s8.bf16 %v1932_v2 }
 0x319   :  { %2270 = vmatprep.subr.bf16.mxu1 %v2108_v10  ;;  %v3922_v10 = vld [vmem:[#allocation21] sm:$0xf] }
 0x31a   :  { %2230 = vmatpush1.bf16.msra.mxu0 %v1979_v55  ;;  %v2195_v55 = vunpack.c.h.s8.bf16 %v1947_v51  ;;  %v1396_v23 = vrot.slane %v3922_v10, %v3856_v18 }
 0x31b   :  { %2231 = vmatprep.subr.bf16.mxu0 %v1972_v56  ;;  %v2035_v56 = vunpack.c.h.s8.bf16 %v1867_v48 }
 0x31c   :  { %2271 = vmatpush1.bf16.msra.mxu1 %v2107_v11  ;;  %v3927_v11 = vld [vmem:[%s4157_s13] sm:$0xf] }
 0x31d   :  { %2272 = vmatprep.subr.bf16.mxu1 %v2100_v22  ;;  %v1418_v22 = vrot.slane %v3927_v11, %v3850_v15 }
 0x31e   :  { %2232 = vmatpush1.bf16.msra.mxu0 %v1971_v59  ;;  %v2022_v59 = vunpack.c.h.s8.bf16 %v3916_v54 }
 0x31f   :  { %2233 = vmatprep.subr.bf16.mxu0 %v1964_v60  ;;  %v1940_v60 = vld [vmem:[#allocation24 + $0x348] sm:$0xff] }
 0x320   :  { %2273 = vmatpush1.bf16.msra.mxu1 %v2099_v24  ;;  %v2180_v61 = vunpack.c.h.s8.bf16 %v1940_v60 }
 0x321   :  { %2274 = vmatprep.subr.bf16.mxu1 %v2092_v28  ;;  %v1422_v28 = vrot.slane %v3927_v11, %v3856_v18 }
 0x322   :  { %2234 = vmatpush1.bf16.msra.mxu0 %v1963_v63  ;;  %v2172_v63 = vunpack.c.l.s8.bf16 %v1940_v60 }
 0x323   :  { %2235 = vmatprep.subr.bf16.mxu0 %v2084_v0  ;;  %v2171_v0 = vunpack.c.l.s8.bf16 %v1939_v1  ;;  %v1837_v1 = vld [vmem:[#allocation24 + $0x10] sm:$0xff] }
 0x324   :  { %2275 = vmatpush1.bf16.msra.mxu1 %v2091_v29  ;;  %v1965_v2 = vunpack.c.l.s8.bf16 %v1837_v1 }
 0x325   :  { %2276 = vmatprep.subr.bf16.mxu1 %v2212_v34 }
 0x326   :  { %2236 = vmatpush2.bf16.msra.mxu0 %v2083_v7  ;;  %v2155_v7 = vunpack.c.l.s8.bf16 %v1931_v4  ;;  %v1893_v4 = vld [vmem:[#allocation24 + $0x1d0] sm:$0xff] }
 0x327   :  { %2237 = vmatprep.subr.bf16.mxu0 %v2076_v8  ;;  %v3919_v8 = vld [vmem:[#allocation24 + $0x2d8] sm:$0xff] }
 0x328   :  { %2277 = vmatpush2.bf16.msra.mxu1 %v2211_v36  ;;  %v2150_v9 = vunpack.c.h.s8.bf16 %v3919_v8 }
 0x329   :  { %2278 = vmatprep.subr.bf16.mxu1 %v2204_v45 }
 0x32a   :  { %2238 = vmatpush2.bf16.msra.mxu0 %v2075_v12  ;;  %v1392_v12 = vrot.slane %v3922_v10, %v3850_v15 }
 0x32b   :  { %2239 = vmatprep.subr.bf16.mxu0 %v2068_v17 }
 0x32c   :  { %2279 = vmatpush2.bf16.msra.mxu1 %v2203_v42 }
 0x32d   :  { %2280 = vmatprep.subr.bf16.mxu1 %v2196_v50  ;;  %v1853_v50 = vld [vmem:[#allocation24 + $0x90] sm:$0xff] }
 0x32e   :  { %2240 = vmatpush2.bf16.msra.mxu0 %v2067_v25  ;;  %v2005_v51 = vunpack.c.h.s8.bf16 %v1853_v50 }
 0x32f   :  { %2241 = vmatprep.subr.bf16.mxu0 %v2060_v26 }
 0x330   :  { %2281 = vmatpush2.bf16.msra.mxu1 %v2195_v55 }
 0x331   :  { %2282 = vmatprep.subr.bf16.mxu1 %v2188_v38  ;;  %v1845_v38 = vld [vmem:[#allocation24 + $0x50] sm:$0xff] }
 0x332   :  { %2242 = vmatpush2.bf16.msra.mxu0 %v2059_v30  ;;  %v1981_v60 = vunpack.c.l.s8.bf16 %v1845_v38 }
 0x333   :  { %2243 = vmatprep.subr.bf16.mxu0 %v2052_v31 }
 0x334   :  { %2283 = vmatpush2.bf16.msra.mxu1 %v2187_v39  ;;  %v1989_v39 = vunpack.c.h.s8.bf16 %v1845_v38 }
 0x335   :  { %2284 = vmatprep.subr.bf16.mxu1 %v2180_v61 }
 0x336   :  { %2244 = vmatpush2.bf16.msra.mxu0 %v2051_v37  ;;  %v1861_v37 = vld [vmem:[#allocation24 + $0xd0] sm:$0xff] }
 0x337   :  { %2245 = vmatprep.subr.bf16.mxu0 %v2044_v40  ;;  %v2021_v45 = vunpack.c.h.s8.bf16 %v1861_v37  ;;  %v2013_v48 = vunpack.c.l.s8.bf16 %v1861_v37  ;;  %v1404_v37 = vrot.slane %v3922_v10, %v3859_v19 }
 0x338   :  { %2285 = vmatpush2.bf16.msra.mxu1 %v2179_v62  ;;  %v1973_v62 = vunpack.c.h.s8.bf16 %v1837_v1 }
 0x339   :  { %2286 = vmatprep.subr.bf16.mxu1 %v2172_v63 }
 0x33a   :  { %2246 = vmatpush2.bf16.msra.mxu0 %v2043_v46  ;;  %v2014_v46 = vunpack.c.l.s8.bf16 %v3916_v54 }
 0x33b   :  { %2247 = vmatprep.subr.bf16.mxu0 %v2036_v43  ;;  %v1854_v43 = vld [vmem:[#allocation24 + $0x98] sm:$0xff] }
 0x33c   :  { %2287 = vmatpush2.bf16.msra.mxu1 %v2171_v0  ;;  %v2006_v49 = vunpack.c.h.s8.bf16 %v1854_v43  ;;  %v1998_v55 = vunpack.c.l.s8.bf16 %v1854_v43  ;;  %v1894_v0 = vld [vmem:[#allocation24 + $0x1d8] sm:$0xff] }
 0x33d   :  { %2288 = vmatprep.subr.bf16.mxu1 %v2164_v3  ;;  %v2086_v3 = vunpack.c.h.s8.bf16 %v1894_v0 }
 0x33e   :  { %2248 = vmatpush2.bf16.msra.mxu0 %v2035_v56  ;;  %v1846_v56 = vld [vmem:[#allocation24 + $0x58] sm:$0xff] }
 0x33f   :  { %2249 = vmatprep.subr.bf16.mxu0 %v2028_v53  ;;  %v1997_v53 = vunpack.c.l.s8.bf16 %v1853_v50  ;;  %v1990_v54 = vunpack.c.h.s8.bf16 %v1846_v56 }
 0x340   :  { %2289 = vmatpush2.bf16.msra.mxu1 %v2163_v5  ;;  %v2085_v5 = vunpack.c.h.s8.bf16 %v1893_v4 }
 0x341   :  { %2290 = vmatprep.subr.bf16.mxu1 %v2156_v6  ;;  %v2078_v6 = vunpack.c.l.s8.bf16 %v1894_v0 }
 0x342   :  { %2250 = vmatpush2.bf16.msra.mxu0 %v2027_v58  ;;  %v1982_v58 = vunpack.c.l.s8.bf16 %v1846_v56 }
 0x343   :  { %2301 = vmatprep.subr.bf16.mxu0 %v2022_v59  ;;  %v1838_v59 = vld [vmem:[#allocation24 + $0x18] sm:$0xff] }
 0x344   :  { %2291 = vmatpush2.bf16.msra.mxu1 %v2155_v7  ;;  %v1974_v61 = vunpack.c.h.s8.bf16 %v1838_v59  ;;  %v1966_v63 = vunpack.c.l.s8.bf16 %v1838_v59  ;;  %v1886_v7 = vld [vmem:[#allocation24 + $0x198] sm:$0xff] }
 0x345   :  { %2342 = vmatprep.subr.bf16.mxu1 %v2150_v9  ;;  %v2077_v9 = vunpack.c.l.s8.bf16 %v1893_v4 }
 0x385   :  { %v1257_v17 = vpop.f32.mrf.mxu0  ;;  %v1298_v20 = vpop.f32.mrf.mxu1 }
 0x386   :  { %v1299_v21 = vadd.f32 %v1298_v20, %v1257_v17  ;;  %v1885_v17 = vld [vmem:[#allocation24 + $0x190] sm:$0xff] }
 0x387   :  { %v1259_v24 = vpop.f32.mrf.mxu0  ;;  %v1300_v25 = vpop.f32.mrf.mxu1  ;;  %v2069_v20 = vunpack.c.h.s8.bf16 %v1885_v17 }
 0x388   :  { %v1409_v26 = vmul.f32 %v1392_v12, %v1299_v21  ;;  %v1301_v27 = vadd.f32 %v1300_v25, %v1259_v24  ;;  %v2070_v12 = vunpack.c.h.s8.bf16 %v1886_v7  ;;  %v2062_v21 = vunpack.c.l.s8.bf16 %v1886_v7  ;;  %v1877_v25 = vld [vmem:[#allocation24 + $0x150] sm:$0xff] }
 0x389   :  { %v1261_v29 = vpop.f32.mrf.mxu0  ;;  %v1302_v30 = vpop.f32.mrf.mxu1 }
 0x38a   :  { %v1435_v31 = vadd.f32 %v1418_v22, %v1409_v26  ;;  %v1410_v32 = vmul.f32 %v1396_v23, %v1301_v27  ;;  %v1878_v22 = vld [vmem:[#allocation24 + $0x158] sm:$0xff]  ;;  %v2061_v23 = vunpack.c.l.s8.bf16 %v1885_v17  ;;  %v2053_v26 = vunpack.c.h.s8.bf16 %v1877_v25  ;;  %v1917_v17 = vld [vmem:[#allocation24 + $0x290] sm:$0xff] }
 0x38b   :  { %v1262_v33 = vpop.f32.mrf.mxu0  ;;  %v1303_v34 = vpop.f32.mrf.mxu1  ;;  %v2054_v24 = vunpack.c.h.s8.bf16 %v1878_v22  ;;  %v2046_v27 = vunpack.c.l.s8.bf16 %v1878_v22  ;;  %v1400_v29 = vrot.slane %v3922_v10, %v3853_v16  ;;  %v2045_v30 = vunpack.c.l.s8.bf16 %v1877_v25  ;;  %v1910_v25 = vld [vmem:[#allocation24 + $0x258] sm:$0xff] }
 0x38c   :  { %v1436_v35 = vadd.f32 %v1422_v28, %v1410_v32  ;;  %v1439_v36 = vmax.f32 %v1435_v31, 0.0  ;;  %v1870_v28 = vld [vmem:[#allocation24 + $0x118] sm:$0xff]  ;;  %v1869_v34 = vld [vmem:[#allocation24 + $0x110] sm:$0xff] }
 0x38d   :  { %v2038_v33 = vunpack.c.h.s8.bf16 %v1870_v28  ;;  %v2029_v10 = vunpack.c.l.s8.bf16 %v1869_v34 }
 0x38e   :  { %v1440_v40 = vmax.f32 %v1436_v35, 0.0  ;;  %v3939_v42 = vpack.c.bf16 %v1439_v36, %v1439_v36  ;;  %v1426_v36 = vrot.slane %v3927_v11, %v3853_v16 }
 0x390   :  { %v3937_v41 = vpack.c.bf16 %v1440_v40, %v1440_v40 }
 0x392   :  { %2251 = vmatprep.mubr.bf16.mxu0 %v3937_v41 }
 0x393   :  { %2252 = vmatmul.mubr.bf16.vlgmr.msra.gmra.mxu0 %v3939_v42 }
 0x394   :  { %2302 = vmatpush1.bf16.msra.mxu0 %v2021_v45  ;;  %2333 = vmatprep.mubr.bf16.mxu0 %v3937_v41 }
 0x395   :  { %2303 = vmatprep.subr.bf16.mxu0 %v2014_v46 }
 0x398   :  { %2304 = vmatpush1.bf16.msra.mxu0 %v2013_v48  ;;  %v1430_v48 = vrot.slane %v3927_v11, %v3859_v19  ;;  %v1863_v11 = vld [vmem:[#allocation24 + $0xe0] sm:$0xff] }
 0x399   :  { %2305 = vmatprep.subr.bf16.mxu0 %v2006_v49  ;;  %v2037_v49 = vunpack.c.h.s8.bf16 %v1869_v34 }
 0x39c   :  { %2306 = vmatpush1.bf16.msra.mxu0 %v2005_v51 }
 0x39d   :  { %2307 = vmatprep.subr.bf16.mxu0 %v1998_v55  ;;  %v2030_v55 = vunpack.c.l.s8.bf16 %v1870_v28 }
 0x3a0   :  { %2308 = vmatpush1.bf16.msra.mxu0 %v1997_v53 }
 0x3a1   :  { %2309 = vmatprep.subr.bf16.mxu0 %v1990_v54  ;;  %v1864_v54 = vld [vmem:[#allocation24 + $0xe8] sm:$0xff] }
 0x3a2   :  { %v2016_v4 = vunpack.c.l.s8.bf16 %v1864_v54 }
 0x3a4   :  { %2310 = vmatpush1.bf16.msra.mxu0 %v1989_v39 }
 0x3a5   :  { %2311 = vmatprep.subr.bf16.mxu0 %v1982_v58 }
 0x3a8   :  { %2312 = vmatpush1.bf16.msra.mxu0 %v1981_v60  ;;  %v1925_v60 = vld [vmem:[#allocation24 + $0x2d0] sm:$0xff] }
 0x3a9   :  { %2313 = vmatprep.subr.bf16.mxu0 %v1974_v61  ;;  %v2024_v61 = vunpack.c.h.s8.bf16 %v1864_v54  ;;  %v2141_v7 = vunpack.c.l.s8.bf16 %v1925_v60  ;;  %v1958_v54 = vld [vmem:[#allocation24 + $0x3d8] sm:$0xff] }
 0x3ac   :  { %2314 = vmatpush1.bf16.msra.mxu0 %v1973_v62 }
 0x3ad   :  { %2315 = vmatprep.subr.bf16.mxu0 %v1966_v63  ;;  %v2149_v63 = vunpack.c.h.s8.bf16 %v1925_v60 }
 0x3b0   :  { %2316 = vmatpush1.bf16.msra.mxu0 %v1965_v2  ;;  %v2023_v2 = vunpack.c.h.s8.bf16 %v1863_v11 }
 0x3b1   :  { %2317 = vmatprep.subr.bf16.mxu0 %v2086_v3  ;;  %v2142_v3 = vunpack.c.l.s8.bf16 %v3919_v8 }
 0x3b4   :  { %2318 = vmatpush2.bf16.msra.mxu0 %v2085_v5  ;;  %v1918_v5 = vld [vmem:[#allocation24 + $0x298] sm:$0xff] }
 0x3b5   :  { %2319 = vmatprep.subr.bf16.mxu0 %v2078_v6  ;;  %v1856_v6 = vld [vmem:[#allocation24 + $0xa8] sm:$0xff] }
 0x3b6   :  { %v2008_v8 = vunpack.c.h.s8.bf16 %v1856_v6 }
 0x3b8   :  { %2320 = vmatpush2.bf16.msra.mxu0 %v2077_v9  ;;  %v2015_v9 = vunpack.c.l.s8.bf16 %v1863_v11 }
 0x3b9   :  { %2321 = vmatprep.subr.bf16.mxu0 %v2070_v12  ;;  %v2134_v12 = vunpack.c.h.s8.bf16 %v1918_v5 }
 0x3bc   :  { %2322 = vmatpush2.bf16.msra.mxu0 %v2069_v20  ;;  %v1855_v20 = vld [vmem:[#allocation24 + $0xa0] sm:$0xff] }
 0x3bd   :  { %2323 = vmatprep.subr.bf16.mxu0 %v2062_v21  ;;  %v2133_v21 = vunpack.c.h.s8.bf16 %v1917_v17  ;;  %v2007_v22 = vunpack.c.h.s8.bf16 %v1855_v20  ;;  %v1999_v28 = vunpack.c.l.s8.bf16 %v1855_v20 }
 0x3c0   :  { %2324 = vmatpush2.bf16.msra.mxu0 %v2061_v23  ;;  %v2126_v23 = vunpack.c.l.s8.bf16 %v1918_v5 }
 0x3c1   :  { %2325 = vmatprep.subr.bf16.mxu0 %v2054_v24  ;;  %v2000_v24 = vunpack.c.l.s8.bf16 %v1856_v6 }
 0x3c4   :  { %2326 = vmatpush2.bf16.msra.mxu0 %v2053_v26  ;;  %v1848_v26 = vld [vmem:[#allocation24 + $0x68] sm:$0xff] }
 0x3c5   :  { %v1339_v31 = vpop.f32.mrf.mxu0  ;;  %v1380_v32 = vpop.f32.mrf.mxu1  ;;  %2327 = vmatprep.subr.bf16.mxu0 %v2046_v27  ;;  %v2125_v27 = vunpack.c.l.s8.bf16 %v1917_v17  ;;  %v1887_v17 = vld [vmem:[#allocation24 + $0x1a0] sm:$0xff] }
 0x3c6   :  { %v1381_v35 = vadd.f32 %v1380_v32, %v1339_v31  ;;  %v1992_v31 = vunpack.c.h.s8.bf16 %v1848_v26  ;;  %v1847_v32 = vld [vmem:[#allocation24 + $0x60] sm:$0xff]  ;;  %v2071_v20 = vunpack.c.h.s8.bf16 %v1887_v17 }
 0x3c7   :  { %v1341_v40 = vpop.f32.mrf.mxu0  ;;  %v1382_v45 = vpop.f32.mrf.mxu1  ;;  %v1991_v34 = vunpack.c.h.s8.bf16 %v1847_v32 }
 0x3c8   :  { %v1411_v46 = vmul.f32 %v1400_v29, %v1381_v35  ;;  %v1383_v43 = vadd.f32 %v1382_v45, %v1341_v40  ;;  %2328 = vmatpush2.bf16.msra.mxu0 %v2045_v30  ;;  %v2118_v29 = vunpack.c.h.s8.bf16 %v1910_v25  ;;  %v1909_v30 = vld [vmem:[#allocation24 + $0x250] sm:$0xff]  ;;  %v2110_v35 = vunpack.c.l.s8.bf16 %v1910_v25  ;;  %v1840_v40 = vld [vmem:[#allocation24 + $0x28] sm:$0xff] }
 0x3c9   :  { %v1343_v50 = vpop.f32.mrf.mxu0  ;;  %v1384_v51 = vpop.f32.mrf.mxu1  ;;  %2329 = vmatprep.subr.bf16.mxu0 %v2038_v33  ;;  %v2117_v33 = vunpack.c.h.s8.bf16 %v1909_v30  ;;  %v2109_v45 = vunpack.c.l.s8.bf16 %v1909_v30  ;;  %v1879_v30 = vld [vmem:[#allocation24 + $0x160] sm:$0xff] }
 0x3ca   :  { %v1437_v56 = vadd.f32 %v1426_v36, %v1411_v46  ;;  %v1412_v53 = vmul.f32 %v1404_v37, %v1383_v43  ;;  %v1984_v36 = vunpack.c.l.s8.bf16 %v1848_v26  ;;  %v1902_v37 = vld [vmem:[#allocation24 + $0x218] sm:$0xff]  ;;  %v1983_v46 = vunpack.c.l.s8.bf16 %v1847_v32  ;;  %v1839_v50 = vld [vmem:[#allocation24 + $0x20] sm:$0xff] }
 0x3cb   :  { %v1344_v38 = vpop.f32.mrf.mxu0  ;;  %v1385_v39 = vpop.f32.mrf.mxu1  ;;  %v2102_v43 = vunpack.c.h.s8.bf16 %v1902_v37  ;;  %v2063_v26 = vunpack.c.l.s8.bf16 %v1887_v17  ;;  %v2055_v32 = vunpack.c.h.s8.bf16 %v1879_v30 }
 0x3cc   :  { %v1438_v58 = vadd.f32 %v1430_v48, %v1412_v53  ;;  %2330 = vmatpush2.bf16.msra.mxu0 %v2037_v49  ;;  %v1441_v59 = vmax.f32 %v1437_v56, 0.0  ;;  %v1901_v48 = vld [vmem:[#allocation24 + $0x210] sm:$0xff]  ;;  %v1976_v49 = vunpack.c.h.s8.bf16 %v1840_v40  ;;  %v2094_v56 = vunpack.c.l.s8.bf16 %v1902_v37  ;;  %v1896_v38 = vld [vmem:[#allocation24 + $0x1e8] sm:$0xff] }
 0x3cd   :  { %2331 = vmatprep.subr.bf16.mxu0 %v2030_v55  ;;  %v2101_v51 = vunpack.c.h.s8.bf16 %v1901_v48  ;;  %v1975_v55 = vunpack.c.h.s8.bf16 %v1839_v50  ;;  %v1968_v53 = vunpack.c.l.s8.bf16 %v1840_v40  ;;  %v2093_v39 = vunpack.c.l.s8.bf16 %v1901_v48  ;;  %v1871_v48 = vld [vmem:[#allocation24 + $0x120] sm:$0xff] }
 0x3ce   :  { %v1442_v1 = vmax.f32 %v1438_v58, 0.0  ;;  %v3955_v0 = vpack.c.bf16 %v1441_v59, %v1441_v59  ;;  %v1967_v58 = vunpack.c.l.s8.bf16 %v1839_v50  ;;  %v1957_v59 = vld [vmem:[#allocation24 + $0x3d0] sm:$0xff]  ;;  %v2088_v60 = vunpack.c.h.s8.bf16 %v1896_v38 }
 0x3cf   :  { %v2205_v5 = vunpack.c.l.s8.bf16 %v1957_v59  ;;  %v2047_v40 = vunpack.c.l.s8.bf16 %v1879_v30  ;;  %v2039_v50 = vunpack.c.h.s8.bf16 %v1871_v48 }
 0x3d0   :  { %v3953_v62 = vpack.c.bf16 %v1442_v1, %v1442_v1  ;;  %2332 = vmatpush2.bf16.msra.mxu0 %v2029_v10  ;;  %v2214_v10 = vunpack.c.h.s8.bf16 %v1958_v54  ;;  %v2213_v1 = vunpack.c.h.s8.bf16 %v1957_v59  ;;  %v1865_v59 = vld [vmem:[#allocation24 + $0xf0] sm:$0xff] }
 0x3d1   :  { %2383 = vmatprep.subr.bf16.mxu0 %v2024_v61  ;;  %v1895_v61 = vld [vmem:[#allocation24 + $0x1e0] sm:$0xff] }
 0x3d2   :  { %2292 = vmatprep.mubr.bf16.mxu1 %v3953_v62  ;;  %v2087_v11 = vunpack.c.h.s8.bf16 %v1895_v61  ;;  %v2079_v6 = vunpack.c.l.s8.bf16 %v1895_v61  ;;  %v2025_v61 = vunpack.c.h.s8.bf16 %v1865_v59 }
 0x3d3   :  { %2293 = vmatmul.mubr.bf16.vlgmr.msra.gmra.mxu1 %v3955_v0  ;;  %2334 = vmatmul.mubr.bf16.vlgmr.msra.gmra.mxu0 %v3939_v42 }
 0x3d4   :  { %2343 = vmatpush1.bf16.msra.mxu1 %v2149_v63  ;;  %2374 = vmatprep.mubr.bf16.mxu1 %v3953_v62  ;;  %v2206_v63 = vunpack.c.l.s8.bf16 %v1958_v54 }
 0x3d5   :  { %2384 = vmatpush1.bf16.msra.mxu0 %v2023_v2  ;;  %2415 = vmatprep.mubr.bf16.mxu0 %v3937_v41  ;;  %v2080_v2 = vunpack.c.l.s8.bf16 %v1896_v38  ;;  %v2031_v38 = vunpack.c.l.s8.bf16 %v1871_v48 }
 0x3d6   :  { %2344 = vmatprep.subr.bf16.mxu1 %v2142_v3  ;;  %2385 = vmatprep.subr.bf16.mxu0 %v2016_v4  ;;  %v1950_v3 = vld [vmem:[#allocation24 + $0x398] sm:$0xff]  ;;  %v1888_v4 = vld [vmem:[#allocation24 + $0x1a8] sm:$0xff] }
 0x3d8   :  { %2345 = vmatpush1.bf16.msra.mxu1 %v2141_v7  ;;  %v2198_v7 = vunpack.c.h.s8.bf16 %v1950_v3 }
 0x3d9   :  { %2386 = vmatpush1.bf16.msra.mxu0 %v2015_v9  ;;  %2346 = vmatprep.subr.bf16.mxu1 %v2134_v12  ;;  %v1949_v9 = vld [vmem:[#allocation24 + $0x390] sm:$0xff]  ;;  %v2072_v12 = vunpack.c.h.s8.bf16 %v1888_v4 }
 0x3da   :  { %2387 = vmatprep.subr.bf16.mxu0 %v2008_v8  ;;  %v2197_v8 = vunpack.c.h.s8.bf16 %v1949_v9  ;;  %v2189_v25 = vunpack.c.l.s8.bf16 %v1949_v9  ;;  %v1857_v9 = vld [vmem:[#allocation24 + $0xb0] sm:$0xff] }
 0x3db   :  { %v2009_v17 = vunpack.c.h.s8.bf16 %v1857_v9 }
 0x3dc   :  { %2347 = vmatpush1.bf16.msra.mxu1 %v2133_v21  ;;  %v2190_v21 = vunpack.c.l.s8.bf16 %v1950_v3 }
 0x3dd   :  { %2388 = vmatpush1.bf16.msra.mxu0 %v2007_v22  ;;  %2348 = vmatprep.subr.bf16.mxu1 %v2126_v23  ;;  %v2064_v22 = vunpack.c.l.s8.bf16 %v1888_v4  ;;  %v1942_v23 = vld [vmem:[#allocation24 + $0x358] sm:$0xff]  ;;  %v2017_v4 = vunpack.c.l.s8.bf16 %v1865_v59 }
 0x3de   :  { %2389 = vmatprep.subr.bf16.mxu0 %v2000_v24  ;;  %v1880_v24 = vld [vmem:[#allocation24 + $0x168] sm:$0xff] }
 0x3e0   :  { %2349 = vmatpush1.bf16.msra.mxu1 %v2125_v27  ;;  %v2182_v27 = vunpack.c.h.s8.bf16 %v1942_v23 }
 0x3e1   :  { %2390 = vmatpush1.bf16.msra.mxu0 %v1999_v28  ;;  %2350 = vmatprep.subr.bf16.mxu1 %v2118_v29  ;;  %v1941_v28 = vld [vmem:[#allocation24 + $0x350] sm:$0xff]  ;;  %v2056_v29 = vunpack.c.h.s8.bf16 %v1880_v24 }
 0x3e2   :  { %2391 = vmatprep.subr.bf16.mxu0 %v1992_v31  ;;  %v2181_v31 = vunpack.c.h.s8.bf16 %v1941_v28  ;;  %v2173_v37 = vunpack.c.l.s8.bf16 %v1941_v28 }
 0x3e4   :  { %2351 = vmatpush1.bf16.msra.mxu1 %v2117_v33  ;;  %v2174_v33 = vunpack.c.l.s8.bf16 %v1942_v23 }
 0x3e5   :  { %2392 = vmatpush1.bf16.msra.mxu0 %v1991_v34  ;;  %2352 = vmatprep.subr.bf16.mxu1 %v2110_v35  ;;  %v2048_v34 = vunpack.c.l.s8.bf16 %v1880_v24  ;;  %v1934_v35 = vld [vmem:[#allocation24 + $0x318] sm:$0xff]  ;;  %v2001_v24 = vunpack.c.l.s8.bf16 %v1857_v9 }
 0x3e6   :  { %2393 = vmatprep.subr.bf16.mxu0 %v1984_v36  ;;  %v1872_v36 = vld [vmem:[#allocation24 + $0x128] sm:$0xff] }
 0x3e8   :  { %2353 = vmatpush1.bf16.msra.mxu1 %v2109_v45  ;;  %v2166_v45 = vunpack.c.h.s8.bf16 %v1934_v35 }
 0x3e9   :  { %2394 = vmatpush1.bf16.msra.mxu0 %v1983_v46  ;;  %2354 = vmatprep.subr.bf16.mxu1 %v2102_v43  ;;  %v1933_v46 = vld [vmem:[#allocation24 + $0x310] sm:$0xff]  ;;  %v2040_v43 = vunpack.c.h.s8.bf16 %v1872_v36 }
 0x3ea   :  { %2395 = vmatprep.subr.bf16.mxu0 %v1976_v49  ;;  %v2165_v49 = vunpack.c.h.s8.bf16 %v1933_v46  ;;  %v2157_v54 = vunpack.c.l.s8.bf16 %v1933_v46 }
 0x3ec   :  { %2355 = vmatpush1.bf16.msra.mxu1 %v2101_v51  ;;  %v2158_v51 = vunpack.c.l.s8.bf16 %v1934_v35 }
 0x3ed   :  { %2396 = vmatpush1.bf16.msra.mxu0 %v1975_v55  ;;  %2356 = vmatprep.subr.bf16.mxu1 %v2094_v56  ;;  %v2032_v55 = vunpack.c.l.s8.bf16 %v1872_v36  ;;  %v1928_v56 = vld [vmem:[#allocation24 + $0x2e8] sm:$0xff] }
 0x3ee   :  { %2397 = vmatprep.subr.bf16.mxu0 %v1968_v53  ;;  %v1866_v53 = vld [vmem:[#allocation24 + $0xf8] sm:$0xff] }
 0x3f0   :  { %2357 = vmatpush1.bf16.msra.mxu1 %v2093_v39  ;;  %v2152_v39 = vunpack.c.h.s8.bf16 %v1928_v56 }
 0x3f1   :  { %2398 = vmatpush1.bf16.msra.mxu0 %v1967_v58  ;;  %2358 = vmatprep.subr.bf16.mxu1 %v2214_v10  ;;  %v1927_v58 = vld [vmem:[#allocation24 + $0x2e0] sm:$0xff]  ;;  %v2026_v10 = vunpack.c.h.s8.bf16 %v1866_v53 }
 0x3f2   :  { %2399 = vmatprep.subr.bf16.mxu0 %v2088_v60  ;;  %v2151_v60 = vunpack.c.h.s8.bf16 %v1927_v58  ;;  %v2143_v3 = vunpack.c.l.s8.bf16 %v1927_v58 }
 0x3f4   :  { %2359 = vmatpush2.bf16.msra.mxu1 %v2213_v1  ;;  %v2144_v1 = vunpack.c.l.s8.bf16 %v1928_v56 }
 0x3f5   :  { %2400 = vmatpush2.bf16.msra.mxu0 %v2087_v11  ;;  %2360 = vmatprep.subr.bf16.mxu1 %v2206_v63  ;;  %v1920_v11 = vld [vmem:[#allocation24 + $0x2a8] sm:$0xff]  ;;  %v2018_v63 = vunpack.c.l.s8.bf16 %v1866_v53 }
 0x3f6   :  { %2401 = vmatprep.subr.bf16.mxu0 %v2080_v2  ;;  %v1858_v2 = vld [vmem:[#allocation24 + $0xb8] sm:$0xff] }
 0x3f8   :  { %2361 = vmatpush2.bf16.msra.mxu1 %v2205_v5  ;;  %v2136_v5 = vunpack.c.h.s8.bf16 %v1920_v11 }
 0x3f9   :  { %2402 = vmatpush2.bf16.msra.mxu0 %v2079_v6  ;;  %2362 = vmatprep.subr.bf16.mxu1 %v2198_v7  ;;  %v1919_v6 = vld [vmem:[#allocation24 + $0x2a0] sm:$0xff]  ;;  %v2010_v7 = vunpack.c.h.s8.bf16 %v1858_v2 }
 0x3fa   :  { %2403 = vmatprep.subr.bf16.mxu0 %v2072_v12  ;;  %v2135_v12 = vunpack.c.h.s8.bf16 %v1919_v6  ;;  %v2127_v23 = vunpack.c.l.s8.bf16 %v1919_v6 }
 0x3fc   :  { %2363 = vmatpush2.bf16.msra.mxu1 %v2197_v8  ;;  %v2128_v8 = vunpack.c.l.s8.bf16 %v1920_v11 }
 0x3fd   :  { %2404 = vmatpush2.bf16.msra.mxu0 %v2071_v20  ;;  %2364 = vmatprep.subr.bf16.mxu1 %v2190_v21  ;;  %v2002_v20 = vunpack.c.l.s8.bf16 %v1858_v2  ;;  %v1912_v21 = vld [vmem:[#allocation24 + $0x268] sm:$0xff] }
 0x3fe   :  { %2405 = vmatprep.subr.bf16.mxu0 %v2064_v22  ;;  %v1850_v22 = vld [vmem:[#allocation24 + $0x78] sm:$0xff]  ;;  %v2112_v30 = vunpack.c.l.s8.bf16 %v1912_v21 }
 0x400   :  { %2365 = vmatpush2.bf16.msra.mxu1 %v2189_v25  ;;  %v1911_v25 = vld [vmem:[#allocation24 + $0x260] sm:$0xff] }
 0x401   :  { %2406 = vmatpush2.bf16.msra.mxu0 %v2063_v26  ;;  %2366 = vmatprep.subr.bf16.mxu1 %v2182_v27  ;;  %v1994_v26 = vunpack.c.h.s8.bf16 %v1850_v22  ;;  %v1849_v27 = vld [vmem:[#allocation24 + $0x70] sm:$0xff]  ;;  %v2119_v28 = vunpack.c.h.s8.bf16 %v1911_v25 }
 0x402   :  { %2407 = vmatprep.subr.bf16.mxu0 %v2056_v29  ;;  %v1993_v29 = vunpack.c.h.s8.bf16 %v1849_v27  ;;  %v1985_v35 = vunpack.c.l.s8.bf16 %v1849_v27 }
 0x404   :  { %2367 = vmatpush2.bf16.msra.mxu1 %v2181_v31  ;;  %v1986_v31 = vunpack.c.l.s8.bf16 %v1850_v22 }
 0x405   :  { %2408 = vmatpush2.bf16.msra.mxu0 %v2055_v32  ;;  %2368 = vmatprep.subr.bf16.mxu1 %v2174_v33  ;;  %v1904_v32 = vld [vmem:[#allocation24 + $0x228] sm:$0xff]  ;;  %v1842_v33 = vld [vmem:[#allocation24 + $0x38] sm:$0xff] }
 0x406   :  { %2409 = vmatprep.subr.bf16.mxu0 %v2048_v34  ;;  %v2111_v34 = vunpack.c.l.s8.bf16 %v1911_v25  ;;  %v2104_v36 = vunpack.c.h.s8.bf16 %v1904_v32  ;;  %v2096_v48 = vunpack.c.l.s8.bf16 %v1904_v32 }
 0x408   :  { %2369 = vmatpush2.bf16.msra.mxu1 %v2173_v37  ;;  %v1903_v37 = vld [vmem:[#allocation24 + $0x220] sm:$0xff] }
 0x409   :  { %2410 = vmatpush2.bf16.msra.mxu0 %v2047_v40  ;;  %2370 = vmatprep.subr.bf16.mxu1 %v2166_v45  ;;  %v1978_v40 = vunpack.c.h.s8.bf16 %v1842_v33  ;;  %v1841_v45 = vld [vmem:[#allocation24 + $0x30] sm:$0xff]  ;;  %v2103_v46 = vunpack.c.h.s8.bf16 %v1903_v37 }
 0x40a   :  { %2411 = vmatprep.subr.bf16.mxu0 %v2040_v43  ;;  %v1977_v43 = vunpack.c.h.s8.bf16 %v1841_v45  ;;  %v1969_v56 = vunpack.c.l.s8.bf16 %v1841_v45  ;;  %v3971_v45 = vld [vmem:[#allocation15] sm:$0xf] }
 0x40c   :  { %2371 = vmatpush2.bf16.msra.mxu1 %v2165_v49  ;;  %v1970_v49 = vunpack.c.l.s8.bf16 %v1842_v33 }
 0x40d   :  { %2412 = vmatpush2.bf16.msra.mxu0 %v2039_v50  ;;  %2372 = vmatprep.subr.bf16.mxu1 %v2158_v51  ;;  %v1960_v50 = vld [vmem:[#allocation24 + $0x3e8] sm:$0xff]  ;;  %v1898_v51 = vld [vmem:[#allocation24 + $0x1f8] sm:$0xff] }
 0x40e   :  { %2413 = vmatprep.subr.bf16.mxu0 %v2032_v55  ;;  %v2095_v55 = vunpack.c.l.s8.bf16 %v1903_v37  ;;  %v2216_v53 = vunpack.c.h.s8.bf16 %v1960_v50  ;;  %v2208_v59 = vunpack.c.l.s8.bf16 %v1960_v50 }
 0x410   :  { %2373 = vmatpush2.bf16.msra.mxu1 %v2157_v54  ;;  %v1959_v54 = vld [vmem:[#allocation24 + $0x3e0] sm:$0xff] }
 0x411   :  { %2414 = vmatpush2.bf16.msra.mxu0 %v2031_v38  ;;  %2424 = vmatprep.subr.bf16.mxu1 %v2152_v39  ;;  %v2090_v38 = vunpack.c.h.s8.bf16 %v1898_v51  ;;  %v1897_v39 = vld [vmem:[#allocation24 + $0x1f0] sm:$0xff]  ;;  %v2215_v58 = vunpack.c.h.s8.bf16 %v1959_v54  ;;  %v2207_v11 = vunpack.c.l.s8.bf16 %v1959_v54 }
 0x412   :  { %2465 = vmatprep.subr.bf16.mxu0 %v2026_v10  ;;  %v2089_v10 = vunpack.c.h.s8.bf16 %v1897_v39 }
 0x413   :  { %2375 = vmatmul.mubr.bf16.vlgmr.msra.gmra.mxu1 %v3955_v0 }
 0x414   :  { %2416 = vmatmul.mubr.bf16.vlgmr.msra.gmra.mxu0 %v3939_v42  ;;  %2425 = vmatpush1.bf16.msra.mxu1 %v2151_v60  ;;  %v2082_v60 = vunpack.c.l.s8.bf16 %v1898_v51 }
 0x415   :  { %2456 = vmatprep.mubr.bf16.mxu1 %v3953_v62  ;;  %2466 = vmatpush1.bf16.msra.mxu0 %v2025_v61  ;;  %v1952_v61 = vld [vmem:[#allocation24 + $0x3a8] sm:$0xff] }
 0x416   :  { %2497 = vmatprep.mubr.bf16.mxu0 %v3937_v41  ;;  %2426 = vmatprep.subr.bf16.mxu1 %v2144_v1  ;;  %v2120_v41 = vunpack.c.h.s8.bf16 %v1912_v21  ;;  %v1890_v1 = vld [vmem:[#allocation24 + $0x1b8] sm:$0xff]  ;;  %v2200_v2 = vunpack.c.h.s8.bf16 %v1952_v61  ;;  %v2192_v9 = vunpack.c.l.s8.bf16 %v1952_v61 }
 0x417   :  { %2467 = vmatprep.subr.bf16.mxu0 %v2018_v63  ;;  %v2081_v63 = vunpack.c.l.s8.bf16 %v1897_v39  ;;  %v1929_v39 = vld [vmem:[#allocation24 + $0x2f0] sm:$0xff] }
 0x418   :  { %2427 = vmatpush1.bf16.msra.mxu1 %v2143_v3  ;;  %v1951_v3 = vld [vmem:[#allocation24 + $0x3a0] sm:$0xff] }
 0x419   :  { %2468 = vmatpush1.bf16.msra.mxu0 %v2017_v4  ;;  %2428 = vmatprep.subr.bf16.mxu1 %v2136_v5  ;;  %v2074_v4 = vunpack.c.h.s8.bf16 %v1890_v1  ;;  %v1889_v5 = vld [vmem:[#allocation24 + $0x1b0] sm:$0xff]  ;;  %v2199_v6 = vunpack.c.h.s8.bf16 %v1951_v3 }
 0x41a   :  { %2469 = vmatprep.subr.bf16.mxu0 %v2010_v7  ;;  %v2073_v7 = vunpack.c.h.s8.bf16 %v1889_v5  ;;  %v2065_v21 = vunpack.c.l.s8.bf16 %v1889_v5  ;;  %v2145_v5 = vunpack.c.l.s8.bf16 %v1929_v39 }
 0x41c   :  { %2429 = vmatpush1.bf16.msra.mxu1 %v2135_v12  ;;  %v2066_v12 = vunpack.c.l.s8.bf16 %v1890_v1 }
 0x41d   :  { %2470 = vmatpush1.bf16.msra.mxu0 %v2009_v17  ;;  %2430 = vmatprep.subr.bf16.mxu1 %v2128_v8  ;;  %v1944_v17 = vld [vmem:[#allocation24 + $0x368] sm:$0xff]  ;;  %v1882_v8 = vld [vmem:[#allocation24 + $0x178] sm:$0xff] }
 0x41e   :  { %2471 = vmatprep.subr.bf16.mxu0 %v2002_v20  ;;  %v2191_v20 = vunpack.c.l.s8.bf16 %v1951_v3  ;;  %v2184_v22 = vunpack.c.h.s8.bf16 %v1944_v17  ;;  %v2176_v27 = vunpack.c.l.s8.bf16 %v1944_v17  ;;  %v1464_v3 = vld [vmem:[#allocation23 + $0x88] sm:$0xff] }
 0x41f   :  { %v1616_v17 = vunpack.c.h.s8.bf16 %v1464_v3 }
 0x420   :  { %2431 = vmatpush1.bf16.msra.mxu1 %v2127_v23  ;;  %v1943_v23 = vld [vmem:[#allocation24 + $0x360] sm:$0xff] }
 0x421   :  { %2472 = vmatpush1.bf16.msra.mxu0 %v2001_v24  ;;  %2432 = vmatprep.subr.bf16.mxu1 %v2120_v41  ;;  %v2058_v24 = vunpack.c.h.s8.bf16 %v1882_v8  ;;  %v1881_v41 = vld [vmem:[#allocation24 + $0x170] sm:$0xff]  ;;  %v2183_v25 = vunpack.c.h.s8.bf16 %v1943_v23  ;;  %v2175_v33 = vunpack.c.l.s8.bf16 %v1943_v23  ;;  %v1608_v23 = vunpack.c.l.s8.bf16 %v1464_v3  ;;  %v1954_v3 = vld [vmem:[#allocation24 + $0x3b8] sm:$0xff] }
 0x422   :  { %2473 = vmatprep.subr.bf16.mxu0 %v1994_v26  ;;  %v2057_v26 = vunpack.c.h.s8.bf16 %v1881_v41 }
 0x424   :  { %2433 = vmatpush1.bf16.msra.mxu1 %v2119_v28  ;;  %v2050_v28 = vunpack.c.l.s8.bf16 %v1882_v8  ;;  %v1463_v8 = vld [vmem:[#allocation23 + $0x80] sm:$0xff] }
 0x425   :  { %2474 = vmatpush1.bf16.msra.mxu0 %v1993_v29  ;;  %2434 = vmatprep.subr.bf16.mxu1 %v2112_v30  ;;  %v1936_v29 = vld [vmem:[#allocation24 + $0x328] sm:$0xff]  ;;  %v3967_v30 = vld [vmem:[#allocation14] sm:$0xf] }
 0x426   :  { %2475 = vmatprep.subr.bf16.mxu0 %v1986_v31  ;;  %v1874_v31 = vld [vmem:[#allocation24 + $0x138] sm:$0xff]  ;;  %v813_v32 = vrot.slane %v3967_v30, %v3856_v18  ;;  %v2160_v50 = vunpack.c.l.s8.bf16 %v1936_v29 }
 0x427   :  { %v2042_v37 = vunpack.c.h.s8.bf16 %v1874_v31  ;;  %v2034_v51 = vunpack.c.l.s8.bf16 %v1874_v31  ;;  %v1455_v31 = vld [vmem:[#allocation23 + $0x40] sm:$0xff] }
 0x428   :  { %2435 = vmatpush1.bf16.msra.mxu1 %v2111_v34  ;;  %v2049_v34 = vunpack.c.l.s8.bf16 %v1881_v41  ;;  %v1456_v41 = vld [vmem:[#allocation23 + $0x48] sm:$0xff] }
 0x429   :  { %2476 = vmatpush1.bf16.msra.mxu0 %v1985_v35  ;;  %2436 = vmatprep.subr.bf16.mxu1 %v2104_v36  ;;  %v2168_v35 = vunpack.c.h.s8.bf16 %v1936_v29  ;;  %v1935_v36 = vld [vmem:[#allocation24 + $0x320] sm:$0xff]  ;;  %v1600_v29 = vunpack.c.h.s8.bf16 %v1456_v41 }
 0x42a   :  { %2477 = vmatprep.subr.bf16.mxu0 %v1978_v40  ;;  %v1873_v40 = vld [vmem:[#allocation24 + $0x130] sm:$0xff]  ;;  %v2159_v54 = vunpack.c.l.s8.bf16 %v1935_v36 }
 0x42c   :  { %2437 = vmatpush1.bf16.msra.mxu1 %v2103_v46  ;;  %v827_v46 = vmul.f32 %v813_v32, %v3889_v47 }
 0x42d   :  { %2478 = vmatpush1.bf16.msra.mxu0 %v1977_v43  ;;  %2438 = vmatprep.subr.bf16.mxu1 %v2096_v48  ;;  %v839_v43 = vrot.slane %v3971_v45, %v3856_v18  ;;  %v2167_v48 = vunpack.c.h.s8.bf16 %v1935_v36  ;;  %v1906_v36 = vld [vmem:[#allocation24 + $0x238] sm:$0xff] }
 0x42e   :  { %2479 = vmatprep.subr.bf16.mxu0 %v1970_v49  ;;  %v2041_v49 = vunpack.c.h.s8.bf16 %v1873_v40 }
 0x430   :  { %2439 = vmatpush1.bf16.msra.mxu1 %v2095_v55  ;;  %v1930_v55 = vld [vmem:[#allocation24 + $0x2f8] sm:$0xff] }
 0x431   :  { %2480 = vmatpush1.bf16.msra.mxu0 %v1969_v56  ;;  %2440 = vmatprep.subr.bf16.mxu1 %v2216_v53  ;;  %v1472_v56 = vld [vmem:[#allocation23 + $0xc8] sm:$0xff]  ;;  %v853_v53 = vadd.f32 %v839_v43, %v827_v46  ;;  %v2154_v47 = vunpack.c.h.s8.bf16 %v1930_v55  ;;  %v2146_v1 = vunpack.c.l.s8.bf16 %v1930_v55  ;;  %v1591_v46 = vunpack.c.l.s8.bf16 %v1455_v31 }
 0x432   :  { %2481 = vmatprep.subr.bf16.mxu0 %v2090_v38  ;;  %v2033_v38 = vunpack.c.l.s8.bf16 %v1873_v40  ;;  %v2106_v43 = vunpack.c.h.s8.bf16 %v1906_v36 }
 0x434   :  { %2441 = vmatpush2.bf16.msra.mxu1 %v2215_v58  ;;  %v1632_v58 = vunpack.c.h.s8.bf16 %v1472_v56 }
 0x435   :  { %2482 = vmatpush2.bf16.msra.mxu0 %v2089_v10  ;;  %2442 = vmatprep.subr.bf16.mxu1 %v2208_v59  ;;  %v1471_v10 = vld [vmem:[#allocation23 + $0xc0] sm:$0xff]  ;;  %v857_v59 = vmax.f32 %v853_v53, 0.0 }
 0x436   :  { %2483 = vmatprep.subr.bf16.mxu0 %v2082_v60  ;;  %v2153_v60 = vunpack.c.h.s8.bf16 %v1929_v39  ;;  %v1631_v61 = vunpack.c.h.s8.bf16 %v1471_v10 }
 0x438   :  { %2443 = vmatpush2.bf16.msra.mxu1 %v2207_v11  ;;  %v1922_v11 = vld [vmem:[#allocation24 + $0x2b8] sm:$0xff] }
 0x439   :  { %2484 = vmatpush2.bf16.msra.mxu0 %v2081_v63  ;;  %2444 = vmatprep.subr.bf16.mxu1 %v2200_v2  ;;  %v1624_v2 = vunpack.c.l.s8.bf16 %v1472_v56  ;;  %v2098_v56 = vunpack.c.l.s8.bf16 %v1906_v36  ;;  %v1938_v36 = vld [vmem:[#allocation24 + $0x338] sm:$0xff] }
 0x43a   :  { %2485 = vmatprep.subr.bf16.mxu0 %v2074_v4  ;;  %v3979_v4 = vpack.c.bf16 %v857_v59, %v857_v59 }
 0x43c   :  { %2445 = vmatpush2.bf16.msra.mxu1 %v2199_v6 }
 0x43d   :  { %2486 = vmatpush2.bf16.msra.mxu0 %v2073_v7  ;;  %2446 = vmatprep.subr.bf16.mxu1 %v2192_v9  ;;  %v1623_v7 = vunpack.c.l.s8.bf16 %v1471_v10  ;;  %v2138_v9 = vunpack.c.h.s8.bf16 %v1922_v11  ;;  %v1961_v10 = vld [vmem:[#allocation24 + $0x3f0] sm:$0xff] }
 0x43e   :  { %2487 = vmatprep.subr.bf16.mxu0 %v2066_v12  ;;  %v1921_v12 = vld [vmem:[#allocation24 + $0x2b0] sm:$0xff] }
 0x440   :  { %2447 = vmatpush2.bf16.msra.mxu1 %v2191_v20 }
 0x441   :  { %2488 = vmatpush2.bf16.msra.mxu0 %v2065_v21  ;;  %2448 = vmatprep.subr.bf16.mxu1 %v2184_v22  ;;  %v2137_v21 = vunpack.c.h.s8.bf16 %v1921_v12  ;;  %v1615_v22 = vunpack.c.h.s8.bf16 %v1463_v8 }
 0x442   :  { %2489 = vmatprep.subr.bf16.mxu0 %v2058_v24  ;;  %v1914_v24 = vld [vmem:[#allocation24 + $0x278] sm:$0xff] }
 0x444   :  { %2449 = vmatpush2.bf16.msra.mxu1 %v2183_v25  ;;  %v2129_v25 = vunpack.c.l.s8.bf16 %v1921_v12  ;;  %v2202_v12 = vunpack.c.h.s8.bf16 %v1954_v3 }
 0x445   :  { %2490 = vmatpush2.bf16.msra.mxu0 %v2057_v26  ;;  %2450 = vmatprep.subr.bf16.mxu1 %v2176_v27  ;;  %v1607_v26 = vunpack.c.l.s8.bf16 %v1463_v8  ;;  %v2122_v27 = vunpack.c.h.s8.bf16 %v1914_v24 }
 0x446   :  { %2491 = vmatprep.subr.bf16.mxu0 %v2050_v28  ;;  %v1913_v28 = vld [vmem:[#allocation24 + $0x270] sm:$0xff] }
 0x447   :  { %v2121_v32 = vunpack.c.h.s8.bf16 %v1913_v28  ;;  %v2113_v40 = vunpack.c.l.s8.bf16 %v1913_v28 }
 0x448   :  { %2451 = vmatpush2.bf16.msra.mxu1 %v2175_v33  ;;  %v1599_v33 = vunpack.c.h.s8.bf16 %v1455_v31 }
 0x449   :  { %2492 = vmatpush2.bf16.msra.mxu0 %v2049_v34  ;;  %2452 = vmatprep.subr.bf16.mxu1 %v2168_v35  ;;  %v2114_v34 = vunpack.c.l.s8.bf16 %v1914_v24  ;;  %v1592_v35 = vunpack.c.l.s8.bf16 %v1456_v41  ;;  %v1488_v24 = vld [vmem:[#allocation23 + $0x148] sm:$0xff] }
 0x44a   :  { %2493 = vmatprep.subr.bf16.mxu0 %v2042_v37  ;;  %v1448_v37 = vld [vmem:[#allocation23 + $0x8] sm:$0xff]  ;;  %v1664_v28 = vunpack.c.h.s8.bf16 %v1488_v24 }
 0x44b   :  { %v1576_v53 = vunpack.c.l.s8.bf16 %v1448_v37 }
 0x44c   :  { %2453 = vmatpush2.bf16.msra.mxu1 %v2167_v48  ;;  %v1905_v48 = vld [vmem:[#allocation24 + $0x230] sm:$0xff] }
 0x44d   :  { %2494 = vmatpush2.bf16.msra.mxu0 %v2041_v49  ;;  %2454 = vmatprep.subr.bf16.mxu1 %v2160_v50  ;;  %v1584_v49 = vunpack.c.h.s8.bf16 %v1448_v37  ;;  %v1447_v50 = vld [vmem:[#allocation23] sm:$0xff]  ;;  %v821_v37 = vrot.slane %v3967_v30, %v3859_v19 }
 0x44e   :  { %2495 = vmatprep.subr.bf16.mxu0 %v2034_v51  ;;  %v2105_v51 = vunpack.c.h.s8.bf16 %v1905_v48  ;;  %v1583_v55 = vunpack.c.h.s8.bf16 %v1447_v50  ;;  %v1575_v39 = vunpack.c.l.s8.bf16 %v1447_v50 }
 0x450   :  { %2455 = vmatpush2.bf16.msra.mxu1 %v2159_v54  ;;  %v1962_v54 = vld [vmem:[#allocation24 + $0x3f8] sm:$0xff] }
 0x451   :  { %2496 = vmatpush2.bf16.msra.mxu0 %v2033_v38  ;;  %2506 = vmatprep.subr.bf16.mxu1 %v2154_v47  ;;  %v1504_v38 = vld [vmem:[#allocation23 + $0x1c8] sm:$0xff]  ;;  %v2097_v47 = vunpack.c.l.s8.bf16 %v1905_v48  ;;  %v2170_v48 = vunpack.c.h.s8.bf16 %v1938_v36 }
 0x452   :  { %2547 = vmatprep.subr.bf16.mxu0 %v1632_v58  ;;  %v2218_v58 = vunpack.c.h.s8.bf16 %v1962_v54  ;;  %v1696_v59 = vunpack.c.h.s8.bf16 %v1504_v38 }
 0x453   :  { %2457 = vmatmul.mubr.bf16.vlgmr.msra.gmra.mxu1 %v3955_v0  ;;  %v3977_v63 = vpop.f32.mrf.mxu0 }
 0x454   :  { %2498 = vmatmul.mubr.bf16.vlgmr.msra.gmra.mxu0 %v3939_v42  ;;  %2507 = vmatpush1.bf16.msra.mxu1 %v2153_v60  ;;  %v1503_v60 = vld [vmem:[#allocation23 + $0x1c0] sm:$0xff] }
 0x455   :  { %2538 = vmatprep.mubr.bf16.mxu1 %v3953_v62  ;;  %2548 = vmatpush1.bf16.msra.mxu0 %v1631_v61  ;;  %v3983_v6 = vpop.f32.mrf.mxu0  ;;  %v2130_v62 = vunpack.c.l.s8.bf16 %v1922_v11  ;;  %v2217_v61 = vunpack.c.h.s8.bf16 %v1961_v10  ;;  %v2210_v11 = vunpack.c.l.s8.bf16 %v1962_v54  ;;  %v847_v54 = vrot.slane %v3971_v45, %v3859_v19 }
 0x456   :  { %2579 = vmatprep.mubr.bf16.mxu0 %v3979_v4  ;;  %2508 = vmatprep.subr.bf16.mxu1 %v2146_v1  ;;  %v1695_v1 = vunpack.c.h.s8.bf16 %v1503_v60 }
 0x457   :  { %2549 = vmatprep.subr.bf16.mxu0 %v1624_v2  ;;  %v2257_v20 = vpop.f32.mrf.mxu0  ;;  %v1688_v2 = vunpack.c.l.s8.bf16 %v1504_v38 }
 0x458   :  { %2509 = vmatpush1.bf16.msra.mxu1 %v2145_v5  ;;  %v1496_v5 = vld [vmem:[#allocation23 + $0x188] sm:$0xff]  ;;  %v1495_v20 = vld [vmem:[#allocation23 + $0x180] sm:$0xff] }
 0x459   :  { %2550 = vmatpush1.bf16.msra.mxu0 %v1623_v7  ;;  %v2258_v42 = vpop.f32.mrf.mxu0  ;;  %2510 = vmatprep.subr.bf16.mxu1 %v2138_v9  ;;  %v2209_v7 = vunpack.c.l.s8.bf16 %v1961_v10  ;;  %v1687_v9 = vunpack.c.l.s8.bf16 %v1503_v60  ;;  %v1680_v8 = vunpack.c.h.s8.bf16 %v1496_v5  ;;  %v1536_v10 = vld [vmem:[#allocation23 + $0x2c8] sm:$0xff]  ;;  %v1474_v60 = vld [vmem:[#allocation23 + $0xd8] sm:$0xff] }
 0x45a   :  { %2551 = vmatprep.subr.bf16.mxu0 %v1616_v17  ;;  %v1953_v17 = vld [vmem:[#allocation24 + $0x3b0] sm:$0xff]  ;;  %v1679_v42 = vunpack.c.h.s8.bf16 %v1495_v20 }
 0x45b   :  { %v2193_v41 = vunpack.c.l.s8.bf16 %v1953_v17 }
 0x45c   :  { %2511 = vmatpush1.bf16.msra.mxu1 %v2137_v21  ;;  %v2201_v21 = vunpack.c.h.s8.bf16 %v1953_v17 }
 0x45d   :  { %2552 = vmatpush1.bf16.msra.mxu0 %v1615_v22  ;;  %2512 = vmatprep.subr.bf16.mxu1 %v2130_v62  ;;  %v2194_v22 = vunpack.c.l.s8.bf16 %v1954_v3  ;;  %v1672_v62 = vunpack.c.l.s8.bf16 %v1496_v5  ;;  %v1634_v3 = vunpack.c.h.s8.bf16 %v1474_v60  ;;  %v1473_v5 = vld [vmem:[#allocation23 + $0xd0] sm:$0xff] }
 0x45e   :  { %2553 = vmatprep.subr.bf16.mxu0 %v1608_v23  ;;  %v1946_v23 = vld [vmem:[#allocation24 + $0x378] sm:$0xff] }
 0x460   :  { %2513 = vmatpush1.bf16.msra.mxu1 %v2129_v25  ;;  %v1671_v25 = vunpack.c.l.s8.bf16 %v1495_v20  ;;  %v1528_v20 = vld [vmem:[#allocation23 + $0x288] sm:$0xff] }
 0x461   :  { %2554 = vmatpush1.bf16.msra.mxu0 %v1607_v26  ;;  %2514 = vmatprep.subr.bf16.mxu1 %v2122_v27  ;;  %v2186_v26 = vunpack.c.h.s8.bf16 %v1946_v23  ;;  %v1945_v27 = vld [vmem:[#allocation24 + $0x370] sm:$0xff] }
 0x462   :  { %2555 = vmatprep.subr.bf16.mxu0 %v1600_v29  ;;  %v1487_v29 = vld [vmem:[#allocation23 + $0x140] sm:$0xff]  ;;  %v2185_v31 = vunpack.c.h.s8.bf16 %v1945_v27 }
 0x464   :  { %2515 = vmatpush1.bf16.msra.mxu1 %v2121_v32  ;;  %v1663_v32 = vunpack.c.h.s8.bf16 %v1487_v29 }
 0x465   :  { %2556 = vmatpush1.bf16.msra.mxu0 %v1599_v33  ;;  %2516 = vmatprep.subr.bf16.mxu1 %v2114_v34  ;;  %v2178_v33 = vunpack.c.l.s8.bf16 %v1946_v23  ;;  %v809_v34 = vrot.slane %v3967_v30, %v3850_v15  ;;  %v1466_v23 = vld [vmem:[#allocation23 + $0x98] sm:$0xff] }
 0x466   :  { %2557 = vmatprep.subr.bf16.mxu0 %v1592_v35  ;;  %v1656_v35 = vunpack.c.l.s8.bf16 %v1488_v24 }
 0x467   :  { %v826_v50 = vmul.f32 %v809_v34, %v3887_v44 }
 0x468   :  { %2517 = vmatpush1.bf16.msra.mxu1 %v2113_v40  ;;  %v1480_v40 = vld [vmem:[#allocation23 + $0x108] sm:$0xff] }
 0x469   :  { %2558 = vmatpush1.bf16.msra.mxu0 %v1591_v46  ;;  %2518 = vmatprep.subr.bf16.mxu1 %v2106_v43  ;;  %v2177_v46 = vunpack.c.l.s8.bf16 %v1945_v27  ;;  %v1655_v43 = vunpack.c.l.s8.bf16 %v1487_v29  ;;  %v1640_v44 = vunpack.c.l.s8.bf16 %v1480_v40  ;;  %v1625_v27 = vunpack.c.l.s8.bf16 %v1473_v5 }
 0x46a   :  { %2559 = vmatprep.subr.bf16.mxu0 %v1584_v49  ;;  %v1937_v49 = vld [vmem:[#allocation24 + $0x330] sm:$0xff] }
 0x46b   :  { %v2169_v38 = vunpack.c.h.s8.bf16 %v1937_v49 }
 0x46c   :  { %2519 = vmatpush1.bf16.msra.mxu1 %v2105_v51  ;;  %v835_v51 = vrot.slane %v3971_v45, %v3850_v15 }
 0x46d   :  { %2560 = vmatpush1.bf16.msra.mxu0 %v1583_v55  ;;  %2520 = vmatprep.subr.bf16.mxu1 %v2098_v56  ;;  %v1648_v55 = vunpack.c.h.s8.bf16 %v1480_v40  ;;  %v1479_v56 = vld [vmem:[#allocation23 + $0x100] sm:$0xff]  ;;  %v1736_v40 = vunpack.c.l.s8.bf16 %v1528_v20 }
 0x46e   :  { %2561 = vmatprep.subr.bf16.mxu0 %v1576_v53  ;;  %v829_v53 = vmul.f32 %v821_v37, %v3893_v57  ;;  %v1639_v57 = vunpack.c.l.s8.bf16 %v1479_v56 }
 0x470   :  { %2521 = vmatpush1.bf16.msra.mxu1 %v2097_v47  ;;  %v1647_v47 = vunpack.c.h.s8.bf16 %v1479_v56  ;;  %v1457_v56 = vld [vmem:[#allocation23 + $0x50] sm:$0xff] }
 0x471   :  { %2562 = vmatpush1.bf16.msra.mxu0 %v1575_v39  ;;  %2522 = vmatprep.subr.bf16.mxu1 %v2218_v58  ;;  %v2162_v39 = vunpack.c.l.s8.bf16 %v1938_v36  ;;  %v852_v58 = vadd.f32 %v835_v51, %v826_v50  ;;  %v1519_v51 = vld [vmem:[#allocation23 + $0x240] sm:$0xff] }
 0x472   :  { %2563 = vmatprep.subr.bf16.mxu0 %v1696_v59  ;;  %v855_v59 = vadd.f32 %v847_v54, %v829_v53  ;;  %v1727_v53 = vunpack.c.h.s8.bf16 %v1519_v51  ;;  %v1601_v54 = vunpack.c.h.s8.bf16 %v1457_v56 }
 0x474   :  { %2523 = vmatpush2.bf16.msra.mxu1 %v2217_v61  ;;  %v2161_v61 = vunpack.c.l.s8.bf16 %v1937_v49 }
 0x475   :  { %2564 = vmatpush2.bf16.msra.mxu0 %v1695_v1  ;;  %2524 = vmatprep.subr.bf16.mxu1 %v2210_v11  ;;  %v1760_v1 = vunpack.c.h.s8.bf16 %v1536_v10  ;;  %v1535_v11 = vld [vmem:[#allocation23 + $0x2c0] sm:$0xff] }
 0x476   :  { %2565 = vmatprep.subr.bf16.mxu0 %v1688_v2  ;;  %v856_v2 = vmax.f32 %v852_v58, 0.0  ;;  %v1450_v58 = vld [vmem:[#allocation23 + $0x18] sm:$0xff] }
 0x478   :  { %2525 = vmatpush2.bf16.msra.mxu1 %v2209_v7  ;;  %v859_v7 = vmax.f32 %v855_v59, 0.0  ;;  %v3996_v17 = vpack.c.bf16 %v856_v2, %v856_v2 }
 0x479   :  { %2566 = vmatpush2.bf16.msra.mxu0 %v1687_v9  ;;  %2526 = vmatprep.subr.bf16.mxu1 %v2202_v12  ;;  %v1759_v9 = vunpack.c.h.s8.bf16 %v1535_v11  ;;  %v1633_v12 = vunpack.c.h.s8.bf16 %v1473_v5  ;;  %v1568_v5 = vld [vmem:[#allocation23 + $0x3c8] sm:$0xff] }
 0x47a   :  { %2567 = vmatprep.subr.bf16.mxu0 %v1680_v8  ;;  %v1752_v8 = vunpack.c.l.s8.bf16 %v1536_v10  ;;  %v1593_v10 = vunpack.c.l.s8.bf16 %v1457_v56  ;;  %v1489_v56 = vld [vmem:[#allocation23 + $0x150] sm:$0xff] }
 0x47c   :  { %2527 = vmatpush2.bf16.msra.mxu1 %v2201_v21  ;;  %v3998_v21 = vpack.c.bf16 %v859_v7, %v859_v7  ;;  %v1506_v7 = vld [vmem:[#allocation23 + $0x1d8] sm:$0xff] }
 0x47d   :  { %2568 = vmatpush2.bf16.msra.mxu0 %v1679_v42  ;;  %2528 = vmatprep.subr.bf16.mxu1 %v2194_v22 }
 0x47e   :  { %2569 = vmatprep.subr.bf16.mxu0 %v1672_v62  ;;  %v1626_v62 = vunpack.c.l.s8.bf16 %v1474_v60  ;;  %v1511_v60 = vld [vmem:[#allocation23 + $0x200] sm:$0xff] }
 0x480   :  { %2529 = vmatpush2.bf16.msra.mxu1 %v2193_v41  ;;  %v1751_v41 = vunpack.c.l.s8.bf16 %v1535_v11 }
 0x481   :  { %2570 = vmatpush2.bf16.msra.mxu0 %v1671_v25  ;;  %2530 = vmatprep.subr.bf16.mxu1 %v2186_v26 }
 0x482   :  { %2571 = vmatprep.subr.bf16.mxu0 %v1664_v28  ;;  %v1527_v28 = vld [vmem:[#allocation23 + $0x280] sm:$0xff] }
 0x483   :  { %v1743_v34 = vunpack.c.h.s8.bf16 %v1527_v28 }
 0x484   :  { %2531 = vmatpush2.bf16.msra.mxu1 %v2185_v31  ;;  %v1465_v31 = vld [vmem:[#allocation23 + $0x90] sm:$0xff] }
 0x485   :  { %2572 = vmatpush2.bf16.msra.mxu0 %v1663_v32  ;;  %2532 = vmatprep.subr.bf16.mxu1 %v2178_v33  ;;  %v1617_v37 = vunpack.c.h.s8.bf16 %v1465_v31  ;;  %v1609_v49 = vunpack.c.l.s8.bf16 %v1465_v31 }
 0x486   :  { %2573 = vmatprep.subr.bf16.mxu0 %v1656_v35 }
 0x488   :  { %2533 = vmatpush2.bf16.msra.mxu1 %v2177_v46  ;;  %v1610_v46 = vunpack.c.l.s8.bf16 %v1466_v23 }
 0x489   :  { %2574 = vmatpush2.bf16.msra.mxu0 %v1655_v43  ;;  %2534 = vmatprep.subr.bf16.mxu1 %v2170_v48  ;;  %v1520_v43 = vld [vmem:[#allocation23 + $0x248] sm:$0xff]  ;;  %v1458_v48 = vld [vmem:[#allocation23 + $0x58] sm:$0xff] }
 0x48a   :  { %2575 = vmatprep.subr.bf16.mxu0 %v1648_v55  ;;  %v1728_v50 = vunpack.c.h.s8.bf16 %v1520_v43  ;;  %v1602_v55 = vunpack.c.h.s8.bf16 %v1458_v48 }
 0x48c   :  { %2535 = vmatpush2.bf16.msra.mxu1 %v2169_v38  ;;  %v1720_v38 = vunpack.c.l.s8.bf16 %v1520_v43  ;;  %v1552_v43 = vld [vmem:[#allocation23 + $0x348] sm:$0xff] }
 0x48d   :  { %2576 = vmatpush2.bf16.msra.mxu0 %v1647_v47  ;;  %2536 = vmatprep.subr.bf16.mxu1 %v2162_v39  ;;  %v1594_v47 = vunpack.c.l.s8.bf16 %v1458_v48  ;;  %v1512_v39 = vld [vmem:[#allocation23 + $0x208] sm:$0xff]  ;;  %v1490_v48 = vld [vmem:[#allocation23 + $0x158] sm:$0xff] }
 0x48e   :  { %2577 = vmatprep.subr.bf16.mxu0 %v1640_v44  ;;  %v1719_v44 = vunpack.c.l.s8.bf16 %v1519_v51  ;;  %v1712_v59 = vunpack.c.h.s8.bf16 %v1512_v39  ;;  %v1704_v2 = vunpack.c.l.s8.bf16 %v1512_v39  ;;  %v1551_v51 = vld [vmem:[#allocation23 + $0x340] sm:$0xff]  ;;  %v1658_v39 = vunpack.c.l.s8.bf16 %v1490_v48 }
 0x490   :  { %2537 = vmatpush2.bf16.msra.mxu1 %v2161_v61  ;;  %v1586_v61 = vunpack.c.h.s8.bf16 %v1450_v58 }
 0x491   :  { %2578 = vmatpush2.bf16.msra.mxu0 %v1639_v57  ;;  %2588 = vmatprep.subr.bf16.mxu1 %v1760_v1  ;;  %v1449_v57 = vld [vmem:[#allocation23 + $0x10] sm:$0xff]  ;;  %v1711_v1 = vunpack.c.h.s8.bf16 %v1511_v60 }
 0x492   :  { %2629 = vmatprep.subr.bf16.mxu0 %v1634_v3  ;;  %v1585_v11 = vunpack.c.h.s8.bf16 %v1449_v57  ;;  %v1578_v3 = vunpack.c.l.s8.bf16 %v1450_v58  ;;  %v1544_v58 = vld [vmem:[#allocation23 + $0x308] sm:$0xff] }
 0x493   :  { %2539 = vmatmul.mubr.bf16.vlgmr.msra.gmra.mxu1 %v3955_v0  ;;  %v2294_v42 = vpop.f32.mrf.mxu1  ;;  %v4001_v22 = vpop.f32.mrf.mxu0  ;;  %v1744_v0 = vunpack.c.h.s8.bf16 %v1528_v20  ;;  %v1567_v20 = vld [vmem:[#allocation23 + $0x3c0] sm:$0xff] }
 0x494   :  { %v4004_v24 = vadd.f32 %v2294_v42, %v3977_v63  ;;  %2580 = vmatmul.mubr.bf16.vlgmr.msra.gmra.mxu0 %v3996_v17  ;;  %2589 = vmatpush1.bf16.msra.mxu1 %v1759_v9  ;;  %v1618_v63 = vunpack.c.h.s8.bf16 %v1466_v23  ;;  %v1703_v9 = vunpack.c.l.s8.bf16 %v1511_v60  ;;  %v1698_v42 = vunpack.c.h.s8.bf16 %v1506_v7 }
 0x495   :  { %2620 = vmatprep.mubr.bf16.mxu1 %v3998_v21  ;;  %2630 = vmatpush1.bf16.msra.mxu0 %v1633_v12  ;;  %v2296_v25 = vpop.f32.mrf.mxu1  ;;  %v4008_v26 = vpop.f32.mrf.mxu0  ;;  %v1577_v12 = vunpack.c.l.s8.bf16 %v1449_v57  ;;  %v1823_v23 = vunpack.c.h.s8.bf16 %v1567_v20  ;;  %v843_v60 = vrot.slane %v3971_v45, %v3853_v16  ;;  %v1776_v57 = vunpack.c.h.s8.bf16 %v1544_v58 }
 0x496   :  { %2661 = vmatprep.mubr.bf16.mxu0 %v3979_v4  ;;  %v4012_v29 = vadd.f32 %v2296_v25, %v3983_v6  ;;  %2590 = vmatprep.subr.bf16.mxu1 %v1752_v8  ;;  %v1735_v6 = vunpack.c.l.s8.bf16 %v1527_v28  ;;  %v1824_v8 = vunpack.c.h.s8.bf16 %v1568_v5  ;;  %v1816_v25 = vunpack.c.l.s8.bf16 %v1568_v5  ;;  %v1498_v28 = vld [vmem:[#allocation23 + $0x198] sm:$0xff] }
 0x497   :  { %v2298_v32 = vpop.f32.mrf.mxu1  ;;  %v2339_v33 = vpop.f32.mrf.mxu0  ;;  %2631 = vmatprep.subr.bf16.mxu0 %v1626_v62  ;;  %v1505_v62 = vld [vmem:[#allocation23 + $0x1d0] sm:$0xff] }
 0x498   :  { %2591 = vmatpush1.bf16.msra.mxu1 %v1751_v41  ;;  %v1697_v41 = vunpack.c.h.s8.bf16 %v1505_v62  ;;  %v1689_v31 = vunpack.c.l.s8.bf16 %v1505_v62  ;;  %v1559_v33 = vld [vmem:[#allocation23 + $0x380] sm:$0xff]  ;;  %v1537_v62 = vld [vmem:[#allocation23 + $0x2d0] sm:$0xff] }
 0x499   :  { %2632 = vmatpush1.bf16.msra.mxu0 %v1625_v27  ;;  %v2299_v35 = vpop.f32.mrf.mxu1  ;;  %v2340_v36 = vpop.f32.mrf.mxu0  ;;  %2592 = vmatprep.subr.bf16.mxu1 %v1744_v0  ;;  %v1690_v27 = vunpack.c.l.s8.bf16 %v1506_v7  ;;  %v1560_v0 = vld [vmem:[#allocation23 + $0x388] sm:$0xff]  ;;  %v1768_v7 = vunpack.c.l.s8.bf16 %v1544_v58 }
 0x49a   :  { %2633 = vmatprep.subr.bf16.mxu0 %v1618_v63  ;;  %v1815_v63 = vunpack.c.l.s8.bf16 %v1567_v20  ;;  %v1808_v32 = vunpack.c.h.s8.bf16 %v1560_v0  ;;  %v1497_v35 = vld [vmem:[#allocation23 + $0x190] sm:$0xff]  ;;  %v1807_v36 = vunpack.c.h.s8.bf16 %v1559_v33 }
 0x49c   :  { %2593 = vmatpush1.bf16.msra.mxu1 %v1743_v34  ;;  %v1682_v34 = vunpack.c.h.s8.bf16 %v1498_v28 }
 0x49d   :  { %2634 = vmatpush1.bf16.msra.mxu0 %v1617_v37  ;;  %2594 = vmatprep.subr.bf16.mxu1 %v1736_v40  ;;  %v1681_v37 = vunpack.c.h.s8.bf16 %v1497_v35  ;;  %v1800_v40 = vunpack.c.l.s8.bf16 %v1560_v0 }
 0x49e   :  { %2635 = vmatprep.subr.bf16.mxu0 %v1610_v46  ;;  %v1674_v46 = vunpack.c.l.s8.bf16 %v1498_v28 }
 0x4a0   :  { %2595 = vmatpush1.bf16.msra.mxu1 %v1735_v6  ;;  %v1799_v6 = vunpack.c.l.s8.bf16 %v1559_v33  ;;  %v1468_v33 = vld [vmem:[#allocation23 + $0xa8] sm:$0xff] }
 0x4a1   :  { %2636 = vmatpush1.bf16.msra.mxu0 %v1609_v49  ;;  %2596 = vmatprep.subr.bf16.mxu1 %v1728_v50  ;;  %v1673_v49 = vunpack.c.l.s8.bf16 %v1497_v35  ;;  %v1792_v50 = vunpack.c.h.s8.bf16 %v1552_v43 }
 0x4a2   :  { %2637 = vmatprep.subr.bf16.mxu0 %v1602_v55  ;;  %v1666_v55 = vunpack.c.h.s8.bf16 %v1490_v48 }
 0x4a4   :  { %2597 = vmatpush1.bf16.msra.mxu1 %v1727_v53  ;;  %v1791_v53 = vunpack.c.h.s8.bf16 %v1551_v51 }
 0x4a5   :  { %2638 = vmatpush1.bf16.msra.mxu0 %v1601_v54  ;;  %2598 = vmatprep.subr.bf16.mxu1 %v1720_v38  ;;  %v817_v54 = vrot.slane %v3967_v30, %v3853_v16  ;;  %v1665_v38 = vunpack.c.h.s8.bf16 %v1489_v56  ;;  %v1543_v30 = vld [vmem:[#allocation23 + $0x300] sm:$0xff] }
 0x4a6   :  { %2639 = vmatprep.subr.bf16.mxu0 %v1594_v47  ;;  %v1784_v47 = vunpack.c.l.s8.bf16 %v1552_v43  ;;  %v1767_v45 = vunpack.c.l.s8.bf16 %v1543_v30  ;;  %v1529_v43 = vld [vmem:[#allocation23 + $0x290] sm:$0xff] }
 0x4a7   :  { %v1737_v58 = vunpack.c.l.s8.bf16 %v1529_v43 }
 0x4a8   :  { %2599 = vmatpush1.bf16.msra.mxu1 %v1719_v44  ;;  %v1482_v44 = vld [vmem:[#allocation23 + $0x118] sm:$0xff] }
 0x4a9   :  { %2640 = vmatpush1.bf16.msra.mxu0 %v1593_v10  ;;  %2600 = vmatprep.subr.bf16.mxu1 %v1712_v59  ;;  %v1783_v10 = vunpack.c.l.s8.bf16 %v1551_v51  ;;  %v828_v59 = vmul.f32 %v817_v54, %v3891_v52  ;;  %v1642_v52 = vunpack.c.l.s8.bf16 %v1482_v44 }
 0x4aa   :  { %2641 = vmatprep.subr.bf16.mxu0 %v1586_v61  ;;  %v1657_v61 = vunpack.c.l.s8.bf16 %v1489_v56 }
 0x4ac   :  { %2601 = vmatpush1.bf16.msra.mxu1 %v1711_v1  ;;  %v1650_v1 = vunpack.c.h.s8.bf16 %v1482_v44 }
 0x4ad   :  { %2642 = vmatpush1.bf16.msra.mxu0 %v1585_v11  ;;  %2602 = vmatprep.subr.bf16.mxu1 %v1704_v2  ;;  %v1481_v11 = vld [vmem:[#allocation23 + $0x110] sm:$0xff]  ;;  %v1775_v2 = vunpack.c.h.s8.bf16 %v1543_v30 }
 0x4ae   :  { %2643 = vmatprep.subr.bf16.mxu0 %v1578_v3  ;;  %v854_v3 = vadd.f32 %v843_v60, %v828_v59  ;;  %v1649_v5 = vunpack.c.h.s8.bf16 %v1481_v11  ;;  %v1641_v20 = vunpack.c.l.s8.bf16 %v1481_v11  ;;  %v1521_v59 = vld [vmem:[#allocation23 + $0x250] sm:$0xff] }
 0x4b0   :  { %2603 = vmatpush1.bf16.msra.mxu1 %v1703_v9  ;;  %v1538_v9 = vld [vmem:[#allocation23 + $0x2d8] sm:$0xff] }
 0x4b1   :  { %2644 = vmatpush1.bf16.msra.mxu0 %v1577_v12  ;;  %2604 = vmatprep.subr.bf16.mxu1 %v1824_v8  ;;  %v1476_v12 = vld [vmem:[#allocation23 + $0xe8] sm:$0xff]  ;;  %v858_v8 = vmax.f32 %v854_v3, 0.0  ;;  %v1754_v28 = vunpack.c.l.s8.bf16 %v1538_v9 }
 0x4b2   :  { %2645 = vmatprep.subr.bf16.mxu0 %v1698_v42  ;;  %v1762_v42 = vunpack.c.h.s8.bf16 %v1538_v9  ;;  %v1452_v3 = vld [vmem:[#allocation23 + $0x28] sm:$0xff]  ;;  %v1513_v9 = vld [vmem:[#allocation23 + $0x210] sm:$0xff] }
 0x4b4   :  { %2605 = vmatpush2.bf16.msra.mxu1 %v1823_v23  ;;  %v1636_v23 = vunpack.c.h.s8.bf16 %v1476_v12 }
 0x4b5   :  { %2646 = vmatpush2.bf16.msra.mxu0 %v1697_v41  ;;  %2606 = vmatprep.subr.bf16.mxu1 %v1816_v25  ;;  %v1475_v41 = vld [vmem:[#allocation23 + $0xe0] sm:$0xff]  ;;  %v1761_v25 = vunpack.c.h.s8.bf16 %v1537_v62 }
 0x4b6   :  { %2647 = vmatprep.subr.bf16.mxu0 %v1690_v27  ;;  %v4019_v27 = vpack.c.bf16 %v858_v8, %v858_v8  ;;  %v1635_v0 = vunpack.c.h.s8.bf16 %v1475_v41  ;;  %v1713_v8 = vunpack.c.h.s8.bf16 %v1513_v9 }
 0x4b8   :  { %2607 = vmatpush2.bf16.msra.mxu1 %v1815_v63  ;;  %v1530_v63 = vld [vmem:[#allocation23 + $0x298] sm:$0xff] }
 0x4b9   :  { %2648 = vmatpush2.bf16.msra.mxu0 %v1689_v31  ;;  %2608 = vmatprep.subr.bf16.mxu1 %v1808_v32  ;;  %v1628_v32 = vunpack.c.l.s8.bf16 %v1476_v12  ;;  %v1738_v54 = vunpack.c.l.s8.bf16 %v1530_v63  ;;  %v1588_v12 = vunpack.c.h.s8.bf16 %v1452_v3 }
 0x4ba   :  { %2649 = vmatprep.subr.bf16.mxu0 %v1682_v34 }
 0x4bc   :  { %2609 = vmatpush2.bf16.msra.mxu1 %v1807_v36  ;;  %v1753_v36 = vunpack.c.l.s8.bf16 %v1537_v62  ;;  %v1580_v62 = vunpack.c.l.s8.bf16 %v1452_v3  ;;  %v1484_v3 = vld [vmem:[#allocation23 + $0x128] sm:$0xff] }
 0x4bd   :  { %2650 = vmatpush2.bf16.msra.mxu0 %v1681_v37  ;;  %2610 = vmatprep.subr.bf16.mxu1 %v1800_v40  ;;  %v1627_v40 = vunpack.c.l.s8.bf16 %v1475_v41  ;;  %v1508_v41 = vld [vmem:[#allocation23 + $0x1e8] sm:$0xff] }
 0x4be   :  { %2651 = vmatprep.subr.bf16.mxu0 %v1674_v46  ;;  %v1746_v46 = vunpack.c.h.s8.bf16 %v1530_v63  ;;  %v1569_v63 = vld [vmem:[#allocation23 + $0x3d0] sm:$0xff] }
 0x4c0   :  { %2611 = vmatpush2.bf16.msra.mxu1 %v1799_v6  ;;  %v1620_v6 = vunpack.c.h.s8.bf16 %v1468_v33 }
 0x4c1   :  { %2652 = vmatpush2.bf16.msra.mxu0 %v1673_v49  ;;  %2612 = vmatprep.subr.bf16.mxu1 %v1792_v50  ;;  %v1467_v49 = vld [vmem:[#allocation23 + $0xa0] sm:$0xff] }
 0x4c2   :  { %2653 = vmatprep.subr.bf16.mxu0 %v1666_v55  ;;  %v1745_v55 = vunpack.c.h.s8.bf16 %v1529_v43  ;;  %v1611_v44 = vunpack.c.l.s8.bf16 %v1467_v49  ;;  %v1500_v43 = vld [vmem:[#allocation23 + $0x1a8] sm:$0xff] }
 0x4c4   :  { %2613 = vmatpush2.bf16.msra.mxu1 %v1791_v53  ;;  %v1619_v53 = vunpack.c.h.s8.bf16 %v1467_v49 }
 0x4c5   :  { %2654 = vmatpush2.bf16.msra.mxu0 %v1665_v38  ;;  %2614 = vmatprep.subr.bf16.mxu1 %v1784_v47  ;;  %v1522_v47 = vld [vmem:[#allocation23 + $0x258] sm:$0xff] }
 0x4c6   :  { %2655 = vmatprep.subr.bf16.mxu0 %v1658_v39  ;;  %v1460_v39 = vld [vmem:[#allocation23 + $0x68] sm:$0xff] }
 0x4c7   :  { %v1604_v60 = vunpack.c.h.s8.bf16 %v1460_v39  ;;  %v1596_v11 = vunpack.c.l.s8.bf16 %v1460_v39  ;;  %v1492_v39 = vld [vmem:[#allocation23 + $0x168] sm:$0xff] }
 0x4c8   :  { %2615 = vmatpush2.bf16.msra.mxu1 %v1783_v10  ;;  %v1730_v10 = vunpack.c.h.s8.bf16 %v1522_v47 }
 0x4c9   :  { %2656 = vmatpush2.bf16.msra.mxu0 %v1657_v61  ;;  %2616 = vmatprep.subr.bf16.mxu1 %v1776_v57  ;;  %v1459_v61 = vld [vmem:[#allocation23 + $0x60] sm:$0xff]  ;;  %v1729_v57 = vunpack.c.h.s8.bf16 %v1521_v59 }
 0x4ca   :  { %2657 = vmatprep.subr.bf16.mxu0 %v1650_v1  ;;  %v1603_v30 = vunpack.c.h.s8.bf16 %v1459_v61  ;;  %v1722_v1 = vunpack.c.l.s8.bf16 %v1522_v47  ;;  %v1554_v47 = vld [vmem:[#allocation23 + $0x358] sm:$0xff] }
 0x4cc   :  { %2617 = vmatpush2.bf16.msra.mxu1 %v1775_v2  ;;  %v1514_v2 = vld [vmem:[#allocation23 + $0x218] sm:$0xff] }
 0x4cd   :  { %2658 = vmatpush2.bf16.msra.mxu0 %v1649_v5  ;;  %2618 = vmatprep.subr.bf16.mxu1 %v1768_v7  ;;  %v1721_v5 = vunpack.c.l.s8.bf16 %v1521_v59  ;;  %v1595_v7 = vunpack.c.l.s8.bf16 %v1459_v61  ;;  %v1553_v59 = vld [vmem:[#allocation23 + $0x350] sm:$0xff]  ;;  %v1491_v61 = vld [vmem:[#allocation23 + $0x160] sm:$0xff] }
 0x4ce   :  { %2659 = vmatprep.subr.bf16.mxu0 %v1642_v52  ;;  %v1714_v52 = vunpack.c.h.s8.bf16 %v1514_v2 }
 0x4d0   :  { %2619 = vmatpush2.bf16.msra.mxu1 %v1767_v45  ;;  %v1451_v45 = vld [vmem:[#allocation23 + $0x20] sm:$0xff] }
 0x4d1   :  { %2660 = vmatpush2.bf16.msra.mxu0 %v1641_v20  ;;  %2670 = vmatprep.subr.bf16.mxu1 %v1762_v42  ;;  %v1587_v20 = vunpack.c.h.s8.bf16 %v1451_v45  ;;  %v1706_v42 = vunpack.c.l.s8.bf16 %v1514_v2  ;;  %v1546_v2 = vld [vmem:[#allocation23 + $0x318] sm:$0xff] }
 0x4d2   :  { %2711 = vmatprep.subr.bf16.mxu0 %v1636_v23  ;;  %v1570_v23 = vld [vmem:[#allocation23 + $0x3d8] sm:$0xff] }
 0x4d3   :  { %v2376_v31 = vpop.f32.mrf.mxu1  ;;  %2621 = vmatmul.mubr.bf16.vlgmr.msra.gmra.mxu1 %v4019_v27 }
 0x4d4   :  { %v4023_v34 = vadd.f32 %v2376_v31, %v4001_v22  ;;  %v4025_v35 = vpop.f32.mrf.mxu0  ;;  %2662 = vmatmul.mubr.bf16.vlgmr.msra.gmra.mxu0 %v3996_v17  ;;  %2671 = vmatpush1.bf16.msra.mxu1 %v1761_v25  ;;  %v1705_v25 = vunpack.c.l.s8.bf16 %v1513_v9  ;;  %v1700_v31 = vunpack.c.h.s8.bf16 %v1508_v41  ;;  %v1545_v9 = vld [vmem:[#allocation23 + $0x310] sm:$0xff] }
 0x4d5   :  { %2702 = vmatprep.mubr.bf16.mxu1 %v3998_v21  ;;  %v2378_v37 = vpop.f32.mrf.mxu1  ;;  %2712 = vmatpush1.bf16.msra.mxu0 %v1635_v0  ;;  %v1579_v0 = vunpack.c.l.s8.bf16 %v1451_v45  ;;  %v1483_v45 = vld [vmem:[#allocation23 + $0x120] sm:$0xff] }
 0x4d6   :  { %v4030_v48 = vadd.f32 %v2378_v37, %v4008_v26  ;;  %2743 = vmatprep.mubr.bf16.mxu0 %v3979_v4  ;;  %v4033_v22 = vpop.f32.mrf.mxu0  ;;  %2672 = vmatprep.subr.bf16.mxu1 %v1754_v28  ;;  %v1612_v26 = vunpack.c.l.s8.bf16 %v1468_v33  ;;  %v1826_v28 = vunpack.c.h.s8.bf16 %v1570_v23  ;;  %v1825_v33 = vunpack.c.h.s8.bf16 %v1569_v63 }
 0x4d7   :  { %v2380_v50 = vpop.f32.mrf.mxu1  ;;  %2713 = vmatprep.subr.bf16.mxu0 %v1628_v32  ;;  %v1507_v32 = vld [vmem:[#allocation23 + $0x1e0] sm:$0xff]  ;;  %v1818_v37 = vunpack.c.l.s8.bf16 %v1570_v23  ;;  %v1540_v23 = vld [vmem:[#allocation23 + $0x2e8] sm:$0xff] }
 0x4d8   :  { %v2421_v51 = vpop.f32.mrf.mxu0  ;;  %2673 = vmatpush1.bf16.msra.mxu1 %v1753_v36  ;;  %v1699_v36 = vunpack.c.h.s8.bf16 %v1507_v32  ;;  %v1691_v49 = vunpack.c.l.s8.bf16 %v1507_v32  ;;  %v1477_v32 = vld [vmem:[#allocation23 + $0xf0] sm:$0xff] }
 0x4d9   :  { %v2381_v56 = vpop.f32.mrf.mxu1  ;;  %2714 = vmatpush1.bf16.msra.mxu0 %v1627_v40  ;;  %2674 = vmatprep.subr.bf16.mxu1 %v1746_v46  ;;  %v1692_v40 = vunpack.c.l.s8.bf16 %v1508_v41  ;;  %v1562_v46 = vld [vmem:[#allocation23 + $0x398] sm:$0xff]  ;;  %v1561_v51 = vld [vmem:[#allocation23 + $0x390] sm:$0xff] }
 0x4da   :  { %v2422_v38 = vpop.f32.mrf.mxu0  ;;  %2715 = vmatprep.subr.bf16.mxu0 %v1620_v6  ;;  %v1817_v6 = vunpack.c.l.s8.bf16 %v1569_v63  ;;  %v1810_v50 = vunpack.c.h.s8.bf16 %v1562_v46  ;;  %v1499_v56 = vld [vmem:[#allocation23 + $0x1a0] sm:$0xff]  ;;  %v1478_v41 = vld [vmem:[#allocation23 + $0xf8] sm:$0xff] }
 0x4db   :  { %v1802_v38 = vunpack.c.l.s8.bf16 %v1562_v46  ;;  %v1539_v63 = vld [vmem:[#allocation23 + $0x2e0] sm:$0xff] }
 0x4dc   :  { %2675 = vmatpush1.bf16.msra.mxu1 %v1745_v55  ;;  %v1684_v55 = vunpack.c.h.s8.bf16 %v1500_v43 }
 0x4dd   :  { %2716 = vmatpush1.bf16.msra.mxu0 %v1619_v53  ;;  %2676 = vmatprep.subr.bf16.mxu1 %v1738_v54  ;;  %v1809_v53 = vunpack.c.h.s8.bf16 %v1561_v51  ;;  %v1683_v54 = vunpack.c.h.s8.bf16 %v1499_v56 }
 0x4de   :  { %2717 = vmatprep.subr.bf16.mxu0 %v1612_v26  ;;  %v1676_v26 = vunpack.c.l.s8.bf16 %v1500_v43  ;;  %v1630_v43 = vunpack.c.l.s8.bf16 %v1478_v41 }
 0x4e0   :  { %2677 = vmatpush1.bf16.msra.mxu1 %v1737_v58  ;;  %v1801_v58 = vunpack.c.l.s8.bf16 %v1561_v51  ;;  %v1755_v51 = vunpack.c.l.s8.bf16 %v1539_v63 }
 0x4e1   :  { %2718 = vmatpush1.bf16.msra.mxu0 %v1611_v44  ;;  %2678 = vmatprep.subr.bf16.mxu1 %v1730_v10  ;;  %v1675_v44 = vunpack.c.l.s8.bf16 %v1499_v56  ;;  %v1794_v10 = vunpack.c.h.s8.bf16 %v1554_v47  ;;  %v1629_v56 = vunpack.c.l.s8.bf16 %v1477_v32 }
 0x4e2   :  { %2719 = vmatprep.subr.bf16.mxu0 %v1604_v60  ;;  %v1668_v60 = vunpack.c.h.s8.bf16 %v1492_v39 }
 0x4e4   :  { %2679 = vmatpush1.bf16.msra.mxu1 %v1729_v57  ;;  %v1793_v57 = vunpack.c.h.s8.bf16 %v1553_v59 }
 0x4e5   :  { %2720 = vmatpush1.bf16.msra.mxu0 %v1603_v30  ;;  %2680 = vmatprep.subr.bf16.mxu1 %v1722_v1  ;;  %v1667_v30 = vunpack.c.h.s8.bf16 %v1491_v61  ;;  %v1786_v1 = vunpack.c.l.s8.bf16 %v1554_v47  ;;  %v1469_v47 = vld [vmem:[#allocation23 + $0xb0] sm:$0xff] }
 0x4e6   :  { %2721 = vmatprep.subr.bf16.mxu0 %v1596_v11  ;;  %v1660_v11 = vunpack.c.l.s8.bf16 %v1492_v39 }
 0x4e8   :  { %2681 = vmatpush1.bf16.msra.mxu1 %v1721_v5  ;;  %v1785_v5 = vunpack.c.l.s8.bf16 %v1553_v59  ;;  %v1621_v59 = vunpack.c.h.s8.bf16 %v1469_v47 }
 0x4e9   :  { %2722 = vmatpush1.bf16.msra.mxu0 %v1595_v7  ;;  %2682 = vmatprep.subr.bf16.mxu1 %v1714_v52  ;;  %v1659_v7 = vunpack.c.l.s8.bf16 %v1491_v61  ;;  %v1778_v52 = vunpack.c.h.s8.bf16 %v1546_v2 }
 0x4ea   :  { %2723 = vmatprep.subr.bf16.mxu0 %v1588_v12  ;;  %v1652_v12 = vunpack.c.h.s8.bf16 %v1484_v3 }
 0x4ec   :  { %2683 = vmatpush1.bf16.msra.mxu1 %v1713_v8  ;;  %v1777_v8 = vunpack.c.h.s8.bf16 %v1545_v9 }
 0x4ed   :  { %2724 = vmatpush1.bf16.msra.mxu0 %v1587_v20  ;;  %2684 = vmatprep.subr.bf16.mxu1 %v1706_v42  ;;  %v1651_v20 = vunpack.c.h.s8.bf16 %v1483_v45  ;;  %v1770_v42 = vunpack.c.l.s8.bf16 %v1546_v2  ;;  %v1523_v2 = vld [vmem:[#allocation23 + $0x260] sm:$0xff] }
 0x4ee   :  { %2725 = vmatprep.subr.bf16.mxu0 %v1580_v62  ;;  %v1644_v62 = vunpack.c.l.s8.bf16 %v1484_v3 }
 0x4f0   :  { %2685 = vmatpush1.bf16.msra.mxu1 %v1705_v25  ;;  %v1769_v25 = vunpack.c.l.s8.bf16 %v1545_v9 }
 0x4f1   :  { %2726 = vmatpush1.bf16.msra.mxu0 %v1579_v0  ;;  %2686 = vmatprep.subr.bf16.mxu1 %v1826_v28  ;;  %v1643_v0 = vunpack.c.l.s8.bf16 %v1483_v45  ;;  %v1764_v28 = vunpack.c.h.s8.bf16 %v1540_v23  ;;  %v1516_v45 = vld [vmem:[#allocation23 + $0x228] sm:$0xff] }
 0x4f2   :  { %2727 = vmatprep.subr.bf16.mxu0 %v1700_v31  ;;  %v1638_v31 = vunpack.c.h.s8.bf16 %v1478_v41 }
 0x4f4   :  { %2687 = vmatpush2.bf16.msra.mxu1 %v1825_v33  ;;  %v1763_v33 = vunpack.c.h.s8.bf16 %v1539_v63  ;;  %v1708_v63 = vunpack.c.l.s8.bf16 %v1516_v45 }
 0x4f5   :  { %2728 = vmatpush2.bf16.msra.mxu0 %v1699_v36  ;;  %2688 = vmatprep.subr.bf16.mxu1 %v1818_v37  ;;  %v1637_v36 = vunpack.c.h.s8.bf16 %v1477_v32  ;;  %v1756_v37 = vunpack.c.l.s8.bf16 %v1540_v23  ;;  %v1515_v23 = vld [vmem:[#allocation23 + $0x220] sm:$0xff]  ;;  %v1572_v32 = vld [vmem:[#allocation23 + $0x3e8] sm:$0xff] }
 0x4f6   :  { %2729 = vmatprep.subr.bf16.mxu0 %v1692_v40  ;;  %v1532_v40 = vld [vmem:[#allocation23 + $0x2a8] sm:$0xff] }
 0x4f8   :  { %2689 = vmatpush2.bf16.msra.mxu1 %v1817_v6  ;;  %v1470_v6 = vld [vmem:[#allocation23 + $0xb8] sm:$0xff] }
 0x4f9   :  { %2730 = vmatpush2.bf16.msra.mxu0 %v1691_v49  ;;  %2690 = vmatprep.subr.bf16.mxu1 %v1810_v50 }
 0x4fa   :  { %2731 = vmatprep.subr.bf16.mxu0 %v1684_v55 }
 0x4fc   :  { %2691 = vmatpush2.bf16.msra.mxu1 %v1809_v53  ;;  %v1748_v53 = vunpack.c.h.s8.bf16 %v1532_v40 }
 0x4fd   :  { %2732 = vmatpush2.bf16.msra.mxu0 %v1683_v54  ;;  %2692 = vmatprep.subr.bf16.mxu1 %v1802_v38  ;;  %v1531_v54 = vld [vmem:[#allocation23 + $0x2a0] sm:$0xff] }
 0x4fe   :  { %2733 = vmatprep.subr.bf16.mxu0 %v1676_v26  ;;  %v1622_v26 = vunpack.c.h.s8.bf16 %v1470_v6 }
 0x500   :  { %2693 = vmatpush2.bf16.msra.mxu1 %v1801_v58 }
 0x501   :  { %2734 = vmatpush2.bf16.msra.mxu0 %v1675_v44  ;;  %2694 = vmatprep.subr.bf16.mxu1 %v1794_v10  ;;  %v1747_v44 = vunpack.c.h.s8.bf16 %v1531_v54 }
 0x502   :  { %2735 = vmatprep.subr.bf16.mxu0 %v1668_v60  ;;  %v1740_v60 = vunpack.c.l.s8.bf16 %v1532_v40  ;;  %v1828_v40 = vunpack.c.h.s8.bf16 %v1572_v32 }
 0x504   :  { %2695 = vmatpush2.bf16.msra.mxu1 %v1793_v57  ;;  %v1524_v57 = vld [vmem:[#allocation23 + $0x268] sm:$0xff] }
 0x505   :  { %2736 = vmatpush2.bf16.msra.mxu0 %v1667_v30  ;;  %2696 = vmatprep.subr.bf16.mxu1 %v1786_v1  ;;  %v1739_v30 = vunpack.c.l.s8.bf16 %v1531_v54  ;;  %v1613_v1 = vunpack.c.l.s8.bf16 %v1469_v47  ;;  %v1724_v9 = vunpack.c.l.s8.bf16 %v1524_v57  ;;  %v1564_v54 = vld [vmem:[#allocation23 + $0x3a8] sm:$0xff] }
 0x506   :  { %2737 = vmatprep.subr.bf16.mxu0 %v1660_v11  ;;  %v1732_v11 = vunpack.c.h.s8.bf16 %v1524_v57 }
 0x508   :  { %2697 = vmatpush2.bf16.msra.mxu1 %v1785_v5  ;;  %v1461_v5 = vld [vmem:[#allocation23 + $0x70] sm:$0xff] }
 0x509   :  { %2738 = vmatpush2.bf16.msra.mxu0 %v1659_v7  ;;  %2698 = vmatprep.subr.bf16.mxu1 %v1778_v52  ;;  %v1731_v7 = vunpack.c.h.s8.bf16 %v1523_v2  ;;  %v1605_v52 = vunpack.c.h.s8.bf16 %v1461_v5 }
 0x50a   :  { %2739 = vmatprep.subr.bf16.mxu0 %v1652_v12 }
 0x50c   :  { %2699 = vmatpush2.bf16.msra.mxu1 %v1777_v8  ;;  %v1454_v8 = vld [vmem:[#allocation23 + $0x38] sm:$0xff] }
 0x50d   :  { %2740 = vmatpush2.bf16.msra.mxu0 %v1651_v20  ;;  %2700 = vmatprep.subr.bf16.mxu1 %v1770_v42  ;;  %v1723_v20 = vunpack.c.l.s8.bf16 %v1523_v2  ;;  %v1597_v42 = vunpack.c.l.s8.bf16 %v1461_v5  ;;  %v1590_v41 = vunpack.c.h.s8.bf16 %v1454_v8 }
 0x50e   :  { %2741 = vmatprep.subr.bf16.mxu0 %v1644_v62  ;;  %v1716_v62 = vunpack.c.h.s8.bf16 %v1516_v45 }
 0x510   :  { %2701 = vmatpush2.bf16.msra.mxu1 %v1769_v25  ;;  %v1453_v25 = vld [vmem:[#allocation23 + $0x30] sm:$0xff] }
 0x511   :  { %2742 = vmatpush2.bf16.msra.mxu0 %v1643_v0  ;;  %2752 = vmatprep.subr.bf16.mxu1 %v1764_v28  ;;  %v1715_v0 = vunpack.c.h.s8.bf16 %v1515_v23  ;;  %v1589_v28 = vunpack.c.h.s8.bf16 %v1453_v25 }
 0x512   :  { %2793 = vmatprep.subr.bf16.mxu0 %v1638_v31  ;;  %v1582_v31 = vunpack.c.l.s8.bf16 %v1454_v8  ;;  %v1548_v8 = vld [vmem:[#allocation23 + $0x328] sm:$0xff] }
 0x513   :  { %v2458_v46 = vpop.f32.mrf.mxu1  ;;  %2703 = vmatmul.mubr.bf16.vlgmr.msra.gmra.mxu1 %v4019_v27 }
 0x514   :  { %v4037_v49 = vadd.f32 %v2458_v46, %v4025_v35  ;;  %v4039_v50 = vpop.f32.mrf.mxu0  ;;  %2744 = vmatmul.mubr.bf16.vlgmr.msra.gmra.mxu0 %v3996_v17  ;;  %2753 = vmatpush1.bf16.msra.mxu1 %v1763_v33  ;;  %v1510_v33 = vld [vmem:[#allocation23 + $0x1f8] sm:$0xff]  ;;  %v1571_v46 = vld [vmem:[#allocation23 + $0x3e0] sm:$0xff] }
 0x515   :  { %2784 = vmatprep.mubr.bf16.mxu1 %v3998_v21  ;;  %v2460_v55 = vpop.f32.mrf.mxu1  ;;  %2794 = vmatpush1.bf16.msra.mxu0 %v1637_v36  ;;  %v1707_v36 = vunpack.c.l.s8.bf16 %v1515_v23  ;;  %v1819_v47 = vunpack.c.l.s8.bf16 %v1571_v46  ;;  %v1780_v23 = vunpack.c.h.s8.bf16 %v1548_v8 }
 0x516   :  { %v4044_v38 = vadd.f32 %v2460_v55, %v4033_v22  ;;  %2825 = vmatprep.mubr.bf16.mxu0 %v3979_v4  ;;  %v4047_v35 = vpop.f32.mrf.mxu0  ;;  %2754 = vmatprep.subr.bf16.mxu1 %v1756_v37  ;;  %v1614_v22 = vunpack.c.l.s8.bf16 %v1470_v6  ;;  %v1462_v4 = vld [vmem:[#allocation23 + $0x78] sm:$0xff]  ;;  %v1581_v37 = vunpack.c.l.s8.bf16 %v1453_v25  ;;  %v1509_v6 = vld [vmem:[#allocation23 + $0x1f0] sm:$0xff] }
 0x517   :  { %v2462_v39 = vpop.f32.mrf.mxu1  ;;  %2795 = vmatprep.subr.bf16.mxu0 %v1630_v43  ;;  %v1606_v3 = vunpack.c.h.s8.bf16 %v1462_v4  ;;  %v1598_v12 = vunpack.c.l.s8.bf16 %v1462_v4  ;;  %v1702_v43 = vunpack.c.h.s8.bf16 %v1510_v33  ;;  %v1701_v55 = vunpack.c.h.s8.bf16 %v1509_v6  ;;  %v1556_v4 = vld [vmem:[#allocation23 + $0x368] sm:$0xff] }
 0x518   :  { %v2503_v58 = vpop.f32.mrf.mxu0  ;;  %2755 = vmatpush1.bf16.msra.mxu1 %v1755_v51  ;;  %v1827_v51 = vunpack.c.h.s8.bf16 %v1571_v46  ;;  %v1693_v39 = vunpack.c.l.s8.bf16 %v1509_v6  ;;  %v1796_v2 = vunpack.c.h.s8.bf16 %v1556_v4  ;;  %v1541_v46 = vld [vmem:[#allocation23 + $0x2f0] sm:$0xff] }
 0x519   :  { %v2463_v10 = vpop.f32.mrf.mxu1  ;;  %2796 = vmatpush1.bf16.msra.mxu0 %v1629_v56  ;;  %2756 = vmatprep.subr.bf16.mxu1 %v1748_v53  ;;  %v1820_v56 = vunpack.c.l.s8.bf16 %v1572_v32  ;;  %v1694_v53 = vunpack.c.l.s8.bf16 %v1510_v33  ;;  %v1812_v58 = vunpack.c.h.s8.bf16 %v1564_v54  ;;  %v1542_v33 = vld [vmem:[#allocation23 + $0x2f8] sm:$0xff] }
 0x51a   :  { %v2504_v61 = vpop.f32.mrf.mxu0  ;;  %2797 = vmatprep.subr.bf16.mxu0 %v1622_v26  ;;  %v1502_v26 = vld [vmem:[#allocation23 + $0x1b8] sm:$0xff]  ;;  %v1758_v6 = vunpack.c.l.s8.bf16 %v1542_v33 }
 0x51b   :  { %v1686_v10 = vunpack.c.h.s8.bf16 %v1502_v26  ;;  %v1678_v57 = vunpack.c.l.s8.bf16 %v1502_v26 }
 0x51c   :  { %2757 = vmatpush1.bf16.msra.mxu1 %v1747_v44  ;;  %v1563_v44 = vld [vmem:[#allocation23 + $0x3a0] sm:$0xff] }
 0x51d   :  { %2798 = vmatpush1.bf16.msra.mxu0 %v1621_v59  ;;  %2758 = vmatprep.subr.bf16.mxu1 %v1740_v60  ;;  %v1501_v59 = vld [vmem:[#allocation23 + $0x1b0] sm:$0xff]  ;;  %v1811_v60 = vunpack.c.h.s8.bf16 %v1563_v44 }
 0x51e   :  { %2799 = vmatprep.subr.bf16.mxu0 %v1614_v22  ;;  %v1685_v61 = vunpack.c.h.s8.bf16 %v1501_v59  ;;  %v1804_v22 = vunpack.c.l.s8.bf16 %v1564_v54  ;;  %v1757_v54 = vunpack.c.l.s8.bf16 %v1541_v46 }
 0x520   :  { %2759 = vmatpush1.bf16.msra.mxu1 %v1739_v30  ;;  %v1494_v30 = vld [vmem:[#allocation23 + $0x178] sm:$0xff] }
 0x521   :  { %2800 = vmatpush1.bf16.msra.mxu0 %v1613_v1  ;;  %2760 = vmatprep.subr.bf16.mxu1 %v1732_v11  ;;  %v1803_v1 = vunpack.c.l.s8.bf16 %v1563_v44  ;;  %v1677_v11 = vunpack.c.l.s8.bf16 %v1501_v59  ;;  %v1670_v5 = vunpack.c.h.s8.bf16 %v1494_v30  ;;  %v1662_v45 = vunpack.c.l.s8.bf16 %v1494_v30  ;;  %v1525_v30 = vld [vmem:[#allocation23 + $0x270] sm:$0xff] }
 0x522   :  { %2801 = vmatprep.subr.bf16.mxu0 %v1606_v3  ;;  %v1555_v3 = vld [vmem:[#allocation23 + $0x360] sm:$0xff] }
 0x524   :  { %2761 = vmatpush1.bf16.msra.mxu1 %v1731_v7  ;;  %v1493_v7 = vld [vmem:[#allocation23 + $0x170] sm:$0xff] }
 0x525   :  { %2802 = vmatpush1.bf16.msra.mxu0 %v1605_v52  ;;  %2762 = vmatprep.subr.bf16.mxu1 %v1724_v9  ;;  %v1795_v52 = vunpack.c.h.s8.bf16 %v1555_v3  ;;  %v1669_v9 = vunpack.c.h.s8.bf16 %v1493_v7 }
 0x526   :  { %2803 = vmatprep.subr.bf16.mxu0 %v1598_v12  ;;  %v1788_v12 = vunpack.c.l.s8.bf16 %v1556_v4 }
 0x528   :  { %2763 = vmatpush1.bf16.msra.mxu1 %v1723_v20  ;;  %v1486_v20 = vld [vmem:[#allocation23 + $0x138] sm:$0xff] }
 0x529   :  { %2804 = vmatpush1.bf16.msra.mxu0 %v1597_v42  ;;  %2764 = vmatprep.subr.bf16.mxu1 %v1716_v62  ;;  %v1787_v42 = vunpack.c.l.s8.bf16 %v1555_v3  ;;  %v1661_v62 = vunpack.c.l.s8.bf16 %v1493_v7  ;;  %v1654_v25 = vunpack.c.h.s8.bf16 %v1486_v20  ;;  %v1646_v32 = vunpack.c.l.s8.bf16 %v1486_v20 }
 0x52a   :  { %2805 = vmatprep.subr.bf16.mxu0 %v1590_v41  ;;  %v1547_v41 = vld [vmem:[#allocation23 + $0x320] sm:$0xff] }
 0x52c   :  { %2765 = vmatpush1.bf16.msra.mxu1 %v1715_v0  ;;  %v1485_v0 = vld [vmem:[#allocation23 + $0x130] sm:$0xff] }
 0x52d   :  { %2806 = vmatpush1.bf16.msra.mxu0 %v1589_v28  ;;  %2766 = vmatprep.subr.bf16.mxu1 %v1708_v63  ;;  %v1779_v28 = vunpack.c.h.s8.bf16 %v1547_v41  ;;  %v1653_v63 = vunpack.c.h.s8.bf16 %v1485_v0 }
 0x52e   :  { %2807 = vmatprep.subr.bf16.mxu0 %v1582_v31  ;;  %v1772_v31 = vunpack.c.l.s8.bf16 %v1548_v8 }
 0x530   :  { %2767 = vmatpush1.bf16.msra.mxu1 %v1707_v36  ;;  %v1771_v36 = vunpack.c.l.s8.bf16 %v1547_v41  ;;  %v1574_v41 = vld [vmem:[#allocation23 + $0x3f8] sm:$0xff] }
 0x531   :  { %2808 = vmatpush1.bf16.msra.mxu0 %v1581_v37  ;;  %2768 = vmatprep.subr.bf16.mxu1 %v1828_v40  ;;  %v1645_v37 = vunpack.c.l.s8.bf16 %v1485_v0  ;;  %v1766_v40 = vunpack.c.h.s8.bf16 %v1542_v33 }
 0x532   :  { %2809 = vmatprep.subr.bf16.mxu0 %v1702_v43  ;;  %v1765_v43 = vunpack.c.h.s8.bf16 %v1541_v46  ;;  %v1822_v46 = vunpack.c.l.s8.bf16 %v1574_v41 }
 0x534   :  { %2769 = vmatpush2.bf16.msra.mxu1 %v1827_v51  ;;  %v1534_v51 = vld [vmem:[#allocation23 + $0x2b8] sm:$0xff] }
 0x535   :  { %2810 = vmatpush2.bf16.msra.mxu0 %v1701_v55  ;;  %2770 = vmatprep.subr.bf16.mxu1 %v1820_v56 }
 0x536   :  { %2811 = vmatprep.subr.bf16.mxu0 %v1694_v53 }
 0x538   :  { %2771 = vmatpush2.bf16.msra.mxu1 %v1819_v47 }
 0x539   :  { %2812 = vmatpush2.bf16.msra.mxu0 %v1693_v39  ;;  %2772 = vmatprep.subr.bf16.mxu1 %v1812_v58  ;;  %v1750_v39 = vunpack.c.h.s8.bf16 %v1534_v51  ;;  %v1533_v58 = vld [vmem:[#allocation23 + $0x2b0] sm:$0xff] }
 0x53a   :  { %2813 = vmatprep.subr.bf16.mxu0 %v1686_v10 }
 0x53c   :  { %2773 = vmatpush2.bf16.msra.mxu1 %v1811_v60  ;;  %v1749_v60 = vunpack.c.h.s8.bf16 %v1533_v58 }
 0x53d   :  { %2814 = vmatpush2.bf16.msra.mxu0 %v1685_v61  ;;  %2774 = vmatprep.subr.bf16.mxu1 %v1804_v22 }
 0x53e   :  { %2815 = vmatprep.subr.bf16.mxu0 %v1678_v57  ;;  %v1741_v57 = vunpack.c.l.s8.bf16 %v1533_v58 }
 0x540   :  { %2775 = vmatpush2.bf16.msra.mxu1 %v1803_v1 }
 0x541   :  { %2816 = vmatpush2.bf16.msra.mxu0 %v1677_v11  ;;  %2776 = vmatprep.subr.bf16.mxu1 %v1796_v2  ;;  %v3033_v11 = vld [vmem:[#allocation26 + $0x38] sm:$0xff] }
 0x542   :  { %2817 = vmatprep.subr.bf16.mxu0 %v1670_v5  ;;  %v3029_v2 = vld [vmem:[#allocation26 + $0x18] sm:$0xff]  ;;  %v3057_v3 = vunpack.c.h.s8.bf16 %v3033_v11  ;;  %v3056_v7 = vunpack.c.l.s8.bf16 %v3033_v11 }
 0x543   :  { %v3049_v5 = vunpack.c.h.s8.bf16 %v3029_v2  ;;  %v3048_v8 = vunpack.c.l.s8.bf16 %v3029_v2 }
 0x544   :  { %2777 = vmatpush2.bf16.msra.mxu1 %v1795_v52  ;;  %v1725_v52 = vunpack.c.l.s8.bf16 %v1525_v30 }
 0x545   :  { %2818 = vmatpush2.bf16.msra.mxu0 %v1669_v9  ;;  %2778 = vmatprep.subr.bf16.mxu1 %v1788_v12  ;;  %v3032_v9 = vld [vmem:[#allocation26 + $0x30] sm:$0xff] }
 0x546   :  { %2819 = vmatprep.subr.bf16.mxu0 %v1662_v45  ;;  %v1517_v45 = vld [vmem:[#allocation23 + $0x230] sm:$0xff]  ;;  %v3055_v20 = vunpack.c.h.s8.bf16 %v3032_v9  ;;  %v3054_v0 = vunpack.c.l.s8.bf16 %v3032_v9 }
 0x548   :  { %2779 = vmatpush2.bf16.msra.mxu1 %v1787_v42  ;;  %v3028_v42 = vld [vmem:[#allocation26 + $0x10] sm:$0xff] }
 0x549   :  { %2820 = vmatpush2.bf16.msra.mxu0 %v1661_v62  ;;  %2780 = vmatprep.subr.bf16.mxu1 %v1780_v23  ;;  %v1717_v62 = vunpack.c.h.s8.bf16 %v1517_v45  ;;  %v3046_v33 = vunpack.c.l.s8.bf16 %v3028_v42 }
 0x54a   :  { %2821 = vmatprep.subr.bf16.mxu0 %v1654_v25  ;;  %v3047_v25 = vunpack.c.h.s8.bf16 %v3028_v42  ;;  %v4092_v42 = vld [vmem:[%s4162_s18] sm:$0xf] }
 0x54c   :  { %2781 = vmatpush2.bf16.msra.mxu1 %v1779_v28  ;;  %v1709_v28 = vunpack.c.l.s8.bf16 %v1517_v45 }
 0x54d   :  { %2822 = vmatpush2.bf16.msra.mxu0 %v1653_v63  ;;  %2782 = vmatprep.subr.bf16.mxu1 %v1772_v31  ;;  %v4064_v63 = vld [vmem:[#allocation26 + $0x28] sm:$0xff]  ;;  %v1830_v31 = vunpack.c.h.s8.bf16 %v1574_v41 }
 0x54e   :  { %2823 = vmatprep.subr.bf16.mxu0 %v1646_v32  ;;  %v1573_v32 = vld [vmem:[#allocation23 + $0x3f0] sm:$0xff] }
 0x550   :  { %2783 = vmatpush2.bf16.msra.mxu1 %v1771_v36  ;;  %v3053_v36 = vunpack.c.h.s8.bf16 %v4064_v63 }
 0x551   :  { %2824 = vmatpush2.bf16.msra.mxu0 %v1645_v37  ;;  %2834 = vmatprep.subr.bf16.mxu1 %v1766_v40  ;;  %v3027_v37 = vld [vmem:[#allocation26 + $0x8] sm:$0xff]  ;;  %v1829_v40 = vunpack.c.h.s8.bf16 %v1573_v32 }
 0x552   :  { %3218 = vmatprep.subr.bf16.mxu0 %v3057_v3 }
 0x553   :  { %v2540_v55 = vpop.f32.mrf.mxu1  ;;  %2785 = vmatmul.mubr.bf16.vlgmr.msra.gmra.mxu1 %v4019_v27 }
 0x554   :  { %v4051_v56 = vadd.f32 %v2540_v55, %v4039_v50  ;;  %v2581_v53 = vpop.f32.mrf.mxu0  ;;  %2826 = vmatmul.mubr.bf16.vlgmr.msra.gmra.mxu0 %v3996_v17  ;;  %2835 = vmatpush1.bf16.msra.mxu1 %v1765_v43  ;;  %v1566_v43 = vld [vmem:[#allocation23 + $0x3b8] sm:$0xff] }
 0x555   :  { %v4055_v26 = vadd.f32 %v2581_v53, %v4004_v24  ;;  %2866 = vmatprep.mubr.bf16.mxu1 %v3998_v21  ;;  %v2542_v47 = vpop.f32.mrf.mxu1  ;;  %2836 = vmatprep.subr.bf16.mxu1 %v1758_v6  ;;  %v1742_v24 = vunpack.c.l.s8.bf16 %v1534_v51  ;;  %v1526_v21 = vld [vmem:[#allocation23 + $0x278] sm:$0xff]  ;;  %v3045_v6 = vunpack.c.h.s8.bf16 %v3027_v37  ;;  %v1821_v51 = vunpack.c.l.s8.bf16 %v1573_v32  ;;  %v1565_v53 = vld [vmem:[#allocation23 + $0x3b0] sm:$0xff] }
 0x556   :  { %v4059_v44 = vadd.f32 %v2542_v47, %v4047_v35  ;;  %v2583_v10 = vpop.f32.mrf.mxu0  ;;  %v1734_v4 = vunpack.c.h.s8.bf16 %v1526_v21  ;;  %v1733_v35 = vunpack.c.h.s8.bf16 %v1525_v30  ;;  %v1726_v1 = vunpack.c.l.s8.bf16 %v1526_v21  ;;  %3219 = vmatpush3.bf16.msra.mxu0 %v3049_v5  ;;  %v1549_v21 = vld [vmem:[#allocation23 + $0x330] sm:$0xff] }
 0x557   :  { %v4062_v50 = vadd.f32 %v2583_v10, %v4012_v29  ;;  %v2544_v59 = vpop.f32.mrf.mxu1  ;;  %v1518_v29 = vld [vmem:[#allocation23 + $0x238] sm:$0xff]  ;;  %3220 = vmatprep.subr.bf16.mxu0 %v3056_v7  ;;  %v1814_v55 = vunpack.c.h.s8.bf16 %v1566_v43  ;;  %v1806_v47 = vunpack.c.l.s8.bf16 %v1566_v43  ;;  %v1805_v58 = vunpack.c.l.s8.bf16 %v1565_v53 }
 0x558   :  { %v2585_v17 = vpop.f32.mrf.mxu0  ;;  %2837 = vmatpush1.bf16.msra.mxu1 %v1757_v54  ;;  %v1718_v12 = vunpack.c.h.s8.bf16 %v1518_v29  ;;  %v1710_v23 = vunpack.c.l.s8.bf16 %v1518_v29  ;;  %v1813_v54 = vunpack.c.h.s8.bf16 %v1565_v53  ;;  %v1557_v59 = vld [vmem:[#allocation23 + $0x370] sm:$0xff]  ;;  %v1773_v30 = vunpack.c.l.s8.bf16 %v1549_v21  ;;  %v3041_v53 = vld [vmem:[#allocation26 + $0x78] sm:$0xff] }
 0x559   :  { %v2545_v61 = vpop.f32.mrf.mxu1  ;;  %2838 = vmatprep.subr.bf16.mxu1 %v1750_v39  ;;  %v1558_v39 = vld [vmem:[#allocation23 + $0x378] sm:$0xff]  ;;  %v1797_v17 = vunpack.c.h.s8.bf16 %v1557_v59 }
 0x55a   :  { %v2586_v22 = vpop.f32.mrf.mxu0  ;;  %3221 = vmatpush3.bf16.msra.mxu0 %v3048_v8  ;;  %v1798_v10 = vunpack.c.h.s8.bf16 %v1558_v39  ;;  %v1550_v61 = vld [vmem:[#allocation23 + $0x338] sm:$0xff] }
 0x55b   :  { %3222 = vmatprep.subr.bf16.mxu0 %v3055_v20  ;;  %v1782_v22 = vunpack.c.h.s8.bf16 %v1550_v61 }
 0x55c   :  { %2839 = vmatpush1.bf16.msra.mxu1 %v1749_v60  ;;  %v1790_v60 = vunpack.c.l.s8.bf16 %v1558_v39 }
 0x55d   :  { %2840 = vmatprep.subr.bf16.mxu1 %v1742_v24  ;;  %v1789_v24 = vunpack.c.l.s8.bf16 %v1557_v59  ;;  %v3036_v59 = vld [vmem:[#allocation26 + $0x50] sm:$0xff] }
 0x55e   :  { %3223 = vmatpush3.bf16.msra.mxu0 %v3047_v25 }
 0x55f   :  { %3224 = vmatprep.subr.bf16.mxu0 %v3054_v0 }
 0x560   :  { %2841 = vmatpush1.bf16.msra.mxu1 %v1741_v57  ;;  %v1781_v57 = vunpack.c.h.s8.bf16 %v1549_v21  ;;  %v3035_v21 = vld [vmem:[#allocation26 + $0x48] sm:$0xff] }
 0x561   :  { %2842 = vmatprep.subr.bf16.mxu1 %v1734_v4  ;;  %v1774_v4 = vunpack.c.l.s8.bf16 %v1550_v61  ;;  %v3039_v61 = vld [vmem:[#allocation26 + $0x68] sm:$0xff] }
 0x562   :  { %3225 = vmatpush3.bf16.msra.mxu0 %v3046_v33 }
 0x563   :  { %3226 = vmatprep.subr.bf16.mxu0 %v3053_v36  ;;  %v2988_v36 = vrot.slane %v4092_v42, %v3850_v15 }
 0x564   :  { %2843 = vmatpush1.bf16.msra.mxu1 %v1733_v35  ;;  %v4070_v35 = vld [vmem:[%s4160_s16] sm:$0xff] }
 0x565   :  { %2844 = vmatprep.subr.bf16.mxu1 %v1726_v1  ;;  %v4075_v1 = vld [vmem:[%s4161_s17] sm:$0xff]  ;;  %v2880_v29 = vrot.slane %v4070_v35, %v3850_v15  ;;  %v2884_v7 = vrot.slane %v4070_v35, %v3856_v18 }
 0x566   :  { %3227 = vmatpush3.bf16.msra.mxu0 %v3045_v6  ;;  %v2930_v3 = vrot.slane %v4075_v1, %v3850_v15  ;;  %v2934_v20 = vrot.slane %v4075_v1, %v3856_v18  ;;  %v3040_v15 = vld [vmem:[#allocation26 + $0x70] sm:$0xff] }
 0x568   :  { %2845 = vmatpush1.bf16.msra.mxu1 %v1725_v52  ;;  %v3052_v52 = vunpack.c.l.s8.bf16 %v4064_v63 }
 0x569   :  { %2846 = vmatprep.subr.bf16.mxu1 %v1718_v12  ;;  %v3044_v12 = vunpack.c.l.s8.bf16 %v3027_v37  ;;  %v2992_v37 = vrot.slane %v4092_v42, %v3856_v18 }
 0x56a   :  { %3228 = vmatprep.subr.bf16.mxu0 %v3052_v52  ;;  %v2892_v52 = vrot.slane %v4070_v35, %v3859_v19 }
 0x56b   :  { %3229 = vmatpush3.bf16.msra.mxu0 %v3044_v12 }
 0x56c   :  { %2847 = vmatpush1.bf16.msra.mxu1 %v1717_v62  ;;  %v3030_v62 = vld [vmem:[#allocation26 + $0x20] sm:$0xff] }
 0x56d   :  { %2848 = vmatprep.subr.bf16.mxu1 %v1710_v23  ;;  %v3051_v0 = vunpack.c.h.s8.bf16 %v3030_v62 }
 0x56f   :  { %3230 = vmatprep.subr.bf16.mxu0 %v3051_v0 }
 0x570   :  { %2849 = vmatpush1.bf16.msra.mxu1 %v1709_v28  ;;  %v3026_v28 = vld [vmem:[#allocation26] sm:$0xff] }
 0x571   :  { %2850 = vmatprep.subr.bf16.mxu1 %v1830_v31  ;;  %v3042_v43 = vunpack.c.l.s8.bf16 %v3026_v28 }
 0x574   :  { %2851 = vmatpush2.bf16.msra.mxu1 %v1829_v40 }
 0x575   :  { %2852 = vmatprep.subr.bf16.mxu1 %v1822_v46  ;;  %v3050_v46 = vunpack.c.l.s8.bf16 %v3030_v62 }
 0x578   :  { %2853 = vmatpush2.bf16.msra.mxu1 %v1821_v51 }
 0x579   :  { %2854 = vmatprep.subr.bf16.mxu1 %v1814_v55 }
 0x57c   :  { %2855 = vmatpush2.bf16.msra.mxu1 %v1813_v54  ;;  %v3037_v54 = vld [vmem:[#allocation26 + $0x58] sm:$0xff] }
 0x57d   :  { %2856 = vmatprep.subr.bf16.mxu1 %v1806_v47  ;;  %v3073_v47 = vunpack.c.h.s8.bf16 %v3041_v53  ;;  %v3065_v39 = vunpack.c.h.s8.bf16 %v3037_v54  ;;  %v3064_v18 = vunpack.c.l.s8.bf16 %v3037_v54 }
 0x580   :  { %2857 = vmatpush2.bf16.msra.mxu1 %v1805_v58  ;;  %v3072_v58 = vunpack.c.l.s8.bf16 %v3041_v53  ;;  %v2899_v53 = vsub.s32 5, %v3847_v14 }
 0x581   :  { %2858 = vmatprep.subr.bf16.mxu1 %v1798_v10  ;;  %v3071_v10 = vunpack.c.h.s8.bf16 %v3040_v15 }
 0x584   :  { %2859 = vmatpush2.bf16.msra.mxu1 %v1797_v17  ;;  %v3063_v17 = vunpack.c.h.s8.bf16 %v3036_v59 }
 0x585   :  { %2860 = vmatprep.subr.bf16.mxu1 %v1790_v60  ;;  %v3070_v60 = vunpack.c.l.s8.bf16 %v3040_v15  ;;  %v2900_v15 = vrot.slane %v4070_v35, %v2899_v53 }
 0x588   :  { %2861 = vmatpush2.bf16.msra.mxu1 %v1789_v24  ;;  %v3062_v24 = vunpack.c.l.s8.bf16 %v3036_v59 }
 0x589   :  { %2862 = vmatprep.subr.bf16.mxu1 %v1782_v22  ;;  %v3069_v22 = vunpack.c.h.s8.bf16 %v3039_v61 }
 0x58c   :  { %2863 = vmatpush2.bf16.msra.mxu1 %v1781_v57  ;;  %v3061_v57 = vunpack.c.h.s8.bf16 %v3035_v21 }
 0x58d   :  { %2864 = vmatprep.subr.bf16.mxu1 %v1774_v4 }
 0x590   :  { %2865 = vmatpush2.bf16.msra.mxu1 %v1773_v30  ;;  %v2888_v30 = vrot.slane %v4070_v35, %v3853_v16 }
 0x591   :  { %3240 = vmatprep.subr.bf16.mxu1 %v3073_v47 }
 0x593   :  { %v2622_v11 = vpop.f32.mrf.mxu1  ;;  %2867 = vmatmul.mubr.bf16.vlgmr.msra.gmra.mxu1 %v4019_v27 }
 0x594   :  { %v2623_v2 = vadd.f32 %v2622_v11, %v4055_v26  ;;  %v2663_v5 = vpop.f32.mrf.mxu0  ;;  %3241 = vmatpush3.bf16.msra.mxu1 %v3065_v39  ;;  %v2938_v11 = vrot.slane %v4075_v1, %v3853_v16 }
 0x595   :  { %v2624_v9 = vpop.f32.mrf.mxu1  ;;  %3242 = vmatprep.subr.bf16.mxu1 %v3072_v58  ;;  %v2664_v4 = vadd.f32 %v2663_v5, %v4023_v34 }
 0x596   :  { %v2917_v45 = vmul.f32 %v2880_v29, %v2623_v2  ;;  %v2625_v8 = vadd.f32 %v2624_v9, %v4062_v50  ;;  %v2665_v27 = vpop.f32.mrf.mxu0  ;;  %v3043_v50 = vunpack.c.h.s8.bf16 %v3026_v28  ;;  %v3068_v9 = vunpack.c.l.s8.bf16 %v3039_v61 }
 0x597   :  { %v2626_v26 = vpop.f32.mrf.mxu1  ;;  %v2666_v2 = vadd.f32 %v2665_v27, %v4030_v48  ;;  %v3038_v48 = vld [vmem:[#allocation26 + $0x60] sm:$0xff] }
 0x598   :  { %v2967_v23 = vadd.f32 %v2930_v3, %v2917_v45  ;;  %v2918_v41 = vmul.f32 %v2884_v7, %v2625_v8  ;;  %v2667_v25 = vpop.f32.mrf.mxu0  ;;  %3231 = vmatpush3.bf16.msra.mxu0 %v3043_v50  ;;  %3243 = vmatpush3.bf16.msra.mxu1 %v3064_v18  ;;  %v3060_v8 = vunpack.c.l.s8.bf16 %v3035_v21  ;;  %v2942_v26 = vrot.slane %v4075_v1, %v3859_v19 }
 0x599   :  { %v2627_v63 = vpop.f32.mrf.mxu1  ;;  %3232 = vmatprep.subr.bf16.mxu0 %v3050_v46  ;;  %3244 = vmatprep.subr.bf16.mxu1 %v3071_v10  ;;  %v2996_v25 = vrot.slane %v4092_v42, %v3853_v16  ;;  %v3067_v0 = vunpack.c.h.s8.bf16 %v3038_v48 }
 0x59a   :  { %v2975_v31 = vmax.f32 %v2967_v23, 0.0  ;;  %v2968_v32 = vadd.f32 %v2934_v20, %v2918_v41  ;;  %v2668_v33 = vpop.f32.mrf.mxu0 }
 0x59b   :  { %v3000_v33 = vrot.slane %v4092_v42, %v3859_v19 }
 0x59c   :  { %v2976_v40 = vmax.f32 %v2968_v32, 0.0  ;;  %v3005_v6 = vmul.f32 %v2988_v36, %v2975_v31  ;;  %3233 = vmatpush3.bf16.msra.mxu0 %v3042_v43  ;;  %3245 = vmatpush3.bf16.msra.mxu1 %v3063_v17  ;;  %v2950_v17 = vrot.slane %v4075_v1, %v2899_v53 }
 0x59d   :  { %3246 = vmatprep.subr.bf16.mxu1 %v3070_v60 }
 0x59e   :  { %v3006_v51 = vmul.f32 %v2992_v37, %v2976_v40  ;;  %v3066_v40 = vunpack.c.l.s8.bf16 %v3038_v48 }
 0x5a0   :  { %v4098_v55 = vadd.f32 %v3006_v51, %v3005_v6  ;;  %3247 = vmatpush3.bf16.msra.mxu1 %v3062_v24  ;;  %v2895_v51 = vsub.s32 4, %v3847_v14 }
 0x5a1   :  { %3248 = vmatprep.subr.bf16.mxu1 %v3069_v22 }
 0x5a2   :  { %v2896_v54 = vrot.slane %v4070_v35, %v2895_v51  ;;  %v2946_v39 = vrot.slane %v4075_v1, %v2895_v51  ;;  %v3217_v51 = vld [vmem:[%s4166_s22] ss:$0 sm:$0xff] }
 0x5a4   :  { %3249 = vmatpush3.bf16.msra.mxu1 %v3061_v57 }
 0x5a5   :  { %3250 = vmatprep.subr.bf16.mxu1 %v3068_v9 }
 0x5a8   :  { %3251 = vmatpush3.bf16.msra.mxu1 %v3060_v8 }
 0x5a9   :  { %3252 = vmatprep.subr.bf16.mxu1 %v3067_v0 }
 0x5d3   :  { %v2704_v29 = vpop.f32.mrf.mxu1 }
 0x5d4   :  { %v2705_v3 = vadd.f32 %v2704_v29, %v2664_v4  ;;  %v2745_v7 = vpop.f32.mrf.mxu0 }
 0x5d5   :  { %v2746_v12 = vadd.f32 %v2745_v7, %v4037_v49  ;;  %v2706_v45 = vpop.f32.mrf.mxu1  ;;  %v3034_v49 = vld [vmem:[#allocation26 + $0x40] sm:$0xff] }
 0x5d6   :  { %v2919_v34 = vmul.f32 %v2888_v30, %v2705_v3  ;;  %v2707_v5 = vadd.f32 %v2706_v45, %v2666_v2  ;;  %v2747_v20 = vpop.f32.mrf.mxu0  ;;  %v3059_v63 = vunpack.c.h.s8.bf16 %v3034_v49  ;;  %v3058_v46 = vunpack.c.l.s8.bf16 %v3034_v49 }
 0x5d7   :  { %v2708_v62 = vpop.f32.mrf.mxu1  ;;  %v2748_v42 = vadd.f32 %v2747_v20, %v4044_v38  ;;  %v2907_v3 = vsub.s32 7, %v3847_v14 }
 0x5d8   :  { %v2969_v27 = vadd.f32 %v2938_v11, %v2919_v34  ;;  %v2920_v23 = vmul.f32 %v2892_v52, %v2707_v5  ;;  %v2749_v41 = vpop.f32.mrf.mxu0  ;;  %3253 = vmatpush3.bf16.msra.mxu1 %v3059_v63 }
 0x5d9   :  { %v2709_v28 = vpop.f32.mrf.mxu1  ;;  %3254 = vmatprep.subr.bf16.mxu1 %v3066_v40  ;;  %v2908_v8 = vrot.slane %v4070_v35, %v2907_v3  ;;  %v3216_v40 = vld [vmem:[%s4165_s21] ss:$0 sm:$0xff]  ;;  %s3649_s21 = smov [#allocation27]  }
 0x5da   :  { %v2977_v50 = vmax.f32 %v2969_v27, 0.0  ;;  %v2750_v31 = vpop.f32.mrf.mxu0  ;;  %v2970_v32 = vadd.f32 %v2942_v26, %v2920_v23  ;;  %v2958_v26 = vrot.slane %v4075_v1, %v2907_v3  ;;  %s3195_s4 = sshll.u32 %s3649_s21, 4  ;;  %s3196_s4 = int_to_ptr.vmem [resolvable:$true] %s3195_s4 }
 0x5db   :  { %s3589_s22 = scalar_lea.vmem %s3196_s4, 128  ;;  %p3594_p6 = scmp.lt.s32.totalorder %s3196_s4, %s3196_s4 }
 0x5dc   :  { %v2978_v36 = vmax.f32 %v2970_v32, 0.0  ;;  %v3007_v37 = vmul.f32 %v2996_v25, %v2977_v50  ;;  %3255 = vmatpush3.bf16.msra.mxu1 %v3058_v46  ;;  %p3590_p5 = scmp.ne.s32.totalorder %s3196_s4, %s3589_s22  ;;  %p3595_p7 = scmp.lt.s32.totalorder %s3589_s22, %s3589_s22 }
 0x5de   :  { %v3008_v43 = vmul.f32 %v3000_v33, %v2978_v36  ;;  %v3010_v6 = vadd.f32 %v4098_v55, %v3007_v37  ;;  %p3596_p8 = por %p3595_p7, %p3594_p6 }
 0x5e0   :  { %v3011_v16 = vadd.f32 %v3010_v6, %v3008_v43  ;;  %v3171_v43 = vand.u32 127, %v390_v13  ;;  %p3597_p9 = pnand %p3596_p8, %p3590_p5 }
 0x5e2   :  { %3012 = vadd.xlane.f32.xlu0 %v3011_v16  ;;  %vm3172_vm2 = vcmp.lt.s32.totalorder %v3171_v43, 8 }
 0x613   :  { %v2786_v19 = vpop.f32.mrf.mxu1 }
 0x614   :  { %v2787_v47 = vadd.f32 %v2786_v19, %v2746_v12  ;;  %v2827_v58 = vpop.f32.mrf.mxu0 }
 0x615   :  { %v2828_v55 = vadd.f32 %v2827_v58, %v4051_v56  ;;  %v2788_v18 = vpop.f32.mrf.mxu1  ;;  %v2903_v56 = vsub.s32 6, %v3847_v14 }
 0x616   :  { %v2921_v10 = vmul.f32 %v2896_v54, %v2787_v47  ;;  %v2789_v59 = vadd.f32 %v2788_v18, %v2748_v42  ;;  %v2829_v60 = vpop.f32.mrf.mxu0 }
 0x617   :  { %v2790_v61 = vpop.f32.mrf.mxu1  ;;  %v2904_v7 = vrot.slane %v4070_v35, %v2903_v56  ;;  %v2830_v9 = vadd.f32 %v2829_v60, %v4059_v44  ;;  %v2954_v45 = vrot.slane %v4075_v1, %v2903_v56  ;;  %v3215_v44 = vld [vmem:[#allocation2] ss:$0 sm:$0xff] }
 0x618   :  { %v2971_v24 = vadd.f32 %v2946_v39, %v2921_v10  ;;  %v2922_v22 = vmul.f32 %v2900_v15, %v2789_v59  ;;  %v2831_v21 = vpop.f32.mrf.mxu0 }
 0x619   :  { %v2791_v57 = vpop.f32.mrf.mxu1 }
 0x61a   :  { %v2972_v38 = vadd.f32 %v2950_v17, %v2922_v22  ;;  %v2832_v4 = vpop.f32.mrf.mxu0  ;;  %v2979_v30 = vmax.f32 %v2971_v24, 0.0 }
 0x61c   :  { %v2980_v29 = vmax.f32 %v2972_v38, 0.0  ;;  %v3022_v2 = vpack.c.bf16 %v2979_v30, %v2979_v30 }
 0x61e   :  { %v3023_v11 = vpack.c.bf16 %v2980_v29, %v2980_v29 }
 0x620   :  { %3106 = vmatprep.mubr.bf16.mxu0 %v3023_v11 }
 0x621   :  { %3107 = vmatmul.mubr.bf16.vlgmr.msra.gmra.mxu0 %v3022_v2 }
 0x653   :  { %v2868_v52 = vpop.f32.mrf.mxu1 }
 0x654   :  { %v2869_v12 = vadd.f32 %v2868_v52, %v2828_v55 }
 0x655   :  { %v2870_v34 = vpop.f32.mrf.mxu1 }
 0x656   :  { %v2923_v5 = vmul.f32 %v2904_v7, %v2869_v12  ;;  %v2871_v20 = vadd.f32 %v2870_v34, %v2830_v9 }
 0x657   :  { %v2872_v62 = vpop.f32.mrf.mxu1 }
 0x658   :  { %v2973_v48 = vadd.f32 %v2954_v45, %v2923_v5  ;;  %v2924_v27 = vmul.f32 %v2908_v8, %v2871_v20 }
 0x659   :  { %v2873_v23 = vpop.f32.mrf.mxu1 }
 0x65a   :  { %v2974_v14 = vadd.f32 %v2958_v26, %v2924_v27  ;;  %v2981_v41 = vmax.f32 %v2973_v48, 0.0 }
 0x65c   :  { %v2982_v25 = vmax.f32 %v2974_v14, 0.0  ;;  %v3024_v49 = vpack.c.bf16 %v2981_v41, %v2981_v41 }
 0x65e   :  { %v3025_v0 = vpack.c.bf16 %v2982_v25, %v2982_v25 }
 0x660   :  { %3146 = vmatprep.mubr.bf16.mxu1 %v3025_v0 }
 0x661   :  { %3147 = vmatmul.mubr.bf16.vlgmr.msra.gmra.mxu1 %v3024_v49 }
 0x66b   :  { %v3013_v28 = vpop.xlane.xlu0 %3012 }
 0x66c   :  { %v3021_v63 = vadd.f32 %v3215_v44, %v3013_v28 }
 0x66e   :  { %3183 = vperm.xlu1 %3285, %v3021_v63  }
 0x6e1   :  { %v3234_v35 = vpop.f32.mrf.mxu0 }
 0x6e3   :  { %v3235_v50 = vpop.f32.mrf.mxu0 }
 0x6e4   :  { %v3236_v31 = vadd.f32 %v3235_v50, %v3234_v35 }
 0x6e5   :  { %v3237_v32 = vpop.f32.mrf.mxu0 }
 0x6e7   :  { %v3238_v1 = vpop.f32.mrf.mxu0 }
 0x6e9   :  { %v3184_v55 = vpop.permute.xlu1 %3183 }
 0x721   :  { %v3256_v33 = vpop.f32.mrf.mxu1 }
 0x723   :  { %v3257_v36 = vpop.f32.mrf.mxu1 }
 0x724   :  { %v3258_v37 = vadd.f32 %v3257_v36, %v3256_v33 }
 0x725   :  { %v3259_v46 = vpop.f32.mrf.mxu1 }
 0x726   :  { %v3149_v6 = vadd.f32 %v3258_v37, %v3236_v31 }
 0x727   :  { %v3260_v16 = vpop.f32.mrf.mxu1 }
 0x728   :  { %v3161_v53 = vmul.f32 %v3216_v40, %v3149_v6 }
 0x72a   :  { %v3169_v54 = vadd.f32 %v3217_v51, %v3161_v53 }
 0x72c   :  { %v3173_v19 = vsel %vm3172_vm2, %v3169_v54, -inf  ;;  %v3176_v42 = vand.u32 2147483647, %v3169_v54 }
 0x72d   :  { %3174 = vmax.xlane.f32.xlu0 %v3173_v19 }
 0x72e   :  { %v3177_v47 = vsel %vm3172_vm2, %v3176_v42, 1.0 }
 0x72f   :  { %3287 = vrcp.f32 %v3177_v47 }
 0x73c   :  { %v3288_v39 = vpop.eup %3287 }
 0x7b6   :  { %v3175_v58 = vpop.xlane.xlu0 %3174 }
 0x7b7   :  { %v3179_v15 = vmul.f32 %v3288_v39, %v3175_v58 }
 0x7b9   :  { %v3180_v13 = vsub.f32 %v3169_v54, %v3179_v15 }
 0x7bb   :  { %v3186_v18 = vadd.f32 %v3184_v55, %v3180_v13 }
 0x7bd   :  { %v3187_v10 = vsel %vm3172_vm2, %v3186_v18, 0.0 }
 0x7be   :  { %3188 = vst [vmem:[#allocation27] sm:$0xff] %v3187_v10 }
 0x7bf   :  { %3600 = shalt.err (!%p3597_p9)
}
 0x7c0   :  { %3198 = dma.vmem_to_hbm [thread:$0]  %s3196_s4, 128, %s4167_s23, [#allocation5]  }
 0x7c1   :  { %3625 = dma.done.wait [#allocation5], 128  }
 0x7c2   :  { %3626 = vsyncadd [#allocation5], 4294967168 }
 0x7c3   :  { %3202 = vsyncpa [#allocation4], 1 }
 0x7c4   :  { %3203 = vsyncpa [#allocation7], 1 }
 0x7c5   :  { %3204 = vsyncpa [#allocation10], 1 }
 0x7c6   :  { %3205 = vsyncpa [#allocation13], 1 }
 0x7c7   :  { %3206 = vsyncpa [#allocation16], 1 }
 0x7c8   :  { %3207 = vsyncpa [#allocation19], 1 }
 0x7c9   :  { %3208 = vsyncpa [#allocation22], 1 }
 0x7ca   :  { %3209 = vsyncpa [#allocation25], 1 }
 0x7cb   :  { %3210 = vsyncpa [#allocation5], 1 }

// kernel: tpu_custom_call.1
= control target key start
LH: loop header
LB: loop body
LE: loop exit
PB: predicated region body
PF: predicated region fallthrough
CT: control target
= control target key end

     0   :  { %s4144_s0 = inlined_call_operand.hbm [shape: bf16[8,96], index: 0, kind: input, shape index: {}]   ;;  %s4145_s1 = inlined_call_operand.hbm [shape: bf16[8,64], index: 1, kind: input, shape index: {}]   ;;  %s4146_s2 = inlined_call_operand.hbm [shape: s8[96,512], index: 2, kind: input, shape index: {}]   ;;  %s4147_s3 = inlined_call_operand.hbm [shape: f32[1,512], index: 3, kind: input, shape index: {}]   ;;  %s4148_s4 = inlined_call_operand.hbm [shape: f32[1,512], index: 4, kind: input, shape index: {}]   ;;  %s4149_s5 = inlined_call_operand.hbm [shape: s8[512,512], index: 5, kind: input, shape index: {}]   ;;  %s4150_s6 = inlined_call_operand.hbm [shape: f32[1,512], index: 6, kind: input, shape index: {}]   ;;  %s4151_s7 = inlined_call_operand.hbm [shape: f32[1,512], index: 7, kind: input, shape index: {}]   ;;  %s4152_s8 = inlined_call_operand.hbm [shape: s8[64,512], index: 8, kind: input, shape index: {}]   ;;  %s4153_s9 = inlined_call_operand.hbm [shape: f32[1,512], index: 9, kind: input, shape index: {}]   ;;  %s4154_s10 = inlined_call_operand.vmem [shape: f32[1,512], index: 10, kind: input, shape index: {}]   ;;  %s4155_s11 = inlined_call_operand.hbm [shape: s8[512,512], index: 11, kind: input, shape index: {}]   ;;  %s4156_s12 = inlined_call_operand.hbm [shape: f32[1,512], index: 12, kind: input, shape index: {}]   ;;  %s4157_s13 = inlined_call_operand.vmem [shape: f32[1,512], index: 13, kind: input, shape index: {}]   ;;  %s4158_s14 = inlined_call_operand.hbm [shape: s8[512,1024], index: 14, kind: input, shape index: {}]   ;;  %s4159_s15 = inlined_call_operand.hbm [shape: s8[512,1024], index: 15, kind: input, shape index: {}]   ;;  %s4160_s16 = inlined_call_operand.vmem [shape: f32[1,1024], index: 16, kind: input, shape index: {}]   ;;  %s4161_s17 = inlined_call_operand.vmem [shape: f32[1,1024], index: 17, kind: input, shape index: {}]   ;;  %s4162_s18 = inlined_call_operand.vmem [shape: f32[1,512], index: 18, kind: input, shape index: {}]   ;;  %s4163_s19 = inlined_call_operand.<no memory space> [shape: f32[1,1], index: 19, kind: input, shape index: {}]   ;;  %s4164_s20 = inlined_call_operand.hbm [shape: s8[512,128], index: 20, kind: input, shape index: {}]   ;;  %s4165_s21 = inlined_call_operand.vmem [shape: f32[1,128], index: 21, kind: input, shape index: {}]   ;;  %s4166_s22 = inlined_call_operand.vmem [shape: f32[1,128], index: 22, kind: input, shape index: {}]   ;;  %s4167_s23 = inlined_call_operand.hbm [shape: f32[8,128], index: 23, kind: output, shape index: {}]  }
   0x1   :  { %4168 = sst [smem:[#allocation37_spill]] %s4144_s0  ;;  %v28_v0 = vstv %s4163_s19 }
   0x2   :  { %4169 = sst [smem:[#allocation38_spill]] %s4145_s1  ;;  %29 = vst [vmem:[#allocation2] sm:$0x1] %v28_v0 }
   0x3   :  { %4170 = sst [smem:[#allocation39_spill]] %s4146_s2 }
   0x4   :  { %4171 = sst [smem:[#allocation40_spill]] %s4147_s3 }
   0x5   :  { %4172 = sst [smem:[#allocation41_spill]] %s4148_s4 }
   0x6   :  { %4173 = sst [smem:[#allocation42_spill]] %s4149_s5 }
   0x7   :  { %4174 = sst [smem:[#allocation43_spill]] %s4150_s6 }
   0x8   :  { %4175 = sst [smem:[#allocation44_spill]] %s4151_s7 }
   0x9   :  { %30 = vsyncpa [#allocation4], 0 }
   0xa   :  { %31 = vsyncpa [#allocation7], 0 }
   0xb   :  { %32 = vsyncpa [#allocation10], 0 }
   0xc   :  { %33 = vsyncpa [#allocation13], 0 }
   0xd   :  { %34 = vsyncpa [#allocation16], 0 }
   0xe   :  { %35 = vsyncpa [#allocation19], 0 }
   0xf   :  { %36 = vsyncpa [#allocation22], 0 }
  0x10   :  { %37 = vsyncpa [#allocation25], 0 }
  0x11   :  { %38 = vsyncpa [#allocation5], 0  ;;  %s3627_s24 = smov [#allocation6]   ;;  %s3628_s5 = smov [#allocation9]  }
  0x12   :  { %s55_s25 = sshll.u32 %s3627_s24, 4  ;;  %s77_s1 = sshll.u32 %s3628_s5, 4  ;;  %s56_s25 = int_to_ptr.vmem [resolvable:$true] %s55_s25  ;;  %s78_s1 = int_to_ptr.vmem [resolvable:$true] %s77_s1 }
  0x13   :  { %s3297_s26 = scalar_lea.vmem %s56_s25, 64  ;;  %p3302_p1 = scmp.lt.s32.totalorder %s56_s25, %s56_s25 }
  0x14   :  { %p3298_p0 = scmp.ne.s32.totalorder %s56_s25, %s3297_s26  ;;  %p3303_p2 = scmp.lt.s32.totalorder %s3297_s26, %s3297_s26 }
  0x16   :  { %p3304_p3 = por %p3303_p2, %p3302_p1 }
  0x18   :  { %p3305_p4 = pnand %p3304_p3, %p3298_p0 }
  0x1a   :  { %3308 = shalt.err (!%p3305_p4)
}
  0x1b   :  { %s4176_s6 = sld [smem:[#allocation38_spill]]  ;;  %s3317_s27 = scalar_lea.vmem %s78_s1, 64 }
  0x1c   :  { %p3318_p5 = scmp.ne.s32.totalorder %s78_s1, %s3317_s27  ;;  %p3322_p6 = scmp.lt.s32.totalorder %s78_s1, %s78_s1 }
  0x1d   :  { %p3323_p7 = scmp.lt.s32.totalorder %s3317_s27, %s3317_s27 }
  0x1f   :  { %p3324_p8 = por %p3323_p7, %p3322_p6 }
  0x21   :  { %58 = dma.hbm_to_vmem [thread:$0]  %s4176_s6, 64, %s56_s25, [#allocation7]  }
  0x22   :  { %p3325_p9 = pnand %p3324_p8, %p3318_p5 }
  0x24   :  { %3328 = shalt.err (!%p3325_p9)
}
  0x25   :  { %s4177_s29 = sld [smem:[#allocation40_spill]]  ;;  %s3629_s3 = smov [#allocation12]  }
  0x26   :  { %s96_s0 = sshll.u32 %s3629_s3, 4  ;;  %s3630_s4 = smov [#allocation15]   ;;  %s97_s0 = int_to_ptr.vmem [resolvable:$true] %s96_s0 }
  0x27   :  { %s119_s30 = sshll.u32 %s3630_s4, 4  ;;  %s3337_s24 = scalar_lea.vmem %s97_s0, 8192  ;;  %s120_s30 = int_to_ptr.vmem [resolvable:$true] %s119_s30 }
  0x28   :  { %p3338_p10 = scmp.ne.s32.totalorder %s97_s0, %s3337_s24  ;;  %p3342_p11 = scmp.lt.s32.totalorder %s97_s0, %s97_s0 }
  0x29   :  { %p3343_p12 = scmp.lt.s32.totalorder %s3337_s24, %s3337_s24 }
  0x2b   :  { %80 = dma.hbm_to_vmem [thread:$0]  %s4177_s29, 64, %s78_s1, [#allocation10]  }
  0x2c   :  { %p3344_p13 = por %p3343_p12, %p3342_p11 }
  0x2e   :  { %p3345_p0 = pnand %p3344_p13, %p3338_p10 }
  0x30   :  { %3348 = shalt.err (!%p3345_p0)
}
  0x31   :  { %s3631_s25 = smov 512   ;;  %s3632_s5 = smov 32  }
  0x32   :  { %s4178_s19 = sld [smem:[#allocation42_spill]]  ;;  %s3357_s2 = scalar_lea.vmem %s120_s30, 64 }
  0x33   :  { %p3358_p1 = scmp.ne.s32.totalorder %s120_s30, %s3357_s2  ;;  %p3362_p2 = scmp.lt.s32.totalorder %s120_s30, %s120_s30 }
  0x34   :  { %p3363_p3 = scmp.lt.s32.totalorder %s3357_s2, %s3357_s2 }
  0x36   :  { %p3364_p4 = por %p3363_p3, %p3362_p2 }
  0x38   :  { %102 = dma.hbm_to_vmem [thread:$0]  %s4178_s19, 8192, %s97_s0, [#allocation13], %s3631_s25, %s3631_s25, %s3632_s5  }
  0x39   :  { %p3365_p5 = pnand %p3364_p4, %p3358_p1 }
  0x3b   :  { %3368 = shalt.err (!%p3365_p5)
}
  0x3c   :  { %s4179_s7 = sld [smem:[#allocation44_spill]]  ;;  %s3633_s28 = smov [#allocation18]  }
  0x3d   :  { %s141_s29 = sshll.u32 %s3633_s28, 4  ;;  %s3634_s3 = smov [#allocation21]   ;;  %s142_s29 = int_to_ptr.vmem [resolvable:$true] %s141_s29 }
  0x3e   :  { %s165_s4 = sshll.u32 %s3634_s3, 4  ;;  %s3377_s24 = scalar_lea.vmem %s142_s29, 64  ;;  %s166_s4 = int_to_ptr.vmem [resolvable:$true] %s165_s4 }
  0x3f   :  { %p3378_p6 = scmp.ne.s32.totalorder %s142_s29, %s3377_s24  ;;  %p3382_p7 = scmp.lt.s32.totalorder %s142_s29, %s142_s29 }
  0x40   :  { %p3383_p8 = scmp.lt.s32.totalorder %s3377_s24, %s3377_s24 }
  0x42   :  { %122 = dma.hbm_to_vmem [thread:$0]  %s4179_s7, 64, %s120_s30, [#allocation16]  }
  0x43   :  { %p3384_p9 = por %p3383_p8, %p3382_p7 }
  0x45   :  { %p3385_p10 = pnand %p3384_p9, %p3378_p6 }
  0x47   :  { %3388 = shalt.err (!%p3385_p10)
}
  0x48   :  { %144 = dma.hbm_to_vmem [thread:$0]  %s4153_s9, 64, %s142_s29, [#allocation19]  }
  0x49   :  { %s3397_s1 = scalar_lea.vmem %s166_s4, 64  ;;  %p3402_p12 = scmp.lt.s32.totalorder %s166_s4, %s166_s4 }
  0x4a   :  { %p3398_p11 = scmp.ne.s32.totalorder %s166_s4, %s3397_s1  ;;  %p3403_p13 = scmp.lt.s32.totalorder %s3397_s1, %s3397_s1 }
  0x4c   :  { %p3404_p0 = por %p3403_p13, %p3402_p12 }
  0x4e   :  { %p3405_p1 = pnand %p3404_p0, %p3398_p11 }
  0x50   :  { %3408 = shalt.err (!%p3405_p1)
}
  0x51   :  { %168 = dma.hbm_to_vmem [thread:$0]  %s4156_s12, 64, %s166_s4, [#allocation22]  }
  0x52   :  { %s3635_s2 = smov [#allocation24]   ;;  %s3636_s27 = smov [#allocation3]  }
  0x53   :  { %s188_s6 = sshll.u32 %s3635_s2, 4  ;;  %s45_s7 = sshll.u32 %s3636_s27, 4  ;;  %s189_s6 = int_to_ptr.vmem [resolvable:$true] %s188_s6  ;;  %s46_s7 = int_to_ptr.vmem [resolvable:$true] %s45_s7 }
  0x54   :  { %s3417_s28 = scalar_lea.vmem %s189_s6, 16384  ;;  %p3422_p3 = scmp.lt.s32.totalorder %s189_s6, %s189_s6 }
  0x55   :  { %p3418_p2 = scmp.ne.s32.totalorder %s189_s6, %s3417_s28  ;;  %p3423_p4 = scmp.lt.s32.totalorder %s3417_s28, %s3417_s28 }
  0x57   :  { %p3424_p5 = por %p3423_p4, %p3422_p3 }
  0x59   :  { %p3425_p6 = pnand %p3424_p5, %p3418_p2 }
  0x5b   :  { %3428 = shalt.err (!%p3425_p6)
}
  0x5c   :  { %s3637_s9 = smov 1024   ;;  %s3638_s29 = smov 64  }
  0x5d   :  { %194 = dma.hbm_to_vmem [thread:$0]  %s4159_s15, 16384, %s189_s6, [#allocation25], %s3637_s9, %s3637_s9, %s3638_s29  }
  0x5e   :  { %s3437_s4 = scalar_lea.vmem %s46_s7, 64  ;;  %p3442_p8 = scmp.lt.s32.totalorder %s46_s7, %s46_s7 }
  0x5f   :  { %p3438_p7 = scmp.ne.s32.totalorder %s46_s7, %s3437_s4  ;;  %p3443_p9 = scmp.lt.s32.totalorder %s3437_s4, %s3437_s4 }
  0x61   :  { %p3444_p10 = por %p3443_p9, %p3442_p8 }
  0x63   :  { %p3445_p11 = pnand %p3444_p10, %p3438_p7 }
  0x65   :  { %3448 = shalt.err (!%p3445_p11)
}
  0x66   :  { %s4180_s26 = sld [smem:[#allocation37_spill]]  ;;  %s3639_s1 = smov [#allocation8]  }
  0x67   :  { %s64_s30 = sshll.u32 %s3639_s1, 4  ;;  %s3640_s19 = smov [#allocation11]   ;;  %s65_s30 = int_to_ptr.vmem [resolvable:$true] %s64_s30 }
  0x68   :  { %s87_s2 = sshll.u32 %s3640_s19, 4  ;;  %s3457_s27 = scalar_lea.vmem %s65_s30, 1536  ;;  %s88_s2 = int_to_ptr.vmem [resolvable:$true] %s87_s2 }
  0x69   :  { %p3458_p12 = scmp.ne.s32.totalorder %s65_s30, %s3457_s27  ;;  %p3462_p13 = scmp.lt.s32.totalorder %s65_s30, %s65_s30 }
  0x6a   :  { %p3463_p0 = scmp.lt.s32.totalorder %s3457_s27, %s3457_s27 }
  0x6c   :  { %48 = dma.hbm_to_vmem [thread:$0]  %s4180_s26, 64, %s46_s7, [#allocation4]  }
  0x6d   :  { %p3464_p1 = por %p3463_p0, %p3462_p13 }
  0x6f   :  { %p3465_p2 = pnand %p3464_p1, %p3458_p12 }
  0x71   :  { %3468 = shalt.err (!%p3465_p2)
}
  0x72   :  { %s4181_s28 = sld [smem:[#allocation39_spill]]  ;;  %s3477_s7 = scalar_lea.vmem %s88_s2, 64 }
  0x73   :  { %p3478_p3 = scmp.ne.s32.totalorder %s88_s2, %s3477_s7  ;;  %p3482_p4 = scmp.lt.s32.totalorder %s88_s2, %s88_s2 }
  0x74   :  { %p3483_p5 = scmp.lt.s32.totalorder %s3477_s7, %s3477_s7 }
  0x76   :  { %p3484_p6 = por %p3483_p5, %p3482_p4 }
  0x78   :  { %70 = dma.hbm_to_vmem [thread:$0]  %s4181_s28, 1536, %s65_s30, [#allocation7], %s3631_s25, %s3631_s25, %s3632_s5  }
  0x79   :  { %p3485_p7 = pnand %p3484_p6, %p3478_p3 }
  0x7b   :  { %3488 = shalt.err (!%p3485_p7)
}
  0x7c   :  { %s4182_s4 = sld [smem:[#allocation41_spill]]  ;;  %s3641_s24 = smov [#allocation14]  }
  0x7d   :  { %s109_s0 = sshll.u32 %s3641_s24, 4  ;;  %s3642_s26 = smov [#allocation17]   ;;  %s110_s0 = int_to_ptr.vmem [resolvable:$true] %s109_s0 }
  0x7e   :  { %s128_s1 = sshll.u32 %s3642_s26, 4  ;;  %s3497_s19 = scalar_lea.vmem %s110_s0, 64  ;;  %s129_s1 = int_to_ptr.vmem [resolvable:$true] %s128_s1 }
  0x7f   :  { %p3498_p8 = scmp.ne.s32.totalorder %s110_s0, %s3497_s19  ;;  %p3502_p9 = scmp.lt.s32.totalorder %s110_s0, %s110_s0 }
  0x80   :  { %p3503_p10 = scmp.lt.s32.totalorder %s3497_s19, %s3497_s19 }
  0x82   :  { %90 = dma.hbm_to_vmem [thread:$0]  %s4182_s4, 64, %s88_s2, [#allocation10]  }
  0x83   :  { %p3504_p11 = por %p3503_p10, %p3502_p9 }
  0x85   :  { %p3505_p12 = pnand %p3504_p11, %p3498_p8 }
  0x87   :  { %3508 = shalt.err (!%p3505_p12)
}
  0x88   :  { %s4183_s15 = sld [smem:[#allocation43_spill]]  ;;  %s3517_s6 = scalar_lea.vmem %s129_s1, 1024 }
  0x89   :  { %p3518_p13 = scmp.ne.s32.totalorder %s129_s1, %s3517_s6  ;;  %p3522_p0 = scmp.lt.s32.totalorder %s129_s1, %s129_s1 }
  0x8a   :  { %p3523_p1 = scmp.lt.s32.totalorder %s3517_s6, %s3517_s6 }
  0x8c   :  { %p3524_p2 = por %p3523_p1, %p3522_p0 }
  0x8e   :  { %112 = dma.hbm_to_vmem [thread:$0]  %s4183_s15, 64, %s110_s0, [#allocation13]  }
  0x8f   :  { %p3525_p3 = pnand %p3524_p2, %p3518_p13 }
  0x91   :  { %3528 = shalt.err (!%p3525_p3)
}
  0x92   :  { %134 = dma.hbm_to_vmem [thread:$0]  %s4152_s8, 1024, %s129_s1, [#allocation16], %s3631_s25, %s3631_s25, %s3632_s5  }
  0x93   :  { %s3643_s7 = smov [#allocation20]   ;;  %s3644_s12 = smov [#allocation23]  }
  0x94   :  { %s152_s3 = sshll.u32 %s3643_s7, 4  ;;  %s176_s4 = sshll.u32 %s3644_s12, 4  ;;  %s153_s3 = int_to_ptr.vmem [resolvable:$true] %s152_s3  ;;  %s177_s4 = int_to_ptr.vmem [resolvable:$true] %s176_s4 }
  0x95   :  { %s3537_s24 = scalar_lea.vmem %s153_s3, 8192  ;;  %p3542_p5 = scmp.lt.s32.totalorder %s153_s3, %s153_s3 }
  0x96   :  { %p3538_p4 = scmp.ne.s32.totalorder %s153_s3, %s3537_s24  ;;  %p3543_p6 = scmp.lt.s32.totalorder %s3537_s24, %s3537_s24 }
  0x98   :  { %p3544_p7 = por %p3543_p6, %p3542_p5 }
  0x9a   :  { %p3545_p8 = pnand %p3544_p7, %p3538_p4 }
  0x9c   :  { %3548 = shalt.err (!%p3545_p8)
}
  0x9d   :  { %158 = dma.hbm_to_vmem [thread:$0]  %s4155_s11, 8192, %s153_s3, [#allocation19], %s3631_s25, %s3631_s25, %s3632_s5  }
  0x9e   :  { %s3557_s8 = scalar_lea.vmem %s177_s4, 16384  ;;  %p3562_p10 = scmp.lt.s32.totalorder %s177_s4, %s177_s4 }
  0x9f   :  { %p3558_p9 = scmp.ne.s32.totalorder %s177_s4, %s3557_s8  ;;  %p3563_p11 = scmp.lt.s32.totalorder %s3557_s8, %s3557_s8 }
  0xa1   :  { %p3564_p12 = por %p3563_p11, %p3562_p10 }
  0xa3   :  { %p3565_p13 = pnand %p3564_p12, %p3558_p9 }
  0xa5   :  { %3568 = shalt.err (!%p3565_p13)
}
  0xa6   :  { %182 = dma.hbm_to_vmem [thread:$0]  %s4158_s14, 16384, %s177_s4, [#allocation22], %s3637_s9, %s3637_s9, %s3638_s29  }
  0xa7   :  { %s3645_s30 = smov [#allocation26]  }
  0xa8   :  { %s208_s27 = sshll.u32 %s3645_s30, 4  ;;  %s209_s27 = int_to_ptr.vmem [resolvable:$true] %s208_s27 }
  0xa9   :  { %s3577_s15 = scalar_lea.vmem %s209_s27, 2048  ;;  %p3582_p1 = scmp.lt.s32.totalorder %s209_s27, %s209_s27 }
  0xaa   :  { %p3578_p0 = scmp.ne.s32.totalorder %s209_s27, %s3577_s15  ;;  %p3583_p2 = scmp.lt.s32.totalorder %s3577_s15, %s3577_s15 }
  0xac   :  { %p3584_p3 = por %p3583_p2, %p3582_p1 }
  0xae   :  { %p3585_p4 = pnand %p3584_p3, %p3578_p0 }
  0xb0   :  { %3588 = shalt.err (!%p3585_p4)
}
  0xb1   :  { %s3646_s11 = smov 128   ;;  %s3647_s25 = smov 8  }
  0xb2   :  { %214 = dma.hbm_to_vmem [thread:$0]  %s4164_s20, 2048, %s209_s27, [#allocation25], %s3646_s11, %s3646_s11, %s3647_s25  }
  0xb3   :  { %3609 = dma.done.wait [#allocation4], 64  }
  0xb4   :  { %3610 = vsyncadd [#allocation4], 4294967232 }
  0xb5   :  { %3611 = dma.done.wait [#allocation7], 1600  }
  0xb6   :  { %3612 = vsyncadd [#allocation7], 4294965696 }
  0xb7   :  { %3613 = dma.done.wait [#allocation10], 128  }
  0xb8   :  { %3614 = vsyncadd [#allocation10], 4294967168 }
  0xb9   :  { %3615 = dma.done.wait [#allocation13], 8256  }
  0xba   :  { %3616 = vsyncadd [#allocation13], 4294959040 }
  0xbb   :  { %3617 = dma.done.wait [#allocation16], 1088  }
  0xbc   :  { %3618 = vsyncadd [#allocation16], 4294966208 }
  0xbd   :  { %3619 = dma.done.wait [#allocation19], 8256  }
  0xbe   :  { %3620 = vsyncadd [#allocation19], 4294959040 }
  0xbf   :  { %3621 = dma.done.wait [#allocation22], 16448  }
  0xc0   :  { %3622 = vsyncadd [#allocation22], 4294950848 }
  0xc1   :  { %3623 = dma.done.wait [#allocation25], 18432  }
  0xc2   :  { %3624 = vsyncadd [#allocation25], 4294948864  ;;  %v3648_v1 = vmov 0   ;;  %v275_v2 = vld [vmem:[#allocation8 + $0x48] sm:$0xff]  ;;  %v277_v3 = vld [vmem:[#allocation8 + $0x58] sm:$0xff]  ;;  %vm302_vm0 = vcmask 785408  }
  0xc3   :  { %338 = vmatprep.mubr.bf16.mxu0 %v3648_v1  ;;  %379 = vmatprep.mubr.bf16.mxu1 %v3648_v1  ;;  %v274_v4 = vld [vmem:[#allocation8 + $0x40] sm:$0xff]  ;;  %v295_v5 = vunpack.c.l.s8.bf16 %v275_v2  ;;  %v299_v6 = vunpack.c.h.s8.bf16 %v275_v2  ;;  %v297_v7 = vunpack.c.l.s8.bf16 %v277_v3  ;;  %v301_v8 = vunpack.c.h.s8.bf16 %v277_v3  ;;  %v276_v9 = vld [vmem:[#allocation8 + $0x50] sm:$0xff]  ;;  %v271_v12 = vld [vmem:[#allocation8 + $0x28] sm:$0xff] }
  0xc4   :  { %3285 = vset.pattern.permute.xlu1 %v3648_v1  ;;  %3286 = vset.pattern.permute.xlu0 %v3648_v1  ;;  %v298_v10 = vunpack.c.h.s8.bf16 %v274_v4  ;;  %v300_v11 = vunpack.c.h.s8.bf16 %v276_v9  ;;  %v273_v13 = vld [vmem:[#allocation8 + $0x38] sm:$0xff]  ;;  %v294_v14 = vunpack.c.l.s8.bf16 %v274_v4  ;;  %v296_v15 = vunpack.c.l.s8.bf16 %v276_v9  ;;  %v270_v18 = vld [vmem:[#allocation8 + $0x20] sm:$0xff]  ;;  %v272_v19 = vld [vmem:[#allocation8 + $0x30] sm:$0xff] }
  0xc5   :  { %310 = vmatprep.subr.bf16.mxu0 %v299_v6  ;;  %351 = vmatprep.subr.bf16.mxu1 %v301_v8  ;;  %v291_v16 = vunpack.c.h.s8.bf16 %v271_v12  ;;  %v293_v17 = vunpack.c.h.s8.bf16 %v273_v13  ;;  %v290_v20 = vunpack.c.h.s8.bf16 %v270_v18  ;;  %v292_v21 = vunpack.c.h.s8.bf16 %v272_v19  ;;  %v267_v24 = vld [vmem:[#allocation8 + $0x8] sm:$0xff]  ;;  %v269_v25 = vld [vmem:[#allocation8 + $0x18] sm:$0xff]  ;;  %v266_v30 = vld [vmem:[#allocation8] sm:$0xff] }
  0xc6   :  { %311 = vmatpush1.bf16.msra.mxu0 %v298_v10  ;;  %352 = vmatpush1.bf16.msra.mxu1 %v300_v11  ;;  %v287_v22 = vunpack.c.l.s8.bf16 %v271_v12  ;;  %v289_v23 = vunpack.c.l.s8.bf16 %v273_v13  ;;  %v286_v26 = vunpack.c.l.s8.bf16 %v270_v18  ;;  %v288_v27 = vunpack.c.l.s8.bf16 %v272_v19  ;;  %v268_v31 = vld [vmem:[#allocation8 + $0x10] sm:$0xff]  ;;  %v460_v42 = vld [vmem:[#allocation12 + $0x60] sm:$0xff]  ;;  %v265_v44 = vld [vmem:[#allocation3] sm:$0xf] }
  0xc7   :  { %312 = vmatprep.subr.bf16.mxu0 %v295_v5  ;;  %353 = vmatprep.subr.bf16.mxu1 %v297_v7  ;;  %v283_v28 = vunpack.c.h.s8.bf16 %v267_v24  ;;  %v285_v29 = vunpack.c.h.s8.bf16 %v269_v25  ;;  %v282_v32 = vunpack.c.h.s8.bf16 %v266_v30  ;;  %v284_v33 = vunpack.c.h.s8.bf16 %v268_v31  ;;  %v461_v36 = vld [vmem:[#allocation12 + $0x68] sm:$0xff]  ;;  %v492_v43 = vld [vmem:[#allocation12 + $0x160] sm:$0xff] }
  0xc8   :  { %v279_v34 = vunpack.c.l.s8.bf16 %v267_v24  ;;  %v281_v35 = vunpack.c.l.s8.bf16 %v269_v25  ;;  %v493_v37 = vld [vmem:[#allocation12 + $0x168] sm:$0xff]  ;;  %v278_v38 = vunpack.c.l.s8.bf16 %v266_v30  ;;  %v280_v39 = vunpack.c.l.s8.bf16 %v268_v31  ;;  %v456_v55 = vld [vmem:[#allocation12 + $0x40] sm:$0xff] }
  0xc9   :  { %v541_v40 = vunpack.c.h.s8.bf16 %v461_v36  ;;  %v605_v41 = vunpack.c.h.s8.bf16 %v493_v37  ;;  %v540_v45 = vunpack.c.h.s8.bf16 %v460_v42  ;;  %v604_v46 = vunpack.c.h.s8.bf16 %v492_v43  ;;  %v457_v49 = vld [vmem:[#allocation12 + $0x48] sm:$0xff]  ;;  %v488_v56 = vld [vmem:[#allocation12 + $0x140] sm:$0xff] }
  0xca   :  { %313 = vmatpush1.bf16.msra.mxu0 %v294_v14  ;;  %354 = vmatpush1.bf16.msra.mxu1 %v296_v15  ;;  %v537_v47 = vunpack.c.l.s8.bf16 %v461_v36  ;;  %v601_v48 = vunpack.c.l.s8.bf16 %v493_v37  ;;  %v489_v50 = vld [vmem:[#allocation12 + $0x148] sm:$0xff]  ;;  %v536_v51 = vunpack.c.l.s8.bf16 %v460_v42  ;;  %v600_v52 = vunpack.c.l.s8.bf16 %v492_v43  ;;  %v452_v4 = vld [vmem:[#allocation12 + $0x20] sm:$0xff] }
  0xcb   :  { %314 = vmatprep.subr.bf16.mxu0 %v291_v16  ;;  %355 = vmatprep.subr.bf16.mxu1 %v293_v17  ;;  %v533_v53 = vunpack.c.h.s8.bf16 %v457_v49  ;;  %v597_v54 = vunpack.c.h.s8.bf16 %v489_v50  ;;  %v532_v57 = vunpack.c.h.s8.bf16 %v456_v55  ;;  %v596_v58 = vunpack.c.h.s8.bf16 %v488_v56  ;;  %v453_v61 = vld [vmem:[#allocation12 + $0x28] sm:$0xff]  ;;  %v484_v5 = vld [vmem:[#allocation12 + $0x120] sm:$0xff] }
  0xcc   :  { %v529_v59 = vunpack.c.l.s8.bf16 %v457_v49  ;;  %v593_v60 = vunpack.c.l.s8.bf16 %v489_v50  ;;  %v485_v62 = vld [vmem:[#allocation12 + $0x128] sm:$0xff]  ;;  %v528_v63 = vunpack.c.l.s8.bf16 %v456_v55  ;;  %v592_v0 = vunpack.c.l.s8.bf16 %v488_v56  ;;  %v448_v16 = vld [vmem:[#allocation12] sm:$0xff] }
  0xcd   :  { %v525_v2 = vunpack.c.h.s8.bf16 %v453_v61  ;;  %v589_v3 = vunpack.c.h.s8.bf16 %v485_v62  ;;  %v524_v6 = vunpack.c.h.s8.bf16 %v452_v4  ;;  %v588_v7 = vunpack.c.h.s8.bf16 %v484_v5  ;;  %v449_v10 = vld [vmem:[#allocation12 + $0x8] sm:$0xff]  ;;  %v480_v17 = vld [vmem:[#allocation12 + $0x100] sm:$0xff] }
  0xce   :  { %315 = vmatpush1.bf16.msra.mxu0 %v290_v20  ;;  %356 = vmatpush1.bf16.msra.mxu1 %v292_v21  ;;  %v521_v8 = vunpack.c.l.s8.bf16 %v453_v61  ;;  %v585_v9 = vunpack.c.l.s8.bf16 %v485_v62  ;;  %v481_v11 = vld [vmem:[#allocation12 + $0x108] sm:$0xff]  ;;  %v520_v12 = vunpack.c.l.s8.bf16 %v452_v4  ;;  %v584_v13 = vunpack.c.l.s8.bf16 %v484_v5  ;;  %v464_v62 = vld [vmem:[#allocation12 + $0x80] sm:$0xff] }
  0xcf   :  { %316 = vmatprep.subr.bf16.mxu0 %v287_v22  ;;  %357 = vmatprep.subr.bf16.mxu1 %v289_v23  ;;  %v517_v14 = vunpack.c.h.s8.bf16 %v449_v10  ;;  %v581_v15 = vunpack.c.h.s8.bf16 %v481_v11  ;;  %v516_v18 = vunpack.c.h.s8.bf16 %v448_v16  ;;  %v580_v19 = vunpack.c.h.s8.bf16 %v480_v17  ;;  %v477_v22 = vld [vmem:[#allocation12 + $0xe8] sm:$0xff] }
  0xd0   :  { %v513_v20 = vunpack.c.l.s8.bf16 %v449_v10  ;;  %v577_v21 = vunpack.c.l.s8.bf16 %v481_v11  ;;  %v509_v23 = vld [vmem:[#allocation12 + $0x1e8] sm:$0xff]  ;;  %v512_v24 = vunpack.c.l.s8.bf16 %v448_v16  ;;  %v576_v25 = vunpack.c.l.s8.bf16 %v480_v17  ;;  %v3842_v10 = vld [vmem:[#allocation12 + $0x178] sm:$0xff] }
  0xd1   :  { %v497_v61 = vld [vmem:[#allocation12 + $0x188] sm:$0xff]  ;;  %v388_v17 = vld [vmem:[#allocation9] sm:$0xf]  ;;  %vm885_vm1 = vcmask 523264  }
  0xd2   :  { %317 = vmatpush1.bf16.msra.mxu0 %v286_v26  ;;  %358 = vmatpush1.bf16.msra.mxu1 %v288_v27  ;;  %v573_v26 = vunpack.c.h.s8.bf16 %v477_v22  ;;  %v637_v27 = vunpack.c.h.s8.bf16 %v509_v23 }
  0xd3   :  { %318 = vmatprep.subr.bf16.mxu0 %v283_v28  ;;  %359 = vmatprep.subr.bf16.mxu1 %v285_v29  ;;  %v476_v28 = vld [vmem:[#allocation12 + $0xe0] sm:$0xff] }
  0xd4   :  { %v508_v29 = vld [vmem:[#allocation12 + $0x1e0] sm:$0xff]  ;;  %v572_v30 = vunpack.c.h.s8.bf16 %v476_v28  ;;  %v568_v36 = vunpack.c.l.s8.bf16 %v476_v28 }
  0xd5   :  { %v636_v31 = vunpack.c.h.s8.bf16 %v508_v29  ;;  %v632_v37 = vunpack.c.l.s8.bf16 %v508_v29 }
  0xd6   :  { %319 = vmatpush1.bf16.msra.mxu0 %v282_v32  ;;  %360 = vmatpush1.bf16.msra.mxu1 %v284_v33  ;;  %v569_v32 = vunpack.c.l.s8.bf16 %v477_v22  ;;  %v633_v33 = vunpack.c.l.s8.bf16 %v509_v23 }
  0xd7   :  { %320 = vmatprep.subr.bf16.mxu0 %v279_v34  ;;  %361 = vmatprep.subr.bf16.mxu1 %v281_v35  ;;  %v473_v34 = vld [vmem:[#allocation12 + $0xc8] sm:$0xff] }
  0xd8   :  { %v505_v35 = vld [vmem:[#allocation12 + $0x1c8] sm:$0xff] }
  0xda   :  { %321 = vmatpush1.bf16.msra.mxu0 %v278_v38  ;;  %362 = vmatpush1.bf16.msra.mxu1 %v280_v39  ;;  %v565_v38 = vunpack.c.h.s8.bf16 %v473_v34  ;;  %v629_v39 = vunpack.c.h.s8.bf16 %v505_v35 }
  0xdb   :  { %640 = vmatprep.subr.bf16.mxu0 %v541_v40  ;;  %681 = vmatprep.subr.bf16.mxu1 %v605_v41  ;;  %v472_v40 = vld [vmem:[#allocation12 + $0xc0] sm:$0xff] }
  0xdc   :  { %v504_v41 = vld [vmem:[#allocation12 + $0x1c0] sm:$0xff]  ;;  %v564_v42 = vunpack.c.h.s8.bf16 %v472_v40 }
  0xdd   :  { %3211 = vmatmul.mubr.msk.bf16.vlgmr.msra.gmra.mxu0 %vm302_vm0, %v265_v44  ;;  %3212 = vmatmul.mubr.msk.bf16.vlgmr.msra.gmra.mxu1 %vm302_vm0, %v265_v44  ;;  %v628_v43 = vunpack.c.h.s8.bf16 %v504_v41  ;;  %v561_v44 = vunpack.c.l.s8.bf16 %v473_v34  ;;  %v624_v49 = vunpack.c.l.s8.bf16 %v504_v41 }
  0xde   :  { %641 = vmatpush1.bf16.msra.mxu0 %v540_v45  ;;  %682 = vmatpush1.bf16.msra.mxu1 %v604_v46  ;;  %v625_v45 = vunpack.c.l.s8.bf16 %v505_v35  ;;  %v469_v46 = vld [vmem:[#allocation12 + $0xa8] sm:$0xff] }
  0xdf   :  { %642 = vmatprep.subr.bf16.mxu0 %v537_v47  ;;  %683 = vmatprep.subr.bf16.mxu1 %v601_v48  ;;  %v501_v47 = vld [vmem:[#allocation12 + $0x1a8] sm:$0xff]  ;;  %v560_v48 = vunpack.c.l.s8.bf16 %v472_v40  ;;  %v557_v50 = vunpack.c.h.s8.bf16 %v469_v46  ;;  %v553_v56 = vunpack.c.l.s8.bf16 %v469_v46 }
  0xe2   :  { %643 = vmatpush1.bf16.msra.mxu0 %v536_v51  ;;  %684 = vmatpush1.bf16.msra.mxu1 %v600_v52  ;;  %v621_v51 = vunpack.c.h.s8.bf16 %v501_v47  ;;  %v468_v52 = vld [vmem:[#allocation12 + $0xa0] sm:$0xff] }
  0xe3   :  { %644 = vmatprep.subr.bf16.mxu0 %v533_v53  ;;  %685 = vmatprep.subr.bf16.mxu1 %v597_v54  ;;  %v500_v53 = vld [vmem:[#allocation12 + $0x1a0] sm:$0xff]  ;;  %v556_v54 = vunpack.c.h.s8.bf16 %v468_v52 }
  0xe4   :  { %v620_v55 = vunpack.c.h.s8.bf16 %v500_v53 }
  0xe6   :  { %645 = vmatpush1.bf16.msra.mxu0 %v532_v57  ;;  %686 = vmatpush1.bf16.msra.mxu1 %v596_v58  ;;  %v617_v57 = vunpack.c.l.s8.bf16 %v501_v47  ;;  %v552_v58 = vunpack.c.l.s8.bf16 %v468_v52  ;;  %v462_v47 = vld [vmem:[#allocation12 + $0x70] sm:$0xff] }
  0xe7   :  { %646 = vmatprep.subr.bf16.mxu0 %v529_v59  ;;  %687 = vmatprep.subr.bf16.mxu1 %v593_v60  ;;  %v616_v59 = vunpack.c.l.s8.bf16 %v500_v53  ;;  %v465_v60 = vld [vmem:[#allocation12 + $0x88] sm:$0xff]  ;;  %v542_v53 = vunpack.c.h.s8.bf16 %v462_v47 }
  0xe8   :  { %v545_v5 = vunpack.c.l.s8.bf16 %v465_v60 }
  0xea   :  { %647 = vmatpush1.bf16.msra.mxu0 %v528_v63  ;;  %688 = vmatpush1.bf16.msra.mxu1 %v592_v0  ;;  %v496_v63 = vld [vmem:[#allocation12 + $0x180] sm:$0xff]  ;;  %v549_v0 = vunpack.c.h.s8.bf16 %v465_v60  ;;  %v491_v60 = vld [vmem:[#allocation12 + $0x158] sm:$0xff] }
  0xeb   :  { %648 = vmatprep.subr.bf16.mxu0 %v525_v2  ;;  %689 = vmatprep.subr.bf16.mxu1 %v589_v3  ;;  %v613_v2 = vunpack.c.h.s8.bf16 %v497_v61  ;;  %v548_v3 = vunpack.c.h.s8.bf16 %v464_v62  ;;  %v612_v4 = vunpack.c.h.s8.bf16 %v496_v63 }
  0xee   :  { %649 = vmatpush1.bf16.msra.mxu0 %v524_v6  ;;  %690 = vmatpush1.bf16.msra.mxu1 %v588_v7  ;;  %v609_v6 = vunpack.c.l.s8.bf16 %v497_v61  ;;  %v544_v7 = vunpack.c.l.s8.bf16 %v464_v62  ;;  %v538_v61 = vunpack.c.l.s8.bf16 %v462_v47 }
  0xef   :  { %650 = vmatprep.subr.bf16.mxu0 %v521_v8  ;;  %691 = vmatprep.subr.bf16.mxu1 %v585_v9  ;;  %v608_v8 = vunpack.c.l.s8.bf16 %v496_v63  ;;  %v3840_v9 = vld [vmem:[#allocation12 + $0x78] sm:$0xff] }
  0xf0   :  { %v543_v11 = vunpack.c.h.s8.bf16 %v3840_v9 }
  0xf2   :  { %651 = vmatpush1.bf16.msra.mxu0 %v520_v12  ;;  %692 = vmatpush1.bf16.msra.mxu1 %v584_v13  ;;  %v607_v12 = vunpack.c.h.s8.bf16 %v3842_v10  ;;  %v390_v13 = vlaneseq }
  0xf3   :  { %652 = vmatprep.subr.bf16.mxu0 %v517_v14  ;;  %693 = vmatprep.subr.bf16.mxu1 %v581_v15 }
  0xf4   :  { %v3847_v14 = vshrl.u32 %v390_v13, 7 }
  0xf6   :  { %653 = vmatpush1.bf16.msra.mxu0 %v516_v18  ;;  %694 = vmatpush1.bf16.msra.mxu1 %v580_v19  ;;  %v3850_v15 = vsub.s32 0, %v3847_v14  ;;  %v3853_v16 = vsub.s32 2, %v3847_v14  ;;  %v3856_v18 = vsub.s32 1, %v3847_v14  ;;  %v3859_v19 = vsub.s32 3, %v3847_v14 }
  0xf7   :  { %654 = vmatprep.subr.bf16.mxu0 %v513_v20  ;;  %695 = vmatprep.subr.bf16.mxu1 %v577_v21  ;;  %v414_v20 = vld [vmem:[#allocation11] sm:$0xf] }
  0xf8   :  { %v393_v21 = vrot.slane %v388_v17, %v3850_v15  ;;  %v401_v22 = vrot.slane %v388_v17, %v3853_v16  ;;  %v419_v23 = vrot.slane %v414_v20, %v3850_v15 }
  0xfa   :  { %655 = vmatpush1.bf16.msra.mxu0 %v512_v24  ;;  %696 = vmatpush1.bf16.msra.mxu1 %v576_v25  ;;  %v427_v24 = vrot.slane %v414_v20, %v3853_v16  ;;  %v397_v25 = vrot.slane %v388_v17, %v3856_v18 }
  0xfb   :  { %656 = vmatprep.subr.bf16.mxu0 %v573_v26  ;;  %697 = vmatprep.subr.bf16.mxu1 %v637_v27  ;;  %v405_v26 = vrot.slane %v388_v17, %v3859_v19 }
  0xfe   :  { %657 = vmatpush2.bf16.msra.mxu0 %v572_v30  ;;  %698 = vmatpush2.bf16.msra.mxu1 %v636_v31  ;;  %v423_v31 = vrot.slane %v414_v20, %v3856_v18 }
  0xff   :  { %658 = vmatprep.subr.bf16.mxu0 %v569_v32  ;;  %699 = vmatprep.subr.bf16.mxu1 %v633_v33  ;;  %v431_v32 = vrot.slane %v414_v20, %v3859_v19  ;;  %v454_v20 = vld [vmem:[#allocation12 + $0x30] sm:$0xff] }
 0x102   :  { %659 = vmatpush2.bf16.msra.mxu0 %v568_v36  ;;  %700 = vmatpush2.bf16.msra.mxu1 %v632_v37 }
 0x103   :  { %660 = vmatprep.subr.bf16.mxu0 %v565_v38  ;;  %701 = vmatprep.subr.bf16.mxu1 %v629_v39 }
 0x106   :  { %661 = vmatpush2.bf16.msra.mxu0 %v564_v42  ;;  %702 = vmatpush2.bf16.msra.mxu1 %v628_v43 }
 0x107   :  { %662 = vmatprep.subr.bf16.mxu0 %v561_v44  ;;  %703 = vmatprep.subr.bf16.mxu1 %v625_v45 }
 0x10a   :  { %663 = vmatpush2.bf16.msra.mxu0 %v560_v48  ;;  %704 = vmatpush2.bf16.msra.mxu1 %v624_v49  ;;  %v494_v48 = vld [vmem:[#allocation12 + $0x170] sm:$0xff] }
 0x10b   :  { %664 = vmatprep.subr.bf16.mxu0 %v557_v50  ;;  %705 = vmatprep.subr.bf16.mxu1 %v621_v51  ;;  %v602_v62 = vunpack.c.l.s8.bf16 %v494_v48 }
 0x10e   :  { %665 = vmatpush2.bf16.msra.mxu0 %v556_v54  ;;  %706 = vmatpush2.bf16.msra.mxu1 %v620_v55  ;;  %v606_v54 = vunpack.c.h.s8.bf16 %v494_v48 }
 0x10f   :  { %666 = vmatprep.subr.bf16.mxu0 %v553_v56  ;;  %707 = vmatprep.subr.bf16.mxu1 %v617_v57  ;;  %v539_v57 = vunpack.c.l.s8.bf16 %v3840_v9  ;;  %v487_v9 = vld [vmem:[#allocation12 + $0x138] sm:$0xff] }
 0x110   :  { %v591_v17 = vunpack.c.h.s8.bf16 %v487_v9 }
 0x112   :  { %667 = vmatpush2.bf16.msra.mxu0 %v552_v58  ;;  %708 = vmatpush2.bf16.msra.mxu1 %v616_v59  ;;  %v603_v58 = vunpack.c.l.s8.bf16 %v3842_v10  ;;  %v459_v59 = vld [vmem:[#allocation12 + $0x58] sm:$0xff] }
 0x113   :  { %668 = vmatprep.subr.bf16.mxu0 %v549_v0  ;;  %709 = vmatprep.subr.bf16.mxu1 %v613_v2  ;;  %v535_v63 = vunpack.c.h.s8.bf16 %v459_v59  ;;  %v599_v0 = vunpack.c.h.s8.bf16 %v491_v60  ;;  %v458_v2 = vld [vmem:[#allocation12 + $0x50] sm:$0xff] }
 0x114   :  { %v530_v10 = vunpack.c.l.s8.bf16 %v458_v2 }
 0x116   :  { %669 = vmatpush2.bf16.msra.mxu0 %v548_v3  ;;  %710 = vmatpush2.bf16.msra.mxu1 %v612_v4  ;;  %v490_v3 = vld [vmem:[#allocation12 + $0x150] sm:$0xff]  ;;  %v534_v4 = vunpack.c.h.s8.bf16 %v458_v2  ;;  %v503_v2 = vld [vmem:[#allocation12 + $0x1b8] sm:$0xff] }
 0x117   :  { %670 = vmatprep.subr.bf16.mxu0 %v545_v5  ;;  %711 = vmatprep.subr.bf16.mxu1 %v609_v6  ;;  %v598_v5 = vunpack.c.h.s8.bf16 %v490_v3  ;;  %v531_v6 = vunpack.c.l.s8.bf16 %v459_v59  ;;  %v506_v59 = vld [vmem:[#allocation12 + $0x1d0] sm:$0xff] }
 0x11a   :  { %671 = vmatpush2.bf16.msra.mxu0 %v544_v7  ;;  %712 = vmatpush2.bf16.msra.mxu1 %v608_v8  ;;  %v595_v7 = vunpack.c.l.s8.bf16 %v491_v60  ;;  %v455_v8 = vld [vmem:[#allocation12 + $0x38] sm:$0xff] }
 0x11b   :  { %722 = vmatprep.subr.bf16.mxu0 %v543_v11  ;;  %763 = vmatprep.subr.bf16.mxu1 %v607_v12  ;;  %v594_v11 = vunpack.c.l.s8.bf16 %v490_v3  ;;  %v527_v12 = vunpack.c.h.s8.bf16 %v455_v8 }
 0x19d   :  { %v340_v27 = vpop.f32.mrf.mxu0  ;;  %v381_v28 = vpop.f32.mrf.mxu1 }
 0x19e   :  { %v410_v29 = vmul.f32 %v393_v21, %v340_v27  ;;  %v412_v30 = vmul.f32 %v401_v22, %v381_v28  ;;  %v486_v21 = vld [vmem:[#allocation12 + $0x130] sm:$0xff]  ;;  %v526_v22 = vunpack.c.h.s8.bf16 %v454_v20  ;;  %v483_v27 = vld [vmem:[#allocation12 + $0x118] sm:$0xff]  ;;  %v522_v28 = vunpack.c.l.s8.bf16 %v454_v20 }
 0x19f   :  { %v342_v33 = vpop.f32.mrf.mxu0  ;;  %v383_v34 = vpop.f32.mrf.mxu1  ;;  %v499_v20 = vld [vmem:[#allocation12 + $0x198] sm:$0xff] }
 0x1a0   :  { %v436_v35 = vadd.f32 %v419_v23, %v410_v29  ;;  %v438_v36 = vadd.f32 %v427_v24, %v412_v30  ;;  %v411_v37 = vmul.f32 %v397_v25, %v342_v33  ;;  %v413_v38 = vmul.f32 %v405_v26, %v383_v34  ;;  %v451_v26 = vld [vmem:[#allocation12 + $0x18] sm:$0xff]  ;;  %v482_v33 = vld [vmem:[#allocation12 + $0x110] sm:$0xff] }
 0x1a1   :  { %v344_v39 = vpop.f32.mrf.mxu0  ;;  %v385_v40 = vpop.f32.mrf.mxu1  ;;  %v590_v23 = vunpack.c.h.s8.bf16 %v486_v21  ;;  %v523_v24 = vunpack.c.l.s8.bf16 %v455_v8  ;;  %v587_v25 = vunpack.c.l.s8.bf16 %v487_v9  ;;  %v586_v29 = vunpack.c.l.s8.bf16 %v486_v21  ;;  %v502_v8 = vld [vmem:[#allocation12 + $0x1b0] sm:$0xff] }
 0x1a2   :  { %v437_v41 = vadd.f32 %v423_v31, %v411_v37  ;;  %v439_v42 = vadd.f32 %v431_v32, %v413_v38  ;;  %v440_v43 = vmax.f32 %v436_v35, 0.0  ;;  %v442_v44 = vmax.f32 %v438_v36, 0.0  ;;  %v450_v32 = vld [vmem:[#allocation12 + $0x10] sm:$0xff]  ;;  %v479_v38 = vld [vmem:[#allocation12 + $0xf8] sm:$0xff] }
 0x1a3   :  { %v345_v45 = vpop.f32.mrf.mxu0  ;;  %v386_v46 = vpop.f32.mrf.mxu1  ;;  %v519_v30 = vunpack.c.h.s8.bf16 %v451_v26  ;;  %v583_v31 = vunpack.c.h.s8.bf16 %v483_v27  ;;  %v518_v34 = vunpack.c.h.s8.bf16 %v450_v32  ;;  %v582_v35 = vunpack.c.h.s8.bf16 %v482_v33  ;;  %v511_v39 = vld [vmem:[#allocation12 + $0x1f8] sm:$0xff] }
 0x1a4   :  { %v441_v49 = vmax.f32 %v437_v41, 0.0  ;;  %v443_v50 = vmax.f32 %v439_v42, 0.0  ;;  %v3869_v55 = vpack.c.bf16 %v440_v43, %v440_v43  ;;  %v3871_v56 = vpack.c.bf16 %v442_v44, %v442_v44  ;;  %v478_v44 = vld [vmem:[#allocation12 + $0xf0] sm:$0xff] }
 0x1a5   :  { %v515_v36 = vunpack.c.l.s8.bf16 %v451_v26  ;;  %v579_v37 = vunpack.c.l.s8.bf16 %v483_v27  ;;  %v514_v40 = vunpack.c.l.s8.bf16 %v450_v32  ;;  %v578_v41 = vunpack.c.l.s8.bf16 %v482_v33  ;;  %v510_v45 = vld [vmem:[#allocation12 + $0x1f0] sm:$0xff]  ;;  %v868_v32 = vld [vmem:[#allocation17 + $0x38] sm:$0xff] }
 0x1a6   :  { %v445_v51 = vpack.c.bf16 %v441_v49, %v441_v49  ;;  %v447_v52 = vpack.c.bf16 %v443_v50, %v443_v50  ;;  %v575_v42 = vunpack.c.h.s8.bf16 %v479_v38  ;;  %v639_v43 = vunpack.c.h.s8.bf16 %v511_v39  ;;  %v475_v50 = vld [vmem:[#allocation12 + $0xd8] sm:$0xff]  ;;  %v498_v26 = vld [vmem:[#allocation12 + $0x190] sm:$0xff] }
 0x1a7   :  { %v574_v46 = vunpack.c.h.s8.bf16 %v478_v44  ;;  %v638_v47 = vunpack.c.h.s8.bf16 %v510_v45  ;;  %v571_v48 = vunpack.c.l.s8.bf16 %v479_v38  ;;  %v635_v49 = vunpack.c.l.s8.bf16 %v511_v39  ;;  %v867_v38 = vld [vmem:[#allocation17 + $0x30] sm:$0xff] }
 0x1a8   :  { %672 = vmatprep.mubr.bf16.mxu0 %v445_v51  ;;  %713 = vmatprep.mubr.bf16.mxu1 %v447_v52 }
 0x1a9   :  { %673 = vmatmul.mubr.bf16.vlgmr.msra.gmra.mxu0 %v3869_v55  ;;  %714 = vmatmul.mubr.bf16.vlgmr.msra.gmra.mxu1 %v3871_v56 }
 0x1aa   :  { %723 = vmatpush1.bf16.msra.mxu0 %v542_v53  ;;  %764 = vmatpush1.bf16.msra.mxu1 %v606_v54  ;;  %v634_v53 = vunpack.c.l.s8.bf16 %v510_v45  ;;  %v567_v54 = vunpack.c.h.s8.bf16 %v475_v50 }
 0x1ab   :  { %754 = vmatprep.mubr.bf16.mxu0 %v445_v51  ;;  %795 = vmatprep.mubr.bf16.mxu1 %v447_v52  ;;  %v507_v51 = vld [vmem:[#allocation12 + $0x1d8] sm:$0xff]  ;;  %v570_v52 = vunpack.c.l.s8.bf16 %v478_v44  ;;  %v864_v44 = vld [vmem:[#allocation17 + $0x18] sm:$0xff] }
 0x1ac   :  { %724 = vmatprep.subr.bf16.mxu0 %v539_v57  ;;  %765 = vmatprep.subr.bf16.mxu1 %v603_v58  ;;  %v631_v57 = vunpack.c.h.s8.bf16 %v507_v51  ;;  %v474_v58 = vld [vmem:[#allocation12 + $0xd0] sm:$0xff] }
 0x1ad   :  { %v566_v60 = vunpack.c.h.s8.bf16 %v474_v58  ;;  %v562_v3 = vunpack.c.l.s8.bf16 %v474_v58  ;;  %v1076_v58 = vld [vmem:[#allocation20 + $0x168] sm:$0xff] }
 0x1ae   :  { %725 = vmatpush1.bf16.msra.mxu0 %v538_v61  ;;  %766 = vmatpush1.bf16.msra.mxu1 %v602_v62  ;;  %v630_v61 = vunpack.c.h.s8.bf16 %v506_v59  ;;  %v563_v62 = vunpack.c.l.s8.bf16 %v475_v50  ;;  %v863_v50 = vld [vmem:[#allocation17 + $0x10] sm:$0xff] }
 0x1af   :  { %726 = vmatprep.subr.bf16.mxu0 %v535_v63  ;;  %767 = vmatprep.subr.bf16.mxu1 %v599_v0  ;;  %v627_v63 = vunpack.c.l.s8.bf16 %v507_v51  ;;  %v471_v0 = vld [vmem:[#allocation12 + $0xb8] sm:$0xff] }
 0x1b2   :  { %727 = vmatpush1.bf16.msra.mxu0 %v534_v4  ;;  %768 = vmatpush1.bf16.msra.mxu1 %v598_v5  ;;  %v626_v4 = vunpack.c.l.s8.bf16 %v506_v59  ;;  %v559_v5 = vunpack.c.h.s8.bf16 %v471_v0  ;;  %v1043_v59 = vld [vmem:[#allocation20 + $0x60] sm:$0xff] }
 0x1b3   :  { %728 = vmatprep.subr.bf16.mxu0 %v531_v6  ;;  %769 = vmatprep.subr.bf16.mxu1 %v595_v7  ;;  %v623_v6 = vunpack.c.h.s8.bf16 %v503_v2  ;;  %v470_v7 = vld [vmem:[#allocation12 + $0xb0] sm:$0xff] }
 0x1b4   :  { %v558_v9 = vunpack.c.h.s8.bf16 %v470_v7  ;;  %v554_v21 = vunpack.c.l.s8.bf16 %v470_v7 }
 0x1b6   :  { %729 = vmatpush1.bf16.msra.mxu0 %v530_v10  ;;  %770 = vmatpush1.bf16.msra.mxu1 %v594_v11  ;;  %v622_v10 = vunpack.c.h.s8.bf16 %v502_v8  ;;  %v555_v11 = vunpack.c.l.s8.bf16 %v471_v0 }
 0x1b7   :  { %730 = vmatprep.subr.bf16.mxu0 %v527_v12  ;;  %771 = vmatprep.subr.bf16.mxu1 %v591_v17  ;;  %v619_v12 = vunpack.c.l.s8.bf16 %v503_v2  ;;  %v467_v17 = vld [vmem:[#allocation12 + $0x98] sm:$0xff] }
 0x1ba   :  { %731 = vmatpush1.bf16.msra.mxu0 %v526_v22  ;;  %772 = vmatpush1.bf16.msra.mxu1 %v590_v23  ;;  %v618_v22 = vunpack.c.l.s8.bf16 %v502_v8  ;;  %v551_v23 = vunpack.c.h.s8.bf16 %v467_v17 }
 0x1bb   :  { %732 = vmatprep.subr.bf16.mxu0 %v523_v24  ;;  %773 = vmatprep.subr.bf16.mxu1 %v587_v25  ;;  %v615_v24 = vunpack.c.h.s8.bf16 %v499_v20  ;;  %v466_v25 = vld [vmem:[#allocation12 + $0x90] sm:$0xff] }
 0x1bc   :  { %v550_v27 = vunpack.c.h.s8.bf16 %v466_v25  ;;  %v546_v33 = vunpack.c.l.s8.bf16 %v466_v25 }
 0x1be   :  { %733 = vmatpush1.bf16.msra.mxu0 %v522_v28  ;;  %774 = vmatpush1.bf16.msra.mxu1 %v586_v29  ;;  %v614_v28 = vunpack.c.h.s8.bf16 %v498_v26  ;;  %v547_v29 = vunpack.c.l.s8.bf16 %v467_v17 }
 0x1bf   :  { %734 = vmatprep.subr.bf16.mxu0 %v519_v30  ;;  %775 = vmatprep.subr.bf16.mxu1 %v583_v31  ;;  %v611_v30 = vunpack.c.l.s8.bf16 %v499_v20  ;;  %v866_v31 = vld [vmem:[#allocation17 + $0x28] sm:$0xff] }
 0x1c2   :  { %735 = vmatpush1.bf16.msra.mxu0 %v518_v34  ;;  %776 = vmatpush1.bf16.msra.mxu1 %v582_v35  ;;  %v610_v34 = vunpack.c.l.s8.bf16 %v498_v26  ;;  %v882_v35 = vunpack.c.h.s8.bf16 %v866_v31 }
 0x1c3   :  { %736 = vmatprep.subr.bf16.mxu0 %v515_v36  ;;  %777 = vmatprep.subr.bf16.mxu1 %v579_v37  ;;  %v884_v36 = vunpack.c.h.s8.bf16 %v868_v32  ;;  %v865_v37 = vld [vmem:[#allocation17 + $0x20] sm:$0xff] }
 0x1c4   :  { %v881_v39 = vunpack.c.h.s8.bf16 %v865_v37  ;;  %v877_v45 = vunpack.c.l.s8.bf16 %v865_v37 }
 0x1c6   :  { %737 = vmatpush1.bf16.msra.mxu0 %v514_v40  ;;  %778 = vmatpush1.bf16.msra.mxu1 %v578_v41  ;;  %v883_v40 = vunpack.c.h.s8.bf16 %v867_v38  ;;  %v878_v41 = vunpack.c.l.s8.bf16 %v866_v31 }
 0x1c7   :  { %738 = vmatprep.subr.bf16.mxu0 %v575_v42  ;;  %779 = vmatprep.subr.bf16.mxu1 %v639_v43  ;;  %v880_v42 = vunpack.c.l.s8.bf16 %v868_v32  ;;  %v862_v43 = vld [vmem:[#allocation17 + $0x8] sm:$0xff] }
 0x1ca   :  { %739 = vmatpush2.bf16.msra.mxu0 %v574_v46  ;;  %780 = vmatpush2.bf16.msra.mxu1 %v638_v47  ;;  %v879_v46 = vunpack.c.l.s8.bf16 %v867_v38  ;;  %v874_v47 = vunpack.c.h.s8.bf16 %v862_v43 }
 0x1cb   :  { %740 = vmatprep.subr.bf16.mxu0 %v571_v48  ;;  %781 = vmatprep.subr.bf16.mxu1 %v635_v49  ;;  %v876_v48 = vunpack.c.h.s8.bf16 %v864_v44  ;;  %v861_v49 = vld [vmem:[#allocation17] sm:$0xff] }
 0x1cc   :  { %v873_v51 = vunpack.c.h.s8.bf16 %v861_v49 }
 0x1ce   :  { %741 = vmatpush2.bf16.msra.mxu0 %v570_v52  ;;  %782 = vmatpush2.bf16.msra.mxu1 %v634_v53  ;;  %v872_v52 = vunpack.c.l.s8.bf16 %v864_v44  ;;  %v869_v53 = vunpack.c.l.s8.bf16 %v861_v49 }
 0x1cf   :  { %742 = vmatprep.subr.bf16.mxu0 %v567_v54  ;;  %783 = vmatprep.subr.bf16.mxu1 %v631_v57  ;;  %v871_v54 = vunpack.c.l.s8.bf16 %v863_v50  ;;  %v1044_v57 = vld [vmem:[#allocation20 + $0x68] sm:$0xff] }
 0x1d0   :  { %v1120_v2 = vunpack.c.l.s8.bf16 %v1044_v57 }
 0x1d2   :  { %743 = vmatpush2.bf16.msra.mxu0 %v566_v60  ;;  %784 = vmatpush2.bf16.msra.mxu1 %v630_v61  ;;  %v1124_v60 = vunpack.c.h.s8.bf16 %v1044_v57  ;;  %v1188_v61 = vunpack.c.h.s8.bf16 %v1076_v58 }
 0x1d3   :  { %744 = vmatprep.subr.bf16.mxu0 %v563_v62  ;;  %785 = vmatprep.subr.bf16.mxu1 %v627_v63  ;;  %v860_v62 = vld [vmem:[#allocation6] sm:$0xf]  ;;  %v1123_v63 = vunpack.c.h.s8.bf16 %v1043_v59 }
 0x1d6   :  { %745 = vmatpush2.bf16.msra.mxu0 %v562_v3  ;;  %786 = vmatpush2.bf16.msra.mxu1 %v626_v4  ;;  %v1184_v3 = vunpack.c.l.s8.bf16 %v1076_v58  ;;  %v1040_v4 = vld [vmem:[#allocation20 + $0x48] sm:$0xff] }
 0x1d7   :  { %746 = vmatprep.subr.bf16.mxu0 %v559_v5  ;;  %787 = vmatprep.subr.bf16.mxu1 %v623_v6  ;;  %v1072_v5 = vld [vmem:[#allocation20 + $0x148] sm:$0xff]  ;;  %v1119_v6 = vunpack.c.l.s8.bf16 %v1043_v59  ;;  %v1116_v8 = vunpack.c.h.s8.bf16 %v1040_v4  ;;  %v1112_v20 = vunpack.c.l.s8.bf16 %v1040_v4 }
 0x1da   :  { %747 = vmatpush2.bf16.msra.mxu0 %v558_v9  ;;  %788 = vmatpush2.bf16.msra.mxu1 %v622_v10  ;;  %v1180_v9 = vunpack.c.h.s8.bf16 %v1072_v5  ;;  %v1039_v10 = vld [vmem:[#allocation20 + $0x40] sm:$0xff] }
 0x1db   :  { %748 = vmatprep.subr.bf16.mxu0 %v555_v11  ;;  %789 = vmatprep.subr.bf16.mxu1 %v619_v12  ;;  %v1071_v11 = vld [vmem:[#allocation20 + $0x140] sm:$0xff]  ;;  %v1115_v12 = vunpack.c.h.s8.bf16 %v1039_v10 }
 0x1dc   :  { %v1179_v17 = vunpack.c.h.s8.bf16 %v1071_v11  ;;  %v1175_v25 = vunpack.c.l.s8.bf16 %v1071_v11 }
 0x1de   :  { %749 = vmatpush2.bf16.msra.mxu0 %v554_v21  ;;  %790 = vmatpush2.bf16.msra.mxu1 %v618_v22  ;;  %v1176_v21 = vunpack.c.l.s8.bf16 %v1072_v5  ;;  %v1036_v22 = vld [vmem:[#allocation20 + $0x28] sm:$0xff] }
 0x1df   :  { %750 = vmatprep.subr.bf16.mxu0 %v551_v23  ;;  %791 = vmatprep.subr.bf16.mxu1 %v615_v24  ;;  %v1068_v23 = vld [vmem:[#allocation20 + $0x128] sm:$0xff]  ;;  %v1111_v24 = vunpack.c.l.s8.bf16 %v1039_v10  ;;  %v1108_v26 = vunpack.c.h.s8.bf16 %v1036_v22  ;;  %v1104_v32 = vunpack.c.l.s8.bf16 %v1036_v22 }
 0x1e2   :  { %751 = vmatpush2.bf16.msra.mxu0 %v550_v27  ;;  %792 = vmatpush2.bf16.msra.mxu1 %v614_v28  ;;  %v1172_v27 = vunpack.c.h.s8.bf16 %v1068_v23  ;;  %v1035_v28 = vld [vmem:[#allocation20 + $0x20] sm:$0xff] }
 0x1e3   :  { %752 = vmatprep.subr.bf16.mxu0 %v547_v29  ;;  %793 = vmatprep.subr.bf16.mxu1 %v611_v30  ;;  %v1067_v29 = vld [vmem:[#allocation20 + $0x120] sm:$0xff]  ;;  %v1107_v30 = vunpack.c.h.s8.bf16 %v1035_v28 }
 0x1e4   :  { %v1171_v31 = vunpack.c.h.s8.bf16 %v1067_v29  ;;  %v1167_v37 = vunpack.c.l.s8.bf16 %v1067_v29  ;;  %v1079_v29 = vld [vmem:[#allocation20 + $0x180] sm:$0xff] }
 0x1e6   :  { %753 = vmatpush2.bf16.msra.mxu0 %v546_v33  ;;  %794 = vmatpush2.bf16.msra.mxu1 %v610_v34  ;;  %v1168_v33 = vunpack.c.l.s8.bf16 %v1068_v23  ;;  %v1032_v34 = vld [vmem:[#allocation20 + $0x8] sm:$0xff] }
 0x1e7   :  { %897 = vmatprep.subr.bf16.mxu0 %v882_v35  ;;  %938 = vmatprep.subr.bf16.mxu1 %v884_v36  ;;  %v1064_v35 = vld [vmem:[#allocation20 + $0x108] sm:$0xff]  ;;  %v1103_v36 = vunpack.c.l.s8.bf16 %v1035_v28  ;;  %v1100_v38 = vunpack.c.h.s8.bf16 %v1032_v34  ;;  %v1096_v44 = vunpack.c.l.s8.bf16 %v1032_v34  ;;  %v1047_v28 = vld [vmem:[#allocation20 + $0x80] sm:$0xff] }
 0x1e9   :  { %755 = vmatmul.mubr.bf16.vlgmr.msra.gmra.mxu0 %v3869_v55  ;;  %796 = vmatmul.mubr.bf16.vlgmr.msra.gmra.mxu1 %v3871_v56  ;;  %v875_v55 = vunpack.c.h.s8.bf16 %v863_v50  ;;  %v870_v56 = vunpack.c.l.s8.bf16 %v862_v43 }
 0x1ea   :  { %898 = vmatpush1.bf16.msra.mxu0 %v881_v39  ;;  %939 = vmatpush1.bf16.msra.mxu1 %v883_v40  ;;  %v1164_v39 = vunpack.c.h.s8.bf16 %v1064_v35  ;;  %v1031_v40 = vld [vmem:[#allocation20] sm:$0xff] }
 0x1eb   :  { %899 = vmatprep.subr.bf16.mxu0 %v878_v41  ;;  %940 = vmatprep.subr.bf16.mxu1 %v880_v42  ;;  %v1063_v41 = vld [vmem:[#allocation20 + $0x100] sm:$0xff]  ;;  %v1099_v42 = vunpack.c.h.s8.bf16 %v1031_v40 }
 0x1ec   :  { %921 = vmatprep.mubr.bf16.mxu0 %v3648_v1  ;;  %962 = vmatprep.mubr.bf16.mxu1 %v3648_v1  ;;  %v1075_v1 = vld [vmem:[#allocation20 + $0x160] sm:$0xff]  ;;  %v1163_v43 = vunpack.c.h.s8.bf16 %v1063_v41  ;;  %v1159_v49 = vunpack.c.l.s8.bf16 %v1063_v41 }
 0x1ed   :  { %v1187_v0 = vunpack.c.h.s8.bf16 %v1075_v1  ;;  %v1183_v7 = vunpack.c.l.s8.bf16 %v1075_v1 }
 0x1ee   :  { %900 = vmatpush1.bf16.msra.mxu0 %v877_v45  ;;  %941 = vmatpush1.bf16.msra.mxu1 %v879_v46  ;;  %v1160_v45 = vunpack.c.l.s8.bf16 %v1064_v35  ;;  %v1060_v46 = vld [vmem:[#allocation20 + $0xe8] sm:$0xff] }
 0x1ef   :  { %901 = vmatprep.subr.bf16.mxu0 %v874_v47  ;;  %942 = vmatprep.subr.bf16.mxu1 %v876_v48  ;;  %v1092_v47 = vld [vmem:[#allocation20 + $0x1e8] sm:$0xff]  ;;  %v1095_v48 = vunpack.c.l.s8.bf16 %v1031_v40  ;;  %v1156_v50 = vunpack.c.h.s8.bf16 %v1060_v46 }
 0x1f0   :  { %v1216_v57 = vunpack.c.l.s8.bf16 %v1092_v47 }
 0x1f2   :  { %902 = vmatpush1.bf16.msra.mxu0 %v873_v51  ;;  %943 = vmatpush1.bf16.msra.mxu1 %v875_v55  ;;  %v1220_v51 = vunpack.c.h.s8.bf16 %v1092_v47  ;;  %v1059_v55 = vld [vmem:[#allocation20 + $0xe0] sm:$0xff] }
 0x1f3   :  { %903 = vmatprep.subr.bf16.mxu0 %v870_v56  ;;  %944 = vmatprep.subr.bf16.mxu1 %v872_v52  ;;  %v1091_v56 = vld [vmem:[#allocation20 + $0x1e0] sm:$0xff]  ;;  %v1155_v52 = vunpack.c.h.s8.bf16 %v1059_v55  ;;  %v1151_v58 = vunpack.c.l.s8.bf16 %v1059_v55 }
 0x1f4   :  { %v1215_v59 = vunpack.c.l.s8.bf16 %v1091_v56 }
 0x1f6   :  { %904 = vmatpush1.bf16.msra.mxu0 %v869_v53  ;;  %945 = vmatpush1.bf16.msra.mxu1 %v871_v54  ;;  %v1219_v53 = vunpack.c.h.s8.bf16 %v1091_v56  ;;  %v1152_v54 = vunpack.c.l.s8.bf16 %v1060_v46 }
 0x1f7   :  { %1223 = vmatprep.subr.bf16.mxu0 %v1124_v60  ;;  %1264 = vmatprep.subr.bf16.mxu1 %v1188_v61  ;;  %v1056_v60 = vld [vmem:[#allocation20 + $0xc8] sm:$0xff] }
 0x1f8   :  { %v1088_v61 = vld [vmem:[#allocation20 + $0x1c8] sm:$0xff]  ;;  %v1148_v1 = vunpack.c.h.s8.bf16 %v1056_v60  ;;  %v1144_v4 = vunpack.c.l.s8.bf16 %v1056_v60 }
 0x1f9   :  { %3213 = vmatmul.mubr.msk.bf16.vlgmr.msra.gmra.mxu0 %vm885_vm1, %v860_v62  ;;  %3214 = vmatmul.mubr.msk.bf16.vlgmr.msra.gmra.mxu1 %vm885_vm1, %v860_v62  ;;  %v1212_v62 = vunpack.c.h.s8.bf16 %v1088_v61  ;;  %v1208_v5 = vunpack.c.l.s8.bf16 %v1088_v61 }
 0x1fa   :  { %1224 = vmatpush1.bf16.msra.mxu0 %v1123_v63  ;;  %1265 = vmatpush1.bf16.msra.mxu1 %v1187_v0  ;;  %v1055_v63 = vld [vmem:[#allocation20 + $0xc0] sm:$0xff] }
 0x1fb   :  { %1225 = vmatprep.subr.bf16.mxu0 %v1120_v2  ;;  %1266 = vmatprep.subr.bf16.mxu1 %v1184_v3  ;;  %v1087_v0 = vld [vmem:[#allocation20 + $0x1c0] sm:$0xff]  ;;  %v1147_v2 = vunpack.c.h.s8.bf16 %v1055_v63 }
 0x1fc   :  { %v1211_v3 = vunpack.c.h.s8.bf16 %v1087_v0 }
 0x1fe   :  { %1226 = vmatpush1.bf16.msra.mxu0 %v1119_v6  ;;  %1267 = vmatpush1.bf16.msra.mxu1 %v1183_v7  ;;  %v1143_v6 = vunpack.c.l.s8.bf16 %v1055_v63  ;;  %v1207_v7 = vunpack.c.l.s8.bf16 %v1087_v0 }
 0x1ff   :  { %1227 = vmatprep.subr.bf16.mxu0 %v1116_v8  ;;  %1268 = vmatprep.subr.bf16.mxu1 %v1180_v9  ;;  %v1052_v8 = vld [vmem:[#allocation20 + $0xa8] sm:$0xff] }
 0x200   :  { %v1084_v9 = vld [vmem:[#allocation20 + $0x1a8] sm:$0xff]  ;;  %v1140_v10 = vunpack.c.h.s8.bf16 %v1052_v8  ;;  %v1136_v22 = vunpack.c.l.s8.bf16 %v1052_v8 }
 0x201   :  { %v1204_v11 = vunpack.c.h.s8.bf16 %v1084_v9  ;;  %v1200_v23 = vunpack.c.l.s8.bf16 %v1084_v9 }
 0x202   :  { %1228 = vmatpush1.bf16.msra.mxu0 %v1115_v12  ;;  %1269 = vmatpush1.bf16.msra.mxu1 %v1179_v17  ;;  %v1051_v12 = vld [vmem:[#allocation20 + $0xa0] sm:$0xff] }
 0x203   :  { %1229 = vmatprep.subr.bf16.mxu0 %v1112_v20  ;;  %1270 = vmatprep.subr.bf16.mxu1 %v1176_v21  ;;  %v1083_v17 = vld [vmem:[#allocation20 + $0x1a0] sm:$0xff]  ;;  %v1139_v20 = vunpack.c.h.s8.bf16 %v1051_v12 }
 0x204   :  { %v1203_v21 = vunpack.c.h.s8.bf16 %v1083_v17 }
 0x206   :  { %1230 = vmatpush1.bf16.msra.mxu0 %v1111_v24  ;;  %1271 = vmatpush1.bf16.msra.mxu1 %v1175_v25  ;;  %v1135_v24 = vunpack.c.l.s8.bf16 %v1051_v12  ;;  %v1199_v25 = vunpack.c.l.s8.bf16 %v1083_v17 }
 0x207   :  { %1231 = vmatprep.subr.bf16.mxu0 %v1108_v26  ;;  %1272 = vmatprep.subr.bf16.mxu1 %v1172_v27  ;;  %v1048_v26 = vld [vmem:[#allocation20 + $0x88] sm:$0xff] }
 0x208   :  { %v1080_v27 = vld [vmem:[#allocation20 + $0x188] sm:$0xff]  ;;  %v1128_v34 = vunpack.c.l.s8.bf16 %v1048_v26 }
 0x209   :  { %v1192_v35 = vunpack.c.l.s8.bf16 %v1080_v27 }
 0x20a   :  { %1232 = vmatpush1.bf16.msra.mxu0 %v1107_v30  ;;  %1273 = vmatpush1.bf16.msra.mxu1 %v1171_v31  ;;  %v1132_v30 = vunpack.c.h.s8.bf16 %v1048_v26  ;;  %v1196_v31 = vunpack.c.h.s8.bf16 %v1080_v27 }
 0x20b   :  { %1233 = vmatprep.subr.bf16.mxu0 %v1104_v32  ;;  %1274 = vmatprep.subr.bf16.mxu1 %v1168_v33  ;;  %v1131_v32 = vunpack.c.h.s8.bf16 %v1047_v28  ;;  %v1195_v33 = vunpack.c.h.s8.bf16 %v1079_v29 }
 0x20e   :  { %1234 = vmatpush1.bf16.msra.mxu0 %v1103_v36  ;;  %1275 = vmatpush1.bf16.msra.mxu1 %v1167_v37  ;;  %v1127_v36 = vunpack.c.l.s8.bf16 %v1047_v28  ;;  %v1191_v37 = vunpack.c.l.s8.bf16 %v1079_v29 }
 0x20f   :  { %1235 = vmatprep.subr.bf16.mxu0 %v1100_v38  ;;  %1276 = vmatprep.subr.bf16.mxu1 %v1164_v39  ;;  %v3881_v38 = vld [vmem:[#allocation20 + $0x78] sm:$0xff] }
 0x210   :  { %v3883_v39 = vld [vmem:[#allocation20 + $0x178] sm:$0xff]  ;;  %v1126_v40 = vunpack.c.h.s8.bf16 %v3881_v38 }
 0x211   :  { %v1190_v41 = vunpack.c.h.s8.bf16 %v3883_v39 }
 0x212   :  { %1236 = vmatpush1.bf16.msra.mxu0 %v1099_v42  ;;  %1277 = vmatpush1.bf16.msra.mxu1 %v1163_v43 }
 0x213   :  { %1237 = vmatprep.subr.bf16.mxu0 %v1096_v44  ;;  %1278 = vmatprep.subr.bf16.mxu1 %v1160_v45 }
 0x216   :  { %1238 = vmatpush1.bf16.msra.mxu0 %v1095_v48  ;;  %1279 = vmatpush1.bf16.msra.mxu1 %v1159_v49 }
 0x217   :  { %1239 = vmatprep.subr.bf16.mxu0 %v1156_v50  ;;  %1280 = vmatprep.subr.bf16.mxu1 %v1220_v51 }
 0x21a   :  { %1240 = vmatpush2.bf16.msra.mxu0 %v1155_v52  ;;  %1281 = vmatpush2.bf16.msra.mxu1 %v1219_v53 }
 0x21b   :  { %1241 = vmatprep.subr.bf16.mxu0 %v1152_v54  ;;  %1282 = vmatprep.subr.bf16.mxu1 %v1216_v57 }
 0x21e   :  { %1242 = vmatpush2.bf16.msra.mxu0 %v1151_v58  ;;  %1283 = vmatpush2.bf16.msra.mxu1 %v1215_v59 }
 0x21f   :  { %1243 = vmatprep.subr.bf16.mxu0 %v1148_v1  ;;  %1284 = vmatprep.subr.bf16.mxu1 %v1212_v62  ;;  %v971_v1 = vld [vmem:[#allocation18] sm:$0xf]  ;;  %v997_v62 = vld [vmem:[%s4154_s10] sm:$0xf] }
 0x220   :  { %v976_v63 = vrot.slane %v971_v1, %v3850_v15  ;;  %v984_v0 = vrot.slane %v971_v1, %v3853_v16 }
 0x222   :  { %1244 = vmatpush2.bf16.msra.mxu0 %v1147_v2  ;;  %1285 = vmatpush2.bf16.msra.mxu1 %v1211_v3  ;;  %v1002_v2 = vrot.slane %v997_v62, %v3850_v15  ;;  %v1010_v3 = vrot.slane %v997_v62, %v3853_v16 }
 0x223   :  { %1245 = vmatprep.subr.bf16.mxu0 %v1144_v4  ;;  %1286 = vmatprep.subr.bf16.mxu1 %v1208_v5  ;;  %v980_v4 = vrot.slane %v971_v1, %v3856_v18  ;;  %v988_v5 = vrot.slane %v971_v1, %v3859_v19 }
 0x226   :  { %1246 = vmatpush2.bf16.msra.mxu0 %v1143_v6  ;;  %1287 = vmatpush2.bf16.msra.mxu1 %v1207_v7 }
 0x227   :  { %1247 = vmatprep.subr.bf16.mxu0 %v1140_v10  ;;  %1288 = vmatprep.subr.bf16.mxu1 %v1204_v11  ;;  %v1006_v10 = vrot.slane %v997_v62, %v3856_v18  ;;  %v1014_v11 = vrot.slane %v997_v62, %v3859_v19 }
 0x22a   :  { %1248 = vmatpush2.bf16.msra.mxu0 %v1139_v20  ;;  %1289 = vmatpush2.bf16.msra.mxu1 %v1203_v21 }
 0x22b   :  { %1249 = vmatprep.subr.bf16.mxu0 %v1136_v22  ;;  %1290 = vmatprep.subr.bf16.mxu1 %v1200_v23 }
 0x22e   :  { %1250 = vmatpush2.bf16.msra.mxu0 %v1135_v24  ;;  %1291 = vmatpush2.bf16.msra.mxu1 %v1199_v25 }
 0x22f   :  { %1251 = vmatprep.subr.bf16.mxu0 %v1132_v30  ;;  %1292 = vmatprep.subr.bf16.mxu1 %v1196_v31 }
 0x232   :  { %1252 = vmatpush2.bf16.msra.mxu0 %v1131_v32  ;;  %1293 = vmatpush2.bf16.msra.mxu1 %v1195_v33  ;;  %v1045_v32 = vld [vmem:[#allocation20 + $0x70] sm:$0xff] }
 0x233   :  { %1253 = vmatprep.subr.bf16.mxu0 %v1128_v34  ;;  %1294 = vmatprep.subr.bf16.mxu1 %v1192_v35  ;;  %v1077_v33 = vld [vmem:[#allocation20 + $0x170] sm:$0xff] }
 0x236   :  { %1254 = vmatpush2.bf16.msra.mxu0 %v1127_v36  ;;  %1295 = vmatpush2.bf16.msra.mxu1 %v1191_v37 }
 0x237   :  { %1305 = vmatprep.subr.bf16.mxu0 %v1126_v40  ;;  %1346 = vmatprep.subr.bf16.mxu1 %v1190_v41  ;;  %v1125_v40 = vunpack.c.h.s8.bf16 %v1045_v32  ;;  %v1189_v41 = vunpack.c.h.s8.bf16 %v1077_v33 }
 0x269   :  { %v674_v42 = vpop.f32.mrf.mxu0  ;;  %v715_v43 = vpop.f32.mrf.mxu1 }
 0x26a   :  { %v3887_v44 = vadd.f32 %v715_v43, %v674_v42 }
 0x26b   :  { %v676_v45 = vpop.f32.mrf.mxu0  ;;  %v717_v46 = vpop.f32.mrf.mxu1 }
 0x26c   :  { %v3889_v47 = vadd.f32 %v717_v46, %v676_v45  ;;  %v1122_v45 = vunpack.c.l.s8.bf16 %v3881_v38  ;;  %v1186_v46 = vunpack.c.l.s8.bf16 %v3883_v39 }
 0x26d   :  { %v678_v48 = vpop.f32.mrf.mxu0  ;;  %v719_v49 = vpop.f32.mrf.mxu1 }
 0x26e   :  { %v1042_v48 = vld [vmem:[#allocation20 + $0x58] sm:$0xff] }
 0x26f   :  { %v679_v50 = vpop.f32.mrf.mxu0  ;;  %v720_v51 = vpop.f32.mrf.mxu1  ;;  %v1074_v49 = vld [vmem:[#allocation20 + $0x158] sm:$0xff] }
 0x270   :  { %v1121_v50 = vunpack.c.l.s8.bf16 %v1045_v32  ;;  %v1185_v51 = vunpack.c.l.s8.bf16 %v1077_v33  ;;  %v1061_v32 = vld [vmem:[#allocation20 + $0xf0] sm:$0xff] }
 0x271   :  { %v1093_v33 = vld [vmem:[#allocation20 + $0x1f0] sm:$0xff] }
 0x2a9   :  { %v756_v55 = vpop.f32.mrf.mxu0  ;;  %v797_v56 = vpop.f32.mrf.mxu1 }
 0x2aa   :  { %v3891_v52 = vadd.f32 %v797_v56, %v756_v55  ;;  %v1118_v55 = vunpack.c.h.s8.bf16 %v1042_v48  ;;  %v1182_v56 = vunpack.c.h.s8.bf16 %v1074_v49 }
 0x2ab   :  { %v758_v53 = vpop.f32.mrf.mxu0  ;;  %v799_v54 = vpop.f32.mrf.mxu1 }
 0x2ac   :  { %v3893_v57 = vadd.f32 %v799_v54, %v758_v53  ;;  %v1041_v53 = vld [vmem:[#allocation20 + $0x50] sm:$0xff] }
 0x2ad   :  { %v760_v58 = vpop.f32.mrf.mxu0  ;;  %v801_v59 = vpop.f32.mrf.mxu1  ;;  %v1073_v54 = vld [vmem:[#allocation20 + $0x150] sm:$0xff]  ;;  %v1117_v38 = vunpack.c.h.s8.bf16 %v1041_v53  ;;  %v1113_v1 = vunpack.c.l.s8.bf16 %v1041_v53 }
 0x2ae   :  { %v1181_v39 = vunpack.c.h.s8.bf16 %v1073_v54  ;;  %v1114_v58 = vunpack.c.l.s8.bf16 %v1042_v48  ;;  %v1178_v59 = vunpack.c.l.s8.bf16 %v1074_v49  ;;  %v1177_v62 = vunpack.c.l.s8.bf16 %v1073_v54 }
 0x2af   :  { %v761_v60 = vpop.f32.mrf.mxu0  ;;  %v802_v61 = vpop.f32.mrf.mxu1 }
 0x2b0   :  { %v1038_v60 = vld [vmem:[#allocation20 + $0x38] sm:$0xff] }
 0x2b1   :  { %v1070_v61 = vld [vmem:[#allocation20 + $0x138] sm:$0xff] }
 0x2b9   :  { %v923_v6 = vpop.f32.mrf.mxu0  ;;  %v964_v7 = vpop.f32.mrf.mxu1 }
 0x2ba   :  { %v993_v8 = vmul.f32 %v976_v63, %v923_v6  ;;  %v995_v9 = vmul.f32 %v984_v0, %v964_v7  ;;  %v1110_v63 = vunpack.c.h.s8.bf16 %v1038_v60  ;;  %v1174_v0 = vunpack.c.h.s8.bf16 %v1070_v61 }
 0x2bb   :  { %v925_v12 = vpop.f32.mrf.mxu0  ;;  %v966_v17 = vpop.f32.mrf.mxu1  ;;  %v1106_v6 = vunpack.c.l.s8.bf16 %v1038_v60  ;;  %v1170_v7 = vunpack.c.l.s8.bf16 %v1070_v61 }
 0x2bc   :  { %v1019_v20 = vadd.f32 %v1002_v2, %v993_v8  ;;  %v1021_v21 = vadd.f32 %v1010_v3, %v995_v9  ;;  %v994_v22 = vmul.f32 %v980_v4, %v925_v12  ;;  %v996_v23 = vmul.f32 %v988_v5, %v966_v17  ;;  %v1037_v2 = vld [vmem:[#allocation20 + $0x30] sm:$0xff]  ;;  %v1034_v8 = vld [vmem:[#allocation20 + $0x18] sm:$0xff] }
 0x2bd   :  { %v927_v24 = vpop.f32.mrf.mxu0  ;;  %v968_v25 = vpop.f32.mrf.mxu1  ;;  %v1069_v3 = vld [vmem:[#allocation20 + $0x130] sm:$0xff]  ;;  %v1109_v4 = vunpack.c.h.s8.bf16 %v1037_v2  ;;  %v1066_v9 = vld [vmem:[#allocation20 + $0x118] sm:$0xff]  ;;  %v1102_v12 = vunpack.c.h.s8.bf16 %v1034_v8 }
 0x2be   :  { %v1020_v26 = vadd.f32 %v1006_v10, %v994_v22  ;;  %v1022_v27 = vadd.f32 %v1014_v11, %v996_v23  ;;  %v1023_v28 = vmax.f32 %v1019_v20, 0.0  ;;  %v1025_v29 = vmax.f32 %v1021_v21, 0.0  ;;  %v1033_v20 = vld [vmem:[#allocation20 + $0x10] sm:$0xff] }
 0x2bf   :  { %v928_v30 = vpop.f32.mrf.mxu0  ;;  %v969_v31 = vpop.f32.mrf.mxu1  ;;  %v1173_v5 = vunpack.c.h.s8.bf16 %v1069_v3  ;;  %v1105_v10 = vunpack.c.l.s8.bf16 %v1037_v2  ;;  %v1169_v11 = vunpack.c.l.s8.bf16 %v1069_v3  ;;  %v1166_v17 = vunpack.c.h.s8.bf16 %v1066_v9  ;;  %v1065_v21 = vld [vmem:[#allocation20 + $0x110] sm:$0xff] }
 0x2c0   :  { %v1024_v34 = vmax.f32 %v1020_v26, 0.0  ;;  %v1026_v35 = vmax.f32 %v1022_v27, 0.0  ;;  %v3906_v42 = vpack.c.bf16 %v1023_v28, %v1023_v28  ;;  %v3908_v43 = vpack.c.bf16 %v1025_v29, %v1025_v29  ;;  %v1062_v26 = vld [vmem:[#allocation20 + $0xf8] sm:$0xff] }
 0x2c1   :  { %v1101_v22 = vunpack.c.h.s8.bf16 %v1033_v20  ;;  %v1165_v23 = vunpack.c.h.s8.bf16 %v1065_v21  ;;  %v1098_v24 = vunpack.c.l.s8.bf16 %v1034_v8  ;;  %v1162_v25 = vunpack.c.l.s8.bf16 %v1066_v9  ;;  %v1094_v27 = vld [vmem:[#allocation20 + $0x1f8] sm:$0xff] }
 0x2c2   :  { %v1028_v36 = vpack.c.bf16 %v1024_v34, %v1024_v34  ;;  %v1030_v37 = vpack.c.bf16 %v1026_v35, %v1026_v35  ;;  %v1097_v28 = vunpack.c.l.s8.bf16 %v1033_v20  ;;  %v1161_v29 = vunpack.c.l.s8.bf16 %v1065_v21 }
 0x2c3   :  { %v1158_v30 = vunpack.c.h.s8.bf16 %v1062_v26  ;;  %v1222_v31 = vunpack.c.h.s8.bf16 %v1094_v27  ;;  %v1157_v34 = vunpack.c.h.s8.bf16 %v1061_v32  ;;  %v1221_v35 = vunpack.c.h.s8.bf16 %v1093_v33 }
 0x2c4   :  { %1255 = vmatprep.mubr.bf16.mxu0 %v1028_v36  ;;  %1296 = vmatprep.mubr.bf16.mxu1 %v1030_v37 }
 0x2c5   :  { %1256 = vmatmul.mubr.bf16.vlgmr.msra.gmra.mxu0 %v3906_v42  ;;  %1297 = vmatmul.mubr.bf16.vlgmr.msra.gmra.mxu1 %v3908_v43 }
 0x2c6   :  { %1306 = vmatpush1.bf16.msra.mxu0 %v1125_v40  ;;  %1347 = vmatpush1.bf16.msra.mxu1 %v1189_v41  ;;  %v1058_v40 = vld [vmem:[#allocation20 + $0xd8] sm:$0xff] }
 0x2c7   :  { %1337 = vmatprep.mubr.bf16.mxu0 %v1028_v36  ;;  %1378 = vmatprep.mubr.bf16.mxu1 %v1030_v37  ;;  %v1154_v36 = vunpack.c.l.s8.bf16 %v1062_v26  ;;  %v1218_v37 = vunpack.c.l.s8.bf16 %v1094_v27  ;;  %v1090_v41 = vld [vmem:[#allocation20 + $0x1d8] sm:$0xff]  ;;  %v1150_v48 = vunpack.c.h.s8.bf16 %v1058_v40  ;;  %v1146_v53 = vunpack.c.l.s8.bf16 %v1058_v40  ;;  %v1859_v26 = vld [vmem:[#allocation24 + $0xc0] sm:$0xff] }
 0x2c8   :  { %1307 = vmatprep.subr.bf16.mxu0 %v1122_v45  ;;  %1348 = vmatprep.subr.bf16.mxu1 %v1186_v46  ;;  %v1153_v45 = vunpack.c.l.s8.bf16 %v1061_v32  ;;  %v1217_v46 = vunpack.c.l.s8.bf16 %v1093_v33  ;;  %v1214_v49 = vunpack.c.h.s8.bf16 %v1090_v41  ;;  %v1210_v54 = vunpack.c.l.s8.bf16 %v1090_v41  ;;  %v1851_v32 = vld [vmem:[#allocation24 + $0x80] sm:$0xff]  ;;  %v1924_v41 = vld [vmem:[#allocation24 + $0x2c8] sm:$0xff] }
 0x2c9   :  { %v2019_v27 = vunpack.c.h.s8.bf16 %v1859_v26  ;;  %v2003_v33 = vunpack.c.h.s8.bf16 %v1851_v32  ;;  %v1843_v40 = vld [vmem:[#allocation24 + $0x40] sm:$0xff] }
 0x2ca   :  { %1308 = vmatpush1.bf16.msra.mxu0 %v1121_v50  ;;  %1349 = vmatpush1.bf16.msra.mxu1 %v1185_v51  ;;  %v1057_v50 = vld [vmem:[#allocation20 + $0xd0] sm:$0xff] }
 0x2cb   :  { %1309 = vmatprep.subr.bf16.mxu0 %v1118_v55  ;;  %1350 = vmatprep.subr.bf16.mxu1 %v1182_v56  ;;  %v1089_v51 = vld [vmem:[#allocation20 + $0x1d0] sm:$0xff]  ;;  %v1149_v55 = vunpack.c.h.s8.bf16 %v1057_v50 }
 0x2cc   :  { %v1213_v56 = vunpack.c.h.s8.bf16 %v1089_v51 }
 0x2ce   :  { %1310 = vmatpush1.bf16.msra.mxu0 %v1117_v38  ;;  %1351 = vmatpush1.bf16.msra.mxu1 %v1181_v39  ;;  %v1054_v38 = vld [vmem:[#allocation20 + $0xb8] sm:$0xff] }
 0x2cf   :  { %1311 = vmatprep.subr.bf16.mxu0 %v1114_v58  ;;  %1352 = vmatprep.subr.bf16.mxu1 %v1178_v59  ;;  %v1086_v39 = vld [vmem:[#allocation20 + $0x1b8] sm:$0xff]  ;;  %v1145_v58 = vunpack.c.l.s8.bf16 %v1057_v50  ;;  %v1209_v59 = vunpack.c.l.s8.bf16 %v1089_v51  ;;  %v1142_v60 = vunpack.c.h.s8.bf16 %v1054_v38  ;;  %v1138_v2 = vunpack.c.l.s8.bf16 %v1054_v38 }
 0x2d0   :  { %v1206_v61 = vunpack.c.h.s8.bf16 %v1086_v39  ;;  %v1202_v3 = vunpack.c.l.s8.bf16 %v1086_v39  ;;  %v2140_v50 = vunpack.c.l.s8.bf16 %v1924_v41  ;;  %v1915_v39 = vld [vmem:[#allocation24 + $0x280] sm:$0xff] }
 0x2d2   :  { %1312 = vmatpush1.bf16.msra.mxu0 %v1113_v1  ;;  %1353 = vmatpush1.bf16.msra.mxu1 %v1177_v62  ;;  %v1053_v1 = vld [vmem:[#allocation20 + $0xb0] sm:$0xff] }
 0x2d3   :  { %1313 = vmatprep.subr.bf16.mxu0 %v1110_v63  ;;  %1354 = vmatprep.subr.bf16.mxu1 %v1174_v0  ;;  %v1085_v62 = vld [vmem:[#allocation20 + $0x1b0] sm:$0xff]  ;;  %v1141_v63 = vunpack.c.h.s8.bf16 %v1053_v1 }
 0x2d4   :  { %v1205_v0 = vunpack.c.h.s8.bf16 %v1085_v62 }
 0x2d6   :  { %1314 = vmatpush1.bf16.msra.mxu0 %v1109_v4  ;;  %1355 = vmatpush1.bf16.msra.mxu1 %v1173_v5  ;;  %v1050_v4 = vld [vmem:[#allocation20 + $0x98] sm:$0xff] }
 0x2d7   :  { %1315 = vmatprep.subr.bf16.mxu0 %v1106_v6  ;;  %1356 = vmatprep.subr.bf16.mxu1 %v1170_v7  ;;  %v1082_v5 = vld [vmem:[#allocation20 + $0x198] sm:$0xff]  ;;  %v1137_v6 = vunpack.c.l.s8.bf16 %v1053_v1  ;;  %v1201_v7 = vunpack.c.l.s8.bf16 %v1085_v62  ;;  %v1134_v8 = vunpack.c.h.s8.bf16 %v1050_v4  ;;  %v1130_v20 = vunpack.c.l.s8.bf16 %v1050_v4 }
 0x2d8   :  { %v1198_v9 = vunpack.c.h.s8.bf16 %v1082_v5  ;;  %v1194_v21 = vunpack.c.l.s8.bf16 %v1082_v5  ;;  %v2123_v62 = vunpack.c.l.s8.bf16 %v1915_v39  ;;  %v1907_v5 = vld [vmem:[#allocation24 + $0x240] sm:$0xff] }
 0x2da   :  { %1316 = vmatpush1.bf16.msra.mxu0 %v1105_v10  ;;  %1357 = vmatpush1.bf16.msra.mxu1 %v1169_v11  ;;  %v1049_v10 = vld [vmem:[#allocation20 + $0x90] sm:$0xff] }
 0x2db   :  { %1317 = vmatprep.subr.bf16.mxu0 %v1102_v12  ;;  %1358 = vmatprep.subr.bf16.mxu1 %v1166_v17  ;;  %v1081_v11 = vld [vmem:[#allocation20 + $0x190] sm:$0xff]  ;;  %v1133_v12 = vunpack.c.h.s8.bf16 %v1049_v10 }
 0x2dc   :  { %v1197_v17 = vunpack.c.h.s8.bf16 %v1081_v11 }
 0x2de   :  { %1318 = vmatpush1.bf16.msra.mxu0 %v1101_v22  ;;  %1359 = vmatpush1.bf16.msra.mxu1 %v1165_v23  ;;  %v1860_v22 = vld [vmem:[#allocation24 + $0xc8] sm:$0xff]  ;;  %v1129_v23 = vunpack.c.l.s8.bf16 %v1049_v10 }
 0x2df   :  { %1319 = vmatprep.subr.bf16.mxu0 %v1098_v24  ;;  %1360 = vmatprep.subr.bf16.mxu1 %v1162_v25  ;;  %v1193_v24 = vunpack.c.l.s8.bf16 %v1081_v11  ;;  %v2020_v25 = vunpack.c.h.s8.bf16 %v1860_v22  ;;  %v2107_v11 = vunpack.c.l.s8.bf16 %v1907_v5 }
 0x2e2   :  { %1320 = vmatpush1.bf16.msra.mxu0 %v1097_v28  ;;  %1361 = vmatpush1.bf16.msra.mxu1 %v1161_v29  ;;  %v2012_v28 = vunpack.c.l.s8.bf16 %v1860_v22  ;;  %v1852_v29 = vld [vmem:[#allocation24 + $0x88] sm:$0xff] }
 0x2e3   :  { %1321 = vmatprep.subr.bf16.mxu0 %v1158_v30  ;;  %1362 = vmatprep.subr.bf16.mxu1 %v1222_v31  ;;  %v2011_v30 = vunpack.c.l.s8.bf16 %v1859_v26  ;;  %v2004_v31 = vunpack.c.h.s8.bf16 %v1852_v29 }
 0x2e6   :  { %1322 = vmatpush2.bf16.msra.mxu0 %v1157_v34  ;;  %1363 = vmatpush2.bf16.msra.mxu1 %v1221_v35  ;;  %v1996_v34 = vunpack.c.l.s8.bf16 %v1852_v29  ;;  %v1844_v35 = vld [vmem:[#allocation24 + $0x48] sm:$0xff] }
 0x2e7   :  { %1323 = vmatprep.subr.bf16.mxu0 %v1154_v36  ;;  %1364 = vmatprep.subr.bf16.mxu1 %v1218_v37  ;;  %v1995_v36 = vunpack.c.l.s8.bf16 %v1851_v32  ;;  %v1988_v37 = vunpack.c.h.s8.bf16 %v1844_v35  ;;  %v1875_v32 = vld [vmem:[#allocation24 + $0x140] sm:$0xff] }
 0x2ea   :  { %1324 = vmatpush2.bf16.msra.mxu0 %v1153_v45  ;;  %1365 = vmatpush2.bf16.msra.mxu1 %v1217_v46  ;;  %v2148_v45 = vunpack.c.h.s8.bf16 %v1924_v41  ;;  %v1868_v41 = vld [vmem:[#allocation24 + $0x108] sm:$0xff] }
 0x2eb   :  { %1325 = vmatprep.subr.bf16.mxu0 %v1150_v48  ;;  %1366 = vmatprep.subr.bf16.mxu1 %v1214_v49  ;;  %v1980_v48 = vunpack.c.l.s8.bf16 %v1844_v35  ;;  %v1836_v49 = vld [vmem:[#allocation24 + $0x8] sm:$0xff]  ;;  %v1955_v35 = vld [vmem:[#allocation24 + $0x3c0] sm:$0xff] }
 0x2ee   :  { %1326 = vmatpush2.bf16.msra.mxu0 %v1149_v55  ;;  %1367 = vmatpush2.bf16.msra.mxu1 %v1213_v56  ;;  %v1979_v55 = vunpack.c.l.s8.bf16 %v1843_v40  ;;  %v1972_v56 = vunpack.c.h.s8.bf16 %v1836_v49 }
 0x2ef   :  { %1327 = vmatprep.subr.bf16.mxu0 %v1146_v53  ;;  %1368 = vmatprep.subr.bf16.mxu1 %v1210_v54  ;;  %v1835_v53 = vld [vmem:[#allocation24] sm:$0xff]  ;;  %v1916_v54 = vld [vmem:[#allocation24 + $0x288] sm:$0xff] }
 0x2f0   :  { %v2132_v38 = vunpack.c.h.s8.bf16 %v1916_v54  ;;  %v2124_v1 = vunpack.c.l.s8.bf16 %v1916_v54  ;;  %v3916_v54 = vld [vmem:[#allocation24 + $0xd8] sm:$0xff] }
 0x2f2   :  { %1328 = vmatpush2.bf16.msra.mxu0 %v1145_v58  ;;  %1369 = vmatpush2.bf16.msra.mxu1 %v1209_v59  ;;  %v2131_v58 = vunpack.c.h.s8.bf16 %v1915_v39  ;;  %v1971_v59 = vunpack.c.h.s8.bf16 %v1835_v53 }
 0x2f3   :  { %1329 = vmatprep.subr.bf16.mxu0 %v1142_v60  ;;  %1370 = vmatprep.subr.bf16.mxu1 %v1206_v61  ;;  %v1964_v60 = vunpack.c.l.s8.bf16 %v1836_v49  ;;  %v1892_v61 = vld [vmem:[#allocation24 + $0x1c8] sm:$0xff] }
 0x2f4   :  { %v1948_v49 = vld [vmem:[#allocation24 + $0x388] sm:$0xff] }
 0x2f6   :  { %1330 = vmatpush2.bf16.msra.mxu0 %v1141_v63  ;;  %1371 = vmatpush2.bf16.msra.mxu1 %v1205_v0  ;;  %v1963_v63 = vunpack.c.l.s8.bf16 %v1835_v53  ;;  %v2084_v0 = vunpack.c.h.s8.bf16 %v1892_v61  ;;  %v2028_v53 = vunpack.c.l.s8.bf16 %v1868_v41 }
 0x2f7   :  { %1331 = vmatprep.subr.bf16.mxu0 %v1138_v2  ;;  %1372 = vmatprep.subr.bf16.mxu1 %v1202_v3  ;;  %v1891_v2 = vld [vmem:[#allocation24 + $0x1c0] sm:$0xff]  ;;  %v1908_v3 = vld [vmem:[#allocation24 + $0x248] sm:$0xff] }
 0x2f8   :  { %v2116_v4 = vunpack.c.h.s8.bf16 %v1908_v3  ;;  %v2108_v10 = vunpack.c.l.s8.bf16 %v1908_v3 }
 0x2fa   :  { %1332 = vmatpush2.bf16.msra.mxu0 %v1137_v6  ;;  %1373 = vmatpush2.bf16.msra.mxu1 %v1201_v7  ;;  %v2115_v6 = vunpack.c.h.s8.bf16 %v1907_v5  ;;  %v2083_v7 = vunpack.c.h.s8.bf16 %v1891_v2 }
 0x2fb   :  { %1333 = vmatprep.subr.bf16.mxu0 %v1134_v8  ;;  %1374 = vmatprep.subr.bf16.mxu1 %v1198_v9  ;;  %v2076_v8 = vunpack.c.l.s8.bf16 %v1892_v61  ;;  %v1884_v9 = vld [vmem:[#allocation24 + $0x188] sm:$0xff] }
 0x2fc   :  { %v2060_v26 = vunpack.c.l.s8.bf16 %v1884_v9 }
 0x2fe   :  { %1334 = vmatpush2.bf16.msra.mxu0 %v1133_v12  ;;  %1375 = vmatpush2.bf16.msra.mxu1 %v1197_v17  ;;  %v2075_v12 = vunpack.c.l.s8.bf16 %v1891_v2  ;;  %v2068_v17 = vunpack.c.h.s8.bf16 %v1884_v9  ;;  %v1932_v2 = vld [vmem:[#allocation24 + $0x308] sm:$0xff] }
 0x2ff   :  { %1335 = vmatprep.subr.bf16.mxu0 %v1130_v20  ;;  %1376 = vmatprep.subr.bf16.mxu1 %v1194_v21  ;;  %v1883_v20 = vld [vmem:[#allocation24 + $0x180] sm:$0xff]  ;;  %v1900_v21 = vld [vmem:[#allocation24 + $0x208] sm:$0xff]  ;;  %v2164_v3 = vunpack.c.h.s8.bf16 %v1932_v2 }
 0x300   :  { %v2100_v22 = vunpack.c.h.s8.bf16 %v1900_v21 }
 0x302   :  { %1336 = vmatpush2.bf16.msra.mxu0 %v1129_v23  ;;  %1377 = vmatpush2.bf16.msra.mxu1 %v1193_v24  ;;  %v1899_v23 = vld [vmem:[#allocation24 + $0x200] sm:$0xff] }
 0x303   :  { %2219 = vmatprep.subr.bf16.mxu0 %v2020_v25  ;;  %2260 = vmatprep.subr.bf16.mxu1 %v2148_v45  ;;  %v2099_v24 = vunpack.c.h.s8.bf16 %v1899_v23  ;;  %v2067_v25 = vunpack.c.h.s8.bf16 %v1883_v20  ;;  %v2091_v29 = vunpack.c.l.s8.bf16 %v1899_v23 }
 0x305   :  { %1338 = vmatmul.mubr.bf16.vlgmr.msra.gmra.mxu0 %v3906_v42  ;;  %1379 = vmatmul.mubr.bf16.vlgmr.msra.gmra.mxu1 %v3908_v43  ;;  %v1923_v42 = vld [vmem:[#allocation24 + $0x2c0] sm:$0xff]  ;;  %v1987_v43 = vunpack.c.h.s8.bf16 %v1843_v40 }
 0x306   :  { %2220 = vmatpush1.bf16.msra.mxu0 %v2019_v27  ;;  %v2147_v46 = vunpack.c.h.s8.bf16 %v1923_v42  ;;  %v2139_v51 = vunpack.c.l.s8.bf16 %v1923_v42  ;;  %v1876_v27 = vld [vmem:[#allocation24 + $0x148] sm:$0xff]  ;;  %v2203_v42 = vunpack.c.l.s8.bf16 %v1955_v35 }
 0x307   :  { %2221 = vmatprep.subr.bf16.mxu0 %v2012_v28  ;;  %v2092_v28 = vunpack.c.l.s8.bf16 %v1900_v21  ;;  %v2044_v40 = vunpack.c.l.s8.bf16 %v1876_v27 }
 0x308   :  { %2261 = vmatpush1.bf16.msra.mxu1 %v2147_v46  ;;  %v2043_v46 = vunpack.c.l.s8.bf16 %v1875_v32 }
 0x309   :  { %2262 = vmatprep.subr.bf16.mxu1 %v2140_v50  ;;  %v2196_v50 = vunpack.c.h.s8.bf16 %v1948_v49 }
 0x30a   :  { %2222 = vmatpush1.bf16.msra.mxu0 %v2011_v30  ;;  %v2059_v30 = vunpack.c.l.s8.bf16 %v1883_v20 }
 0x30b   :  { %2223 = vmatprep.subr.bf16.mxu0 %v2004_v31  ;;  %v2052_v31 = vunpack.c.h.s8.bf16 %v1876_v27 }
 0x30c   :  { %2263 = vmatpush1.bf16.msra.mxu1 %v2139_v51  ;;  %v1947_v51 = vld [vmem:[#allocation24 + $0x380] sm:$0xff] }
 0x30d   :  { %2264 = vmatprep.subr.bf16.mxu1 %v2132_v38  ;;  %v2188_v38 = vunpack.c.l.s8.bf16 %v1948_v49  ;;  %v2187_v39 = vunpack.c.l.s8.bf16 %v1947_v51 }
 0x30e   :  { %2224 = vmatpush1.bf16.msra.mxu0 %v2003_v33  ;;  %v1956_v33 = vld [vmem:[#allocation24 + $0x3c8] sm:$0xff] }
 0x30f   :  { %2225 = vmatprep.subr.bf16.mxu0 %v1996_v34  ;;  %v2212_v34 = vunpack.c.h.s8.bf16 %v1956_v33  ;;  %v2204_v45 = vunpack.c.l.s8.bf16 %v1956_v33 }
 0x310   :  { %2265 = vmatpush1.bf16.msra.mxu1 %v2131_v58 }
 0x311   :  { %2266 = vmatprep.subr.bf16.mxu1 %v2124_v1  ;;  %v1939_v1 = vld [vmem:[#allocation24 + $0x340] sm:$0xff] }
 0x312   :  { %2226 = vmatpush1.bf16.msra.mxu0 %v1995_v36  ;;  %v2211_v36 = vunpack.c.h.s8.bf16 %v1955_v35 }
 0x313   :  { %2227 = vmatprep.subr.bf16.mxu0 %v1988_v37  ;;  %v2051_v37 = vunpack.c.h.s8.bf16 %v1875_v32 }
 0x314   :  { %2267 = vmatpush1.bf16.msra.mxu1 %v2123_v62  ;;  %v2179_v62 = vunpack.c.h.s8.bf16 %v1939_v1 }
 0x315   :  { %2268 = vmatprep.subr.bf16.mxu1 %v2116_v4  ;;  %v1931_v4 = vld [vmem:[#allocation24 + $0x300] sm:$0xff] }
 0x316   :  { %2228 = vmatpush1.bf16.msra.mxu0 %v1987_v43  ;;  %v2036_v43 = vunpack.c.h.s8.bf16 %v1868_v41  ;;  %v2163_v5 = vunpack.c.h.s8.bf16 %v1931_v4 }
 0x317   :  { %2229 = vmatprep.subr.bf16.mxu0 %v1980_v48  ;;  %v1867_v48 = vld [vmem:[#allocation24 + $0x100] sm:$0xff] }
 0x318   :  { %2269 = vmatpush1.bf16.msra.mxu1 %v2115_v6  ;;  %v2027_v58 = vunpack.c.l.s8.bf16 %v1867_v48  ;;  %v2156_v6 = vunpack.c.l.s8.bf16 %v1932_v2 }
 0x319   :  { %2270 = vmatprep.subr.bf16.mxu1 %v2108_v10  ;;  %v3922_v10 = vld [vmem:[#allocation21] sm:$0xf] }
 0x31a   :  { %2230 = vmatpush1.bf16.msra.mxu0 %v1979_v55  ;;  %v2195_v55 = vunpack.c.h.s8.bf16 %v1947_v51  ;;  %v1396_v23 = vrot.slane %v3922_v10, %v3856_v18 }
 0x31b   :  { %2231 = vmatprep.subr.bf16.mxu0 %v1972_v56  ;;  %v2035_v56 = vunpack.c.h.s8.bf16 %v1867_v48 }
 0x31c   :  { %2271 = vmatpush1.bf16.msra.mxu1 %v2107_v11  ;;  %v3927_v11 = vld [vmem:[%s4157_s13] sm:$0xf] }
 0x31d   :  { %2272 = vmatprep.subr.bf16.mxu1 %v2100_v22  ;;  %v1418_v22 = vrot.slane %v3927_v11, %v3850_v15 }
 0x31e   :  { %2232 = vmatpush1.bf16.msra.mxu0 %v1971_v59  ;;  %v2022_v59 = vunpack.c.h.s8.bf16 %v3916_v54 }
 0x31f   :  { %2233 = vmatprep.subr.bf16.mxu0 %v1964_v60  ;;  %v1940_v60 = vld [vmem:[#allocation24 + $0x348] sm:$0xff] }
 0x320   :  { %2273 = vmatpush1.bf16.msra.mxu1 %v2099_v24  ;;  %v2180_v61 = vunpack.c.h.s8.bf16 %v1940_v60 }
 0x321   :  { %2274 = vmatprep.subr.bf16.mxu1 %v2092_v28  ;;  %v1422_v28 = vrot.slane %v3927_v11, %v3856_v18 }
 0x322   :  { %2234 = vmatpush1.bf16.msra.mxu0 %v1963_v63  ;;  %v2172_v63 = vunpack.c.l.s8.bf16 %v1940_v60 }
 0x323   :  { %2235 = vmatprep.subr.bf16.mxu0 %v2084_v0  ;;  %v2171_v0 = vunpack.c.l.s8.bf16 %v1939_v1  ;;  %v1837_v1 = vld [vmem:[#allocation24 + $0x10] sm:$0xff] }
 0x324   :  { %2275 = vmatpush1.bf16.msra.mxu1 %v2091_v29  ;;  %v1965_v2 = vunpack.c.l.s8.bf16 %v1837_v1 }
 0x325   :  { %2276 = vmatprep.subr.bf16.mxu1 %v2212_v34 }
 0x326   :  { %2236 = vmatpush2.bf16.msra.mxu0 %v2083_v7  ;;  %v2155_v7 = vunpack.c.l.s8.bf16 %v1931_v4  ;;  %v1893_v4 = vld [vmem:[#allocation24 + $0x1d0] sm:$0xff] }
 0x327   :  { %2237 = vmatprep.subr.bf16.mxu0 %v2076_v8  ;;  %v3919_v8 = vld [vmem:[#allocation24 + $0x2d8] sm:$0xff] }
 0x328   :  { %2277 = vmatpush2.bf16.msra.mxu1 %v2211_v36  ;;  %v2150_v9 = vunpack.c.h.s8.bf16 %v3919_v8 }
 0x329   :  { %2278 = vmatprep.subr.bf16.mxu1 %v2204_v45 }
 0x32a   :  { %2238 = vmatpush2.bf16.msra.mxu0 %v2075_v12  ;;  %v1392_v12 = vrot.slane %v3922_v10, %v3850_v15 }
 0x32b   :  { %2239 = vmatprep.subr.bf16.mxu0 %v2068_v17 }
 0x32c   :  { %2279 = vmatpush2.bf16.msra.mxu1 %v2203_v42 }
 0x32d   :  { %2280 = vmatprep.subr.bf16.mxu1 %v2196_v50  ;;  %v1853_v50 = vld [vmem:[#allocation24 + $0x90] sm:$0xff] }
 0x32e   :  { %2240 = vmatpush2.bf16.msra.mxu0 %v2067_v25  ;;  %v2005_v51 = vunpack.c.h.s8.bf16 %v1853_v50 }
 0x32f   :  { %2241 = vmatprep.subr.bf16.mxu0 %v2060_v26 }
 0x330   :  { %2281 = vmatpush2.bf16.msra.mxu1 %v2195_v55 }
 0x331   :  { %2282 = vmatprep.subr.bf16.mxu1 %v2188_v38  ;;  %v1845_v38 = vld [vmem:[#allocation24 + $0x50] sm:$0xff] }
 0x332   :  { %2242 = vmatpush2.bf16.msra.mxu0 %v2059_v30  ;;  %v1981_v60 = vunpack.c.l.s8.bf16 %v1845_v38 }
 0x333   :  { %2243 = vmatprep.subr.bf16.mxu0 %v2052_v31 }
 0x334   :  { %2283 = vmatpush2.bf16.msra.mxu1 %v2187_v39  ;;  %v1989_v39 = vunpack.c.h.s8.bf16 %v1845_v38 }
 0x335   :  { %2284 = vmatprep.subr.bf16.mxu1 %v2180_v61 }
 0x336   :  { %2244 = vmatpush2.bf16.msra.mxu0 %v2051_v37  ;;  %v1861_v37 = vld [vmem:[#allocation24 + $0xd0] sm:$0xff] }
 0x337   :  { %2245 = vmatprep.subr.bf16.mxu0 %v2044_v40  ;;  %v2021_v45 = vunpack.c.h.s8.bf16 %v1861_v37  ;;  %v2013_v48 = vunpack.c.l.s8.bf16 %v1861_v37  ;;  %v1404_v37 = vrot.slane %v3922_v10, %v3859_v19 }
 0x338   :  { %2285 = vmatpush2.bf16.msra.mxu1 %v2179_v62  ;;  %v1973_v62 = vunpack.c.h.s8.bf16 %v1837_v1 }
 0x339   :  { %2286 = vmatprep.subr.bf16.mxu1 %v2172_v63 }
 0x33a   :  { %2246 = vmatpush2.bf16.msra.mxu0 %v2043_v46  ;;  %v2014_v46 = vunpack.c.l.s8.bf16 %v3916_v54 }
 0x33b   :  { %2247 = vmatprep.subr.bf16.mxu0 %v2036_v43  ;;  %v1854_v43 = vld [vmem:[#allocation24 + $0x98] sm:$0xff] }
 0x33c   :  { %2287 = vmatpush2.bf16.msra.mxu1 %v2171_v0  ;;  %v2006_v49 = vunpack.c.h.s8.bf16 %v1854_v43  ;;  %v1998_v55 = vunpack.c.l.s8.bf16 %v1854_v43  ;;  %v1894_v0 = vld [vmem:[#allocation24 + $0x1d8] sm:$0xff] }
 0x33d   :  { %2288 = vmatprep.subr.bf16.mxu1 %v2164_v3  ;;  %v2086_v3 = vunpack.c.h.s8.bf16 %v1894_v0 }
 0x33e   :  { %2248 = vmatpush2.bf16.msra.mxu0 %v2035_v56  ;;  %v1846_v56 = vld [vmem:[#allocation24 + $0x58] sm:$0xff] }
 0x33f   :  { %2249 = vmatprep.subr.bf16.mxu0 %v2028_v53  ;;  %v1997_v53 = vunpack.c.l.s8.bf16 %v1853_v50  ;;  %v1990_v54 = vunpack.c.h.s8.bf16 %v1846_v56 }
 0x340   :  { %2289 = vmatpush2.bf16.msra.mxu1 %v2163_v5  ;;  %v2085_v5 = vunpack.c.h.s8.bf16 %v1893_v4 }
 0x341   :  { %2290 = vmatprep.subr.bf16.mxu1 %v2156_v6  ;;  %v2078_v6 = vunpack.c.l.s8.bf16 %v1894_v0 }
 0x342   :  { %2250 = vmatpush2.bf16.msra.mxu0 %v2027_v58  ;;  %v1982_v58 = vunpack.c.l.s8.bf16 %v1846_v56 }
 0x343   :  { %2301 = vmatprep.subr.bf16.mxu0 %v2022_v59  ;;  %v1838_v59 = vld [vmem:[#allocation24 + $0x18] sm:$0xff] }
 0x344   :  { %2291 = vmatpush2.bf16.msra.mxu1 %v2155_v7  ;;  %v1974_v61 = vunpack.c.h.s8.bf16 %v1838_v59  ;;  %v1966_v63 = vunpack.c.l.s8.bf16 %v1838_v59  ;;  %v1886_v7 = vld [vmem:[#allocation24 + $0x198] sm:$0xff] }
 0x345   :  { %2342 = vmatprep.subr.bf16.mxu1 %v2150_v9  ;;  %v2077_v9 = vunpack.c.l.s8.bf16 %v1893_v4 }
 0x385   :  { %v1257_v17 = vpop.f32.mrf.mxu0  ;;  %v1298_v20 = vpop.f32.mrf.mxu1 }
 0x386   :  { %v1299_v21 = vadd.f32 %v1298_v20, %v1257_v17  ;;  %v1885_v17 = vld [vmem:[#allocation24 + $0x190] sm:$0xff] }
 0x387   :  { %v1259_v24 = vpop.f32.mrf.mxu0  ;;  %v1300_v25 = vpop.f32.mrf.mxu1  ;;  %v2069_v20 = vunpack.c.h.s8.bf16 %v1885_v17 }
 0x388   :  { %v1409_v26 = vmul.f32 %v1392_v12, %v1299_v21  ;;  %v1301_v27 = vadd.f32 %v1300_v25, %v1259_v24  ;;  %v2070_v12 = vunpack.c.h.s8.bf16 %v1886_v7  ;;  %v2062_v21 = vunpack.c.l.s8.bf16 %v1886_v7  ;;  %v1877_v25 = vld [vmem:[#allocation24 + $0x150] sm:$0xff] }
 0x389   :  { %v1261_v29 = vpop.f32.mrf.mxu0  ;;  %v1302_v30 = vpop.f32.mrf.mxu1 }
 0x38a   :  { %v1435_v31 = vadd.f32 %v1418_v22, %v1409_v26  ;;  %v1410_v32 = vmul.f32 %v1396_v23, %v1301_v27  ;;  %v1878_v22 = vld [vmem:[#allocation24 + $0x158] sm:$0xff]  ;;  %v2061_v23 = vunpack.c.l.s8.bf16 %v1885_v17  ;;  %v2053_v26 = vunpack.c.h.s8.bf16 %v1877_v25  ;;  %v1917_v17 = vld [vmem:[#allocation24 + $0x290] sm:$0xff] }
 0x38b   :  { %v1262_v33 = vpop.f32.mrf.mxu0  ;;  %v1303_v34 = vpop.f32.mrf.mxu1  ;;  %v2054_v24 = vunpack.c.h.s8.bf16 %v1878_v22  ;;  %v2046_v27 = vunpack.c.l.s8.bf16 %v1878_v22  ;;  %v1400_v29 = vrot.slane %v3922_v10, %v3853_v16  ;;  %v2045_v30 = vunpack.c.l.s8.bf16 %v1877_v25  ;;  %v1910_v25 = vld [vmem:[#allocation24 + $0x258] sm:$0xff] }
 0x38c   :  { %v1436_v35 = vadd.f32 %v1422_v28, %v1410_v32  ;;  %v1439_v36 = vmax.f32 %v1435_v31, 0.0  ;;  %v1870_v28 = vld [vmem:[#allocation24 + $0x118] sm:$0xff]  ;;  %v1869_v34 = vld [vmem:[#allocation24 + $0x110] sm:$0xff] }
 0x38d   :  { %v2038_v33 = vunpack.c.h.s8.bf16 %v1870_v28  ;;  %v2029_v10 = vunpack.c.l.s8.bf16 %v1869_v34 }
 0x38e   :  { %v1440_v40 = vmax.f32 %v1436_v35, 0.0  ;;  %v3939_v42 = vpack.c.bf16 %v1439_v36, %v1439_v36  ;;  %v1426_v36 = vrot.slane %v3927_v11, %v3853_v16 }
 0x390   :  { %v3937_v41 = vpack.c.bf16 %v1440_v40, %v1440_v40 }
 0x392   :  { %2251 = vmatprep.mubr.bf16.mxu0 %v3937_v41 }
 0x393   :  { %2252 = vmatmul.mubr.bf16.vlgmr.msra.gmra.mxu0 %v3939_v42 }
 0x394   :  { %2302 = vmatpush1.bf16.msra.mxu0 %v2021_v45  ;;  %2333 = vmatprep.mubr.bf16.mxu0 %v3937_v41 }
 0x395   :  { %2303 = vmatprep.subr.bf16.mxu0 %v2014_v46 }
 0x398   :  { %2304 = vmatpush1.bf16.msra.mxu0 %v2013_v48  ;;  %v1430_v48 = vrot.slane %v3927_v11, %v3859_v19  ;;  %v1863_v11 = vld [vmem:[#allocation24 + $0xe0] sm:$0xff] }
 0x399   :  { %2305 = vmatprep.subr.bf16.mxu0 %v2006_v49  ;;  %v2037_v49 = vunpack.c.h.s8.bf16 %v1869_v34 }
 0x39c   :  { %2306 = vmatpush1.bf16.msra.mxu0 %v2005_v51 }
 0x39d   :  { %2307 = vmatprep.subr.bf16.mxu0 %v1998_v55  ;;  %v2030_v55 = vunpack.c.l.s8.bf16 %v1870_v28 }
 0x3a0   :  { %2308 = vmatpush1.bf16.msra.mxu0 %v1997_v53 }
 0x3a1   :  { %2309 = vmatprep.subr.bf16.mxu0 %v1990_v54  ;;  %v1864_v54 = vld [vmem:[#allocation24 + $0xe8] sm:$0xff] }
 0x3a2   :  { %v2016_v4 = vunpack.c.l.s8.bf16 %v1864_v54 }
 0x3a4   :  { %2310 = vmatpush1.bf16.msra.mxu0 %v1989_v39 }
 0x3a5   :  { %2311 = vmatprep.subr.bf16.mxu0 %v1982_v58 }
 0x3a8   :  { %2312 = vmatpush1.bf16.msra.mxu0 %v1981_v60  ;;  %v1925_v60 = vld [vmem:[#allocation24 + $0x2d0] sm:$0xff] }
 0x3a9   :  { %2313 = vmatprep.subr.bf16.mxu0 %v1974_v61  ;;  %v2024_v61 = vunpack.c.h.s8.bf16 %v1864_v54  ;;  %v2141_v7 = vunpack.c.l.s8.bf16 %v1925_v60  ;;  %v1958_v54 = vld [vmem:[#allocation24 + $0x3d8] sm:$0xff] }
 0x3ac   :  { %2314 = vmatpush1.bf16.msra.mxu0 %v1973_v62 }
 0x3ad   :  { %2315 = vmatprep.subr.bf16.mxu0 %v1966_v63  ;;  %v2149_v63 = vunpack.c.h.s8.bf16 %v1925_v60 }
 0x3b0   :  { %2316 = vmatpush1.bf16.msra.mxu0 %v1965_v2  ;;  %v2023_v2 = vunpack.c.h.s8.bf16 %v1863_v11 }
 0x3b1   :  { %2317 = vmatprep.subr.bf16.mxu0 %v2086_v3  ;;  %v2142_v3 = vunpack.c.l.s8.bf16 %v3919_v8 }
 0x3b4   :  { %2318 = vmatpush2.bf16.msra.mxu0 %v2085_v5  ;;  %v1918_v5 = vld [vmem:[#allocation24 + $0x298] sm:$0xff] }
 0x3b5   :  { %2319 = vmatprep.subr.bf16.mxu0 %v2078_v6  ;;  %v1856_v6 = vld [vmem:[#allocation24 + $0xa8] sm:$0xff] }
 0x3b6   :  { %v2008_v8 = vunpack.c.h.s8.bf16 %v1856_v6 }
 0x3b8   :  { %2320 = vmatpush2.bf16.msra.mxu0 %v2077_v9  ;;  %v2015_v9 = vunpack.c.l.s8.bf16 %v1863_v11 }
 0x3b9   :  { %2321 = vmatprep.subr.bf16.mxu0 %v2070_v12  ;;  %v2134_v12 = vunpack.c.h.s8.bf16 %v1918_v5 }
 0x3bc   :  { %2322 = vmatpush2.bf16.msra.mxu0 %v2069_v20  ;;  %v1855_v20 = vld [vmem:[#allocation24 + $0xa0] sm:$0xff] }
 0x3bd   :  { %2323 = vmatprep.subr.bf16.mxu0 %v2062_v21  ;;  %v2133_v21 = vunpack.c.h.s8.bf16 %v1917_v17  ;;  %v2007_v22 = vunpack.c.h.s8.bf16 %v1855_v20  ;;  %v1999_v28 = vunpack.c.l.s8.bf16 %v1855_v20 }
 0x3c0   :  { %2324 = vmatpush2.bf16.msra.mxu0 %v2061_v23  ;;  %v2126_v23 = vunpack.c.l.s8.bf16 %v1918_v5 }
 0x3c1   :  { %2325 = vmatprep.subr.bf16.mxu0 %v2054_v24  ;;  %v2000_v24 = vunpack.c.l.s8.bf16 %v1856_v6 }
 0x3c4   :  { %2326 = vmatpush2.bf16.msra.mxu0 %v2053_v26  ;;  %v1848_v26 = vld [vmem:[#allocation24 + $0x68] sm:$0xff] }
 0x3c5   :  { %v1339_v31 = vpop.f32.mrf.mxu0  ;;  %v1380_v32 = vpop.f32.mrf.mxu1  ;;  %2327 = vmatprep.subr.bf16.mxu0 %v2046_v27  ;;  %v2125_v27 = vunpack.c.l.s8.bf16 %v1917_v17  ;;  %v1887_v17 = vld [vmem:[#allocation24 + $0x1a0] sm:$0xff] }
 0x3c6   :  { %v1381_v35 = vadd.f32 %v1380_v32, %v1339_v31  ;;  %v1992_v31 = vunpack.c.h.s8.bf16 %v1848_v26  ;;  %v1847_v32 = vld [vmem:[#allocation24 + $0x60] sm:$0xff]  ;;  %v2071_v20 = vunpack.c.h.s8.bf16 %v1887_v17 }
 0x3c7   :  { %v1341_v40 = vpop.f32.mrf.mxu0  ;;  %v1382_v45 = vpop.f32.mrf.mxu1  ;;  %v1991_v34 = vunpack.c.h.s8.bf16 %v1847_v32 }
 0x3c8   :  { %v1411_v46 = vmul.f32 %v1400_v29, %v1381_v35  ;;  %v1383_v43 = vadd.f32 %v1382_v45, %v1341_v40  ;;  %2328 = vmatpush2.bf16.msra.mxu0 %v2045_v30  ;;  %v2118_v29 = vunpack.c.h.s8.bf16 %v1910_v25  ;;  %v1909_v30 = vld [vmem:[#allocation24 + $0x250] sm:$0xff]  ;;  %v2110_v35 = vunpack.c.l.s8.bf16 %v1910_v25  ;;  %v1840_v40 = vld [vmem:[#allocation24 + $0x28] sm:$0xff] }
 0x3c9   :  { %v1343_v50 = vpop.f32.mrf.mxu0  ;;  %v1384_v51 = vpop.f32.mrf.mxu1  ;;  %2329 = vmatprep.subr.bf16.mxu0 %v2038_v33  ;;  %v2117_v33 = vunpack.c.h.s8.bf16 %v1909_v30  ;;  %v2109_v45 = vunpack.c.l.s8.bf16 %v1909_v30  ;;  %v1879_v30 = vld [vmem:[#allocation24 + $0x160] sm:$0xff] }
 0x3ca   :  { %v1437_v56 = vadd.f32 %v1426_v36, %v1411_v46  ;;  %v1412_v53 = vmul.f32 %v1404_v37, %v1383_v43  ;;  %v1984_v36 = vunpack.c.l.s8.bf16 %v1848_v26  ;;  %v1902_v37 = vld [vmem:[#allocation24 + $0x218] sm:$0xff]  ;;  %v1983_v46 = vunpack.c.l.s8.bf16 %v1847_v32  ;;  %v1839_v50 = vld [vmem:[#allocation24 + $0x20] sm:$0xff] }
 0x3cb   :  { %v1344_v38 = vpop.f32.mrf.mxu0  ;;  %v1385_v39 = vpop.f32.mrf.mxu1  ;;  %v2102_v43 = vunpack.c.h.s8.bf16 %v1902_v37  ;;  %v2063_v26 = vunpack.c.l.s8.bf16 %v1887_v17  ;;  %v2055_v32 = vunpack.c.h.s8.bf16 %v1879_v30 }
 0x3cc   :  { %v1438_v58 = vadd.f32 %v1430_v48, %v1412_v53  ;;  %2330 = vmatpush2.bf16.msra.mxu0 %v2037_v49  ;;  %v1441_v59 = vmax.f32 %v1437_v56, 0.0  ;;  %v1901_v48 = vld [vmem:[#allocation24 + $0x210] sm:$0xff]  ;;  %v1976_v49 = vunpack.c.h.s8.bf16 %v1840_v40  ;;  %v2094_v56 = vunpack.c.l.s8.bf16 %v1902_v37  ;;  %v1896_v38 = vld [vmem:[#allocation24 + $0x1e8] sm:$0xff] }
 0x3cd   :  { %2331 = vmatprep.subr.bf16.mxu0 %v2030_v55  ;;  %v2101_v51 = vunpack.c.h.s8.bf16 %v1901_v48  ;;  %v1975_v55 = vunpack.c.h.s8.bf16 %v1839_v50  ;;  %v1968_v53 = vunpack.c.l.s8.bf16 %v1840_v40  ;;  %v2093_v39 = vunpack.c.l.s8.bf16 %v1901_v48  ;;  %v1871_v48 = vld [vmem:[#allocation24 + $0x120] sm:$0xff] }
 0x3ce   :  { %v1442_v1 = vmax.f32 %v1438_v58, 0.0  ;;  %v3955_v0 = vpack.c.bf16 %v1441_v59, %v1441_v59  ;;  %v1967_v58 = vunpack.c.l.s8.bf16 %v1839_v50  ;;  %v1957_v59 = vld [vmem:[#allocation24 + $0x3d0] sm:$0xff]  ;;  %v2088_v60 = vunpack.c.h.s8.bf16 %v1896_v38 }
 0x3cf   :  { %v2205_v5 = vunpack.c.l.s8.bf16 %v1957_v59  ;;  %v2047_v40 = vunpack.c.l.s8.bf16 %v1879_v30  ;;  %v2039_v50 = vunpack.c.h.s8.bf16 %v1871_v48 }
 0x3d0   :  { %v3953_v62 = vpack.c.bf16 %v1442_v1, %v1442_v1  ;;  %2332 = vmatpush2.bf16.msra.mxu0 %v2029_v10  ;;  %v2214_v10 = vunpack.c.h.s8.bf16 %v1958_v54  ;;  %v2213_v1 = vunpack.c.h.s8.bf16 %v1957_v59  ;;  %v1865_v59 = vld [vmem:[#allocation24 + $0xf0] sm:$0xff] }
 0x3d1   :  { %2383 = vmatprep.subr.bf16.mxu0 %v2024_v61  ;;  %v1895_v61 = vld [vmem:[#allocation24 + $0x1e0] sm:$0xff] }
 0x3d2   :  { %2292 = vmatprep.mubr.bf16.mxu1 %v3953_v62  ;;  %v2087_v11 = vunpack.c.h.s8.bf16 %v1895_v61  ;;  %v2079_v6 = vunpack.c.l.s8.bf16 %v1895_v61  ;;  %v2025_v61 = vunpack.c.h.s8.bf16 %v1865_v59 }
 0x3d3   :  { %2293 = vmatmul.mubr.bf16.vlgmr.msra.gmra.mxu1 %v3955_v0  ;;  %2334 = vmatmul.mubr.bf16.vlgmr.msra.gmra.mxu0 %v3939_v42 }
 0x3d4   :  { %2343 = vmatpush1.bf16.msra.mxu1 %v2149_v63  ;;  %2374 = vmatprep.mubr.bf16.mxu1 %v3953_v62  ;;  %v2206_v63 = vunpack.c.l.s8.bf16 %v1958_v54 }
 0x3d5   :  { %2384 = vmatpush1.bf16.msra.mxu0 %v2023_v2  ;;  %2415 = vmatprep.mubr.bf16.mxu0 %v3937_v41  ;;  %v2080_v2 = vunpack.c.l.s8.bf16 %v1896_v38  ;;  %v2031_v38 = vunpack.c.l.s8.bf16 %v1871_v48 }
 0x3d6   :  { %2344 = vmatprep.subr.bf16.mxu1 %v2142_v3  ;;  %2385 = vmatprep.subr.bf16.mxu0 %v2016_v4  ;;  %v1950_v3 = vld [vmem:[#allocation24 + $0x398] sm:$0xff]  ;;  %v1888_v4 = vld [vmem:[#allocation24 + $0x1a8] sm:$0xff] }
 0x3d8   :  { %2345 = vmatpush1.bf16.msra.mxu1 %v2141_v7  ;;  %v2198_v7 = vunpack.c.h.s8.bf16 %v1950_v3 }
 0x3d9   :  { %2386 = vmatpush1.bf16.msra.mxu0 %v2015_v9  ;;  %2346 = vmatprep.subr.bf16.mxu1 %v2134_v12  ;;  %v1949_v9 = vld [vmem:[#allocation24 + $0x390] sm:$0xff]  ;;  %v2072_v12 = vunpack.c.h.s8.bf16 %v1888_v4 }
 0x3da   :  { %2387 = vmatprep.subr.bf16.mxu0 %v2008_v8  ;;  %v2197_v8 = vunpack.c.h.s8.bf16 %v1949_v9  ;;  %v2189_v25 = vunpack.c.l.s8.bf16 %v1949_v9  ;;  %v1857_v9 = vld [vmem:[#allocation24 + $0xb0] sm:$0xff] }
 0x3db   :  { %v2009_v17 = vunpack.c.h.s8.bf16 %v1857_v9 }
 0x3dc   :  { %2347 = vmatpush1.bf16.msra.mxu1 %v2133_v21  ;;  %v2190_v21 = vunpack.c.l.s8.bf16 %v1950_v3 }
 0x3dd   :  { %2388 = vmatpush1.bf16.msra.mxu0 %v2007_v22  ;;  %2348 = vmatprep.subr.bf16.mxu1 %v2126_v23  ;;  %v2064_v22 = vunpack.c.l.s8.bf16 %v1888_v4  ;;  %v1942_v23 = vld [vmem:[#allocation24 + $0x358] sm:$0xff]  ;;  %v2017_v4 = vunpack.c.l.s8.bf16 %v1865_v59 }
 0x3de   :  { %2389 = vmatprep.subr.bf16.mxu0 %v2000_v24  ;;  %v1880_v24 = vld [vmem:[#allocation24 + $0x168] sm:$0xff] }
 0x3e0   :  { %2349 = vmatpush1.bf16.msra.mxu1 %v2125_v27  ;;  %v2182_v27 = vunpack.c.h.s8.bf16 %v1942_v23 }
 0x3e1   :  { %2390 = vmatpush1.bf16.msra.mxu0 %v1999_v28  ;;  %2350 = vmatprep.subr.bf16.mxu1 %v2118_v29  ;;  %v1941_v28 = vld [vmem:[#allocation24 + $0x350] sm:$0xff]  ;;  %v2056_v29 = vunpack.c.h.s8.bf16 %v1880_v24 }
 0x3e2   :  { %2391 = vmatprep.subr.bf16.mxu0 %v1992_v31  ;;  %v2181_v31 = vunpack.c.h.s8.bf16 %v1941_v28  ;;  %v2173_v37 = vunpack.c.l.s8.bf16 %v1941_v28 }
 0x3e4   :  { %2351 = vmatpush1.bf16.msra.mxu1 %v2117_v33  ;;  %v2174_v33 = vunpack.c.l.s8.bf16 %v1942_v23 }
 0x3e5   :  { %2392 = vmatpush1.bf16.msra.mxu0 %v1991_v34  ;;  %2352 = vmatprep.subr.bf16.mxu1 %v2110_v35  ;;  %v2048_v34 = vunpack.c.l.s8.bf16 %v1880_v24  ;;  %v1934_v35 = vld [vmem:[#allocation24 + $0x318] sm:$0xff]  ;;  %v2001_v24 = vunpack.c.l.s8.bf16 %v1857_v9 }
 0x3e6   :  { %2393 = vmatprep.subr.bf16.mxu0 %v1984_v36  ;;  %v1872_v36 = vld [vmem:[#allocation24 + $0x128] sm:$0xff] }
 0x3e8   :  { %2353 = vmatpush1.bf16.msra.mxu1 %v2109_v45  ;;  %v2166_v45 = vunpack.c.h.s8.bf16 %v1934_v35 }
 0x3e9   :  { %2394 = vmatpush1.bf16.msra.mxu0 %v1983_v46  ;;  %2354 = vmatprep.subr.bf16.mxu1 %v2102_v43  ;;  %v1933_v46 = vld [vmem:[#allocation24 + $0x310] sm:$0xff]  ;;  %v2040_v43 = vunpack.c.h.s8.bf16 %v1872_v36 }
 0x3ea   :  { %2395 = vmatprep.subr.bf16.mxu0 %v1976_v49  ;;  %v2165_v49 = vunpack.c.h.s8.bf16 %v1933_v46  ;;  %v2157_v54 = vunpack.c.l.s8.bf16 %v1933_v46 }
 0x3ec   :  { %2355 = vmatpush1.bf16.msra.mxu1 %v2101_v51  ;;  %v2158_v51 = vunpack.c.l.s8.bf16 %v1934_v35 }
 0x3ed   :  { %2396 = vmatpush1.bf16.msra.mxu0 %v1975_v55  ;;  %2356 = vmatprep.subr.bf16.mxu1 %v2094_v56  ;;  %v2032_v55 = vunpack.c.l.s8.bf16 %v1872_v36  ;;  %v1928_v56 = vld [vmem:[#allocation24 + $0x2e8] sm:$0xff] }
 0x3ee   :  { %2397 = vmatprep.subr.bf16.mxu0 %v1968_v53  ;;  %v1866_v53 = vld [vmem:[#allocation24 + $0xf8] sm:$0xff] }
 0x3f0   :  { %2357 = vmatpush1.bf16.msra.mxu1 %v2093_v39  ;;  %v2152_v39 = vunpack.c.h.s8.bf16 %v1928_v56 }
 0x3f1   :  { %2398 = vmatpush1.bf16.msra.mxu0 %v1967_v58  ;;  %2358 = vmatprep.subr.bf16.mxu1 %v2214_v10  ;;  %v1927_v58 = vld [vmem:[#allocation24 + $0x2e0] sm:$0xff]  ;;  %v2026_v10 = vunpack.c.h.s8.bf16 %v1866_v53 }
 0x3f2   :  { %2399 = vmatprep.subr.bf16.mxu0 %v2088_v60  ;;  %v2151_v60 = vunpack.c.h.s8.bf16 %v1927_v58  ;;  %v2143_v3 = vunpack.c.l.s8.bf16 %v1927_v58 }
 0x3f4   :  { %2359 = vmatpush2.bf16.msra.mxu1 %v2213_v1  ;;  %v2144_v1 = vunpack.c.l.s8.bf16 %v1928_v56 }
 0x3f5   :  { %2400 = vmatpush2.bf16.msra.mxu0 %v2087_v11  ;;  %2360 = vmatprep.subr.bf16.mxu1 %v2206_v63  ;;  %v1920_v11 = vld [vmem:[#allocation24 + $0x2a8] sm:$0xff]  ;;  %v2018_v63 = vunpack.c.l.s8.bf16 %v1866_v53 }
 0x3f6   :  { %2401 = vmatprep.subr.bf16.mxu0 %v2080_v2  ;;  %v1858_v2 = vld [vmem:[#allocation24 + $0xb8] sm:$0xff] }
 0x3f8   :  { %2361 = vmatpush2.bf16.msra.mxu1 %v2205_v5  ;;  %v2136_v5 = vunpack.c.h.s8.bf16 %v1920_v11 }
 0x3f9   :  { %2402 = vmatpush2.bf16.msra.mxu0 %v2079_v6  ;;  %2362 = vmatprep.subr.bf16.mxu1 %v2198_v7  ;;  %v1919_v6 = vld [vmem:[#allocation24 + $0x2a0] sm:$0xff]  ;;  %v2010_v7 = vunpack.c.h.s8.bf16 %v1858_v2 }
 0x3fa   :  { %2403 = vmatprep.subr.bf16.mxu0 %v2072_v12  ;;  %v2135_v12 = vunpack.c.h.s8.bf16 %v1919_v6  ;;  %v2127_v23 = vunpack.c.l.s8.bf16 %v1919_v6 }
 0x3fc   :  { %2363 = vmatpush2.bf16.msra.mxu1 %v2197_v8  ;;  %v2128_v8 = vunpack.c.l.s8.bf16 %v1920_v11 }
 0x3fd   :  { %2404 = vmatpush2.bf16.msra.mxu0 %v2071_v20  ;;  %2364 = vmatprep.subr.bf16.mxu1 %v2190_v21  ;;  %v2002_v20 = vunpack.c.l.s8.bf16 %v1858_v2  ;;  %v1912_v21 = vld [vmem:[#allocation24 + $0x268] sm:$0xff] }
 0x3fe   :  { %2405 = vmatprep.subr.bf16.mxu0 %v2064_v22  ;;  %v1850_v22 = vld [vmem:[#allocation24 + $0x78] sm:$0xff]  ;;  %v2112_v30 = vunpack.c.l.s8.bf16 %v1912_v21 }
 0x400   :  { %2365 = vmatpush2.bf16.msra.mxu1 %v2189_v25  ;;  %v1911_v25 = vld [vmem:[#allocation24 + $0x260] sm:$0xff] }
 0x401   :  { %2406 = vmatpush2.bf16.msra.mxu0 %v2063_v26  ;;  %2366 = vmatprep.subr.bf16.mxu1 %v2182_v27  ;;  %v1994_v26 = vunpack.c.h.s8.bf16 %v1850_v22  ;;  %v1849_v27 = vld [vmem:[#allocation24 + $0x70] sm:$0xff]  ;;  %v2119_v28 = vunpack.c.h.s8.bf16 %v1911_v25 }
 0x402   :  { %2407 = vmatprep.subr.bf16.mxu0 %v2056_v29  ;;  %v1993_v29 = vunpack.c.h.s8.bf16 %v1849_v27  ;;  %v1985_v35 = vunpack.c.l.s8.bf16 %v1849_v27 }
 0x404   :  { %2367 = vmatpush2.bf16.msra.mxu1 %v2181_v31  ;;  %v1986_v31 = vunpack.c.l.s8.bf16 %v1850_v22 }
 0x405   :  { %2408 = vmatpush2.bf16.msra.mxu0 %v2055_v32  ;;  %2368 = vmatprep.subr.bf16.mxu1 %v2174_v33  ;;  %v1904_v32 = vld [vmem:[#allocation24 + $0x228] sm:$0xff]  ;;  %v1842_v33 = vld [vmem:[#allocation24 + $0x38] sm:$0xff] }
 0x406   :  { %2409 = vmatprep.subr.bf16.mxu0 %v2048_v34  ;;  %v2111_v34 = vunpack.c.l.s8.bf16 %v1911_v25  ;;  %v2104_v36 = vunpack.c.h.s8.bf16 %v1904_v32  ;;  %v2096_v48 = vunpack.c.l.s8.bf16 %v1904_v32 }
 0x408   :  { %2369 = vmatpush2.bf16.msra.mxu1 %v2173_v37  ;;  %v1903_v37 = vld [vmem:[#allocation24 + $0x220] sm:$0xff] }
 0x409   :  { %2410 = vmatpush2.bf16.msra.mxu0 %v2047_v40  ;;  %2370 = vmatprep.subr.bf16.mxu1 %v2166_v45  ;;  %v1978_v40 = vunpack.c.h.s8.bf16 %v1842_v33  ;;  %v1841_v45 = vld [vmem:[#allocation24 + $0x30] sm:$0xff]  ;;  %v2103_v46 = vunpack.c.h.s8.bf16 %v1903_v37 }
 0x40a   :  { %2411 = vmatprep.subr.bf16.mxu0 %v2040_v43  ;;  %v1977_v43 = vunpack.c.h.s8.bf16 %v1841_v45  ;;  %v1969_v56 = vunpack.c.l.s8.bf16 %v1841_v45  ;;  %v3971_v45 = vld [vmem:[#allocation15] sm:$0xf] }
 0x40c   :  { %2371 = vmatpush2.bf16.msra.mxu1 %v2165_v49  ;;  %v1970_v49 = vunpack.c.l.s8.bf16 %v1842_v33 }
 0x40d   :  { %2412 = vmatpush2.bf16.msra.mxu0 %v2039_v50  ;;  %2372 = vmatprep.subr.bf16.mxu1 %v2158_v51  ;;  %v1960_v50 = vld [vmem:[#allocation24 + $0x3e8] sm:$0xff]  ;;  %v1898_v51 = vld [vmem:[#allocation24 + $0x1f8] sm:$0xff] }
 0x40e   :  { %2413 = vmatprep.subr.bf16.mxu0 %v2032_v55  ;;  %v2095_v55 = vunpack.c.l.s8.bf16 %v1903_v37  ;;  %v2216_v53 = vunpack.c.h.s8.bf16 %v1960_v50  ;;  %v2208_v59 = vunpack.c.l.s8.bf16 %v1960_v50 }
 0x410   :  { %2373 = vmatpush2.bf16.msra.mxu1 %v2157_v54  ;;  %v1959_v54 = vld [vmem:[#allocation24 + $0x3e0] sm:$0xff] }
 0x411   :  { %2414 = vmatpush2.bf16.msra.mxu0 %v2031_v38  ;;  %2424 = vmatprep.subr.bf16.mxu1 %v2152_v39  ;;  %v2090_v38 = vunpack.c.h.s8.bf16 %v1898_v51  ;;  %v1897_v39 = vld [vmem:[#allocation24 + $0x1f0] sm:$0xff]  ;;  %v2215_v58 = vunpack.c.h.s8.bf16 %v1959_v54  ;;  %v2207_v11 = vunpack.c.l.s8.bf16 %v1959_v54 }
 0x412   :  { %2465 = vmatprep.subr.bf16.mxu0 %v2026_v10  ;;  %v2089_v10 = vunpack.c.h.s8.bf16 %v1897_v39 }
 0x413   :  { %2375 = vmatmul.mubr.bf16.vlgmr.msra.gmra.mxu1 %v3955_v0 }
 0x414   :  { %2416 = vmatmul.mubr.bf16.vlgmr.msra.gmra.mxu0 %v3939_v42  ;;  %2425 = vmatpush1.bf16.msra.mxu1 %v2151_v60  ;;  %v2082_v60 = vunpack.c.l.s8.bf16 %v1898_v51 }
 0x415   :  { %2456 = vmatprep.mubr.bf16.mxu1 %v3953_v62  ;;  %2466 = vmatpush1.bf16.msra.mxu0 %v2025_v61  ;;  %v1952_v61 = vld [vmem:[#allocation24 + $0x3a8] sm:$0xff] }
 0x416   :  { %2497 = vmatprep.mubr.bf16.mxu0 %v3937_v41  ;;  %2426 = vmatprep.subr.bf16.mxu1 %v2144_v1  ;;  %v2120_v41 = vunpack.c.h.s8.bf16 %v1912_v21  ;;  %v1890_v1 = vld [vmem:[#allocation24 + $0x1b8] sm:$0xff]  ;;  %v2200_v2 = vunpack.c.h.s8.bf16 %v1952_v61  ;;  %v2192_v9 = vunpack.c.l.s8.bf16 %v1952_v61 }
 0x417   :  { %2467 = vmatprep.subr.bf16.mxu0 %v2018_v63  ;;  %v2081_v63 = vunpack.c.l.s8.bf16 %v1897_v39  ;;  %v1929_v39 = vld [vmem:[#allocation24 + $0x2f0] sm:$0xff] }
 0x418   :  { %2427 = vmatpush1.bf16.msra.mxu1 %v2143_v3  ;;  %v1951_v3 = vld [vmem:[#allocation24 + $0x3a0] sm:$0xff] }
 0x419   :  { %2468 = vmatpush1.bf16.msra.mxu0 %v2017_v4  ;;  %2428 = vmatprep.subr.bf16.mxu1 %v2136_v5  ;;  %v2074_v4 = vunpack.c.h.s8.bf16 %v1890_v1  ;;  %v1889_v5 = vld [vmem:[#allocation24 + $0x1b0] sm:$0xff]  ;;  %v2199_v6 = vunpack.c.h.s8.bf16 %v1951_v3 }
 0x41a   :  { %2469 = vmatprep.subr.bf16.mxu0 %v2010_v7  ;;  %v2073_v7 = vunpack.c.h.s8.bf16 %v1889_v5  ;;  %v2065_v21 = vunpack.c.l.s8.bf16 %v1889_v5  ;;  %v2145_v5 = vunpack.c.l.s8.bf16 %v1929_v39 }
 0x41c   :  { %2429 = vmatpush1.bf16.msra.mxu1 %v2135_v12  ;;  %v2066_v12 = vunpack.c.l.s8.bf16 %v1890_v1 }
 0x41d   :  { %2470 = vmatpush1.bf16.msra.mxu0 %v2009_v17  ;;  %2430 = vmatprep.subr.bf16.mxu1 %v2128_v8  ;;  %v1944_v17 = vld [vmem:[#allocation24 + $0x368] sm:$0xff]  ;;  %v1882_v8 = vld [vmem:[#allocation24 + $0x178] sm:$0xff] }
 0x41e   :  { %2471 = vmatprep.subr.bf16.mxu0 %v2002_v20  ;;  %v2191_v20 = vunpack.c.l.s8.bf16 %v1951_v3  ;;  %v2184_v22 = vunpack.c.h.s8.bf16 %v1944_v17  ;;  %v2176_v27 = vunpack.c.l.s8.bf16 %v1944_v17  ;;  %v1464_v3 = vld [vmem:[#allocation23 + $0x88] sm:$0xff] }
 0x41f   :  { %v1616_v17 = vunpack.c.h.s8.bf16 %v1464_v3 }
 0x420   :  { %2431 = vmatpush1.bf16.msra.mxu1 %v2127_v23  ;;  %v1943_v23 = vld [vmem:[#allocation24 + $0x360] sm:$0xff] }
 0x421   :  { %2472 = vmatpush1.bf16.msra.mxu0 %v2001_v24  ;;  %2432 = vmatprep.subr.bf16.mxu1 %v2120_v41  ;;  %v2058_v24 = vunpack.c.h.s8.bf16 %v1882_v8  ;;  %v1881_v41 = vld [vmem:[#allocation24 + $0x170] sm:$0xff]  ;;  %v2183_v25 = vunpack.c.h.s8.bf16 %v1943_v23  ;;  %v2175_v33 = vunpack.c.l.s8.bf16 %v1943_v23  ;;  %v1608_v23 = vunpack.c.l.s8.bf16 %v1464_v3  ;;  %v1954_v3 = vld [vmem:[#allocation24 + $0x3b8] sm:$0xff] }
 0x422   :  { %2473 = vmatprep.subr.bf16.mxu0 %v1994_v26  ;;  %v2057_v26 = vunpack.c.h.s8.bf16 %v1881_v41 }
 0x424   :  { %2433 = vmatpush1.bf16.msra.mxu1 %v2119_v28  ;;  %v2050_v28 = vunpack.c.l.s8.bf16 %v1882_v8  ;;  %v1463_v8 = vld [vmem:[#allocation23 + $0x80] sm:$0xff] }
 0x425   :  { %2474 = vmatpush1.bf16.msra.mxu0 %v1993_v29  ;;  %2434 = vmatprep.subr.bf16.mxu1 %v2112_v30  ;;  %v1936_v29 = vld [vmem:[#allocation24 + $0x328] sm:$0xff]  ;;  %v3967_v30 = vld [vmem:[#allocation14] sm:$0xf] }
 0x426   :  { %2475 = vmatprep.subr.bf16.mxu0 %v1986_v31  ;;  %v1874_v31 = vld [vmem:[#allocation24 + $0x138] sm:$0xff]  ;;  %v813_v32 = vrot.slane %v3967_v30, %v3856_v18  ;;  %v2160_v50 = vunpack.c.l.s8.bf16 %v1936_v29 }
 0x427   :  { %v2042_v37 = vunpack.c.h.s8.bf16 %v1874_v31  ;;  %v2034_v51 = vunpack.c.l.s8.bf16 %v1874_v31  ;;  %v1455_v31 = vld [vmem:[#allocation23 + $0x40] sm:$0xff] }
 0x428   :  { %2435 = vmatpush1.bf16.msra.mxu1 %v2111_v34  ;;  %v2049_v34 = vunpack.c.l.s8.bf16 %v1881_v41  ;;  %v1456_v41 = vld [vmem:[#allocation23 + $0x48] sm:$0xff] }
 0x429   :  { %2476 = vmatpush1.bf16.msra.mxu0 %v1985_v35  ;;  %2436 = vmatprep.subr.bf16.mxu1 %v2104_v36  ;;  %v2168_v35 = vunpack.c.h.s8.bf16 %v1936_v29  ;;  %v1935_v36 = vld [vmem:[#allocation24 + $0x320] sm:$0xff]  ;;  %v1600_v29 = vunpack.c.h.s8.bf16 %v1456_v41 }
 0x42a   :  { %2477 = vmatprep.subr.bf16.mxu0 %v1978_v40  ;;  %v1873_v40 = vld [vmem:[#allocation24 + $0x130] sm:$0xff]  ;;  %v2159_v54 = vunpack.c.l.s8.bf16 %v1935_v36 }
 0x42c   :  { %2437 = vmatpush1.bf16.msra.mxu1 %v2103_v46  ;;  %v827_v46 = vmul.f32 %v813_v32, %v3889_v47 }
 0x42d   :  { %2478 = vmatpush1.bf16.msra.mxu0 %v1977_v43  ;;  %2438 = vmatprep.subr.bf16.mxu1 %v2096_v48  ;;  %v839_v43 = vrot.slane %v3971_v45, %v3856_v18  ;;  %v2167_v48 = vunpack.c.h.s8.bf16 %v1935_v36  ;;  %v1906_v36 = vld [vmem:[#allocation24 + $0x238] sm:$0xff] }
 0x42e   :  { %2479 = vmatprep.subr.bf16.mxu0 %v1970_v49  ;;  %v2041_v49 = vunpack.c.h.s8.bf16 %v1873_v40 }
 0x430   :  { %2439 = vmatpush1.bf16.msra.mxu1 %v2095_v55  ;;  %v1930_v55 = vld [vmem:[#allocation24 + $0x2f8] sm:$0xff] }
 0x431   :  { %2480 = vmatpush1.bf16.msra.mxu0 %v1969_v56  ;;  %2440 = vmatprep.subr.bf16.mxu1 %v2216_v53  ;;  %v1472_v56 = vld [vmem:[#allocation23 + $0xc8] sm:$0xff]  ;;  %v853_v53 = vadd.f32 %v839_v43, %v827_v46  ;;  %v2154_v47 = vunpack.c.h.s8.bf16 %v1930_v55  ;;  %v2146_v1 = vunpack.c.l.s8.bf16 %v1930_v55  ;;  %v1591_v46 = vunpack.c.l.s8.bf16 %v1455_v31 }
 0x432   :  { %2481 = vmatprep.subr.bf16.mxu0 %v2090_v38  ;;  %v2033_v38 = vunpack.c.l.s8.bf16 %v1873_v40  ;;  %v2106_v43 = vunpack.c.h.s8.bf16 %v1906_v36 }
 0x434   :  { %2441 = vmatpush2.bf16.msra.mxu1 %v2215_v58  ;;  %v1632_v58 = vunpack.c.h.s8.bf16 %v1472_v56 }
 0x435   :  { %2482 = vmatpush2.bf16.msra.mxu0 %v2089_v10  ;;  %2442 = vmatprep.subr.bf16.mxu1 %v2208_v59  ;;  %v1471_v10 = vld [vmem:[#allocation23 + $0xc0] sm:$0xff]  ;;  %v857_v59 = vmax.f32 %v853_v53, 0.0 }
 0x436   :  { %2483 = vmatprep.subr.bf16.mxu0 %v2082_v60  ;;  %v2153_v60 = vunpack.c.h.s8.bf16 %v1929_v39  ;;  %v1631_v61 = vunpack.c.h.s8.bf16 %v1471_v10 }
 0x438   :  { %2443 = vmatpush2.bf16.msra.mxu1 %v2207_v11  ;;  %v1922_v11 = vld [vmem:[#allocation24 + $0x2b8] sm:$0xff] }
 0x439   :  { %2484 = vmatpush2.bf16.msra.mxu0 %v2081_v63  ;;  %2444 = vmatprep.subr.bf16.mxu1 %v2200_v2  ;;  %v1624_v2 = vunpack.c.l.s8.bf16 %v1472_v56  ;;  %v2098_v56 = vunpack.c.l.s8.bf16 %v1906_v36  ;;  %v1938_v36 = vld [vmem:[#allocation24 + $0x338] sm:$0xff] }
 0x43a   :  { %2485 = vmatprep.subr.bf16.mxu0 %v2074_v4  ;;  %v3979_v4 = vpack.c.bf16 %v857_v59, %v857_v59 }
 0x43c   :  { %2445 = vmatpush2.bf16.msra.mxu1 %v2199_v6 }
 0x43d   :  { %2486 = vmatpush2.bf16.msra.mxu0 %v2073_v7  ;;  %2446 = vmatprep.subr.bf16.mxu1 %v2192_v9  ;;  %v1623_v7 = vunpack.c.l.s8.bf16 %v1471_v10  ;;  %v2138_v9 = vunpack.c.h.s8.bf16 %v1922_v11  ;;  %v1961_v10 = vld [vmem:[#allocation24 + $0x3f0] sm:$0xff] }
 0x43e   :  { %2487 = vmatprep.subr.bf16.mxu0 %v2066_v12  ;;  %v1921_v12 = vld [vmem:[#allocation24 + $0x2b0] sm:$0xff] }
 0x440   :  { %2447 = vmatpush2.bf16.msra.mxu1 %v2191_v20 }
 0x441   :  { %2488 = vmatpush2.bf16.msra.mxu0 %v2065_v21  ;;  %2448 = vmatprep.subr.bf16.mxu1 %v2184_v22  ;;  %v2137_v21 = vunpack.c.h.s8.bf16 %v1921_v12  ;;  %v1615_v22 = vunpack.c.h.s8.bf16 %v1463_v8 }
 0x442   :  { %2489 = vmatprep.subr.bf16.mxu0 %v2058_v24  ;;  %v1914_v24 = vld [vmem:[#allocation24 + $0x278] sm:$0xff] }
 0x444   :  { %2449 = vmatpush2.bf16.msra.mxu1 %v2183_v25  ;;  %v2129_v25 = vunpack.c.l.s8.bf16 %v1921_v12  ;;  %v2202_v12 = vunpack.c.h.s8.bf16 %v1954_v3 }
 0x445   :  { %2490 = vmatpush2.bf16.msra.mxu0 %v2057_v26  ;;  %2450 = vmatprep.subr.bf16.mxu1 %v2176_v27  ;;  %v1607_v26 = vunpack.c.l.s8.bf16 %v1463_v8  ;;  %v2122_v27 = vunpack.c.h.s8.bf16 %v1914_v24 }
 0x446   :  { %2491 = vmatprep.subr.bf16.mxu0 %v2050_v28  ;;  %v1913_v28 = vld [vmem:[#allocation24 + $0x270] sm:$0xff] }
 0x447   :  { %v2121_v32 = vunpack.c.h.s8.bf16 %v1913_v28  ;;  %v2113_v40 = vunpack.c.l.s8.bf16 %v1913_v28 }
 0x448   :  { %2451 = vmatpush2.bf16.msra.mxu1 %v2175_v33  ;;  %v1599_v33 = vunpack.c.h.s8.bf16 %v1455_v31 }
 0x449   :  { %2492 = vmatpush2.bf16.msra.mxu0 %v2049_v34  ;;  %2452 = vmatprep.subr.bf16.mxu1 %v2168_v35  ;;  %v2114_v34 = vunpack.c.l.s8.bf16 %v1914_v24  ;;  %v1592_v35 = vunpack.c.l.s8.bf16 %v1456_v41  ;;  %v1488_v24 = vld [vmem:[#allocation23 + $0x148] sm:$0xff] }
 0x44a   :  { %2493 = vmatprep.subr.bf16.mxu0 %v2042_v37  ;;  %v1448_v37 = vld [vmem:[#allocation23 + $0x8] sm:$0xff]  ;;  %v1664_v28 = vunpack.c.h.s8.bf16 %v1488_v24 }
 0x44b   :  { %v1576_v53 = vunpack.c.l.s8.bf16 %v1448_v37 }
 0x44c   :  { %2453 = vmatpush2.bf16.msra.mxu1 %v2167_v48  ;;  %v1905_v48 = vld [vmem:[#allocation24 + $0x230] sm:$0xff] }
 0x44d   :  { %2494 = vmatpush2.bf16.msra.mxu0 %v2041_v49  ;;  %2454 = vmatprep.subr.bf16.mxu1 %v2160_v50  ;;  %v1584_v49 = vunpack.c.h.s8.bf16 %v1448_v37  ;;  %v1447_v50 = vld [vmem:[#allocation23] sm:$0xff]  ;;  %v821_v37 = vrot.slane %v3967_v30, %v3859_v19 }
 0x44e   :  { %2495 = vmatprep.subr.bf16.mxu0 %v2034_v51  ;;  %v2105_v51 = vunpack.c.h.s8.bf16 %v1905_v48  ;;  %v1583_v55 = vunpack.c.h.s8.bf16 %v1447_v50  ;;  %v1575_v39 = vunpack.c.l.s8.bf16 %v1447_v50 }
 0x450   :  { %2455 = vmatpush2.bf16.msra.mxu1 %v2159_v54  ;;  %v1962_v54 = vld [vmem:[#allocation24 + $0x3f8] sm:$0xff] }
 0x451   :  { %2496 = vmatpush2.bf16.msra.mxu0 %v2033_v38  ;;  %2506 = vmatprep.subr.bf16.mxu1 %v2154_v47  ;;  %v1504_v38 = vld [vmem:[#allocation23 + $0x1c8] sm:$0xff]  ;;  %v2097_v47 = vunpack.c.l.s8.bf16 %v1905_v48  ;;  %v2170_v48 = vunpack.c.h.s8.bf16 %v1938_v36 }
 0x452   :  { %2547 = vmatprep.subr.bf16.mxu0 %v1632_v58  ;;  %v2218_v58 = vunpack.c.h.s8.bf16 %v1962_v54  ;;  %v1696_v59 = vunpack.c.h.s8.bf16 %v1504_v38 }
 0x453   :  { %2457 = vmatmul.mubr.bf16.vlgmr.msra.gmra.mxu1 %v3955_v0  ;;  %v3977_v63 = vpop.f32.mrf.mxu0 }
 0x454   :  { %2498 = vmatmul.mubr.bf16.vlgmr.msra.gmra.mxu0 %v3939_v42  ;;  %2507 = vmatpush1.bf16.msra.mxu1 %v2153_v60  ;;  %v1503_v60 = vld [vmem:[#allocation23 + $0x1c0] sm:$0xff] }
 0x455   :  { %2538 = vmatprep.mubr.bf16.mxu1 %v3953_v62  ;;  %2548 = vmatpush1.bf16.msra.mxu0 %v1631_v61  ;;  %v3983_v6 = vpop.f32.mrf.mxu0  ;;  %v2130_v62 = vunpack.c.l.s8.bf16 %v1922_v11  ;;  %v2217_v61 = vunpack.c.h.s8.bf16 %v1961_v10  ;;  %v2210_v11 = vunpack.c.l.s8.bf16 %v1962_v54  ;;  %v847_v54 = vrot.slane %v3971_v45, %v3859_v19 }
 0x456   :  { %2579 = vmatprep.mubr.bf16.mxu0 %v3979_v4  ;;  %2508 = vmatprep.subr.bf16.mxu1 %v2146_v1  ;;  %v1695_v1 = vunpack.c.h.s8.bf16 %v1503_v60 }
 0x457   :  { %2549 = vmatprep.subr.bf16.mxu0 %v1624_v2  ;;  %v2257_v20 = vpop.f32.mrf.mxu0  ;;  %v1688_v2 = vunpack.c.l.s8.bf16 %v1504_v38 }
 0x458   :  { %2509 = vmatpush1.bf16.msra.mxu1 %v2145_v5  ;;  %v1496_v5 = vld [vmem:[#allocation23 + $0x188] sm:$0xff]  ;;  %v1495_v20 = vld [vmem:[#allocation23 + $0x180] sm:$0xff] }
 0x459   :  { %2550 = vmatpush1.bf16.msra.mxu0 %v1623_v7  ;;  %v2258_v42 = vpop.f32.mrf.mxu0  ;;  %2510 = vmatprep.subr.bf16.mxu1 %v2138_v9  ;;  %v2209_v7 = vunpack.c.l.s8.bf16 %v1961_v10  ;;  %v1687_v9 = vunpack.c.l.s8.bf16 %v1503_v60  ;;  %v1680_v8 = vunpack.c.h.s8.bf16 %v1496_v5  ;;  %v1536_v10 = vld [vmem:[#allocation23 + $0x2c8] sm:$0xff]  ;;  %v1474_v60 = vld [vmem:[#allocation23 + $0xd8] sm:$0xff] }
 0x45a   :  { %2551 = vmatprep.subr.bf16.mxu0 %v1616_v17  ;;  %v1953_v17 = vld [vmem:[#allocation24 + $0x3b0] sm:$0xff]  ;;  %v1679_v42 = vunpack.c.h.s8.bf16 %v1495_v20 }
 0x45b   :  { %v2193_v41 = vunpack.c.l.s8.bf16 %v1953_v17 }
 0x45c   :  { %2511 = vmatpush1.bf16.msra.mxu1 %v2137_v21  ;;  %v2201_v21 = vunpack.c.h.s8.bf16 %v1953_v17 }
 0x45d   :  { %2552 = vmatpush1.bf16.msra.mxu0 %v1615_v22  ;;  %2512 = vmatprep.subr.bf16.mxu1 %v2130_v62  ;;  %v2194_v22 = vunpack.c.l.s8.bf16 %v1954_v3  ;;  %v1672_v62 = vunpack.c.l.s8.bf16 %v1496_v5  ;;  %v1634_v3 = vunpack.c.h.s8.bf16 %v1474_v60  ;;  %v1473_v5 = vld [vmem:[#allocation23 + $0xd0] sm:$0xff] }
 0x45e   :  { %2553 = vmatprep.subr.bf16.mxu0 %v1608_v23  ;;  %v1946_v23 = vld [vmem:[#allocation24 + $0x378] sm:$0xff] }
 0x460   :  { %2513 = vmatpush1.bf16.msra.mxu1 %v2129_v25  ;;  %v1671_v25 = vunpack.c.l.s8.bf16 %v1495_v20  ;;  %v1528_v20 = vld [vmem:[#allocation23 + $0x288] sm:$0xff] }
 0x461   :  { %2554 = vmatpush1.bf16.msra.mxu0 %v1607_v26  ;;  %2514 = vmatprep.subr.bf16.mxu1 %v2122_v27  ;;  %v2186_v26 = vunpack.c.h.s8.bf16 %v1946_v23  ;;  %v1945_v27 = vld [vmem:[#allocation24 + $0x370] sm:$0xff] }
 0x462   :  { %2555 = vmatprep.subr.bf16.mxu0 %v1600_v29  ;;  %v1487_v29 = vld [vmem:[#allocation23 + $0x140] sm:$0xff]  ;;  %v2185_v31 = vunpack.c.h.s8.bf16 %v1945_v27 }
 0x464   :  { %2515 = vmatpush1.bf16.msra.mxu1 %v2121_v32  ;;  %v1663_v32 = vunpack.c.h.s8.bf16 %v1487_v29 }
 0x465   :  { %2556 = vmatpush1.bf16.msra.mxu0 %v1599_v33  ;;  %2516 = vmatprep.subr.bf16.mxu1 %v2114_v34  ;;  %v2178_v33 = vunpack.c.l.s8.bf16 %v1946_v23  ;;  %v809_v34 = vrot.slane %v3967_v30, %v3850_v15  ;;  %v1466_v23 = vld [vmem:[#allocation23 + $0x98] sm:$0xff] }
 0x466   :  { %2557 = vmatprep.subr.bf16.mxu0 %v1592_v35  ;;  %v1656_v35 = vunpack.c.l.s8.bf16 %v1488_v24 }
 0x467   :  { %v826_v50 = vmul.f32 %v809_v34, %v3887_v44 }
 0x468   :  { %2517 = vmatpush1.bf16.msra.mxu1 %v2113_v40  ;;  %v1480_v40 = vld [vmem:[#allocation23 + $0x108] sm:$0xff] }
 0x469   :  { %2558 = vmatpush1.bf16.msra.mxu0 %v1591_v46  ;;  %2518 = vmatprep.subr.bf16.mxu1 %v2106_v43  ;;  %v2177_v46 = vunpack.c.l.s8.bf16 %v1945_v27  ;;  %v1655_v43 = vunpack.c.l.s8.bf16 %v1487_v29  ;;  %v1640_v44 = vunpack.c.l.s8.bf16 %v1480_v40  ;;  %v1625_v27 = vunpack.c.l.s8.bf16 %v1473_v5 }
 0x46a   :  { %2559 = vmatprep.subr.bf16.mxu0 %v1584_v49  ;;  %v1937_v49 = vld [vmem:[#allocation24 + $0x330] sm:$0xff] }
 0x46b   :  { %v2169_v38 = vunpack.c.h.s8.bf16 %v1937_v49 }
 0x46c   :  { %2519 = vmatpush1.bf16.msra.mxu1 %v2105_v51  ;;  %v835_v51 = vrot.slane %v3971_v45, %v3850_v15 }
 0x46d   :  { %2560 = vmatpush1.bf16.msra.mxu0 %v1583_v55  ;;  %2520 = vmatprep.subr.bf16.mxu1 %v2098_v56  ;;  %v1648_v55 = vunpack.c.h.s8.bf16 %v1480_v40  ;;  %v1479_v56 = vld [vmem:[#allocation23 + $0x100] sm:$0xff]  ;;  %v1736_v40 = vunpack.c.l.s8.bf16 %v1528_v20 }
 0x46e   :  { %2561 = vmatprep.subr.bf16.mxu0 %v1576_v53  ;;  %v829_v53 = vmul.f32 %v821_v37, %v3893_v57  ;;  %v1639_v57 = vunpack.c.l.s8.bf16 %v1479_v56 }
 0x470   :  { %2521 = vmatpush1.bf16.msra.mxu1 %v2097_v47  ;;  %v1647_v47 = vunpack.c.h.s8.bf16 %v1479_v56  ;;  %v1457_v56 = vld [vmem:[#allocation23 + $0x50] sm:$0xff] }
 0x471   :  { %2562 = vmatpush1.bf16.msra.mxu0 %v1575_v39  ;;  %2522 = vmatprep.subr.bf16.mxu1 %v2218_v58  ;;  %v2162_v39 = vunpack.c.l.s8.bf16 %v1938_v36  ;;  %v852_v58 = vadd.f32 %v835_v51, %v826_v50  ;;  %v1519_v51 = vld [vmem:[#allocation23 + $0x240] sm:$0xff] }
 0x472   :  { %2563 = vmatprep.subr.bf16.mxu0 %v1696_v59  ;;  %v855_v59 = vadd.f32 %v847_v54, %v829_v53  ;;  %v1727_v53 = vunpack.c.h.s8.bf16 %v1519_v51  ;;  %v1601_v54 = vunpack.c.h.s8.bf16 %v1457_v56 }
 0x474   :  { %2523 = vmatpush2.bf16.msra.mxu1 %v2217_v61  ;;  %v2161_v61 = vunpack.c.l.s8.bf16 %v1937_v49 }
 0x475   :  { %2564 = vmatpush2.bf16.msra.mxu0 %v1695_v1  ;;  %2524 = vmatprep.subr.bf16.mxu1 %v2210_v11  ;;  %v1760_v1 = vunpack.c.h.s8.bf16 %v1536_v10  ;;  %v1535_v11 = vld [vmem:[#allocation23 + $0x2c0] sm:$0xff] }
 0x476   :  { %2565 = vmatprep.subr.bf16.mxu0 %v1688_v2  ;;  %v856_v2 = vmax.f32 %v852_v58, 0.0  ;;  %v1450_v58 = vld [vmem:[#allocation23 + $0x18] sm:$0xff] }
 0x478   :  { %2525 = vmatpush2.bf16.msra.mxu1 %v2209_v7  ;;  %v859_v7 = vmax.f32 %v855_v59, 0.0  ;;  %v3996_v17 = vpack.c.bf16 %v856_v2, %v856_v2 }
 0x479   :  { %2566 = vmatpush2.bf16.msra.mxu0 %v1687_v9  ;;  %2526 = vmatprep.subr.bf16.mxu1 %v2202_v12  ;;  %v1759_v9 = vunpack.c.h.s8.bf16 %v1535_v11  ;;  %v1633_v12 = vunpack.c.h.s8.bf16 %v1473_v5  ;;  %v1568_v5 = vld [vmem:[#allocation23 + $0x3c8] sm:$0xff] }
 0x47a   :  { %2567 = vmatprep.subr.bf16.mxu0 %v1680_v8  ;;  %v1752_v8 = vunpack.c.l.s8.bf16 %v1536_v10  ;;  %v1593_v10 = vunpack.c.l.s8.bf16 %v1457_v56  ;;  %v1489_v56 = vld [vmem:[#allocation23 + $0x150] sm:$0xff] }
 0x47c   :  { %2527 = vmatpush2.bf16.msra.mxu1 %v2201_v21  ;;  %v3998_v21 = vpack.c.bf16 %v859_v7, %v859_v7  ;;  %v1506_v7 = vld [vmem:[#allocation23 + $0x1d8] sm:$0xff] }
 0x47d   :  { %2568 = vmatpush2.bf16.msra.mxu0 %v1679_v42  ;;  %2528 = vmatprep.subr.bf16.mxu1 %v2194_v22 }
 0x47e   :  { %2569 = vmatprep.subr.bf16.mxu0 %v1672_v62  ;;  %v1626_v62 = vunpack.c.l.s8.bf16 %v1474_v60  ;;  %v1511_v60 = vld [vmem:[#allocation23 + $0x200] sm:$0xff] }
 0x480   :  { %2529 = vmatpush2.bf16.msra.mxu1 %v2193_v41  ;;  %v1751_v41 = vunpack.c.l.s8.bf16 %v1535_v11 }
 0x481   :  { %2570 = vmatpush2.bf16.msra.mxu0 %v1671_v25  ;;  %2530 = vmatprep.subr.bf16.mxu1 %v2186_v26 }
 0x482   :  { %2571 = vmatprep.subr.bf16.mxu0 %v1664_v28  ;;  %v1527_v28 = vld [vmem:[#allocation23 + $0x280] sm:$0xff] }
 0x483   :  { %v1743_v34 = vunpack.c.h.s8.bf16 %v1527_v28 }
 0x484   :  { %2531 = vmatpush2.bf16.msra.mxu1 %v2185_v31  ;;  %v1465_v31 = vld [vmem:[#allocation23 + $0x90] sm:$0xff] }
 0x485   :  { %2572 = vmatpush2.bf16.msra.mxu0 %v1663_v32  ;;  %2532 = vmatprep.subr.bf16.mxu1 %v2178_v33  ;;  %v1617_v37 = vunpack.c.h.s8.bf16 %v1465_v31  ;;  %v1609_v49 = vunpack.c.l.s8.bf16 %v1465_v31 }
 0x486   :  { %2573 = vmatprep.subr.bf16.mxu0 %v1656_v35 }
 0x488   :  { %2533 = vmatpush2.bf16.msra.mxu1 %v2177_v46  ;;  %v1610_v46 = vunpack.c.l.s8.bf16 %v1466_v23 }
 0x489   :  { %2574 = vmatpush2.bf16.msra.mxu0 %v1655_v43  ;;  %2534 = vmatprep.subr.bf16.mxu1 %v2170_v48  ;;  %v1520_v43 = vld [vmem:[#allocation23 + $0x248] sm:$0xff]  ;;  %v1458_v48 = vld [vmem:[#allocation23 + $0x58] sm:$0xff] }
 0x48a   :  { %2575 = vmatprep.subr.bf16.mxu0 %v1648_v55  ;;  %v1728_v50 = vunpack.c.h.s8.bf16 %v1520_v43  ;;  %v1602_v55 = vunpack.c.h.s8.bf16 %v1458_v48 }
 0x48c   :  { %2535 = vmatpush2.bf16.msra.mxu1 %v2169_v38  ;;  %v1720_v38 = vunpack.c.l.s8.bf16 %v1520_v43  ;;  %v1552_v43 = vld [vmem:[#allocation23 + $0x348] sm:$0xff] }
 0x48d   :  { %2576 = vmatpush2.bf16.msra.mxu0 %v1647_v47  ;;  %2536 = vmatprep.subr.bf16.mxu1 %v2162_v39  ;;  %v1594_v47 = vunpack.c.l.s8.bf16 %v1458_v48  ;;  %v1512_v39 = vld [vmem:[#allocation23 + $0x208] sm:$0xff]  ;;  %v1490_v48 = vld [vmem:[#allocation23 + $0x158] sm:$0xff] }
 0x48e   :  { %2577 = vmatprep.subr.bf16.mxu0 %v1640_v44  ;;  %v1719_v44 = vunpack.c.l.s8.bf16 %v1519_v51  ;;  %v1712_v59 = vunpack.c.h.s8.bf16 %v1512_v39  ;;  %v1704_v2 = vunpack.c.l.s8.bf16 %v1512_v39  ;;  %v1551_v51 = vld [vmem:[#allocation23 + $0x340] sm:$0xff]  ;;  %v1658_v39 = vunpack.c.l.s8.bf16 %v1490_v48 }
 0x490   :  { %2537 = vmatpush2.bf16.msra.mxu1 %v2161_v61  ;;  %v1586_v61 = vunpack.c.h.s8.bf16 %v1450_v58 }
 0x491   :  { %2578 = vmatpush2.bf16.msra.mxu0 %v1639_v57  ;;  %2588 = vmatprep.subr.bf16.mxu1 %v1760_v1  ;;  %v1449_v57 = vld [vmem:[#allocation23 + $0x10] sm:$0xff]  ;;  %v1711_v1 = vunpack.c.h.s8.bf16 %v1511_v60 }
 0x492   :  { %2629 = vmatprep.subr.bf16.mxu0 %v1634_v3  ;;  %v1585_v11 = vunpack.c.h.s8.bf16 %v1449_v57  ;;  %v1578_v3 = vunpack.c.l.s8.bf16 %v1450_v58  ;;  %v1544_v58 = vld [vmem:[#allocation23 + $0x308] sm:$0xff] }
 0x493   :  { %2539 = vmatmul.mubr.bf16.vlgmr.msra.gmra.mxu1 %v3955_v0  ;;  %v2294_v42 = vpop.f32.mrf.mxu1  ;;  %v4001_v22 = vpop.f32.mrf.mxu0  ;;  %v1744_v0 = vunpack.c.h.s8.bf16 %v1528_v20  ;;  %v1567_v20 = vld [vmem:[#allocation23 + $0x3c0] sm:$0xff] }
 0x494   :  { %v4004_v24 = vadd.f32 %v2294_v42, %v3977_v63  ;;  %2580 = vmatmul.mubr.bf16.vlgmr.msra.gmra.mxu0 %v3996_v17  ;;  %2589 = vmatpush1.bf16.msra.mxu1 %v1759_v9  ;;  %v1618_v63 = vunpack.c.h.s8.bf16 %v1466_v23  ;;  %v1703_v9 = vunpack.c.l.s8.bf16 %v1511_v60  ;;  %v1698_v42 = vunpack.c.h.s8.bf16 %v1506_v7 }
 0x495   :  { %2620 = vmatprep.mubr.bf16.mxu1 %v3998_v21  ;;  %2630 = vmatpush1.bf16.msra.mxu0 %v1633_v12  ;;  %v2296_v25 = vpop.f32.mrf.mxu1  ;;  %v4008_v26 = vpop.f32.mrf.mxu0  ;;  %v1577_v12 = vunpack.c.l.s8.bf16 %v1449_v57  ;;  %v1823_v23 = vunpack.c.h.s8.bf16 %v1567_v20  ;;  %v843_v60 = vrot.slane %v3971_v45, %v3853_v16  ;;  %v1776_v57 = vunpack.c.h.s8.bf16 %v1544_v58 }
 0x496   :  { %2661 = vmatprep.mubr.bf16.mxu0 %v3979_v4  ;;  %v4012_v29 = vadd.f32 %v2296_v25, %v3983_v6  ;;  %2590 = vmatprep.subr.bf16.mxu1 %v1752_v8  ;;  %v1735_v6 = vunpack.c.l.s8.bf16 %v1527_v28  ;;  %v1824_v8 = vunpack.c.h.s8.bf16 %v1568_v5  ;;  %v1816_v25 = vunpack.c.l.s8.bf16 %v1568_v5  ;;  %v1498_v28 = vld [vmem:[#allocation23 + $0x198] sm:$0xff] }
 0x497   :  { %v2298_v32 = vpop.f32.mrf.mxu1  ;;  %v2339_v33 = vpop.f32.mrf.mxu0  ;;  %2631 = vmatprep.subr.bf16.mxu0 %v1626_v62  ;;  %v1505_v62 = vld [vmem:[#allocation23 + $0x1d0] sm:$0xff] }
 0x498   :  { %2591 = vmatpush1.bf16.msra.mxu1 %v1751_v41  ;;  %v1697_v41 = vunpack.c.h.s8.bf16 %v1505_v62  ;;  %v1689_v31 = vunpack.c.l.s8.bf16 %v1505_v62  ;;  %v1559_v33 = vld [vmem:[#allocation23 + $0x380] sm:$0xff]  ;;  %v1537_v62 = vld [vmem:[#allocation23 + $0x2d0] sm:$0xff] }
 0x499   :  { %2632 = vmatpush1.bf16.msra.mxu0 %v1625_v27  ;;  %v2299_v35 = vpop.f32.mrf.mxu1  ;;  %v2340_v36 = vpop.f32.mrf.mxu0  ;;  %2592 = vmatprep.subr.bf16.mxu1 %v1744_v0  ;;  %v1690_v27 = vunpack.c.l.s8.bf16 %v1506_v7  ;;  %v1560_v0 = vld [vmem:[#allocation23 + $0x388] sm:$0xff]  ;;  %v1768_v7 = vunpack.c.l.s8.bf16 %v1544_v58 }
 0x49a   :  { %2633 = vmatprep.subr.bf16.mxu0 %v1618_v63  ;;  %v1815_v63 = vunpack.c.l.s8.bf16 %v1567_v20  ;;  %v1808_v32 = vunpack.c.h.s8.bf16 %v1560_v0  ;;  %v1497_v35 = vld [vmem:[#allocation23 + $0x190] sm:$0xff]  ;;  %v1807_v36 = vunpack.c.h.s8.bf16 %v1559_v33 }
 0x49c   :  { %2593 = vmatpush1.bf16.msra.mxu1 %v1743_v34  ;;  %v1682_v34 = vunpack.c.h.s8.bf16 %v1498_v28 }
 0x49d   :  { %2634 = vmatpush1.bf16.msra.mxu0 %v1617_v37  ;;  %2594 = vmatprep.subr.bf16.mxu1 %v1736_v40  ;;  %v1681_v37 = vunpack.c.h.s8.bf16 %v1497_v35  ;;  %v1800_v40 = vunpack.c.l.s8.bf16 %v1560_v0 }
 0x49e   :  { %2635 = vmatprep.subr.bf16.mxu0 %v1610_v46  ;;  %v1674_v46 = vunpack.c.l.s8.bf16 %v1498_v28 }
 0x4a0   :  { %2595 = vmatpush1.bf16.msra.mxu1 %v1735_v6  ;;  %v1799_v6 = vunpack.c.l.s8.bf16 %v1559_v33  ;;  %v1468_v33 = vld [vmem:[#allocation23 + $0xa8] sm:$0xff] }
 0x4a1   :  { %2636 = vmatpush1.bf16.msra.mxu0 %v1609_v49  ;;  %2596 = vmatprep.subr.bf16.mxu1 %v1728_v50  ;;  %v1673_v49 = vunpack.c.l.s8.bf16 %v1497_v35  ;;  %v1792_v50 = vunpack.c.h.s8.bf16 %v1552_v43 }
 0x4a2   :  { %2637 = vmatprep.subr.bf16.mxu0 %v1602_v55  ;;  %v1666_v55 = vunpack.c.h.s8.bf16 %v1490_v48 }
 0x4a4   :  { %2597 = vmatpush1.bf16.msra.mxu1 %v1727_v53  ;;  %v1791_v53 = vunpack.c.h.s8.bf16 %v1551_v51 }
 0x4a5   :  { %2638 = vmatpush1.bf16.msra.mxu0 %v1601_v54  ;;  %2598 = vmatprep.subr.bf16.mxu1 %v1720_v38  ;;  %v817_v54 = vrot.slane %v3967_v30, %v3853_v16  ;;  %v1665_v38 = vunpack.c.h.s8.bf16 %v1489_v56  ;;  %v1543_v30 = vld [vmem:[#allocation23 + $0x300] sm:$0xff] }
 0x4a6   :  { %2639 = vmatprep.subr.bf16.mxu0 %v1594_v47  ;;  %v1784_v47 = vunpack.c.l.s8.bf16 %v1552_v43  ;;  %v1767_v45 = vunpack.c.l.s8.bf16 %v1543_v30  ;;  %v1529_v43 = vld [vmem:[#allocation23 + $0x290] sm:$0xff] }
 0x4a7   :  { %v1737_v58 = vunpack.c.l.s8.bf16 %v1529_v43 }
 0x4a8   :  { %2599 = vmatpush1.bf16.msra.mxu1 %v1719_v44  ;;  %v1482_v44 = vld [vmem:[#allocation23 + $0x118] sm:$0xff] }
 0x4a9   :  { %2640 = vmatpush1.bf16.msra.mxu0 %v1593_v10  ;;  %2600 = vmatprep.subr.bf16.mxu1 %v1712_v59  ;;  %v1783_v10 = vunpack.c.l.s8.bf16 %v1551_v51  ;;  %v828_v59 = vmul.f32 %v817_v54, %v3891_v52  ;;  %v1642_v52 = vunpack.c.l.s8.bf16 %v1482_v44 }
 0x4aa   :  { %2641 = vmatprep.subr.bf16.mxu0 %v1586_v61  ;;  %v1657_v61 = vunpack.c.l.s8.bf16 %v1489_v56 }
 0x4ac   :  { %2601 = vmatpush1.bf16.msra.mxu1 %v1711_v1  ;;  %v1650_v1 = vunpack.c.h.s8.bf16 %v1482_v44 }
 0x4ad   :  { %2642 = vmatpush1.bf16.msra.mxu0 %v1585_v11  ;;  %2602 = vmatprep.subr.bf16.mxu1 %v1704_v2  ;;  %v1481_v11 = vld [vmem:[#allocation23 + $0x110] sm:$0xff]  ;;  %v1775_v2 = vunpack.c.h.s8.bf16 %v1543_v30 }
 0x4ae   :  { %2643 = vmatprep.subr.bf16.mxu0 %v1578_v3  ;;  %v854_v3 = vadd.f32 %v843_v60, %v828_v59  ;;  %v1649_v5 = vunpack.c.h.s8.bf16 %v1481_v11  ;;  %v1641_v20 = vunpack.c.l.s8.bf16 %v1481_v11  ;;  %v1521_v59 = vld [vmem:[#allocation23 + $0x250] sm:$0xff] }
 0x4b0   :  { %2603 = vmatpush1.bf16.msra.mxu1 %v1703_v9  ;;  %v1538_v9 = vld [vmem:[#allocation23 + $0x2d8] sm:$0xff] }
 0x4b1   :  { %2644 = vmatpush1.bf16.msra.mxu0 %v1577_v12  ;;  %2604 = vmatprep.subr.bf16.mxu1 %v1824_v8  ;;  %v1476_v12 = vld [vmem:[#allocation23 + $0xe8] sm:$0xff]  ;;  %v858_v8 = vmax.f32 %v854_v3, 0.0  ;;  %v1754_v28 = vunpack.c.l.s8.bf16 %v1538_v9 }
 0x4b2   :  { %2645 = vmatprep.subr.bf16.mxu0 %v1698_v42  ;;  %v1762_v42 = vunpack.c.h.s8.bf16 %v1538_v9  ;;  %v1452_v3 = vld [vmem:[#allocation23 + $0x28] sm:$0xff]  ;;  %v1513_v9 = vld [vmem:[#allocation23 + $0x210] sm:$0xff] }
 0x4b4   :  { %2605 = vmatpush2.bf16.msra.mxu1 %v1823_v23  ;;  %v1636_v23 = vunpack.c.h.s8.bf16 %v1476_v12 }
 0x4b5   :  { %2646 = vmatpush2.bf16.msra.mxu0 %v1697_v41  ;;  %2606 = vmatprep.subr.bf16.mxu1 %v1816_v25  ;;  %v1475_v41 = vld [vmem:[#allocation23 + $0xe0] sm:$0xff]  ;;  %v1761_v25 = vunpack.c.h.s8.bf16 %v1537_v62 }
 0x4b6   :  { %2647 = vmatprep.subr.bf16.mxu0 %v1690_v27  ;;  %v4019_v27 = vpack.c.bf16 %v858_v8, %v858_v8  ;;  %v1635_v0 = vunpack.c.h.s8.bf16 %v1475_v41  ;;  %v1713_v8 = vunpack.c.h.s8.bf16 %v1513_v9 }
 0x4b8   :  { %2607 = vmatpush2.bf16.msra.mxu1 %v1815_v63  ;;  %v1530_v63 = vld [vmem:[#allocation23 + $0x298] sm:$0xff] }
 0x4b9   :  { %2648 = vmatpush2.bf16.msra.mxu0 %v1689_v31  ;;  %2608 = vmatprep.subr.bf16.mxu1 %v1808_v32  ;;  %v1628_v32 = vunpack.c.l.s8.bf16 %v1476_v12  ;;  %v1738_v54 = vunpack.c.l.s8.bf16 %v1530_v63  ;;  %v1588_v12 = vunpack.c.h.s8.bf16 %v1452_v3 }
 0x4ba   :  { %2649 = vmatprep.subr.bf16.mxu0 %v1682_v34 }
 0x4bc   :  { %2609 = vmatpush2.bf16.msra.mxu1 %v1807_v36  ;;  %v1753_v36 = vunpack.c.l.s8.bf16 %v1537_v62  ;;  %v1580_v62 = vunpack.c.l.s8.bf16 %v1452_v3  ;;  %v1484_v3 = vld [vmem:[#allocation23 + $0x128] sm:$0xff] }
 0x4bd   :  { %2650 = vmatpush2.bf16.msra.mxu0 %v1681_v37  ;;  %2610 = vmatprep.subr.bf16.mxu1 %v1800_v40  ;;  %v1627_v40 = vunpack.c.l.s8.bf16 %v1475_v41  ;;  %v1508_v41 = vld [vmem:[#allocation23 + $0x1e8] sm:$0xff] }
 0x4be   :  { %2651 = vmatprep.subr.bf16.mxu0 %v1674_v46  ;;  %v1746_v46 = vunpack.c.h.s8.bf16 %v1530_v63  ;;  %v1569_v63 = vld [vmem:[#allocation23 + $0x3d0] sm:$0xff] }
 0x4c0   :  { %2611 = vmatpush2.bf16.msra.mxu1 %v1799_v6  ;;  %v1620_v6 = vunpack.c.h.s8.bf16 %v1468_v33 }
 0x4c1   :  { %2652 = vmatpush2.bf16.msra.mxu0 %v1673_v49  ;;  %2612 = vmatprep.subr.bf16.mxu1 %v1792_v50  ;;  %v1467_v49 = vld [vmem:[#allocation23 + $0xa0] sm:$0xff] }
 0x4c2   :  { %2653 = vmatprep.subr.bf16.mxu0 %v1666_v55  ;;  %v1745_v55 = vunpack.c.h.s8.bf16 %v1529_v43  ;;  %v1611_v44 = vunpack.c.l.s8.bf16 %v1467_v49  ;;  %v1500_v43 = vld [vmem:[#allocation23 + $0x1a8] sm:$0xff] }
 0x4c4   :  { %2613 = vmatpush2.bf16.msra.mxu1 %v1791_v53  ;;  %v1619_v53 = vunpack.c.h.s8.bf16 %v1467_v49 }
 0x4c5   :  { %2654 = vmatpush2.bf16.msra.mxu0 %v1665_v38  ;;  %2614 = vmatprep.subr.bf16.mxu1 %v1784_v47  ;;  %v1522_v47 = vld [vmem:[#allocation23 + $0x258] sm:$0xff] }
 0x4c6   :  { %2655 = vmatprep.subr.bf16.mxu0 %v1658_v39  ;;  %v1460_v39 = vld [vmem:[#allocation23 + $0x68] sm:$0xff] }
 0x4c7   :  { %v1604_v60 = vunpack.c.h.s8.bf16 %v1460_v39  ;;  %v1596_v11 = vunpack.c.l.s8.bf16 %v1460_v39  ;;  %v1492_v39 = vld [vmem:[#allocation23 + $0x168] sm:$0xff] }
 0x4c8   :  { %2615 = vmatpush2.bf16.msra.mxu1 %v1783_v10  ;;  %v1730_v10 = vunpack.c.h.s8.bf16 %v1522_v47 }
 0x4c9   :  { %2656 = vmatpush2.bf16.msra.mxu0 %v1657_v61  ;;  %2616 = vmatprep.subr.bf16.mxu1 %v1776_v57  ;;  %v1459_v61 = vld [vmem:[#allocation23 + $0x60] sm:$0xff]  ;;  %v1729_v57 = vunpack.c.h.s8.bf16 %v1521_v59 }
 0x4ca   :  { %2657 = vmatprep.subr.bf16.mxu0 %v1650_v1  ;;  %v1603_v30 = vunpack.c.h.s8.bf16 %v1459_v61  ;;  %v1722_v1 = vunpack.c.l.s8.bf16 %v1522_v47  ;;  %v1554_v47 = vld [vmem:[#allocation23 + $0x358] sm:$0xff] }
 0x4cc   :  { %2617 = vmatpush2.bf16.msra.mxu1 %v1775_v2  ;;  %v1514_v2 = vld [vmem:[#allocation23 + $0x218] sm:$0xff] }
 0x4cd   :  { %2658 = vmatpush2.bf16.msra.mxu0 %v1649_v5  ;;  %2618 = vmatprep.subr.bf16.mxu1 %v1768_v7  ;;  %v1721_v5 = vunpack.c.l.s8.bf16 %v1521_v59  ;;  %v1595_v7 = vunpack.c.l.s8.bf16 %v1459_v61  ;;  %v1553_v59 = vld [vmem:[#allocation23 + $0x350] sm:$0xff]  ;;  %v1491_v61 = vld [vmem:[#allocation23 + $0x160] sm:$0xff] }
 0x4ce   :  { %2659 = vmatprep.subr.bf16.mxu0 %v1642_v52  ;;  %v1714_v52 = vunpack.c.h.s8.bf16 %v1514_v2 }
 0x4d0   :  { %2619 = vmatpush2.bf16.msra.mxu1 %v1767_v45  ;;  %v1451_v45 = vld [vmem:[#allocation23 + $0x20] sm:$0xff] }
 0x4d1   :  { %2660 = vmatpush2.bf16.msra.mxu0 %v1641_v20  ;;  %2670 = vmatprep.subr.bf16.mxu1 %v1762_v42  ;;  %v1587_v20 = vunpack.c.h.s8.bf16 %v1451_v45  ;;  %v1706_v42 = vunpack.c.l.s8.bf16 %v1514_v2  ;;  %v1546_v2 = vld [vmem:[#allocation23 + $0x318] sm:$0xff] }
 0x4d2   :  { %2711 = vmatprep.subr.bf16.mxu0 %v1636_v23  ;;  %v1570_v23 = vld [vmem:[#allocation23 + $0x3d8] sm:$0xff] }
 0x4d3   :  { %v2376_v31 = vpop.f32.mrf.mxu1  ;;  %2621 = vmatmul.mubr.bf16.vlgmr.msra.gmra.mxu1 %v4019_v27 }
 0x4d4   :  { %v4023_v34 = vadd.f32 %v2376_v31, %v4001_v22  ;;  %v4025_v35 = vpop.f32.mrf.mxu0  ;;  %2662 = vmatmul.mubr.bf16.vlgmr.msra.gmra.mxu0 %v3996_v17  ;;  %2671 = vmatpush1.bf16.msra.mxu1 %v1761_v25  ;;  %v1705_v25 = vunpack.c.l.s8.bf16 %v1513_v9  ;;  %v1700_v31 = vunpack.c.h.s8.bf16 %v1508_v41  ;;  %v1545_v9 = vld [vmem:[#allocation23 + $0x310] sm:$0xff] }
 0x4d5   :  { %2702 = vmatprep.mubr.bf16.mxu1 %v3998_v21  ;;  %v2378_v37 = vpop.f32.mrf.mxu1  ;;  %2712 = vmatpush1.bf16.msra.mxu0 %v1635_v0  ;;  %v1579_v0 = vunpack.c.l.s8.bf16 %v1451_v45  ;;  %v1483_v45 = vld [vmem:[#allocation23 + $0x120] sm:$0xff] }
 0x4d6   :  { %v4030_v48 = vadd.f32 %v2378_v37, %v4008_v26  ;;  %2743 = vmatprep.mubr.bf16.mxu0 %v3979_v4  ;;  %v4033_v22 = vpop.f32.mrf.mxu0  ;;  %2672 = vmatprep.subr.bf16.mxu1 %v1754_v28  ;;  %v1612_v26 = vunpack.c.l.s8.bf16 %v1468_v33  ;;  %v1826_v28 = vunpack.c.h.s8.bf16 %v1570_v23  ;;  %v1825_v33 = vunpack.c.h.s8.bf16 %v1569_v63 }
 0x4d7   :  { %v2380_v50 = vpop.f32.mrf.mxu1  ;;  %2713 = vmatprep.subr.bf16.mxu0 %v1628_v32  ;;  %v1507_v32 = vld [vmem:[#allocation23 + $0x1e0] sm:$0xff]  ;;  %v1818_v37 = vunpack.c.l.s8.bf16 %v1570_v23  ;;  %v1540_v23 = vld [vmem:[#allocation23 + $0x2e8] sm:$0xff] }
 0x4d8   :  { %v2421_v51 = vpop.f32.mrf.mxu0  ;;  %2673 = vmatpush1.bf16.msra.mxu1 %v1753_v36  ;;  %v1699_v36 = vunpack.c.h.s8.bf16 %v1507_v32  ;;  %v1691_v49 = vunpack.c.l.s8.bf16 %v1507_v32  ;;  %v1477_v32 = vld [vmem:[#allocation23 + $0xf0] sm:$0xff] }
 0x4d9   :  { %v2381_v56 = vpop.f32.mrf.mxu1  ;;  %2714 = vmatpush1.bf16.msra.mxu0 %v1627_v40  ;;  %2674 = vmatprep.subr.bf16.mxu1 %v1746_v46  ;;  %v1692_v40 = vunpack.c.l.s8.bf16 %v1508_v41  ;;  %v1562_v46 = vld [vmem:[#allocation23 + $0x398] sm:$0xff]  ;;  %v1561_v51 = vld [vmem:[#allocation23 + $0x390] sm:$0xff] }
 0x4da   :  { %v2422_v38 = vpop.f32.mrf.mxu0  ;;  %2715 = vmatprep.subr.bf16.mxu0 %v1620_v6  ;;  %v1817_v6 = vunpack.c.l.s8.bf16 %v1569_v63  ;;  %v1810_v50 = vunpack.c.h.s8.bf16 %v1562_v46  ;;  %v1499_v56 = vld [vmem:[#allocation23 + $0x1a0] sm:$0xff]  ;;  %v1478_v41 = vld [vmem:[#allocation23 + $0xf8] sm:$0xff] }
 0x4db   :  { %v1802_v38 = vunpack.c.l.s8.bf16 %v1562_v46  ;;  %v1539_v63 = vld [vmem:[#allocation23 + $0x2e0] sm:$0xff] }
 0x4dc   :  { %2675 = vmatpush1.bf16.msra.mxu1 %v1745_v55  ;;  %v1684_v55 = vunpack.c.h.s8.bf16 %v1500_v43 }
 0x4dd   :  { %2716 = vmatpush1.bf16.msra.mxu0 %v1619_v53  ;;  %2676 = vmatprep.subr.bf16.mxu1 %v1738_v54  ;;  %v1809_v53 = vunpack.c.h.s8.bf16 %v1561_v51  ;;  %v1683_v54 = vunpack.c.h.s8.bf16 %v1499_v56 }
 0x4de   :  { %2717 = vmatprep.subr.bf16.mxu0 %v1612_v26  ;;  %v1676_v26 = vunpack.c.l.s8.bf16 %v1500_v43  ;;  %v1630_v43 = vunpack.c.l.s8.bf16 %v1478_v41 }
 0x4e0   :  { %2677 = vmatpush1.bf16.msra.mxu1 %v1737_v58  ;;  %v1801_v58 = vunpack.c.l.s8.bf16 %v1561_v51  ;;  %v1755_v51 = vunpack.c.l.s8.bf16 %v1539_v63 }
 0x4e1   :  { %2718 = vmatpush1.bf16.msra.mxu0 %v1611_v44  ;;  %2678 = vmatprep.subr.bf16.mxu1 %v1730_v10  ;;  %v1675_v44 = vunpack.c.l.s8.bf16 %v1499_v56  ;;  %v1794_v10 = vunpack.c.h.s8.bf16 %v1554_v47  ;;  %v1629_v56 = vunpack.c.l.s8.bf16 %v1477_v32 }
 0x4e2   :  { %2719 = vmatprep.subr.bf16.mxu0 %v1604_v60  ;;  %v1668_v60 = vunpack.c.h.s8.bf16 %v1492_v39 }
 0x4e4   :  { %2679 = vmatpush1.bf16.msra.mxu1 %v1729_v57  ;;  %v1793_v57 = vunpack.c.h.s8.bf16 %v1553_v59 }
 0x4e5   :  { %2720 = vmatpush1.bf16.msra.mxu0 %v1603_v30  ;;  %2680 = vmatprep.subr.bf16.mxu1 %v1722_v1  ;;  %v1667_v30 = vunpack.c.h.s8.bf16 %v1491_v61  ;;  %v1786_v1 = vunpack.c.l.s8.bf16 %v1554_v47  ;;  %v1469_v47 = vld [vmem:[#allocation23 + $0xb0] sm:$0xff] }
 0x4e6   :  { %2721 = vmatprep.subr.bf16.mxu0 %v1596_v11  ;;  %v1660_v11 = vunpack.c.l.s8.bf16 %v1492_v39 }
 0x4e8   :  { %2681 = vmatpush1.bf16.msra.mxu1 %v1721_v5  ;;  %v1785_v5 = vunpack.c.l.s8.bf16 %v1553_v59  ;;  %v1621_v59 = vunpack.c.h.s8.bf16 %v1469_v47 }
 0x4e9   :  { %2722 = vmatpush1.bf16.msra.mxu0 %v1595_v7  ;;  %2682 = vmatprep.subr.bf16.mxu1 %v1714_v52  ;;  %v1659_v7 = vunpack.c.l.s8.bf16 %v1491_v61  ;;  %v1778_v52 = vunpack.c.h.s8.bf16 %v1546_v2 }
 0x4ea   :  { %2723 = vmatprep.subr.bf16.mxu0 %v1588_v12  ;;  %v1652_v12 = vunpack.c.h.s8.bf16 %v1484_v3 }
 0x4ec   :  { %2683 = vmatpush1.bf16.msra.mxu1 %v1713_v8  ;;  %v1777_v8 = vunpack.c.h.s8.bf16 %v1545_v9 }
 0x4ed   :  { %2724 = vmatpush1.bf16.msra.mxu0 %v1587_v20  ;;  %2684 = vmatprep.subr.bf16.mxu1 %v1706_v42  ;;  %v1651_v20 = vunpack.c.h.s8.bf16 %v1483_v45  ;;  %v1770_v42 = vunpack.c.l.s8.bf16 %v1546_v2  ;;  %v1523_v2 = vld [vmem:[#allocation23 + $0x260] sm:$0xff] }
 0x4ee   :  { %2725 = vmatprep.subr.bf16.mxu0 %v1580_v62  ;;  %v1644_v62 = vunpack.c.l.s8.bf16 %v1484_v3 }
 0x4f0   :  { %2685 = vmatpush1.bf16.msra.mxu1 %v1705_v25  ;;  %v1769_v25 = vunpack.c.l.s8.bf16 %v1545_v9 }
 0x4f1   :  { %2726 = vmatpush1.bf16.msra.mxu0 %v1579_v0  ;;  %2686 = vmatprep.subr.bf16.mxu1 %v1826_v28  ;;  %v1643_v0 = vunpack.c.l.s8.bf16 %v1483_v45  ;;  %v1764_v28 = vunpack.c.h.s8.bf16 %v1540_v23  ;;  %v1516_v45 = vld [vmem:[#allocation23 + $0x228] sm:$0xff] }
 0x4f2   :  { %2727 = vmatprep.subr.bf16.mxu0 %v1700_v31  ;;  %v1638_v31 = vunpack.c.h.s8.bf16 %v1478_v41 }
 0x4f4   :  { %2687 = vmatpush2.bf16.msra.mxu1 %v1825_v33  ;;  %v1763_v33 = vunpack.c.h.s8.bf16 %v1539_v63  ;;  %v1708_v63 = vunpack.c.l.s8.bf16 %v1516_v45 }
 0x4f5   :  { %2728 = vmatpush2.bf16.msra.mxu0 %v1699_v36  ;;  %2688 = vmatprep.subr.bf16.mxu1 %v1818_v37  ;;  %v1637_v36 = vunpack.c.h.s8.bf16 %v1477_v32  ;;  %v1756_v37 = vunpack.c.l.s8.bf16 %v1540_v23  ;;  %v1515_v23 = vld [vmem:[#allocation23 + $0x220] sm:$0xff]  ;;  %v1572_v32 = vld [vmem:[#allocation23 + $0x3e8] sm:$0xff] }
 0x4f6   :  { %2729 = vmatprep.subr.bf16.mxu0 %v1692_v40  ;;  %v1532_v40 = vld [vmem:[#allocation23 + $0x2a8] sm:$0xff] }
 0x4f8   :  { %2689 = vmatpush2.bf16.msra.mxu1 %v1817_v6  ;;  %v1470_v6 = vld [vmem:[#allocation23 + $0xb8] sm:$0xff] }
 0x4f9   :  { %2730 = vmatpush2.bf16.msra.mxu0 %v1691_v49  ;;  %2690 = vmatprep.subr.bf16.mxu1 %v1810_v50 }
 0x4fa   :  { %2731 = vmatprep.subr.bf16.mxu0 %v1684_v55 }
 0x4fc   :  { %2691 = vmatpush2.bf16.msra.mxu1 %v1809_v53  ;;  %v1748_v53 = vunpack.c.h.s8.bf16 %v1532_v40 }
 0x4fd   :  { %2732 = vmatpush2.bf16.msra.mxu0 %v1683_v54  ;;  %2692 = vmatprep.subr.bf16.mxu1 %v1802_v38  ;;  %v1531_v54 = vld [vmem:[#allocation23 + $0x2a0] sm:$0xff] }
 0x4fe   :  { %2733 = vmatprep.subr.bf16.mxu0 %v1676_v26  ;;  %v1622_v26 = vunpack.c.h.s8.bf16 %v1470_v6 }
 0x500   :  { %2693 = vmatpush2.bf16.msra.mxu1 %v1801_v58 }
 0x501   :  { %2734 = vmatpush2.bf16.msra.mxu0 %v1675_v44  ;;  %2694 = vmatprep.subr.bf16.mxu1 %v1794_v10  ;;  %v1747_v44 = vunpack.c.h.s8.bf16 %v1531_v54 }
 0x502   :  { %2735 = vmatprep.subr.bf16.mxu0 %v1668_v60  ;;  %v1740_v60 = vunpack.c.l.s8.bf16 %v1532_v40  ;;  %v1828_v40 = vunpack.c.h.s8.bf16 %v1572_v32 }
 0x504   :  { %2695 = vmatpush2.bf16.msra.mxu1 %v1793_v57  ;;  %v1524_v57 = vld [vmem:[#allocation23 + $0x268] sm:$0xff] }
 0x505   :  { %2736 = vmatpush2.bf16.msra.mxu0 %v1667_v30  ;;  %2696 = vmatprep.subr.bf16.mxu1 %v1786_v1  ;;  %v1739_v30 = vunpack.c.l.s8.bf16 %v1531_v54  ;;  %v1613_v1 = vunpack.c.l.s8.bf16 %v1469_v47  ;;  %v1724_v9 = vunpack.c.l.s8.bf16 %v1524_v57  ;;  %v1564_v54 = vld [vmem:[#allocation23 + $0x3a8] sm:$0xff] }
 0x506   :  { %2737 = vmatprep.subr.bf16.mxu0 %v1660_v11  ;;  %v1732_v11 = vunpack.c.h.s8.bf16 %v1524_v57 }
 0x508   :  { %2697 = vmatpush2.bf16.msra.mxu1 %v1785_v5  ;;  %v1461_v5 = vld [vmem:[#allocation23 + $0x70] sm:$0xff] }
 0x509   :  { %2738 = vmatpush2.bf16.msra.mxu0 %v1659_v7  ;;  %2698 = vmatprep.subr.bf16.mxu1 %v1778_v52  ;;  %v1731_v7 = vunpack.c.h.s8.bf16 %v1523_v2  ;;  %v1605_v52 = vunpack.c.h.s8.bf16 %v1461_v5 }
 0x50a   :  { %2739 = vmatprep.subr.bf16.mxu0 %v1652_v12 }
 0x50c   :  { %2699 = vmatpush2.bf16.msra.mxu1 %v1777_v8  ;;  %v1454_v8 = vld [vmem:[#allocation23 + $0x38] sm:$0xff] }
 0x50d   :  { %2740 = vmatpush2.bf16.msra.mxu0 %v1651_v20  ;;  %2700 = vmatprep.subr.bf16.mxu1 %v1770_v42  ;;  %v1723_v20 = vunpack.c.l.s8.bf16 %v1523_v2  ;;  %v1597_v42 = vunpack.c.l.s8.bf16 %v1461_v5  ;;  %v1590_v41 = vunpack.c.h.s8.bf16 %v1454_v8 }
 0x50e   :  { %2741 = vmatprep.subr.bf16.mxu0 %v1644_v62  ;;  %v1716_v62 = vunpack.c.h.s8.bf16 %v1516_v45 }
 0x510   :  { %2701 = vmatpush2.bf16.msra.mxu1 %v1769_v25  ;;  %v1453_v25 = vld [vmem:[#allocation23 + $0x30] sm:$0xff] }
 0x511   :  { %2742 = vmatpush2.bf16.msra.mxu0 %v1643_v0  ;;  %2752 = vmatprep.subr.bf16.mxu1 %v1764_v28  ;;  %v1715_v0 = vunpack.c.h.s8.bf16 %v1515_v23  ;;  %v1589_v28 = vunpack.c.h.s8.bf16 %v1453_v25 }
 0x512   :  { %2793 = vmatprep.subr.bf16.mxu0 %v1638_v31  ;;  %v1582_v31 = vunpack.c.l.s8.bf16 %v1454_v8  ;;  %v1548_v8 = vld [vmem:[#allocation23 + $0x328] sm:$0xff] }
 0x513   :  { %v2458_v46 = vpop.f32.mrf.mxu1  ;;  %2703 = vmatmul.mubr.bf16.vlgmr.msra.gmra.mxu1 %v4019_v27 }
 0x514   :  { %v4037_v49 = vadd.f32 %v2458_v46, %v4025_v35  ;;  %v4039_v50 = vpop.f32.mrf.mxu0  ;;  %2744 = vmatmul.mubr.bf16.vlgmr.msra.gmra.mxu0 %v3996_v17  ;;  %2753 = vmatpush1.bf16.msra.mxu1 %v1763_v33  ;;  %v1510_v33 = vld [vmem:[#allocation23 + $0x1f8] sm:$0xff]  ;;  %v1571_v46 = vld [vmem:[#allocation23 + $0x3e0] sm:$0xff] }
 0x515   :  { %2784 = vmatprep.mubr.bf16.mxu1 %v3998_v21  ;;  %v2460_v55 = vpop.f32.mrf.mxu1  ;;  %2794 = vmatpush1.bf16.msra.mxu0 %v1637_v36  ;;  %v1707_v36 = vunpack.c.l.s8.bf16 %v1515_v23  ;;  %v1819_v47 = vunpack.c.l.s8.bf16 %v1571_v46  ;;  %v1780_v23 = vunpack.c.h.s8.bf16 %v1548_v8 }
 0x516   :  { %v4044_v38 = vadd.f32 %v2460_v55, %v4033_v22  ;;  %2825 = vmatprep.mubr.bf16.mxu0 %v3979_v4  ;;  %v4047_v35 = vpop.f32.mrf.mxu0  ;;  %2754 = vmatprep.subr.bf16.mxu1 %v1756_v37  ;;  %v1614_v22 = vunpack.c.l.s8.bf16 %v1470_v6  ;;  %v1462_v4 = vld [vmem:[#allocation23 + $0x78] sm:$0xff]  ;;  %v1581_v37 = vunpack.c.l.s8.bf16 %v1453_v25  ;;  %v1509_v6 = vld [vmem:[#allocation23 + $0x1f0] sm:$0xff] }
 0x517   :  { %v2462_v39 = vpop.f32.mrf.mxu1  ;;  %2795 = vmatprep.subr.bf16.mxu0 %v1630_v43  ;;  %v1606_v3 = vunpack.c.h.s8.bf16 %v1462_v4  ;;  %v1598_v12 = vunpack.c.l.s8.bf16 %v1462_v4  ;;  %v1702_v43 = vunpack.c.h.s8.bf16 %v1510_v33  ;;  %v1701_v55 = vunpack.c.h.s8.bf16 %v1509_v6  ;;  %v1556_v4 = vld [vmem:[#allocation23 + $0x368] sm:$0xff] }
 0x518   :  { %v2503_v58 = vpop.f32.mrf.mxu0  ;;  %2755 = vmatpush1.bf16.msra.mxu1 %v1755_v51  ;;  %v1827_v51 = vunpack.c.h.s8.bf16 %v1571_v46  ;;  %v1693_v39 = vunpack.c.l.s8.bf16 %v1509_v6  ;;  %v1796_v2 = vunpack.c.h.s8.bf16 %v1556_v4  ;;  %v1541_v46 = vld [vmem:[#allocation23 + $0x2f0] sm:$0xff] }
 0x519   :  { %v2463_v10 = vpop.f32.mrf.mxu1  ;;  %2796 = vmatpush1.bf16.msra.mxu0 %v1629_v56  ;;  %2756 = vmatprep.subr.bf16.mxu1 %v1748_v53  ;;  %v1820_v56 = vunpack.c.l.s8.bf16 %v1572_v32  ;;  %v1694_v53 = vunpack.c.l.s8.bf16 %v1510_v33  ;;  %v1812_v58 = vunpack.c.h.s8.bf16 %v1564_v54  ;;  %v1542_v33 = vld [vmem:[#allocation23 + $0x2f8] sm:$0xff] }
 0x51a   :  { %v2504_v61 = vpop.f32.mrf.mxu0  ;;  %2797 = vmatprep.subr.bf16.mxu0 %v1622_v26  ;;  %v1502_v26 = vld [vmem:[#allocation23 + $0x1b8] sm:$0xff]  ;;  %v1758_v6 = vunpack.c.l.s8.bf16 %v1542_v33 }
 0x51b   :  { %v1686_v10 = vunpack.c.h.s8.bf16 %v1502_v26  ;;  %v1678_v57 = vunpack.c.l.s8.bf16 %v1502_v26 }
 0x51c   :  { %2757 = vmatpush1.bf16.msra.mxu1 %v1747_v44  ;;  %v1563_v44 = vld [vmem:[#allocation23 + $0x3a0] sm:$0xff] }
 0x51d   :  { %2798 = vmatpush1.bf16.msra.mxu0 %v1621_v59  ;;  %2758 = vmatprep.subr.bf16.mxu1 %v1740_v60  ;;  %v1501_v59 = vld [vmem:[#allocation23 + $0x1b0] sm:$0xff]  ;;  %v1811_v60 = vunpack.c.h.s8.bf16 %v1563_v44 }
 0x51e   :  { %2799 = vmatprep.subr.bf16.mxu0 %v1614_v22  ;;  %v1685_v61 = vunpack.c.h.s8.bf16 %v1501_v59  ;;  %v1804_v22 = vunpack.c.l.s8.bf16 %v1564_v54  ;;  %v1757_v54 = vunpack.c.l.s8.bf16 %v1541_v46 }
 0x520   :  { %2759 = vmatpush1.bf16.msra.mxu1 %v1739_v30  ;;  %v1494_v30 = vld [vmem:[#allocation23 + $0x178] sm:$0xff] }
 0x521   :  { %2800 = vmatpush1.bf16.msra.mxu0 %v1613_v1  ;;  %2760 = vmatprep.subr.bf16.mxu1 %v1732_v11  ;;  %v1803_v1 = vunpack.c.l.s8.bf16 %v1563_v44  ;;  %v1677_v11 = vunpack.c.l.s8.bf16 %v1501_v59  ;;  %v1670_v5 = vunpack.c.h.s8.bf16 %v1494_v30  ;;  %v1662_v45 = vunpack.c.l.s8.bf16 %v1494_v30  ;;  %v1525_v30 = vld [vmem:[#allocation23 + $0x270] sm:$0xff] }
 0x522   :  { %2801 = vmatprep.subr.bf16.mxu0 %v1606_v3  ;;  %v1555_v3 = vld [vmem:[#allocation23 + $0x360] sm:$0xff] }
 0x524   :  { %2761 = vmatpush1.bf16.msra.mxu1 %v1731_v7  ;;  %v1493_v7 = vld [vmem:[#allocation23 + $0x170] sm:$0xff] }
 0x525   :  { %2802 = vmatpush1.bf16.msra.mxu0 %v1605_v52  ;;  %2762 = vmatprep.subr.bf16.mxu1 %v1724_v9  ;;  %v1795_v52 = vunpack.c.h.s8.bf16 %v1555_v3  ;;  %v1669_v9 = vunpack.c.h.s8.bf16 %v1493_v7 }
 0x526   :  { %2803 = vmatprep.subr.bf16.mxu0 %v1598_v12  ;;  %v1788_v12 = vunpack.c.l.s8.bf16 %v1556_v4 }
 0x528   :  { %2763 = vmatpush1.bf16.msra.mxu1 %v1723_v20  ;;  %v1486_v20 = vld [vmem:[#allocation23 + $0x138] sm:$0xff] }
 0x529   :  { %2804 = vmatpush1.bf16.msra.mxu0 %v1597_v42  ;;  %2764 = vmatprep.subr.bf16.mxu1 %v1716_v62  ;;  %v1787_v42 = vunpack.c.l.s8.bf16 %v1555_v3  ;;  %v1661_v62 = vunpack.c.l.s8.bf16 %v1493_v7  ;;  %v1654_v25 = vunpack.c.h.s8.bf16 %v1486_v20  ;;  %v1646_v32 = vunpack.c.l.s8.bf16 %v1486_v20 }
 0x52a   :  { %2805 = vmatprep.subr.bf16.mxu0 %v1590_v41  ;;  %v1547_v41 = vld [vmem:[#allocation23 + $0x320] sm:$0xff] }
 0x52c   :  { %2765 = vmatpush1.bf16.msra.mxu1 %v1715_v0  ;;  %v1485_v0 = vld [vmem:[#allocation23 + $0x130] sm:$0xff] }
 0x52d   :  { %2806 = vmatpush1.bf16.msra.mxu0 %v1589_v28  ;;  %2766 = vmatprep.subr.bf16.mxu1 %v1708_v63  ;;  %v1779_v28 = vunpack.c.h.s8.bf16 %v1547_v41  ;;  %v1653_v63 = vunpack.c.h.s8.bf16 %v1485_v0 }
 0x52e   :  { %2807 = vmatprep.subr.bf16.mxu0 %v1582_v31  ;;  %v1772_v31 = vunpack.c.l.s8.bf16 %v1548_v8 }
 0x530   :  { %2767 = vmatpush1.bf16.msra.mxu1 %v1707_v36  ;;  %v1771_v36 = vunpack.c.l.s8.bf16 %v1547_v41  ;;  %v1574_v41 = vld [vmem:[#allocation23 + $0x3f8] sm:$0xff] }
 0x531   :  { %2808 = vmatpush1.bf16.msra.mxu0 %v1581_v37  ;;  %2768 = vmatprep.subr.bf16.mxu1 %v1828_v40  ;;  %v1645_v37 = vunpack.c.l.s8.bf16 %v1485_v0  ;;  %v1766_v40 = vunpack.c.h.s8.bf16 %v1542_v33 }
 0x532   :  { %2809 = vmatprep.subr.bf16.mxu0 %v1702_v43  ;;  %v1765_v43 = vunpack.c.h.s8.bf16 %v1541_v46  ;;  %v1822_v46 = vunpack.c.l.s8.bf16 %v1574_v41 }
 0x534   :  { %2769 = vmatpush2.bf16.msra.mxu1 %v1827_v51  ;;  %v1534_v51 = vld [vmem:[#allocation23 + $0x2b8] sm:$0xff] }
 0x535   :  { %2810 = vmatpush2.bf16.msra.mxu0 %v1701_v55  ;;  %2770 = vmatprep.subr.bf16.mxu1 %v1820_v56 }
 0x536   :  { %2811 = vmatprep.subr.bf16.mxu0 %v1694_v53 }
 0x538   :  { %2771 = vmatpush2.bf16.msra.mxu1 %v1819_v47 }
 0x539   :  { %2812 = vmatpush2.bf16.msra.mxu0 %v1693_v39  ;;  %2772 = vmatprep.subr.bf16.mxu1 %v1812_v58  ;;  %v1750_v39 = vunpack.c.h.s8.bf16 %v1534_v51  ;;  %v1533_v58 = vld [vmem:[#allocation23 + $0x2b0] sm:$0xff] }
 0x53a   :  { %2813 = vmatprep.subr.bf16.mxu0 %v1686_v10 }
 0x53c   :  { %2773 = vmatpush2.bf16.msra.mxu1 %v1811_v60  ;;  %v1749_v60 = vunpack.c.h.s8.bf16 %v1533_v58 }
 0x53d   :  { %2814 = vmatpush2.bf16.msra.mxu0 %v1685_v61  ;;  %2774 = vmatprep.subr.bf16.mxu1 %v1804_v22 }
 0x53e   :  { %2815 = vmatprep.subr.bf16.mxu0 %v1678_v57  ;;  %v1741_v57 = vunpack.c.l.s8.bf16 %v1533_v58 }
 0x540   :  { %2775 = vmatpush2.bf16.msra.mxu1 %v1803_v1 }
 0x541   :  { %2816 = vmatpush2.bf16.msra.mxu0 %v1677_v11  ;;  %2776 = vmatprep.subr.bf16.mxu1 %v1796_v2  ;;  %v3033_v11 = vld [vmem:[#allocation26 + $0x38] sm:$0xff] }
 0x542   :  { %2817 = vmatprep.subr.bf16.mxu0 %v1670_v5  ;;  %v3029_v2 = vld [vmem:[#allocation26 + $0x18] sm:$0xff]  ;;  %v3057_v3 = vunpack.c.h.s8.bf16 %v3033_v11  ;;  %v3056_v7 = vunpack.c.l.s8.bf16 %v3033_v11 }
 0x543   :  { %v3049_v5 = vunpack.c.h.s8.bf16 %v3029_v2  ;;  %v3048_v8 = vunpack.c.l.s8.bf16 %v3029_v2 }
 0x544   :  { %2777 = vmatpush2.bf16.msra.mxu1 %v1795_v52  ;;  %v1725_v52 = vunpack.c.l.s8.bf16 %v1525_v30 }
 0x545   :  { %2818 = vmatpush2.bf16.msra.mxu0 %v1669_v9  ;;  %2778 = vmatprep.subr.bf16.mxu1 %v1788_v12  ;;  %v3032_v9 = vld [vmem:[#allocation26 + $0x30] sm:$0xff] }
 0x546   :  { %2819 = vmatprep.subr.bf16.mxu0 %v1662_v45  ;;  %v1517_v45 = vld [vmem:[#allocation23 + $0x230] sm:$0xff]  ;;  %v3055_v20 = vunpack.c.h.s8.bf16 %v3032_v9  ;;  %v3054_v0 = vunpack.c.l.s8.bf16 %v3032_v9 }
 0x548   :  { %2779 = vmatpush2.bf16.msra.mxu1 %v1787_v42  ;;  %v3028_v42 = vld [vmem:[#allocation26 + $0x10] sm:$0xff] }
 0x549   :  { %2820 = vmatpush2.bf16.msra.mxu0 %v1661_v62  ;;  %2780 = vmatprep.subr.bf16.mxu1 %v1780_v23  ;;  %v1717_v62 = vunpack.c.h.s8.bf16 %v1517_v45  ;;  %v3046_v33 = vunpack.c.l.s8.bf16 %v3028_v42 }
 0x54a   :  { %2821 = vmatprep.subr.bf16.mxu0 %v1654_v25  ;;  %v3047_v25 = vunpack.c.h.s8.bf16 %v3028_v42  ;;  %v4092_v42 = vld [vmem:[%s4162_s18] sm:$0xf] }
 0x54c   :  { %2781 = vmatpush2.bf16.msra.mxu1 %v1779_v28  ;;  %v1709_v28 = vunpack.c.l.s8.bf16 %v1517_v45 }
 0x54d   :  { %2822 = vmatpush2.bf16.msra.mxu0 %v1653_v63  ;;  %2782 = vmatprep.subr.bf16.mxu1 %v1772_v31  ;;  %v4064_v63 = vld [vmem:[#allocation26 + $0x28] sm:$0xff]  ;;  %v1830_v31 = vunpack.c.h.s8.bf16 %v1574_v41 }
 0x54e   :  { %2823 = vmatprep.subr.bf16.mxu0 %v1646_v32  ;;  %v1573_v32 = vld [vmem:[#allocation23 + $0x3f0] sm:$0xff] }
 0x550   :  { %2783 = vmatpush2.bf16.msra.mxu1 %v1771_v36  ;;  %v3053_v36 = vunpack.c.h.s8.bf16 %v4064_v63 }
 0x551   :  { %2824 = vmatpush2.bf16.msra.mxu0 %v1645_v37  ;;  %2834 = vmatprep.subr.bf16.mxu1 %v1766_v40  ;;  %v3027_v37 = vld [vmem:[#allocation26 + $0x8] sm:$0xff]  ;;  %v1829_v40 = vunpack.c.h.s8.bf16 %v1573_v32 }
 0x552   :  { %3218 = vmatprep.subr.bf16.mxu0 %v3057_v3 }
 0x553   :  { %v2540_v55 = vpop.f32.mrf.mxu1  ;;  %2785 = vmatmul.mubr.bf16.vlgmr.msra.gmra.mxu1 %v4019_v27 }
 0x554   :  { %v4051_v56 = vadd.f32 %v2540_v55, %v4039_v50  ;;  %v2581_v53 = vpop.f32.mrf.mxu0  ;;  %2826 = vmatmul.mubr.bf16.vlgmr.msra.gmra.mxu0 %v3996_v17  ;;  %2835 = vmatpush1.bf16.msra.mxu1 %v1765_v43  ;;  %v1566_v43 = vld [vmem:[#allocation23 + $0x3b8] sm:$0xff] }
 0x555   :  { %v4055_v26 = vadd.f32 %v2581_v53, %v4004_v24  ;;  %2866 = vmatprep.mubr.bf16.mxu1 %v3998_v21  ;;  %v2542_v47 = vpop.f32.mrf.mxu1  ;;  %2836 = vmatprep.subr.bf16.mxu1 %v1758_v6  ;;  %v1742_v24 = vunpack.c.l.s8.bf16 %v1534_v51  ;;  %v1526_v21 = vld [vmem:[#allocation23 + $0x278] sm:$0xff]  ;;  %v3045_v6 = vunpack.c.h.s8.bf16 %v3027_v37  ;;  %v1821_v51 = vunpack.c.l.s8.bf16 %v1573_v32  ;;  %v1565_v53 = vld [vmem:[#allocation23 + $0x3b0] sm:$0xff] }
 0x556   :  { %v4059_v44 = vadd.f32 %v2542_v47, %v4047_v35  ;;  %v2583_v10 = vpop.f32.mrf.mxu0  ;;  %v1734_v4 = vunpack.c.h.s8.bf16 %v1526_v21  ;;  %v1733_v35 = vunpack.c.h.s8.bf16 %v1525_v30  ;;  %v1726_v1 = vunpack.c.l.s8.bf16 %v1526_v21  ;;  %3219 = vmatpush3.bf16.msra.mxu0 %v3049_v5  ;;  %v1549_v21 = vld [vmem:[#allocation23 + $0x330] sm:$0xff] }
 0x557   :  { %v4062_v50 = vadd.f32 %v2583_v10, %v4012_v29  ;;  %v2544_v59 = vpop.f32.mrf.mxu1  ;;  %v1518_v29 = vld [vmem:[#allocation23 + $0x238] sm:$0xff]  ;;  %3220 = vmatprep.subr.bf16.mxu0 %v3056_v7  ;;  %v1814_v55 = vunpack.c.h.s8.bf16 %v1566_v43  ;;  %v1806_v47 = vunpack.c.l.s8.bf16 %v1566_v43  ;;  %v1805_v58 = vunpack.c.l.s8.bf16 %v1565_v53 }
 0x558   :  { %v2585_v17 = vpop.f32.mrf.mxu0  ;;  %2837 = vmatpush1.bf16.msra.mxu1 %v1757_v54  ;;  %v1718_v12 = vunpack.c.h.s8.bf16 %v1518_v29  ;;  %v1710_v23 = vunpack.c.l.s8.bf16 %v1518_v29  ;;  %v1813_v54 = vunpack.c.h.s8.bf16 %v1565_v53  ;;  %v1557_v59 = vld [vmem:[#allocation23 + $0x370] sm:$0xff]  ;;  %v1773_v30 = vunpack.c.l.s8.bf16 %v1549_v21  ;;  %v3041_v53 = vld [vmem:[#allocation26 + $0x78] sm:$0xff] }
 0x559   :  { %v2545_v61 = vpop.f32.mrf.mxu1  ;;  %2838 = vmatprep.subr.bf16.mxu1 %v1750_v39  ;;  %v1558_v39 = vld [vmem:[#allocation23 + $0x378] sm:$0xff]  ;;  %v1797_v17 = vunpack.c.h.s8.bf16 %v1557_v59 }
 0x55a   :  { %v2586_v22 = vpop.f32.mrf.mxu0  ;;  %3221 = vmatpush3.bf16.msra.mxu0 %v3048_v8  ;;  %v1798_v10 = vunpack.c.h.s8.bf16 %v1558_v39  ;;  %v1550_v61 = vld [vmem:[#allocation23 + $0x338] sm:$0xff] }
 0x55b   :  { %3222 = vmatprep.subr.bf16.mxu0 %v3055_v20  ;;  %v1782_v22 = vunpack.c.h.s8.bf16 %v1550_v61 }
 0x55c   :  { %2839 = vmatpush1.bf16.msra.mxu1 %v1749_v60  ;;  %v1790_v60 = vunpack.c.l.s8.bf16 %v1558_v39 }
 0x55d   :  { %2840 = vmatprep.subr.bf16.mxu1 %v1742_v24  ;;  %v1789_v24 = vunpack.c.l.s8.bf16 %v1557_v59  ;;  %v3036_v59 = vld [vmem:[#allocation26 + $0x50] sm:$0xff] }
 0x55e   :  { %3223 = vmatpush3.bf16.msra.mxu0 %v3047_v25 }
 0x55f   :  { %3224 = vmatprep.subr.bf16.mxu0 %v3054_v0 }
 0x560   :  { %2841 = vmatpush1.bf16.msra.mxu1 %v1741_v57  ;;  %v1781_v57 = vunpack.c.h.s8.bf16 %v1549_v21  ;;  %v3035_v21 = vld [vmem:[#allocation26 + $0x48] sm:$0xff] }
 0x561   :  { %2842 = vmatprep.subr.bf16.mxu1 %v1734_v4  ;;  %v1774_v4 = vunpack.c.l.s8.bf16 %v1550_v61  ;;  %v3039_v61 = vld [vmem:[#allocation26 + $0x68] sm:$0xff] }
 0x562   :  { %3225 = vmatpush3.bf16.msra.mxu0 %v3046_v33 }
 0x563   :  { %3226 = vmatprep.subr.bf16.mxu0 %v3053_v36  ;;  %v2988_v36 = vrot.slane %v4092_v42, %v3850_v15 }
 0x564   :  { %2843 = vmatpush1.bf16.msra.mxu1 %v1733_v35  ;;  %v4070_v35 = vld [vmem:[%s4160_s16] sm:$0xff] }
 0x565   :  { %2844 = vmatprep.subr.bf16.mxu1 %v1726_v1  ;;  %v4075_v1 = vld [vmem:[%s4161_s17] sm:$0xff]  ;;  %v2880_v29 = vrot.slane %v4070_v35, %v3850_v15  ;;  %v2884_v7 = vrot.slane %v4070_v35, %v3856_v18 }
 0x566   :  { %3227 = vmatpush3.bf16.msra.mxu0 %v3045_v6  ;;  %v2930_v3 = vrot.slane %v4075_v1, %v3850_v15  ;;  %v2934_v20 = vrot.slane %v4075_v1, %v3856_v18  ;;  %v3040_v15 = vld [vmem:[#allocation26 + $0x70] sm:$0xff] }
 0x568   :  { %2845 = vmatpush1.bf16.msra.mxu1 %v1725_v52  ;;  %v3052_v52 = vunpack.c.l.s8.bf16 %v4064_v63 }
 0x569   :  { %2846 = vmatprep.subr.bf16.mxu1 %v1718_v12  ;;  %v3044_v12 = vunpack.c.l.s8.bf16 %v3027_v37  ;;  %v2992_v37 = vrot.slane %v4092_v42, %v3856_v18 }
 0x56a   :  { %3228 = vmatprep.subr.bf16.mxu0 %v3052_v52  ;;  %v2892_v52 = vrot.slane %v4070_v35, %v3859_v19 }
 0x56b   :  { %3229 = vmatpush3.bf16.msra.mxu0 %v3044_v12 }
 0x56c   :  { %2847 = vmatpush1.bf16.msra.mxu1 %v1717_v62  ;;  %v3030_v62 = vld [vmem:[#allocation26 + $0x20] sm:$0xff] }
 0x56d   :  { %2848 = vmatprep.subr.bf16.mxu1 %v1710_v23  ;;  %v3051_v0 = vunpack.c.h.s8.bf16 %v3030_v62 }
 0x56f   :  { %3230 = vmatprep.subr.bf16.mxu0 %v3051_v0 }
 0x570   :  { %2849 = vmatpush1.bf16.msra.mxu1 %v1709_v28  ;;  %v3026_v28 = vld [vmem:[#allocation26] sm:$0xff] }
 0x571   :  { %2850 = vmatprep.subr.bf16.mxu1 %v1830_v31  ;;  %v3042_v43 = vunpack.c.l.s8.bf16 %v3026_v28 }
 0x574   :  { %2851 = vmatpush2.bf16.msra.mxu1 %v1829_v40 }
 0x575   :  { %2852 = vmatprep.subr.bf16.mxu1 %v1822_v46  ;;  %v3050_v46 = vunpack.c.l.s8.bf16 %v3030_v62 }
 0x578   :  { %2853 = vmatpush2.bf16.msra.mxu1 %v1821_v51 }
 0x579   :  { %2854 = vmatprep.subr.bf16.mxu1 %v1814_v55 }
 0x57c   :  { %2855 = vmatpush2.bf16.msra.mxu1 %v1813_v54  ;;  %v3037_v54 = vld [vmem:[#allocation26 + $0x58] sm:$0xff] }
 0x57d   :  { %2856 = vmatprep.subr.bf16.mxu1 %v1806_v47  ;;  %v3073_v47 = vunpack.c.h.s8.bf16 %v3041_v53  ;;  %v3065_v39 = vunpack.c.h.s8.bf16 %v3037_v54  ;;  %v3064_v18 = vunpack.c.l.s8.bf16 %v3037_v54 }
 0x580   :  { %2857 = vmatpush2.bf16.msra.mxu1 %v1805_v58  ;;  %v3072_v58 = vunpack.c.l.s8.bf16 %v3041_v53  ;;  %v2899_v53 = vsub.s32 5, %v3847_v14 }
 0x581   :  { %2858 = vmatprep.subr.bf16.mxu1 %v1798_v10  ;;  %v3071_v10 = vunpack.c.h.s8.bf16 %v3040_v15 }
 0x584   :  { %2859 = vmatpush2.bf16.msra.mxu1 %v1797_v17  ;;  %v3063_v17 = vunpack.c.h.s8.bf16 %v3036_v59 }
 0x585   :  { %2860 = vmatprep.subr.bf16.mxu1 %v1790_v60  ;;  %v3070_v60 = vunpack.c.l.s8.bf16 %v3040_v15  ;;  %v2900_v15 = vrot.slane %v4070_v35, %v2899_v53 }
 0x588   :  { %2861 = vmatpush2.bf16.msra.mxu1 %v1789_v24  ;;  %v3062_v24 = vunpack.c.l.s8.bf16 %v3036_v59 }
 0x589   :  { %2862 = vmatprep.subr.bf16.mxu1 %v1782_v22  ;;  %v3069_v22 = vunpack.c.h.s8.bf16 %v3039_v61 }
 0x58c   :  { %2863 = vmatpush2.bf16.msra.mxu1 %v1781_v57  ;;  %v3061_v57 = vunpack.c.h.s8.bf16 %v3035_v21 }
 0x58d   :  { %2864 = vmatprep.subr.bf16.mxu1 %v1774_v4 }
 0x590   :  { %2865 = vmatpush2.bf16.msra.mxu1 %v1773_v30  ;;  %v2888_v30 = vrot.slane %v4070_v35, %v3853_v16 }
 0x591   :  { %3240 = vmatprep.subr.bf16.mxu1 %v3073_v47 }
 0x593   :  { %v2622_v11 = vpop.f32.mrf.mxu1  ;;  %2867 = vmatmul.mubr.bf16.vlgmr.msra.gmra.mxu1 %v4019_v27 }
 0x594   :  { %v2623_v2 = vadd.f32 %v2622_v11, %v4055_v26  ;;  %v2663_v5 = vpop.f32.mrf.mxu0  ;;  %3241 = vmatpush3.bf16.msra.mxu1 %v3065_v39  ;;  %v2938_v11 = vrot.slane %v4075_v1, %v3853_v16 }
 0x595   :  { %v2624_v9 = vpop.f32.mrf.mxu1  ;;  %3242 = vmatprep.subr.bf16.mxu1 %v3072_v58  ;;  %v2664_v4 = vadd.f32 %v2663_v5, %v4023_v34 }
 0x596   :  { %v2917_v45 = vmul.f32 %v2880_v29, %v2623_v2  ;;  %v2625_v8 = vadd.f32 %v2624_v9, %v4062_v50  ;;  %v2665_v27 = vpop.f32.mrf.mxu0  ;;  %v3043_v50 = vunpack.c.h.s8.bf16 %v3026_v28  ;;  %v3068_v9 = vunpack.c.l.s8.bf16 %v3039_v61 }
 0x597   :  { %v2626_v26 = vpop.f32.mrf.mxu1  ;;  %v2666_v2 = vadd.f32 %v2665_v27, %v4030_v48  ;;  %v3038_v48 = vld [vmem:[#allocation26 + $0x60] sm:$0xff] }
 0x598   :  { %v2967_v23 = vadd.f32 %v2930_v3, %v2917_v45  ;;  %v2918_v41 = vmul.f32 %v2884_v7, %v2625_v8  ;;  %v2667_v25 = vpop.f32.mrf.mxu0  ;;  %3231 = vmatpush3.bf16.msra.mxu0 %v3043_v50  ;;  %3243 = vmatpush3.bf16.msra.mxu1 %v3064_v18  ;;  %v3060_v8 = vunpack.c.l.s8.bf16 %v3035_v21  ;;  %v2942_v26 = vrot.slane %v4075_v1, %v3859_v19 }
 0x599   :  { %v2627_v63 = vpop.f32.mrf.mxu1  ;;  %3232 = vmatprep.subr.bf16.mxu0 %v3050_v46  ;;  %3244 = vmatprep.subr.bf16.mxu1 %v3071_v10  ;;  %v2996_v25 = vrot.slane %v4092_v42, %v3853_v16  ;;  %v3067_v0 = vunpack.c.h.s8.bf16 %v3038_v48 }
 0x59a   :  { %v2975_v31 = vmax.f32 %v2967_v23, 0.0  ;;  %v2968_v32 = vadd.f32 %v2934_v20, %v2918_v41  ;;  %v2668_v33 = vpop.f32.mrf.mxu0 }
 0x59b   :  { %v3000_v33 = vrot.slane %v4092_v42, %v3859_v19 }
 0x59c   :  { %v2976_v40 = vmax.f32 %v2968_v32, 0.0  ;;  %v3005_v6 = vmul.f32 %v2988_v36, %v2975_v31  ;;  %3233 = vmatpush3.bf16.msra.mxu0 %v3042_v43  ;;  %3245 = vmatpush3.bf16.msra.mxu1 %v3063_v17  ;;  %v2950_v17 = vrot.slane %v4075_v1, %v2899_v53 }
 0x59d   :  { %3246 = vmatprep.subr.bf16.mxu1 %v3070_v60 }
 0x59e   :  { %v3006_v51 = vmul.f32 %v2992_v37, %v2976_v40  ;;  %v3066_v40 = vunpack.c.l.s8.bf16 %v3038_v48 }
 0x5a0   :  { %v4098_v55 = vadd.f32 %v3006_v51, %v3005_v6  ;;  %3247 = vmatpush3.bf16.msra.mxu1 %v3062_v24  ;;  %v2895_v51 = vsub.s32 4, %v3847_v14 }
 0x5a1   :  { %3248 = vmatprep.subr.bf16.mxu1 %v3069_v22 }
 0x5a2   :  { %v2896_v54 = vrot.slane %v4070_v35, %v2895_v51  ;;  %v2946_v39 = vrot.slane %v4075_v1, %v2895_v51  ;;  %v3217_v51 = vld [vmem:[%s4166_s22] ss:$0 sm:$0xff] }
 0x5a4   :  { %3249 = vmatpush3.bf16.msra.mxu1 %v3061_v57 }
 0x5a5   :  { %3250 = vmatprep.subr.bf16.mxu1 %v3068_v9 }
 0x5a8   :  { %3251 = vmatpush3.bf16.msra.mxu1 %v3060_v8 }
 0x5a9   :  { %3252 = vmatprep.subr.bf16.mxu1 %v3067_v0 }
 0x5d3   :  { %v2704_v29 = vpop.f32.mrf.mxu1 }
 0x5d4   :  { %v2705_v3 = vadd.f32 %v2704_v29, %v2664_v4  ;;  %v2745_v7 = vpop.f32.mrf.mxu0 }
 0x5d5   :  { %v2746_v12 = vadd.f32 %v2745_v7, %v4037_v49  ;;  %v2706_v45 = vpop.f32.mrf.mxu1  ;;  %v3034_v49 = vld [vmem:[#allocation26 + $0x40] sm:$0xff] }
 0x5d6   :  { %v2919_v34 = vmul.f32 %v2888_v30, %v2705_v3  ;;  %v2707_v5 = vadd.f32 %v2706_v45, %v2666_v2  ;;  %v2747_v20 = vpop.f32.mrf.mxu0  ;;  %v3059_v63 = vunpack.c.h.s8.bf16 %v3034_v49  ;;  %v3058_v46 = vunpack.c.l.s8.bf16 %v3034_v49 }
 0x5d7   :  { %v2708_v62 = vpop.f32.mrf.mxu1  ;;  %v2748_v42 = vadd.f32 %v2747_v20, %v4044_v38  ;;  %v2907_v3 = vsub.s32 7, %v3847_v14 }
 0x5d8   :  { %v2969_v27 = vadd.f32 %v2938_v11, %v2919_v34  ;;  %v2920_v23 = vmul.f32 %v2892_v52, %v2707_v5  ;;  %v2749_v41 = vpop.f32.mrf.mxu0  ;;  %3253 = vmatpush3.bf16.msra.mxu1 %v3059_v63 }
 0x5d9   :  { %v2709_v28 = vpop.f32.mrf.mxu1  ;;  %3254 = vmatprep.subr.bf16.mxu1 %v3066_v40  ;;  %v2908_v8 = vrot.slane %v4070_v35, %v2907_v3  ;;  %v3216_v40 = vld [vmem:[%s4165_s21] ss:$0 sm:$0xff]  ;;  %s3649_s21 = smov [#allocation27]  }
 0x5da   :  { %v2977_v50 = vmax.f32 %v2969_v27, 0.0  ;;  %v2750_v31 = vpop.f32.mrf.mxu0  ;;  %v2970_v32 = vadd.f32 %v2942_v26, %v2920_v23  ;;  %v2958_v26 = vrot.slane %v4075_v1, %v2907_v3  ;;  %s3195_s4 = sshll.u32 %s3649_s21, 4  ;;  %s3196_s4 = int_to_ptr.vmem [resolvable:$true] %s3195_s4 }
 0x5db   :  { %s3589_s22 = scalar_lea.vmem %s3196_s4, 128  ;;  %p3594_p6 = scmp.lt.s32.totalorder %s3196_s4, %s3196_s4 }
 0x5dc   :  { %v2978_v36 = vmax.f32 %v2970_v32, 0.0  ;;  %v3007_v37 = vmul.f32 %v2996_v25, %v2977_v50  ;;  %3255 = vmatpush3.bf16.msra.mxu1 %v3058_v46  ;;  %p3590_p5 = scmp.ne.s32.totalorder %s3196_s4, %s3589_s22  ;;  %p3595_p7 = scmp.lt.s32.totalorder %s3589_s22, %s3589_s22 }
 0x5de   :  { %v3008_v43 = vmul.f32 %v3000_v33, %v2978_v36  ;;  %v3010_v6 = vadd.f32 %v4098_v55, %v3007_v37  ;;  %p3596_p8 = por %p3595_p7, %p3594_p6 }
 0x5e0   :  { %v3011_v16 = vadd.f32 %v3010_v6, %v3008_v43  ;;  %v3171_v43 = vand.u32 127, %v390_v13  ;;  %p3597_p9 = pnand %p3596_p8, %p3590_p5 }
 0x5e2   :  { %3012 = vadd.xlane.f32.xlu0 %v3011_v16  ;;  %vm3172_vm2 = vcmp.lt.s32.totalorder %v3171_v43, 8 }
 0x613   :  { %v2786_v19 = vpop.f32.mrf.mxu1 }
 0x614   :  { %v2787_v47 = vadd.f32 %v2786_v19, %v2746_v12  ;;  %v2827_v58 = vpop.f32.mrf.mxu0 }
 0x615   :  { %v2828_v55 = vadd.f32 %v2827_v58, %v4051_v56  ;;  %v2788_v18 = vpop.f32.mrf.mxu1  ;;  %v2903_v56 = vsub.s32 6, %v3847_v14 }
 0x616   :  { %v2921_v10 = vmul.f32 %v2896_v54, %v2787_v47  ;;  %v2789_v59 = vadd.f32 %v2788_v18, %v2748_v42  ;;  %v2829_v60 = vpop.f32.mrf.mxu0 }
 0x617   :  { %v2790_v61 = vpop.f32.mrf.mxu1  ;;  %v2904_v7 = vrot.slane %v4070_v35, %v2903_v56  ;;  %v2830_v9 = vadd.f32 %v2829_v60, %v4059_v44  ;;  %v2954_v45 = vrot.slane %v4075_v1, %v2903_v56  ;;  %v3215_v44 = vld [vmem:[#allocation2] ss:$0 sm:$0xff] }
 0x618   :  { %v2971_v24 = vadd.f32 %v2946_v39, %v2921_v10  ;;  %v2922_v22 = vmul.f32 %v2900_v15, %v2789_v59  ;;  %v2831_v21 = vpop.f32.mrf.mxu0 }
 0x619   :  { %v2791_v57 = vpop.f32.mrf.mxu1 }
 0x61a   :  { %v2972_v38 = vadd.f32 %v2950_v17, %v2922_v22  ;;  %v2832_v4 = vpop.f32.mrf.mxu0  ;;  %v2979_v30 = vmax.f32 %v2971_v24, 0.0 }
 0x61c   :  { %v2980_v29 = vmax.f32 %v2972_v38, 0.0  ;;  %v3022_v2 = vpack.c.bf16 %v2979_v30, %v2979_v30 }
 0x61e   :  { %v3023_v11 = vpack.c.bf16 %v2980_v29, %v2980_v29 }
 0x620   :  { %3106 = vmatprep.mubr.bf16.mxu0 %v3023_v11 }
 0x621   :  { %3107 = vmatmul.mubr.bf16.vlgmr.msra.gmra.mxu0 %v3022_v2 }
 0x653   :  { %v2868_v52 = vpop.f32.mrf.mxu1 }
 0x654   :  { %v2869_v12 = vadd.f32 %v2868_v52, %v2828_v55 }
 0x655   :  { %v2870_v34 = vpop.f32.mrf.mxu1 }
 0x656   :  { %v2923_v5 = vmul.f32 %v2904_v7, %v2869_v12  ;;  %v2871_v20 = vadd.f32 %v2870_v34, %v2830_v9 }
 0x657   :  { %v2872_v62 = vpop.f32.mrf.mxu1 }
 0x658   :  { %v2973_v48 = vadd.f32 %v2954_v45, %v2923_v5  ;;  %v2924_v27 = vmul.f32 %v2908_v8, %v2871_v20 }
 0x659   :  { %v2873_v23 = vpop.f32.mrf.mxu1 }
 0x65a   :  { %v2974_v14 = vadd.f32 %v2958_v26, %v2924_v27  ;;  %v2981_v41 = vmax.f32 %v2973_v48, 0.0 }
 0x65c   :  { %v2982_v25 = vmax.f32 %v2974_v14, 0.0  ;;  %v3024_v49 = vpack.c.bf16 %v2981_v41, %v2981_v41 }
 0x65e   :  { %v3025_v0 = vpack.c.bf16 %v2982_v25, %v2982_v25 }
 0x660   :  { %3146 = vmatprep.mubr.bf16.mxu1 %v3025_v0 }
 0x661   :  { %3147 = vmatmul.mubr.bf16.vlgmr.msra.gmra.mxu1 %v3024_v49 }
 0x66b   :  { %v3013_v28 = vpop.xlane.xlu0 %3012 }
 0x66c   :  { %v3021_v63 = vadd.f32 %v3215_v44, %v3013_v28 }
 0x66e   :  { %3183 = vperm.xlu1 %3285, %v3021_v63  }
 0x6e1   :  { %v3234_v35 = vpop.f32.mrf.mxu0 }
 0x6e3   :  { %v3235_v50 = vpop.f32.mrf.mxu0 }
 0x6e4   :  { %v3236_v31 = vadd.f32 %v3235_v50, %v3234_v35 }
 0x6e5   :  { %v3237_v32 = vpop.f32.mrf.mxu0 }
 0x6e7   :  { %v3238_v1 = vpop.f32.mrf.mxu0 }
 0x6e9   :  { %v3184_v55 = vpop.permute.xlu1 %3183 }
 0x721   :  { %v3256_v33 = vpop.f32.mrf.mxu1 }
 0x723   :  { %v3257_v36 = vpop.f32.mrf.mxu1 }
 0x724   :  { %v3258_v37 = vadd.f32 %v3257_v36, %v3256_v33 }
 0x725   :  { %v3259_v46 = vpop.f32.mrf.mxu1 }
 0x726   :  { %v3149_v6 = vadd.f32 %v3258_v37, %v3236_v31 }
 0x727   :  { %v3260_v16 = vpop.f32.mrf.mxu1 }
 0x728   :  { %v3161_v53 = vmul.f32 %v3216_v40, %v3149_v6 }
 0x72a   :  { %v3169_v54 = vadd.f32 %v3217_v51, %v3161_v53 }
 0x72c   :  { %v3173_v19 = vsel %vm3172_vm2, %v3169_v54, -inf  ;;  %v3176_v42 = vand.u32 2147483647, %v3169_v54 }
 0x72d   :  { %3174 = vmax.xlane.f32.xlu0 %v3173_v19 }
 0x72e   :  { %v3177_v47 = vsel %vm3172_vm2, %v3176_v42, 1.0 }
 0x72f   :  { %3287 = vrcp.f32 %v3177_v47 }
 0x73c   :  { %v3288_v39 = vpop.eup %3287 }
 0x7b6   :  { %v3175_v58 = vpop.xlane.xlu0 %3174 }
 0x7b7   :  { %v3179_v15 = vmul.f32 %v3288_v39, %v3175_v58 }
 0x7b9   :  { %v3180_v13 = vsub.f32 %v3169_v54, %v3179_v15 }
 0x7bb   :  { %v3186_v18 = vadd.f32 %v3184_v55, %v3180_v13 }
 0x7bd   :  { %v3187_v10 = vsel %vm3172_vm2, %v3186_v18, 0.0 }
 0x7be   :  { %3188 = vst [vmem:[#allocation27] sm:$0xff] %v3187_v10 }
 0x7bf   :  { %3600 = shalt.err (!%p3597_p9)
}
 0x7c0   :  { %3198 = dma.vmem_to_hbm [thread:$0]  %s3196_s4, 128, %s4167_s23, [#allocation5]  }
 0x7c1   :  { %3625 = dma.done.wait [#allocation5], 128  }
 0x7c2   :  { %3626 = vsyncadd [#allocation5], 4294967168 }
 0x7c3   :  { %3202 = vsyncpa [#allocation4], 1 }
 0x7c4   :  { %3203 = vsyncpa [#allocation7], 1 }
 0x7c5   :  { %3204 = vsyncpa [#allocation10], 1 }
 0x7c6   :  { %3205 = vsyncpa [#allocation13], 1 }
 0x7c7   :  { %3206 = vsyncpa [#allocation16], 1 }
 0x7c8   :  { %3207 = vsyncpa [#allocation19], 1 }
 0x7c9   :  { %3208 = vsyncpa [#allocation22], 1 }
 0x7ca   :  { %3209 = vsyncpa [#allocation25], 1 }
 0x7cb   :  { %3210 = vsyncpa [#allocation5], 1 }

</bundles_post_ra>
